<compile_context>
chip_gen: v7x
topology: tpu7x:2x2x1
jax: 0.10.0
libtpu: 0.0.40
codegen_flags: <defaults>
</compile_context>

<pallas_src>
import math
from functools import partial

import jax
import jax.numpy as jnp
from jax import lax
from jax.experimental import pallas as pl
from jax.experimental.pallas import tpu as pltpu

# ---- model hyperparameters (from the PyTorch spec) -------------------------
D_MODEL = 64
NHEAD = 32
HEAD_DIM = D_MODEL // NHEAD          # = 2
NUM_LAYERS = 5
DIM_FF = 4096
DROPOUT_P = 0.01
MAX_LEN = 5000
LN_EPS = 1e-5


# ---- tiling helpers ---------------------------------------------------------
def _pick_row_tile(rows: int, max_tile: int = 256) -> int:
    """Largest multiple-of-8 divisor of `rows` <= max_tile (or `rows` itself)."""
    if rows <= max_tile:
        return rows
    for t in range(max_tile, 7, -8):
        if rows % t == 0:
            return t
    return rows


def _rowwise_call(kernel_fn, row_inputs, const_inputs, out_cols, *,
                  out_dtype=jnp.float32, max_tile=256, vmem_limit=None, cost=None):
    """Shared row-tiled pallas_call: row_inputs are [M, C_i] (tiled over rows),
    const_inputs are small weight/bias matrices held as constant-index blocks."""
    M = row_inputs[0].shape[0]
    tm = _pick_row_tile(M, max_tile)
    in_specs = []
    for a in row_inputs:
        in_specs.append(pl.BlockSpec((tm, a.shape[1]), lambda i: (i, 0)))
    for c in const_inputs:
        in_specs.append(pl.BlockSpec(c.shape, lambda i: (0, 0)))
    cp = dict(dimension_semantics=("parallel",))
    if vmem_limit is not None:
        cp["vmem_limit_bytes"] = int(vmem_limit)
    return pl.pallas_call(
        kernel_fn,
        out_shape=jax.ShapeDtypeStruct((M, out_cols), out_dtype),
        grid=(M // tm,),
        in_specs=in_specs,
        out_specs=pl.BlockSpec((tm, out_cols), lambda i: (i, 0)),
        compiler_params=pltpu.CompilerParams(**cp),
        cost_estimate=cost,
    )(*row_inputs, *const_inputs)


# ---- in-kernel helpers -------------------------------------------------------
def _softsign(x):
    return x / (1.0 + jnp.abs(x))


def _layernorm(z, g, b, eps):
    mean = jnp.mean(z, axis=-1, keepdims=True)
    c = z - mean
    var = jnp.mean(c * c, axis=-1, keepdims=True)
    return (c * lax.rsqrt(var + eps)) * g + b


# ---- kernels -----------------------------------------------------------------
def _embed_kernel(src_ref, pe_ref, w_ref, b_ref, o_ref):
    # fused: linear_in + learnable positional-encoding add
    y = jnp.dot(src_ref[...], w_ref[...], preferred_element_type=jnp.float32)
    o_ref[...] = (y + b_ref[...] + pe_ref[...]).astype(o_ref.dtype)


def _linear_kernel(x_ref, w_ref, b_ref, o_ref):
    y = jnp.dot(x_ref[...], w_ref[...], preferred_element_type=jnp.float32)
    o_ref[...] = (y + b_ref[...]).astype(o_ref.dtype)


def _outproj_add_ln_kernel(attn_ref, res_ref, wo_ref, bo_ref, g_ref, beta_ref,
                           o_ref, *, eps):
    # fused: attention output projection + residual add + LayerNorm1
    sa = jnp.dot(attn_ref[...], wo_ref[...],
                 preferred_element_type=jnp.float32) + bo_ref[...]
    # TODO(synk): torch's post-attention dropout (p=0.01) is eval-mode identity here.
    z = res_ref[...] + sa
    o_ref[...] = _layernorm(z, g_ref[...], beta_ref[...], eps).astype(o_ref.dtype)


def _ffn_add_ln_kernel(x_ref, w1_ref, b1_ref, w2_ref, b2_ref, g_ref, beta_ref,
                       o_ref, *, eps):
    # fused: linear1 -> relu -> linear2 -> residual add -> LayerNorm2
    x = x_ref[...]
    h = jnp.dot(x, w1_ref[...], preferred_element_type=jnp.float32) + b1_ref[...]
    h = jnp.maximum(h, 0.0)
    # TODO(synk): torch's FFN dropouts (p=0.01) are eval-mode identity here.
    ff = jnp.dot(h, w2_ref[...], preferred_element_type=jnp.float32) + b2_ref[...]
    z = x + ff
    o_ref[...] = _layernorm(z, g_ref[...], beta_ref[...], eps).astype(o_ref.dtype)


def _mha_core_kernel(q_ref, k_ref, v_ref, o_ref, *, scale):
    q = q_ref[...] * scale
    s = jnp.einsum("bqd,bkd->bqk", q, k_ref[...], preferred_element_type=jnp.float32)
    m = jnp.max(s, axis=-1, keepdims=True)
    e = jnp.exp(s - m)
    p = e / jnp.sum(e, axis=-1, keepdims=True)
    # TODO(synk): attention-probability dropout (p=0.01) is eval-mode identity here.
    o_ref[...] = jnp.einsum("bqk,bkd->bqd", p, v_ref[...],
                            preferred_element_type=jnp.float32).astype(o_ref.dtype)


def _head_kernel(*refs, training, p):
    # fused: softsign(mid1) [-> dropout] -> softsign(mid2) -> softsign(mid3) -> out
    if training:
        (x_ref, u_ref, w1, b1, w2, b2, w3, b3, wo, bo, o_ref) = refs
    else:
        (x_ref, w1, b1, w2, b2, w3, b3, wo, bo, o_ref) = refs
    y = _softsign(jnp.dot(x_ref[...], w1[...],
                          preferred_element_type=jnp.float32) + b1[...])
    if training:
        # TODO(synk): torch.nn.Dropout's RNG stream cannot be reproduced bit-exactly;
        # the mask comes from a jax.random uniform slab computed in the wrapper.
        scale = 1.0 / (1.0 - p)
        y = y * jnp.where(u_ref[...] >= p, scale, 0.0)
    y = _softsign(jnp.dot(y, w2[...], preferred_element_type=jnp.float32) + b2[...])
    y = _softsign(jnp.dot(y, w3[...], preferred_element_type=jnp.float32) + b3[...])
    y = jnp.dot(y, wo[...], preferred_element_type=jnp.float32) + bo[...]
    o_ref[...] = y.astype(o_ref.dtype)


# ---- wrappers ----------------------------------------------------------------
def embed(src2d, pe2d, w_in, b_in):
    return _rowwise_call(_embed_kernel, [src2d, pe2d],
                         [w_in, b_in.reshape(1, -1)], D_MODEL)


def qkv_proj(x2d, wqkv, bqkv):
    return _rowwise_call(_linear_kernel, [x2d],
                         [wqkv, bqkv.reshape(1, -1)], 3 * D_MODEL)


def attention_core(qh, kh, vh):
    bh, S, hd = qh.shape
    spec = pl.BlockSpec((bh, S, hd), lambda i: (0, 0, 0))
    return pl.pallas_call(
        partial(_mha_core_kernel, scale=1.0 / math.sqrt(HEAD_DIM)),
        out_shape=jax.ShapeDtypeStruct((bh, S, hd), jnp.float32),
        grid=(1,),
        in_specs=[spec, spec, spec],
        out_specs=spec,
        compiler_params=pltpu.CompilerParams(dimension_semantics=("arbitrary",)),
    )(qh, kh, vh)


def outproj_add_ln(attn2d, res2d, wo, bo, g, b):
    return _rowwise_call(partial(_outproj_add_ln_kernel, eps=LN_EPS),
                         [attn2d, res2d],
                         [wo, bo.reshape(1, -1), g.reshape(1, -1), b.reshape(1, -1)],
                         D_MODEL)


def ffn_add_ln(x2d, w1, b1, w2, b2, g, b):
    M, D = x2d.shape
    tm = _pick_row_tile(M, 256)
    const_bytes = 4 * (w1.size + w2.size + b1.size + b2.size + g.size + b.size)
    tile_bytes = 4 * tm * (3 * D + DIM_FF)
    vmem = min(2 * const_bytes + 2 * tile_bytes + (4 << 20), 48 << 20)
    cost = pl.CostEstimate(
        flops=2 * M * D * DIM_FF * 2 + 12 * M * D,
        transcendentals=0,
        bytes_accessed=const_bytes + 4 * 2 * M * D)
    return _rowwise_call(partial(_ffn_add_ln_kernel, eps=LN_EPS),
                         [x2d],
                         [w1, b1.reshape(1, -1), w2, b2.reshape(1, -1),
                          g.reshape(1, -1), b.reshape(1, -1)],
                         D_MODEL, vmem_limit=vmem, cost=cost)


def head_mlp(x2d, params, u=None, training=False):
    consts = [params["w_mid1"], params["b_mid1"].reshape(1, -1),
              params["w_mid2"], params["b_mid2"].reshape(1, -1),
              params["w_mid3"], params["b_mid3"].reshape(1, -1),
              params["w_out"], params["b_out"].reshape(1, -1)]
    kern = partial(_head_kernel, training=training, p=float(DROPOUT_P))
    row_inputs = [x2d] + ([u] if training else [])
    return _rowwise_call(kern, row_inputs, consts, 1)


def multi_head_attention(x2d, B, S, p):
    qkv = qkv_proj(x2d, p["wqkv"], p["bqkv"])              # [B*S, 3*D]
    q, k, v = jnp.split(qkv, 3, axis=-1)

    def to_heads(t):                                        # JAX glue (layout only)
        return (t.reshape(B, S, NHEAD, HEAD_DIM)
                 .transpose(0, 2, 1, 3)
                 .reshape(B * NHEAD, S, HEAD_DIM))

    attn = attention_core(to_heads(q), to_heads(k), to_heads(v))
    return (attn.reshape(B, NHEAD, S, HEAD_DIM)
                .transpose(0, 2, 1, 3)
                .reshape(B * S, D_MODEL))


def encoder_layer(x2d, B, S, p):
    attn2d = multi_head_attention(x2d, B, S, p)
    x2d = outproj_add_ln(attn2d, x2d, p["wo"], p["bo"], p["ln1_g"], p["ln1_b"])
    x2d = ffn_add_ln(x2d, p["w1"], p["b1"], p["w2"], p["b2"], p["ln2_g"], p["ln2_b"])
    return x2d


# ---- full model forward ------------------------------------------------------
def transformer_model_forward(params, src, *, training=False, dropout_key=None):
    B, S, F = src.shape
    M = B * S
    # Learnable positional encoding, added per sequence position.
    # TODO(synk): the original code indexes pe with arange(x.size(0)); with
    # batch_first inputs that indexes by batch — we use the intended
    # per-sequence-position semantics here.
    pe = params["pe"][:S]                                                # [S, D]
    pe2d = jnp.broadcast_to(pe[None, :, :], (B, S, D_MODEL)).reshape(M, D_MODEL)

    x = embed(src.reshape(M, F), pe2d, params["w_in"], params["b_in"])   # [M, D]

    for layer_p in params["layers"]:
        x = encoder_layer(x, B, S, layer_p)

    u = None
    if training:
        if dropout_key is None:
            dropout_key = jax.random.PRNGKey(0)
        u = jax.random.uniform(dropout_key, (M, D_MODEL), jnp.float32)
    x = head_mlp(x, params, u, training)                                 # [M, 1]
    return x.reshape(B, S, 1)


# ---- parameter construction (glue, plain JAX) --------------------------------
def init_params(key, input_features):
    ks = jax.random.split(key, 8 + NUM_LAYERS)

    def lin(k, fan_in, fan_out):
        kw, kb = jax.random.split(k)
        bound = 1.0 / math.sqrt(fan_in)
        w = jax.random.uniform(kw, (fan_in, fan_out), jnp.float32, -bound, bound)
        b = jax.random.uniform(kb, (fan_out,), jnp.float32, -bound, bound)
        return w, b

    params = {}
    params["w_in"], params["b_in"] = lin(ks[0], input_features, D_MODEL)
    params["pe"] = 0.02 * jax.random.normal(ks[1], (MAX_LEN, D_MODEL), jnp.float32)

    layers = []
    for i in range(NUM_LAYERS):
        kl = jax.random.split(ks[2 + i], 4)
        wqkv, bqkv = lin(kl[0], D_MODEL, 3 * D_MODEL)
        wo, bo = lin(kl[1], D_MODEL, D_MODEL)
        w1, b1 = lin(kl[2], D_MODEL, DIM_FF)
        w2, b2 = lin(kl[3], DIM_FF, D_MODEL)
        layers.append(dict(
            wqkv=wqkv, bqkv=bqkv, wo=wo, bo=bo, w1=w1, b1=b1, w2=w2, b2=b2,
            ln1_g=jnp.ones((D_MODEL,), jnp.float32),
            ln1_b=jnp.zeros((D_MODEL,), jnp.float32),
            ln2_g=jnp.ones((D_MODEL,), jnp.float32),
            ln2_b=jnp.zeros((D_MODEL,), jnp.float32)))
    params["layers"] = layers

    params["w_mid1"], params["b_mid1"] = lin(ks[2 + NUM_LAYERS], D_MODEL, D_MODEL)
    params["w_mid2"], params["b_mid2"] = lin(ks[3 + NUM_LAYERS], D_MODEL, D_MODEL)
    params["w_mid3"], params["b_mid3"] = lin(ks[4 + NUM_LAYERS], D_MODEL, D_MODEL)
    params["w_out"], params["b_out"] = lin(ks[5 + NUM_LAYERS], D_MODEL, 1)
    return params


if __name__ == "__main__":
    # Small shapes consistent with the module: batch=2, seq=8, input_features=16.
    B, S, F = 2, 8, 16
    key = jax.random.PRNGKey(0)
    pkey, xkey = jax.random.split(key)
    params = init_params(pkey, F)
    src = jax.random.normal(xkey, (B, S, F), dtype=jnp.float32)

    fwd = jax.jit(lambda p, s: transformer_model_forward(p, s, training=False))
    out = fwd(params, src)
    out = jax.block_until_ready(out)

    assert out.shape == (B, S, 1)
    assert out.dtype == jnp.float32
    assert bool(jnp.all(jnp.isfinite(out)))
    print("KERNEL_OK")
</pallas_src>

<mosaic_0001>
module attributes {stable_mosaic.version = 11 : i64} {
  func.func @_embed_kernel(%arg0: i32, %arg1: memref<16x16xf32, #tpu.memory_space<vmem>>, %arg2: memref<16x64xf32, #tpu.memory_space<vmem>>, %arg3: memref<16x64xf32, #tpu.memory_space<vmem>>, %arg4: memref<1x64xf32, #tpu.memory_space<vmem>>, %arg5: memref<16x64xf32, #tpu.memory_space<vmem>>) attributes {dimension_semantics = [#tpu.dimension_semantics<parallel>], iteration_bounds = array<i64: 1>, scalar_prefetch = 0 : i64, scratch_operands = 0 : i64, tpu.core_type = #tpu.core_type<tc>, window_params = [{transform_indices = @transform_0, window_bounds = array<i64: 16, 16>}, {transform_indices = @transform_1, window_bounds = array<i64: 16, 64>}, {pipeline_mode = #tpu.pipeline_mode<synchronous>, transform_indices = @transform_2, window_bounds = array<i64: 16, 64>}, {pipeline_mode = #tpu.pipeline_mode<synchronous>, transform_indices = @transform_3, window_bounds = array<i64: 1, 64>}, {transform_indices = @transform_4, window_bounds = array<i64: 16, 64>}]} {
    %c0 = arith.constant 0 : index
    %c0_0 = arith.constant 0 : index
    %0 = vector.load %arg1[%c0, %c0_0] : memref<16x16xf32, #tpu.memory_space<vmem>>, vector<16x16xf32>
    %c0_1 = arith.constant 0 : index
    %c0_2 = arith.constant 0 : index
    %1 = vector.load %arg3[%c0_1, %c0_2] : memref<16x64xf32, #tpu.memory_space<vmem>>, vector<16x64xf32>
    %cst = arith.constant dense<0.000000e+00> : vector<16x64xf32>
    %2 = tpu.matmul %0, %1, %cst {dimension_numbers = #tpu.dot_dimension_numbers<[1], [0], [0], [1], [0, 0, 1, 1], [], []>} : vector<16x16xf32>, vector<16x64xf32>, vector<16x64xf32> -> vector<16x64xf32>
    %c0_3 = arith.constant 0 : index
    %c0_4 = arith.constant 0 : index
    %3 = vector.load %arg4[%c0_3, %c0_4] : memref<1x64xf32, #tpu.memory_space<vmem>>, vector<1x64xf32>
    %4 = vector.broadcast %3 : vector<1x64xf32> to vector<16x64xf32>
    %5 = arith.addf %2, %4 : vector<16x64xf32>
    %c0_5 = arith.constant 0 : index
    %c0_6 = arith.constant 0 : index
    %6 = vector.load %arg2[%c0_5, %c0_6] : memref<16x64xf32, #tpu.memory_space<vmem>>, vector<16x64xf32>
    %7 = arith.addf %5, %6 : vector<16x64xf32>
    %c0_7 = arith.constant 0 : index
    %c0_8 = arith.constant 0 : index
    %8 = vector.load %arg5[%c0_7, %c0_8] : memref<16x64xf32, #tpu.memory_space<vmem>>, vector<16x64xf32>
    tpu.vector_store %arg5[%c0_7, %c0_8], %7 {strides = array<i32>} : memref<16x64xf32, #tpu.memory_space<vmem>>, vector<16x64xf32>,
    return
  }
  func.func @transform_0(%arg0: i32) -> (i32, i32) {
    %c0_i32 = arith.constant 0 : i32
    %c0_i32_0 = arith.constant 0 : i32
    return %arg0, %c0_i32 : i32, i32
  }
  func.func @transform_1(%arg0: i32) -> (i32, i32) {
    %c0_i32 = arith.constant 0 : i32
    %c0_i32_0 = arith.constant 0 : i32
    return %arg0, %c0_i32 : i32, i32
  }
  func.func @transform_2(%arg0: i32) -> (i32, i32) {
    %c0_i32 = arith.constant 0 : i32
    %c0_i32_0 = arith.constant 0 : i32
    %c0_i32_1 = arith.constant 0 : i32
    return %c0_i32, %c0_i32_0 : i32, i32
  }
  func.func @transform_3(%arg0: i32) -> (i32, i32) {
    %c0_i32 = arith.constant 0 : i32
    %c0_i32_0 = arith.constant 0 : i32
    %c0_i32_1 = arith.constant 0 : i32
    return %c0_i32, %c0_i32_0 : i32, i32
  }
  func.func @transform_4(%arg0: i32) -> (i32, i32) {
    %c0_i32 = arith.constant 0 : i32
    %c0_i32_0 = arith.constant 0 : i32
    return %arg0, %c0_i32 : i32, i32
  }
}

module attributes {stable_mosaic.version = 11 : i64} {
  func.func @_linear_kernel(%arg0: i32, %arg1: memref<16x64xf32, #tpu.memory_space<vmem>>, %arg2: memref<64x192xf32, #tpu.memory_space<vmem>>, %arg3: memref<1x192xf32, #tpu.memory_space<vmem>>, %arg4: memref<16x192xf32, #tpu.memory_space<vmem>>) attributes {dimension_semantics = [#tpu.dimension_semantics<parallel>], iteration_bounds = array<i64: 1>, scalar_prefetch = 0 : i64, scratch_operands = 0 : i64, tpu.core_type = #tpu.core_type<tc>, window_params = [{transform_indices = @transform_0, window_bounds = array<i64: 16, 64>}, {pipeline_mode = #tpu.pipeline_mode<synchronous>, transform_indices = @transform_1, window_bounds = array<i64: 64, 192>}, {pipeline_mode = #tpu.pipeline_mode<synchronous>, transform_indices = @transform_2, window_bounds = array<i64: 1, 192>}, {transform_indices = @transform_3, window_bounds = array<i64: 16, 192>}]} {
    %c0 = arith.constant 0 : index
    %c0_0 = arith.constant 0 : index
    %0 = vector.load %arg1[%c0, %c0_0] : memref<16x64xf32, #tpu.memory_space<vmem>>, vector<16x64xf32>
    %c0_1 = arith.constant 0 : index
    %c0_2 = arith.constant 0 : index
    %1 = vector.load %arg2[%c0_1, %c0_2] : memref<64x192xf32, #tpu.memory_space<vmem>>, vector<64x192xf32>
    %cst = arith.constant dense<0.000000e+00> : vector<16x192xf32>
    %2 = tpu.matmul %0, %1, %cst {dimension_numbers = #tpu.dot_dimension_numbers<[1], [0], [0], [1], [0, 0, 1, 1], [], []>} : vector<16x64xf32>, vector<64x192xf32>, vector<16x192xf32> -> vector<16x192xf32>
    %c0_3 = arith.constant 0 : index
    %c0_4 = arith.constant 0 : index
    %3 = vector.load %arg3[%c0_3, %c0_4] : memref<1x192xf32, #tpu.memory_space<vmem>>, vector<1x192xf32>
    %4 = vector.broadcast %3 : vector<1x192xf32> to vector<16x192xf32>
    %5 = arith.addf %2, %4 : vector<16x192xf32>
    %c0_5 = arith.constant 0 : index
    %c0_6 = arith.constant 0 : index
    %6 = vector.load %arg4[%c0_5, %c0_6] : memref<16x192xf32, #tpu.memory_space<vmem>>, vector<16x192xf32>
    tpu.vector_store %arg4[%c0_5, %c0_6], %5 {strides = array<i32>} : memref<16x192xf32, #tpu.memory_space<vmem>>, vector<16x192xf32>,
    return
  }
  func.func @transform_0(%arg0: i32) -> (i32, i32) {
    %c0_i32 = arith.constant 0 : i32
    %c0_i32_0 = arith.constant 0 : i32
    return %arg0, %c0_i32 : i32, i32
  }
  func.func @transform_1(%arg0: i32) -> (i32, i32) {
    %c0_i32 = arith.constant 0 : i32
    %c0_i32_0 = arith.constant 0 : i32
    %c0_i32_1 = arith.constant 0 : i32
    return %c0_i32, %c0_i32_0 : i32, i32
  }
  func.func @transform_2(%arg0: i32) -> (i32, i32) {
    %c0_i32 = arith.constant 0 : i32
    %c0_i32_0 = arith.constant 0 : i32
    %c0_i32_1 = arith.constant 0 : i32
    return %c0_i32, %c0_i32_0 : i32, i32
  }
  func.func @transform_3(%arg0: i32) -> (i32, i32) {
    %c0_i32 = arith.constant 0 : i32
    %c0_i32_0 = arith.constant 0 : i32
    return %arg0, %c0_i32 : i32, i32
  }
}

module attributes {stable_mosaic.version = 11 : i64} {
  func.func @_mha_core_kernel(%arg0: i32, %arg1: memref<64x8x2xf32, #tpu.memory_space<vmem>>, %arg2: memref<64x8x2xf32, #tpu.memory_space<vmem>>, %arg3: memref<64x8x2xf32, #tpu.memory_space<vmem>>, %arg4: memref<64x8x2xf32, #tpu.memory_space<vmem>>) attributes {dimension_semantics = [#tpu.dimension_semantics<arbitrary>], iteration_bounds = array<i64: 1>, scalar_prefetch = 0 : i64, scratch_operands = 0 : i64, tpu.core_type = #tpu.core_type<tc>, window_params = [{pipeline_mode = #tpu.pipeline_mode<synchronous>, transform_indices = @transform_0, window_bounds = array<i64: 64, 8, 2>}, {pipeline_mode = #tpu.pipeline_mode<synchronous>, transform_indices = @transform_1, window_bounds = array<i64: 64, 8, 2>}, {pipeline_mode = #tpu.pipeline_mode<synchronous>, transform_indices = @transform_2, window_bounds = array<i64: 64, 8, 2>}, {pipeline_mode = #tpu.pipeline_mode<synchronous>, transform_indices = @transform_3, window_bounds = array<i64: 64, 8, 2>}]} {
    %c0 = arith.constant 0 : index
    %c0_0 = arith.constant 0 : index
    %c0_1 = arith.constant 0 : index
    %0 = vector.load %arg1[%c0, %c0_0, %c0_1] : memref<64x8x2xf32, #tpu.memory_space<vmem>>, vector<64x8x2xf32>
    %cst = arith.constant 0.707106769 : f32
    %1 = vector.broadcast %cst : f32 to vector<64x8x2xf32>
    %2 = arith.mulf %0, %1 : vector<64x8x2xf32>
    %c0_2 = arith.constant 0 : index
    %c0_3 = arith.constant 0 : index
    %c0_4 = arith.constant 0 : index
    %3 = vector.load %arg2[%c0_2, %c0_3, %c0_4] : memref<64x8x2xf32, #tpu.memory_space<vmem>>, vector<64x8x2xf32>
    "tpu.trace_start"() <{level = 10 : i32, message = "bqd,bkd->bqk"}> : () -> ()
    %cst_5 = arith.constant dense<0.000000e+00> : vector<64x8x8xf32>
    %4 = tpu.matmul %2, %3, %cst_5 {dimension_numbers = #tpu.dot_dimension_numbers<[2], [2], [1], [1], [0, 0, 0, 1, 1, 1], [0], [0]>} : vector<64x8x2xf32>, vector<64x8x2xf32>, vector<64x8x8xf32> -> vector<64x8x8xf32>
    "tpu.trace_stop"() : () -> ()
    %cst_6 = arith.constant dense<0xFF800000> : vector<64x8xf32>
    %5 = vector.multi_reduction <maximumf>, %4, %cst_6 [2] : vector<64x8x8xf32> to vector<64x8xf32>
    %6 = vector.shape_cast %5 : vector<64x8xf32> to vector<64x8x1xf32>
    %7 = vector.broadcast %6 : vector<64x8x1xf32> to vector<64x8x8xf32>
    %8 = arith.subf %4, %7 : vector<64x8x8xf32>
    %9 = math.exp %8 : vector<64x8x8xf32>
    %cst_7 = arith.constant dense<0.000000e+00> : vector<64x8xf32>
    %10 = vector.multi_reduction <add>, %9, %cst_7 [2] : vector<64x8x8xf32> to vector<64x8xf32>
    %11 = vector.shape_cast %10 : vector<64x8xf32> to vector<64x8x1xf32>
    %12 = vector.broadcast %11 : vector<64x8x1xf32> to vector<64x8x8xf32>
    %13 = arith.divf %9, %12 : vector<64x8x8xf32>
    %c0_8 = arith.constant 0 : index
    %c0_9 = arith.constant 0 : index
    %c0_10 = arith.constant 0 : index
    %14 = vector.load %arg3[%c0_8, %c0_9, %c0_10] : memref<64x8x2xf32, #tpu.memory_space<vmem>>, vector<64x8x2xf32>
    "tpu.trace_start"() <{level = 10 : i32, message = "bqk,bkd->bqd"}> : () -> ()
    %cst_11 = arith.constant dense<0.000000e+00> : vector<64x8x2xf32>
    %15 = tpu.matmul %13, %14, %cst_11 {dimension_numbers = #tpu.dot_dimension_numbers<[2], [1], [1], [2], [0, 0, 0, 1, 1, 2], [0], [0]>} : vector<64x8x8xf32>, vector<64x8x2xf32>, vector<64x8x2xf32> -> vector<64x8x2xf32>
    "tpu.trace_stop"() : () -> ()
    %c0_12 = arith.constant 0 : index
    %c0_13 = arith.constant 0 : index
    %c0_14 = arith.constant 0 : index
    %16 = vector.load %arg4[%c0_12, %c0_13, %c0_14] : memref<64x8x2xf32, #tpu.memory_space<vmem>>, vector<64x8x2xf32>
    tpu.vector_store %arg4[%c0_12, %c0_13, %c0_14], %15 {strides = array<i32>} : memref<64x8x2xf32, #tpu.memory_space<vmem>>, vector<64x8x2xf32>,
    return
  }
  func.func @transform_0(%arg0: i32) -> (i32, i32, i32) {
    %c0_i32 = arith.constant 0 : i32
    %c0_i32_0 = arith.constant 0 : i32
    %c0_i32_1 = arith.constant 0 : i32
    %c0_i32_2 = arith.constant 0 : i32
    return %c0_i32, %c0_i32_0, %c0_i32_1 : i32, i32, i32
  }
  func.func @transform_1(%arg0: i32) -> (i32, i32, i32) {
    %c0_i32 = arith.constant 0 : i32
    %c0_i32_0 = arith.constant 0 : i32
    %c0_i32_1 = arith.constant 0 : i32
    %c0_i32_2 = arith.constant 0 : i32
    return %c0_i32, %c0_i32_0, %c0_i32_1 : i32, i32, i32
  }
  func.func @transform_2(%arg0: i32) -> (i32, i32, i32) {
    %c0_i32 = arith.constant 0 : i32
    %c0_i32_0 = arith.constant 0 : i32
    %c0_i32_1 = arith.constant 0 : i32
    %c0_i32_2 = arith.constant 0 : i32
    return %c0_i32, %c0_i32_0, %c0_i32_1 : i32, i32, i32
  }
  func.func @transform_3(%arg0: i32) -> (i32, i32, i32) {
    %c0_i32 = arith.constant 0 : i32
    %c0_i32_0 = arith.constant 0 : i32
    %c0_i32_1 = arith.constant 0 : i32
    %c0_i32_2 = arith.constant 0 : i32
    return %c0_i32, %c0_i32_0, %c0_i32_1 : i32, i32, i32
  }
}

module attributes {stable_mosaic.version = 11 : i64} {
  func.func @_outproj_add_ln_kernel(%arg0: i32, %arg1: memref<16x64xf32, #tpu.memory_space<vmem>>, %arg2: memref<16x64xf32, #tpu.memory_space<vmem>>, %arg3: memref<64x64xf32, #tpu.memory_space<vmem>>, %arg4: memref<1x64xf32, #tpu.memory_space<vmem>>, %arg5: memref<1x64xf32, #tpu.memory_space<vmem>>, %arg6: memref<1x64xf32, #tpu.memory_space<vmem>>, %arg7: memref<16x64xf32, #tpu.memory_space<vmem>>) attributes {dimension_semantics = [#tpu.dimension_semantics<parallel>], iteration_bounds = array<i64: 1>, scalar_prefetch = 0 : i64, scratch_operands = 0 : i64, tpu.core_type = #tpu.core_type<tc>, window_params = [{transform_indices = @transform_0, window_bounds = array<i64: 16, 64>}, {transform_indices = @transform_1, window_bounds = array<i64: 16, 64>}, {pipeline_mode = #tpu.pipeline_mode<synchronous>, transform_indices = @transform_2, window_bounds = array<i64: 64, 64>}, {pipeline_mode = #tpu.pipeline_mode<synchronous>, transform_indices = @transform_3, window_bounds = array<i64: 1, 64>}, {pipeline_mode = #tpu.pipeline_mode<synchronous>, transform_indices = @transform_4, window_bounds = array<i64: 1, 64>}, {pipeline_mode = #tpu.pipeline_mode<synchronous>, transform_indices = @transform_5, window_bounds = array<i64: 1, 64>}, {transform_indices = @transform_6, window_bounds = array<i64: 16, 64>}]} {
    %c0 = arith.constant 0 : index
    %c0_0 = arith.constant 0 : index
    %0 = vector.load %arg1[%c0, %c0_0] : memref<16x64xf32, #tpu.memory_space<vmem>>, vector<16x64xf32>
    %c0_1 = arith.constant 0 : index
    %c0_2 = arith.constant 0 : index
    %1 = vector.load %arg3[%c0_1, %c0_2] : memref<64x64xf32, #tpu.memory_space<vmem>>, vector<64x64xf32>
    %cst = arith.constant dense<0.000000e+00> : vector<16x64xf32>
    %2 = tpu.matmul %0, %1, %cst {dimension_numbers = #tpu.dot_dimension_numbers<[1], [0], [0], [1], [0, 0, 1, 1], [], []>} : vector<16x64xf32>, vector<64x64xf32>, vector<16x64xf32> -> vector<16x64xf32>
    %c0_3 = arith.constant 0 : index
    %c0_4 = arith.constant 0 : index
    %3 = vector.load %arg4[%c0_3, %c0_4] : memref<1x64xf32, #tpu.memory_space<vmem>>, vector<1x64xf32>
    %4 = vector.broadcast %3 : vector<1x64xf32> to vector<16x64xf32>
    %5 = arith.addf %2, %4 : vector<16x64xf32>
    %c0_5 = arith.constant 0 : index
    %c0_6 = arith.constant 0 : index
    %6 = vector.load %arg2[%c0_5, %c0_6] : memref<16x64xf32, #tpu.memory_space<vmem>>, vector<16x64xf32>
    %7 = arith.addf %6, %5 : vector<16x64xf32>
    %c0_7 = arith.constant 0 : index
    %c0_8 = arith.constant 0 : index
    %8 = vector.load %arg5[%c0_7, %c0_8] : memref<1x64xf32, #tpu.memory_space<vmem>>, vector<1x64xf32>
    %c0_9 = arith.constant 0 : index
    %c0_10 = arith.constant 0 : index
    %9 = vector.load %arg6[%c0_9, %c0_10] : memref<1x64xf32, #tpu.memory_space<vmem>>, vector<1x64xf32>
    %cst_11 = arith.constant dense<0.000000e+00> : vector<16xf32>
    %10 = vector.multi_reduction <add>, %7, %cst_11 [1] : vector<16x64xf32> to vector<16xf32>
    %11 = vector.shape_cast %10 : vector<16xf32> to vector<16x1xf32>
    %cst_12 = arith.constant 6.400000e+01 : f32
    %12 = vector.broadcast %cst_12 : f32 to vector<16x1xf32>
    %13 = arith.divf %11, %12 : vector<16x1xf32>
    %14 = vector.broadcast %13 : vector<16x1xf32> to vector<16x64xf32>
    %15 = arith.subf %7, %14 : vector<16x64xf32>
    %16 = arith.mulf %15, %15 : vector<16x64xf32>
    %cst_13 = arith.constant dense<0.000000e+00> : vector<16xf32>
    %17 = vector.multi_reduction <add>, %16, %cst_13 [1] : vector<16x64xf32> to vector<16xf32>
    %18 = vector.shape_cast %17 : vector<16xf32> to vector<16x1xf32>
    %cst_14 = arith.constant 6.400000e+01 : f32
    %19 = vector.broadcast %cst_14 : f32 to vector<16x1xf32>
    %20 = arith.divf %18, %19 : vector<16x1xf32>
    %cst_15 = arith.constant 9.99999974E-6 : f32
    %21 = vector.broadcast %cst_15 : f32 to vector<16x1xf32>
    %22 = arith.addf %20, %21 : vector<16x1xf32>
    %23 = math.rsqrt %22 : vector<16x1xf32>
    %24 = vector.broadcast %23 : vector<16x1xf32> to vector<16x64xf32>
    %25 = arith.mulf %15, %24 : vector<16x64xf32>
    %26 = vector.broadcast %8 : vector<1x64xf32> to vector<16x64xf32>
    %27 = arith.mulf %25, %26 : vector<16x64xf32>
    %28 = vector.broadcast %9 : vector<1x64xf32> to vector<16x64xf32>
    %29 = arith.addf %27, %28 : vector<16x64xf32>
    %c0_16 = arith.constant 0 : index
    %c0_17 = arith.constant 0 : index
    %30 = vector.load %arg7[%c0_16, %c0_17] : memref<16x64xf32, #tpu.memory_space<vmem>>, vector<16x64xf32>
    tpu.vector_store %arg7[%c0_16, %c0_17], %29 {strides = array<i32>} : memref<16x64xf32, #tpu.memory_space<vmem>>, vector<16x64xf32>,
    return
  }
  func.func @transform_0(%arg0: i32) -> (i32, i32) {
    %c0_i32 = arith.constant 0 : i32
    %c0_i32_0 = arith.constant 0 : i32
    return %arg0, %c0_i32 : i32, i32
  }
  func.func @transform_1(%arg0: i32) -> (i32, i32) {
    %c0_i32 = arith.constant 0 : i32
    %c0_i32_0 = arith.constant 0 : i32
    return %arg0, %c0_i32 : i32, i32
  }
  func.func @transform_2(%arg0: i32) -> (i32, i32) {
    %c0_i32 = arith.constant 0 : i32
    %c0_i32_0 = arith.constant 0 : i32
    %c0_i32_1 = arith.constant 0 : i32
    return %c0_i32, %c0_i32_0 : i32, i32
  }
  func.func @transform_3(%arg0: i32) -> (i32, i32) {
    %c0_i32 = arith.constant 0 : i32
    %c0_i32_0 = arith.constant 0 : i32
    %c0_i32_1 = arith.constant 0 : i32
    return %c0_i32, %c0_i32_0 : i32, i32
  }
  func.func @transform_4(%arg0: i32) -> (i32, i32) {
    %c0_i32 = arith.constant 0 : i32
    %c0_i32_0 = arith.constant 0 : i32
    %c0_i32_1 = arith.constant 0 : i32
    return %c0_i32, %c0_i32_0 : i32, i32
  }
  func.func @transform_5(%arg0: i32) -> (i32, i32) {
    %c0_i32 = arith.constant 0 : i32
    %c0_i32_0 = arith.constant 0 : i32
    %c0_i32_1 = arith.constant 0 : i32
    return %c0_i32, %c0_i32_0 : i32, i32
  }
  func.func @transform_6(%arg0: i32) -> (i32, i32) {
    %c0_i32 = arith.constant 0 : i32
    %c0_i32_0 = arith.constant 0 : i32
    return %arg0, %c0_i32 : i32, i32
  }
}

module attributes {stable_mosaic.version = 11 : i64} {
  func.func @_ffn_add_ln_kernel(%arg0: i32, %arg1: memref<16x64xf32, #tpu.memory_space<vmem>>, %arg2: memref<64x4096xf32, #tpu.memory_space<vmem>>, %arg3: memref<1x4096xf32, #tpu.memory_space<vmem>>, %arg4: memref<4096x64xf32, #tpu.memory_space<vmem>>, %arg5: memref<1x64xf32, #tpu.memory_space<vmem>>, %arg6: memref<1x64xf32, #tpu.memory_space<vmem>>, %arg7: memref<1x64xf32, #tpu.memory_space<vmem>>, %arg8: memref<16x64xf32, #tpu.memory_space<vmem>>) attributes {dimension_semantics = [#tpu.dimension_semantics<parallel>], iteration_bounds = array<i64: 1>, scalar_prefetch = 0 : i64, scratch_operands = 0 : i64, tpu.core_type = #tpu.core_type<tc>, window_params = [{transform_indices = @transform_0, window_bounds = array<i64: 16, 64>}, {pipeline_mode = #tpu.pipeline_mode<synchronous>, transform_indices = @transform_1, window_bounds = array<i64: 64, 4096>}, {pipeline_mode = #tpu.pipeline_mode<synchronous>, transform_indices = @transform_2, window_bounds = array<i64: 1, 4096>}, {pipeline_mode = #tpu.pipeline_mode<synchronous>, transform_indices = @transform_3, window_bounds = array<i64: 4096, 64>}, {pipeline_mode = #tpu.pipeline_mode<synchronous>, transform_indices = @transform_4, window_bounds = array<i64: 1, 64>}, {pipeline_mode = #tpu.pipeline_mode<synchronous>, transform_indices = @transform_5, window_bounds = array<i64: 1, 64>}, {pipeline_mode = #tpu.pipeline_mode<synchronous>, transform_indices = @transform_6, window_bounds = array<i64: 1, 64>}, {transform_indices = @transform_7, window_bounds = array<i64: 16, 64>}]} {
    %c0 = arith.constant 0 : index
    %c0_0 = arith.constant 0 : index
    %0 = vector.load %arg1[%c0, %c0_0] : memref<16x64xf32, #tpu.memory_space<vmem>>, vector<16x64xf32>
    %c0_1 = arith.constant 0 : index
    %c0_2 = arith.constant 0 : index
    %1 = vector.load %arg2[%c0_1, %c0_2] : memref<64x4096xf32, #tpu.memory_space<vmem>>, vector<64x4096xf32>
    %cst = arith.constant dense<0.000000e+00> : vector<16x4096xf32>
    %2 = tpu.matmul %0, %1, %cst {dimension_numbers = #tpu.dot_dimension_numbers<[1], [0], [0], [1], [0, 0, 1, 1], [], []>} : vector<16x64xf32>, vector<64x4096xf32>, vector<16x4096xf32> -> vector<16x4096xf32>
    %c0_3 = arith.constant 0 : index
    %c0_4 = arith.constant 0 : index
    %3 = vector.load %arg3[%c0_3, %c0_4] : memref<1x4096xf32, #tpu.memory_space<vmem>>, vector<1x4096xf32>
    %4 = vector.broadcast %3 : vector<1x4096xf32> to vector<16x4096xf32>
    %5 = arith.addf %2, %4 : vector<16x4096xf32>
    %cst_5 = arith.constant 0.000000e+00 : f32
    %6 = vector.broadcast %cst_5 : f32 to vector<16x4096xf32>
    %7 = arith.maximumf %5, %6 : vector<16x4096xf32>
    %c0_6 = arith.constant 0 : index
    %c0_7 = arith.constant 0 : index
    %8 = vector.load %arg4[%c0_6, %c0_7] : memref<4096x64xf32, #tpu.memory_space<vmem>>, vector<4096x64xf32>
    %cst_8 = arith.constant dense<0.000000e+00> : vector<16x64xf32>
    %9 = tpu.matmul %7, %8, %cst_8 {dimension_numbers = #tpu.dot_dimension_numbers<[1], [0], [0], [1], [0, 0, 1, 1], [], []>} : vector<16x4096xf32>, vector<4096x64xf32>, vector<16x64xf32> -> vector<16x64xf32>
    %c0_9 = arith.constant 0 : index
    %c0_10 = arith.constant 0 : index
    %10 = vector.load %arg5[%c0_9, %c0_10] : memref<1x64xf32, #tpu.memory_space<vmem>>, vector<1x64xf32>
    %11 = vector.broadcast %10 : vector<1x64xf32> to vector<16x64xf32>
    %12 = arith.addf %9, %11 : vector<16x64xf32>
    %13 = arith.addf %0, %12 : vector<16x64xf32>
    %c0_11 = arith.constant 0 : index
    %c0_12 = arith.constant 0 : index
    %14 = vector.load %arg6[%c0_11, %c0_12] : memref<1x64xf32, #tpu.memory_space<vmem>>, vector<1x64xf32>
    %c0_13 = arith.constant 0 : index
    %c0_14 = arith.constant 0 : index
    %15 = vector.load %arg7[%c0_13, %c0_14] : memref<1x64xf32, #tpu.memory_space<vmem>>, vector<1x64xf32>
    %cst_15 = arith.constant dense<0.000000e+00> : vector<16xf32>
    %16 = vector.multi_reduction <add>, %13, %cst_15 [1] : vector<16x64xf32> to vector<16xf32>
    %17 = vector.shape_cast %16 : vector<16xf32> to vector<16x1xf32>
    %cst_16 = arith.constant 6.400000e+01 : f32
    %18 = vector.broadcast %cst_16 : f32 to vector<16x1xf32>
    %19 = arith.divf %17, %18 : vector<16x1xf32>
    %20 = vector.broadcast %19 : vector<16x1xf32> to vector<16x64xf32>
    %21 = arith.subf %13, %20 : vector<16x64xf32>
    %22 = arith.mulf %21, %21 : vector<16x64xf32>
    %cst_17 = arith.constant dense<0.000000e+00> : vector<16xf32>
    %23 = vector.multi_reduction <add>, %22, %cst_17 [1] : vector<16x64xf32> to vector<16xf32>
    %24 = vector.shape_cast %23 : vector<16xf32> to vector<16x1xf32>
    %cst_18 = arith.constant 6.400000e+01 : f32
    %25 = vector.broadcast %cst_18 : f32 to vector<16x1xf32>
    %26 = arith.divf %24, %25 : vector<16x1xf32>
    %cst_19 = arith.constant 9.99999974E-6 : f32
    %27 = vector.broadcast %cst_19 : f32 to vector<16x1xf32>
    %28 = arith.addf %26, %27 : vector<16x1xf32>
    %29 = math.rsqrt %28 : vector<16x1xf32>
    %30 = vector.broadcast %29 : vector<16x1xf32> to vector<16x64xf32>
    %31 = arith.mulf %21, %30 : vector<16x64xf32>
    %32 = vector.broadcast %14 : vector<1x64xf32> to vector<16x64xf32>
    %33 = arith.mulf %31, %32 : vector<16x64xf32>
    %34 = vector.broadcast %15 : vector<1x64xf32> to vector<16x64xf32>
    %35 = arith.addf %33, %34 : vector<16x64xf32>
    %c0_20 = arith.constant 0 : index
    %c0_21 = arith.constant 0 : index
    %36 = vector.load %arg8[%c0_20, %c0_21] : memref<16x64xf32, #tpu.memory_space<vmem>>, vector<16x64xf32>
    tpu.vector_store %arg8[%c0_20, %c0_21], %35 {strides = array<i32>} : memref<16x64xf32, #tpu.memory_space<vmem>>, vector<16x64xf32>,
    return
  }
  func.func @transform_0(%arg0: i32) -> (i32, i32) {
    %c0_i32 = arith.constant 0 : i32
    %c0_i32_0 = arith.constant 0 : i32
    return %arg0, %c0_i32 : i32, i32
  }
  func.func @transform_1(%arg0: i32) -> (i32, i32) {
    %c0_i32 = arith.constant 0 : i32
    %c0_i32_0 = arith.constant 0 : i32
    %c0_i32_1 = arith.constant 0 : i32
    return %c0_i32, %c0_i32_0 : i32, i32
  }
  func.func @transform_2(%arg0: i32) -> (i32, i32) {
    %c0_i32 = arith.constant 0 : i32
    %c0_i32_0 = arith.constant 0 : i32
    %c0_i32_1 = arith.constant 0 : i32
    return %c0_i32, %c0_i32_0 : i32, i32
  }
  func.func @transform_3(%arg0: i32) -> (i32, i32) {
    %c0_i32 = arith.constant 0 : i32
    %c0_i32_0 = arith.constant 0 : i32
    %c0_i32_1 = arith.constant 0 : i32
    return %c0_i32, %c0_i32_0 : i32, i32
  }
  func.func @transform_4(%arg0: i32) -> (i32, i32) {
    %c0_i32 = arith.constant 0 : i32
    %c0_i32_0 = arith.constant 0 : i32
    %c0_i32_1 = arith.constant 0 : i32
    return %c0_i32, %c0_i32_0 : i32, i32
  }
  func.func @transform_5(%arg0: i32) -> (i32, i32) {
    %c0_i32 = arith.constant 0 : i32
    %c0_i32_0 = arith.constant 0 : i32
    %c0_i32_1 = arith.constant 0 : i32
    return %c0_i32, %c0_i32_0 : i32, i32
  }
  func.func @transform_6(%arg0: i32) -> (i32, i32) {
    %c0_i32 = arith.constant 0 : i32
    %c0_i32_0 = arith.constant 0 : i32
    %c0_i32_1 = arith.constant 0 : i32
    return %c0_i32, %c0_i32_0 : i32, i32
  }
  func.func @transform_7(%arg0: i32) -> (i32, i32) {
    %c0_i32 = arith.constant 0 : i32
    %c0_i32_0 = arith.constant 0 : i32
    return %arg0, %c0_i32 : i32, i32
  }
}

module attributes {stable_mosaic.version = 11 : i64} {
  func.func @_linear_kernel(%arg0: i32, %arg1: memref<16x64xf32, #tpu.memory_space<vmem>>, %arg2: memref<64x192xf32, #tpu.memory_space<vmem>>, %arg3: memref<1x192xf32, #tpu.memory_space<vmem>>, %arg4: memref<16x192xf32, #tpu.memory_space<vmem>>) attributes {dimension_semantics = [#tpu.dimension_semantics<parallel>], iteration_bounds = array<i64: 1>, scalar_prefetch = 0 : i64, scratch_operands = 0 : i64, tpu.core_type = #tpu.core_type<tc>, window_params = [{transform_indices = @transform_0, window_bounds = array<i64: 16, 64>}, {pipeline_mode = #tpu.pipeline_mode<synchronous>, transform_indices = @transform_1, window_bounds = array<i64: 64, 192>}, {pipeline_mode = #tpu.pipeline_mode<synchronous>, transform_indices = @transform_2, window_bounds = array<i64: 1, 192>}, {transform_indices = @transform_3, window_bounds = array<i64: 16, 192>}]} {
    %c0 = arith.constant 0 : index
    %c0_0 = arith.constant 0 : index
    %0 = vector.load %arg1[%c0, %c0_0] : memref<16x64xf32, #tpu.memory_space<vmem>>, vector<16x64xf32>
    %c0_1 = arith.constant 0 : index
    %c0_2 = arith.constant 0 : index
    %1 = vector.load %arg2[%c0_1, %c0_2] : memref<64x192xf32, #tpu.memory_space<vmem>>, vector<64x192xf32>
    %cst = arith.constant dense<0.000000e+00> : vector<16x192xf32>
    %2 = tpu.matmul %0, %1, %cst {dimension_numbers = #tpu.dot_dimension_numbers<[1], [0], [0], [1], [0, 0, 1, 1], [], []>} : vector<16x64xf32>, vector<64x192xf32>, vector<16x192xf32> -> vector<16x192xf32>
    %c0_3 = arith.constant 0 : index
    %c0_4 = arith.constant 0 : index
    %3 = vector.load %arg3[%c0_3, %c0_4] : memref<1x192xf32, #tpu.memory_space<vmem>>, vector<1x192xf32>
    %4 = vector.broadcast %3 : vector<1x192xf32> to vector<16x192xf32>
    %5 = arith.addf %2, %4 : vector<16x192xf32>
    %c0_5 = arith.constant 0 : index
    %c0_6 = arith.constant 0 : index
    %6 = vector.load %arg4[%c0_5, %c0_6] : memref<16x192xf32, #tpu.memory_space<vmem>>, vector<16x192xf32>
    tpu.vector_store %arg4[%c0_5, %c0_6], %5 {strides = array<i32>} : memref<16x192xf32, #tpu.memory_space<vmem>>, vector<16x192xf32>,
    return
  }
  func.func @transform_0(%arg0: i32) -> (i32, i32) {
    %c0_i32 = arith.constant 0 : i32
    %c0_i32_0 = arith.constant 0 : i32
    return %arg0, %c0_i32 : i32, i32
  }
  func.func @transform_1(%arg0: i32) -> (i32, i32) {
    %c0_i32 = arith.constant 0 : i32
    %c0_i32_0 = arith.constant 0 : i32
    %c0_i32_1 = arith.constant 0 : i32
    return %c0_i32, %c0_i32_0 : i32, i32
  }
  func.func @transform_2(%arg0: i32) -> (i32, i32) {
    %c0_i32 = arith.constant 0 : i32
    %c0_i32_0 = arith.constant 0 : i32
    %c0_i32_1 = arith.constant 0 : i32
    return %c0_i32, %c0_i32_0 : i32, i32
  }
  func.func @transform_3(%arg0: i32) -> (i32, i32) {
    %c0_i32 = arith.constant 0 : i32
    %c0_i32_0 = arith.constant 0 : i32
    return %arg0, %c0_i32 : i32, i32
  }
}

module attributes {stable_mosaic.version = 11 : i64} {
  func.func @_head_kernel(%arg0: i32, %arg1: memref<16x64xf32, #tpu.memory_space<vmem>>, %arg2: memref<64x64xf32, #tpu.memory_space<vmem>>, %arg3: memref<1x64xf32, #tpu.memory_space<vmem>>, %arg4: memref<64x64xf32, #tpu.memory_space<vmem>>, %arg5: memref<1x64xf32, #tpu.memory_space<vmem>>, %arg6: memref<64x64xf32, #tpu.memory_space<vmem>>, %arg7: memref<1x64xf32, #tpu.memory_space<vmem>>, %arg8: memref<64x1xf32, #tpu.memory_space<vmem>>, %arg9: memref<1x1xf32, #tpu.memory_space<vmem>>, %arg10: memref<16x1xf32, #tpu.memory_space<vmem>>) attributes {dimension_semantics = [#tpu.dimension_semantics<parallel>], iteration_bounds = array<i64: 1>, scalar_prefetch = 0 : i64, scratch_operands = 0 : i64, tpu.core_type = #tpu.core_type<tc>, window_params = [{transform_indices = @transform_0, window_bounds = array<i64: 16, 64>}, {pipeline_mode = #tpu.pipeline_mode<synchronous>, transform_indices = @transform_1, window_bounds = array<i64: 64, 64>}, {pipeline_mode = #tpu.pipeline_mode<synchronous>, transform_indices = @transform_2, window_bounds = array<i64: 1, 64>}, {pipeline_mode = #tpu.pipeline_mode<synchronous>, transform_indices = @transform_3, window_bounds = array<i64: 64, 64>}, {pipeline_mode = #tpu.pipeline_mode<synchronous>, transform_indices = @transform_4, window_bounds = array<i64: 1, 64>}, {pipeline_mode = #tpu.pipeline_mode<synchronous>, transform_indices = @transform_5, window_bounds = array<i64: 64, 64>}, {pipeline_mode = #tpu.pipeline_mode<synchronous>, transform_indices = @transform_6, window_bounds = array<i64: 1, 64>}, {pipeline_mode = #tpu.pipeline_mode<synchronous>, transform_indices = @transform_7, window_bounds = array<i64: 64, 1>}, {pipeline_mode = #tpu.pipeline_mode<synchronous>, transform_indices = @transform_8, window_bounds = array<i64: 1, 1>}, {transform_indices = @transform_9, window_bounds = array<i64: 16, 1>}]} {
    %c0 = arith.constant 0 : index
    %c0_0 = arith.constant 0 : index
    %0 = vector.load %arg1[%c0, %c0_0] : memref<16x64xf32, #tpu.memory_space<vmem>>, vector<16x64xf32>
    %c0_1 = arith.constant 0 : index
    %c0_2 = arith.constant 0 : index
    %1 = vector.load %arg2[%c0_1, %c0_2] : memref<64x64xf32, #tpu.memory_space<vmem>>, vector<64x64xf32>
    %cst = arith.constant dense<0.000000e+00> : vector<16x64xf32>
    %2 = tpu.matmul %0, %1, %cst {dimension_numbers = #tpu.dot_dimension_numbers<[1], [0], [0], [1], [0, 0, 1, 1], [], []>} : vector<16x64xf32>, vector<64x64xf32>, vector<16x64xf32> -> vector<16x64xf32>
    %c0_3 = arith.constant 0 : index
    %c0_4 = arith.constant 0 : index
    %3 = vector.load %arg3[%c0_3, %c0_4] : memref<1x64xf32, #tpu.memory_space<vmem>>, vector<1x64xf32>
    %4 = vector.broadcast %3 : vector<1x64xf32> to vector<16x64xf32>
    %5 = arith.addf %2, %4 : vector<16x64xf32>
    %6 = math.absf %5 : vector<16x64xf32>
    %cst_5 = arith.constant 1.000000e+00 : f32
    %7 = vector.broadcast %cst_5 : f32 to vector<16x64xf32>
    %8 = arith.addf %7, %6 : vector<16x64xf32>
    %9 = arith.divf %5, %8 : vector<16x64xf32>
    %c0_6 = arith.constant 0 : index
    %c0_7 = arith.constant 0 : index
    %10 = vector.load %arg4[%c0_6, %c0_7] : memref<64x64xf32, #tpu.memory_space<vmem>>, vector<64x64xf32>
    %cst_8 = arith.constant dense<0.000000e+00> : vector<16x64xf32>
    %11 = tpu.matmul %9, %10, %cst_8 {dimension_numbers = #tpu.dot_dimension_numbers<[1], [0], [0], [1], [0, 0, 1, 1], [], []>} : vector<16x64xf32>, vector<64x64xf32>, vector<16x64xf32> -> vector<16x64xf32>
    %c0_9 = arith.constant 0 : index
    %c0_10 = arith.constant 0 : index
    %12 = vector.load %arg5[%c0_9, %c0_10] : memref<1x64xf32, #tpu.memory_space<vmem>>, vector<1x64xf32>
    %13 = vector.broadcast %12 : vector<1x64xf32> to vector<16x64xf32>
    %14 = arith.addf %11, %13 : vector<16x64xf32>
    %15 = math.absf %14 : vector<16x64xf32>
    %cst_11 = arith.constant 1.000000e+00 : f32
    %16 = vector.broadcast %cst_11 : f32 to vector<16x64xf32>
    %17 = arith.addf %16, %15 : vector<16x64xf32>
    %18 = arith.divf %14, %17 : vector<16x64xf32>
    %c0_12 = arith.constant 0 : index
    %c0_13 = arith.constant 0 : index
    %19 = vector.load %arg6[%c0_12, %c0_13] : memref<64x64xf32, #tpu.memory_space<vmem>>, vector<64x64xf32>
    %cst_14 = arith.constant dense<0.000000e+00> : vector<16x64xf32>
    %20 = tpu.matmul %18, %19, %cst_14 {dimension_numbers = #tpu.dot_dimension_numbers<[1], [0], [0], [1], [0, 0, 1, 1], [], []>} : vector<16x64xf32>, vector<64x64xf32>, vector<16x64xf32> -> vector<16x64xf32>
    %c0_15 = arith.constant 0 : index
    %c0_16 = arith.constant 0 : index
    %21 = vector.load %arg7[%c0_15, %c0_16] : memref<1x64xf32, #tpu.memory_space<vmem>>, vector<1x64xf32>
    %22 = vector.broadcast %21 : vector<1x64xf32> to vector<16x64xf32>
    %23 = arith.addf %20, %22 : vector<16x64xf32>
    %24 = math.absf %23 : vector<16x64xf32>
    %cst_17 = arith.constant 1.000000e+00 : f32
    %25 = vector.broadcast %cst_17 : f32 to vector<16x64xf32>
    %26 = arith.addf %25, %24 : vector<16x64xf32>
    %27 = arith.divf %23, %26 : vector<16x64xf32>
    %c0_18 = arith.constant 0 : index
    %c0_19 = arith.constant 0 : index
    %28 = vector.load %arg8[%c0_18, %c0_19] : memref<64x1xf32, #tpu.memory_space<vmem>>, vector<64x1xf32>
    %cst_20 = arith.constant dense<0.000000e+00> : vector<16x1xf32>
    %29 = tpu.matmul %27, %28, %cst_20 {dimension_numbers = #tpu.dot_dimension_numbers<[1], [0], [0], [1], [0, 0, 1, 1], [], []>} : vector<16x64xf32>, vector<64x1xf32>, vector<16x1xf32> -> vector<16x1xf32>
    %c0_21 = arith.constant 0 : index
    %c0_22 = arith.constant 0 : index
    %30 = vector.load %arg9[%c0_21, %c0_22] : memref<1x1xf32, #tpu.memory_space<vmem>>, vector<1x1xf32>
    %31 = vector.broadcast %30 : vector<1x1xf32> to vector<16x1xf32>
    %32 = arith.addf %29, %31 : vector<16x1xf32>
    %c0_23 = arith.constant 0 : index
    %c0_24 = arith.constant 0 : index
    %33 = vector.load %arg10[%c0_23, %c0_24] : memref<16x1xf32, #tpu.memory_space<vmem>>, vector<16x1xf32>
    tpu.vector_store %arg10[%c0_23, %c0_24], %32 {strides = array<i32>} : memref<16x1xf32, #tpu.memory_space<vmem>>, vector<16x1xf32>,
    return
  }
  func.func @transform_0(%arg0: i32) -> (i32, i32) {
    %c0_i32 = arith.constant 0 : i32
    %c0_i32_0 = arith.constant 0 : i32
    return %arg0, %c0_i32 : i32, i32
  }
  func.func @transform_1(%arg0: i32) -> (i32, i32) {
    %c0_i32 = arith.constant 0 : i32
    %c0_i32_0 = arith.constant 0 : i32
    %c0_i32_1 = arith.constant 0 : i32
    return %c0_i32, %c0_i32_0 : i32, i32
  }
  func.func @transform_2(%arg0: i32) -> (i32, i32) {
    %c0_i32 = arith.constant 0 : i32
    %c0_i32_0 = arith.constant 0 : i32
    %c0_i32_1 = arith.constant 0 : i32
    return %c0_i32, %c0_i32_0 : i32, i32
  }
  func.func @transform_3(%arg0: i32) -> (i32, i32) {
    %c0_i32 = arith.constant 0 : i32
    %c0_i32_0 = arith.constant 0 : i32
    %c0_i32_1 = arith.constant 0 : i32
    return %c0_i32, %c0_i32_0 : i32, i32
  }
  func.func @transform_4(%arg0: i32) -> (i32, i32) {
    %c0_i32 = arith.constant 0 : i32
    %c0_i32_0 = arith.constant 0 : i32
    %c0_i32_1 = arith.constant 0 : i32
    return %c0_i32, %c0_i32_0 : i32, i32
  }
  func.func @transform_5(%arg0: i32) -> (i32, i32) {
    %c0_i32 = arith.constant 0 : i32
    %c0_i32_0 = arith.constant 0 : i32
    %c0_i32_1 = arith.constant 0 : i32
    return %c0_i32, %c0_i32_0 : i32, i32
  }
  func.func @transform_6(%arg0: i32) -> (i32, i32) {
    %c0_i32 = arith.constant 0 : i32
    %c0_i32_0 = arith.constant 0 : i32
    %c0_i32_1 = arith.constant 0 : i32
    return %c0_i32, %c0_i32_0 : i32, i32
  }
  func.func @transform_7(%arg0: i32) -> (i32, i32) {
    %c0_i32 = arith.constant 0 : i32
    %c0_i32_0 = arith.constant 0 : i32
    %c0_i32_1 = arith.constant 0 : i32
    return %c0_i32, %c0_i32_0 : i32, i32
  }
  func.func @transform_8(%arg0: i32) -> (i32, i32) {
    %c0_i32 = arith.constant 0 : i32
    %c0_i32_0 = arith.constant 0 : i32
    %c0_i32_1 = arith.constant 0 : i32
    return %c0_i32, %c0_i32_0 : i32, i32
  }
  func.func @transform_9(%arg0: i32) -> (i32, i32) {
    %c0_i32 = arith.constant 0 : i32
    %c0_i32_0 = arith.constant 0 : i32
    return %arg0, %c0_i32 : i32, i32
  }
}

</mosaic_0001>

<bundles_post_ra>
// kernel: _lambda_.22
= control target key start
LH: loop header
LB: loop body
LE: loop exit
PB: predicated region body
PF: predicated region fallthrough
CT: control target
= control target key end

     0   :  { %9 = vsyncpa [#allocation3], 0  ;;  %s340_s0 = inlined_call_operand.hbm [shape: f32[16,16], index: 0, kind: input, shape index: {}]   ;;  %s341_s1 = inlined_call_operand.vmem [shape: f32[16,64], index: 1, kind: input, shape index: {}]   ;;  %s342_s2 = inlined_call_operand.hbm [shape: f32[16,64], index: 2, kind: input, shape index: {}]   ;;  %s343_s3 = inlined_call_operand.hbm [shape: f32[1,64], index: 3, kind: input, shape index: {}]   ;;  %s344_s4 = inlined_call_operand.vmem [shape: f32[16,64], index: 4, kind: output, shape index: {}]  }
   0x1   :  { %10 = vsyncpa [#allocation5], 0  ;;  %s255_s15 = smov [#allocation4]   ;;  %s256_s17 = smov [#allocation2]  }
   0x2   :  { %s30_s16 = sshll.u32 %s255_s15, 4  ;;  %s16_s18 = sshll.u32 %s256_s17, 4  ;;  %s31_s16 = int_to_ptr.vmem [resolvable:$true] %s30_s16  ;;  %s285_s18 = int_to_ptr.vmem [resolvable:$true] %s16_s18 }
   0x3   :  { %s185_s21 = scalar_lea.hbm %s342_s2, 256 }
   0x4   :  { %p186_p0 = scmp.ne.s32.totalorder %s342_s2, %s185_s21  ;;  %p189_p1 = scmp.lt.u32.totalorder %s185_s21, %s342_s2 }
   0x6   :  { %p191_p2 = pnand %p189_p1, %p186_p0 }
   0x8   :  { %194 = shalt.err (!%p191_p2)
}
   0x9   :  { %s195_s26 = scalar_lea.vmem %s31_s16, 256  ;;  %p200_p4 = scmp.lt.s32.totalorder %s31_s16, %s31_s16 }
   0xa   :  { %p196_p3 = scmp.ne.s32.totalorder %s31_s16, %s195_s26  ;;  %p201_p5 = scmp.lt.s32.totalorder %s195_s26, %s195_s26 }
   0xc   :  { %p202_p6 = por %p201_p5, %p200_p4 }
   0xe   :  { %p203_p7 = pnand %p202_p6, %p196_p3 }
  0x10   :  { %206 = shalt.err (!%p203_p7)
}
  0x11   :  { %s257_s27 = smov 128   ;;  %s258_s28 = smov 8  }
  0x12   :  { %36 = dma.hbm_to_vmem [thread:$0]  %s342_s2, 256, %s31_s16, [#allocation5], %s257_s27, %s257_s27, %s258_s28  }
  0x13   :  { %s207_s7 = scalar_lea.hbm %s340_s0, 256 }
  0x14   :  { %p208_p8 = scmp.ne.s32.totalorder %s340_s0, %s207_s7  ;;  %p211_p9 = scmp.lt.u32.totalorder %s207_s7, %s340_s0 }
  0x16   :  { %p213_p10 = pnand %p211_p9, %p208_p8 }
  0x18   :  { %216 = shalt.err (!%p213_p10)
}
  0x19   :  { %s217_s12 = scalar_lea.vmem %s285_s18, 256  ;;  %p222_p12 = scmp.lt.s32.totalorder %s285_s18, %s285_s18 }
  0x1a   :  { %p218_p11 = scmp.ne.s32.totalorder %s285_s18, %s217_s12  ;;  %p223_p13 = scmp.lt.s32.totalorder %s217_s12, %s217_s12 }
  0x1c   :  { %p224_p0 = por %p223_p13, %p222_p12 }
  0x1e   :  { %p225_p1 = pnand %p224_p0, %p218_p11 }
  0x20   :  { %228 = shalt.err (!%p225_p1)
}
  0x21   :  { %22 = dma.hbm_to_vmem [thread:$0]  %s340_s0, 256, %s285_s18, [#allocation3], %s257_s27, %s257_s27, %s258_s28  }
  0x22   :  { %s259_s14 = smov [#allocation6]   ;;  %s229_s19 = scalar_lea.hbm %s343_s3, 16 }
  0x23   :  { %s43_s15 = sshll.u32 %s259_s14, 4  ;;  %p230_p2 = scmp.ne.s32.totalorder %s343_s3, %s229_s19  ;;  %s44_s15 = int_to_ptr.vmem [resolvable:$true] %s43_s15 }
  0x24   :  { %p233_p3 = scmp.lt.u32.totalorder %s229_s19, %s343_s3 }
  0x26   :  { %p235_p4 = pnand %p233_p3, %p230_p2 }
  0x28   :  { %238 = shalt.err (!%p235_p4)
}
  0x29   :  { %s239_s24 = scalar_lea.vmem %s44_s15, 16  ;;  %s243_s0 = scalar_lea.vmem %s44_s15, 32 }
  0x2a   :  { %p240_p5 = scmp.ne.s32.totalorder %s44_s15, %s239_s24  ;;  %p244_p6 = scmp.lt.s32.totalorder %s44_s15, %s44_s15 }
  0x2b   :  { %p245_p7 = scmp.lt.s32.totalorder %s243_s0, %s239_s24 }
  0x2d   :  { %p246_p8 = por %p245_p7, %p244_p6 }
  0x2f   :  { %p247_p9 = pnand %p246_p8, %p240_p5 }
  0x31   :  { %250 = shalt.err (!%p247_p9)
}
  0x32   :  { %46 = dma.hbm_to_vmem [thread:$0]  %s343_s3, 16, %s44_s15, [#allocation5]  }
  0x33   :  { %251 = dma.done.wait [#allocation3], 256  }
  0x34   :  { %252 = vsyncadd [#allocation3], 4294967040 }
  0x35   :  { %253 = dma.done.wait [#allocation5], 272  }
  0x36   :  { %254 = vsyncadd [#allocation5], 4294967024  ;;  %vm67_vm0 = vcmask 130048   ;;  %v58_v0 = vld [vmem:[#allocation4] sm:$0xff]  ;;  %v59_v1 = vld [vmem:[#allocation4 + $0x8] sm:$0xff]  ;;  %vm153_vm1 = vcmask 523264  }
  0x37   :  { %v56_v2 = vld [vmem:[#allocation2] sm:$0xff]  ;;  %v176_v3 = vpack.c.bf16 %v59_v1, %v58_v0  ;;  %v57_v4 = vld [vmem:[#allocation2 + $0x8] sm:$0xff] }
  0x38   :  { %173 = vmatprep.mubr.msk.f32.mxu0 %vm67_vm0, %v56_v2  ;;  %v162_v5 = vld [vmem:[#allocation6] ss:$0 sm:$0xff]  ;;  %v150_v7 = vld [vmem:[%s341_s1 + $0x8] sm:$0xff] }
  0x39   :  { %177 = vmatprep.subr.bf16.mxu0 %v176_v3  ;;  %v149_v10 = vld [vmem:[%s341_s1] sm:$0xff] }
  0x3a   :  { %179 = vmatpush3.bf16.msra.mxu0 %v176_v3 }
  0x3d   :  { %174 = vmatmul.mubr.msk.f32.vlgmr.msra.gmra.mrb[0].mxu0 %vm67_vm0, %v57_v4 }
 0x110   :  { %v175_v6 = vpop.f32.mrb[0].mxu0 }
 0x111   :  { %v146_v8 = vadd.f32 %v175_v6, %v162_v5  ;;  %v140_v9 = vpop.f32.mrb[1].mxu0 }
 0x112   :  { %v141_v11 = vadd.f32 %v162_v5, %v140_v9 }
 0x113   :  { %v152_v12 = vadd.f32 %v150_v7, %v146_v8 }
 0x114   :  { %v151_v13 = vadd.f32 %v149_v10, %v141_v11 }
 0x115   :  { %155 = vst.msk [vmem:[%s344_s4 + $0x8] sm:$0xff] %vm153_vm1, %v152_v12 }
 0x116   :  { %154 = vst.msk [vmem:[%s344_s4] sm:$0xff] %vm153_vm1, %v151_v13 }
 0x117   :  { %160 = vsyncpa [#allocation3], 1 }
 0x118   :  { %161 = vsyncpa [#allocation5], 1 }

// kernel: _lambda_.23
= control target key start
LH: loop header
LB: loop body
LE: loop exit
PB: predicated region body
PF: predicated region fallthrough
CT: control target
= control target key end

     0   :  { %8 = vsyncpa [#allocation3], 0  ;;  %s314_s0 = inlined_call_operand.vmem [shape: f32[16,64], index: 0, kind: input, shape index: {}]   ;;  %s315_s1 = inlined_call_operand.hbm [shape: f32[64,192], index: 1, kind: input, shape index: {}]   ;;  %s316_s2 = inlined_call_operand.hbm [shape: f32[1,192], index: 2, kind: input, shape index: {}]   ;;  %s317_s3 = inlined_call_operand.vmem [shape: f32[16,192], index: 3, kind: output, shape index: {}]  }
   0x1   :  { %9 = vsyncpa [#allocation5], 0  ;;  %s243_s12 = smov [#allocation2]   ;;  %s195_s16 = scalar_lea.hbm %s315_s1, 2048 }
   0x2   :  { %s17_s13 = sshll.u32 %s243_s12, 4  ;;  %p196_p0 = scmp.ne.s32.totalorder %s315_s1, %s195_s16  ;;  %s18_s13 = int_to_ptr.vmem [resolvable:$true] %s17_s13 }
   0x3   :  { %p199_p1 = scmp.lt.u32.totalorder %s195_s16, %s315_s1 }
   0x5   :  { %p201_p2 = pnand %p199_p1, %p196_p0 }
   0x7   :  { %204 = shalt.err (!%p201_p2)
}
   0x8   :  { %s205_s21 = scalar_lea.vmem %s18_s13, 2048  ;;  %p210_p4 = scmp.lt.s32.totalorder %s18_s13, %s18_s13 }
   0x9   :  { %p206_p3 = scmp.ne.s32.totalorder %s18_s13, %s205_s21  ;;  %p211_p5 = scmp.lt.s32.totalorder %s205_s21, %s205_s21 }
   0xb   :  { %p212_p6 = por %p211_p5, %p210_p4 }
   0xd   :  { %p213_p7 = pnand %p212_p6, %p206_p3 }
   0xf   :  { %216 = shalt.err (!%p213_p7)
}
  0x10   :  { %s244_s22 = smov 256   ;;  %s245_s23 = smov 16  }
  0x11   :  { %23 = dma.hbm_to_vmem [thread:$0]  %s315_s1, 2048, %s18_s13, [#allocation3], %s244_s22, %s244_s22, %s245_s23  }
  0x12   :  { %s246_s26 = smov [#allocation4]   ;;  %s217_s30 = scalar_lea.hbm %s316_s2, 32 }
  0x13   :  { %s30_s27 = sshll.u32 %s246_s26, 4  ;;  %p218_p8 = scmp.ne.s32.totalorder %s316_s2, %s217_s30  ;;  %s31_s27 = int_to_ptr.vmem [resolvable:$true] %s30_s27 }
  0x14   :  { %p221_p9 = scmp.lt.u32.totalorder %s217_s30, %s316_s2 }
  0x16   :  { %p223_p10 = pnand %p221_p9, %p218_p8 }
  0x18   :  { %226 = shalt.err (!%p223_p10)
}
  0x19   :  { %s227_s8 = scalar_lea.vmem %s31_s27, 32  ;;  %p232_p12 = scmp.lt.s32.totalorder %s31_s27, %s31_s27 }
  0x1a   :  { %p228_p11 = scmp.ne.s32.totalorder %s31_s27, %s227_s8  ;;  %p233_p13 = scmp.lt.s32.totalorder %s227_s8, %s227_s8 }
  0x1c   :  { %p234_p0 = por %p233_p13, %p232_p12 }
  0x1e   :  { %p235_p1 = pnand %p234_p0, %p228_p11 }
  0x20   :  { %238 = shalt.err (!%p235_p1)
}
  0x21   :  { %33 = dma.hbm_to_vmem [thread:$0]  %s316_s2, 32, %s31_s27, [#allocation5]  }
  0x22   :  { %239 = dma.done.wait [#allocation3], 2048  }
  0x23   :  { %240 = vsyncadd [#allocation3], 4294965248 }
  0x24   :  { %241 = dma.done.wait [#allocation5], 32  }
  0x25   :  { %242 = vsyncadd [#allocation5], 4294967264  ;;  %v247_v0 = vmov 0.0   ;;  %v43_v1 = vld [vmem:[#allocation2 + $0x8] sm:$0xff]  ;;  %v45_v2 = vld [vmem:[#allocation2 + $0x18] sm:$0xff]  ;;  %vm70_vm0 = vcmask 523264   ;;  %v60_v27 = vlaneseq }
  0x26   :  { %141 = vmatprep.mubr.f32.mxu0 %v247_v0  ;;  %147 = vmatprep.mubr.f32.mxu1 %v247_v0  ;;  %v42_v3 = vld [vmem:[#allocation2] sm:$0xff]  ;;  %v166_v4 = vpack.c.bf16 %v45_v2, %v43_v1  ;;  %v44_v5 = vld [vmem:[#allocation2 + $0x10] sm:$0xff]  ;;  %v47_v6 = vld [vmem:[#allocation2 + $0x28] sm:$0xff] }
  0x27   :  { %v49_v7 = vld [vmem:[#allocation2 + $0x38] sm:$0xff]  ;;  %v168_v8 = vpack.c.bf16 %v44_v5, %v42_v3  ;;  %v46_v10 = vld [vmem:[#allocation2 + $0x20] sm:$0xff]  ;;  %v48_v11 = vld [vmem:[#allocation2 + $0x30] sm:$0xff]  ;;  %v61_v28 = vshrl.u32 %v60_v27, 7 }
  0x28   :  { %v170_v9 = vpack.c.bf16 %v49_v7, %v47_v6  ;;  %v51_v12 = vld [vmem:[#allocation2 + $0x48] sm:$0xff]  ;;  %167 = vmatprep.subr.bf16.mxu0 %v166_v4  ;;  %182 = vmatprep.subr.bf16.mxu1 %v166_v4  ;;  %v53_v13 = vld [vmem:[#allocation2 + $0x58] sm:$0xff]  ;;  %v172_v14 = vpack.c.bf16 %v48_v11, %v46_v10  ;;  %v50_v16 = vld [vmem:[#allocation2 + $0x40] sm:$0xff] }
  0x29   :  { %169 = vmatpush1.bf16.msra.mxu0 %v168_v8  ;;  %186 = vmatpush1.bf16.msra.mxu1 %v168_v8  ;;  %v174_v15 = vpack.c.bf16 %v53_v13, %v51_v12  ;;  %v52_v17 = vld [vmem:[#allocation2 + $0x50] sm:$0xff]  ;;  %v55_v18 = vld [vmem:[#allocation2 + $0x68] sm:$0xff]  ;;  %v57_v19 = vld [vmem:[#allocation2 + $0x78] sm:$0xff]  ;;  %v62_v29 = vsub.s32 0, %v61_v28  ;;  %v66_v31 = vsub.s32 1, %v61_v28 }
  0x2a   :  { %171 = vmatprep.subr.bf16.mxu0 %v170_v9  ;;  %183 = vmatprep.subr.bf16.mxu1 %v170_v9  ;;  %v176_v20 = vpack.c.bf16 %v52_v17, %v50_v16  ;;  %v178_v21 = vpack.c.bf16 %v57_v19, %v55_v18  ;;  %v54_v22 = vld [vmem:[#allocation2 + $0x60] sm:$0xff]  ;;  %v56_v23 = vld [vmem:[#allocation2 + $0x70] sm:$0xff]  ;;  %v41_v26 = vld [vmem:[%s314_s0 + $0x8] sm:$0xff] }
  0x2b   :  { %v180_v24 = vpack.c.bf16 %v56_v23, %v54_v22  ;;  %v40_v25 = vld [vmem:[%s314_s0] sm:$0xff] }
  0x2c   :  { %v58_v30 = vld [vmem:[#allocation4] sm:$0x3] }
  0x2d   :  { %173 = vmatpush1.bf16.msra.mxu0 %v172_v14  ;;  %187 = vmatpush1.bf16.msra.mxu1 %v172_v14  ;;  %v63_v32 = vrot.slane %v58_v30, %v62_v29  ;;  %v67_v33 = vrot.slane %v58_v30, %v66_v31 }
  0x2e   :  { %175 = vmatprep.subr.bf16.mxu0 %v174_v15  ;;  %184 = vmatprep.subr.bf16.mxu1 %v174_v15 }
  0x31   :  { %177 = vmatpush1.bf16.msra.mxu0 %v176_v20  ;;  %188 = vmatpush1.bf16.msra.mxu1 %v176_v20 }
  0x32   :  { %179 = vmatprep.subr.bf16.mxu0 %v178_v21  ;;  %185 = vmatprep.subr.bf16.mxu1 %v178_v21 }
  0x35   :  { %181 = vmatpush1.bf16.msra.mxu0 %v180_v24  ;;  %189 = vmatpush1.bf16.msra.mxu1 %v180_v24 }
  0x38   :  { %164 = vmatmul.mubr.msk.f32.vlgmr.msra.gmra.mrb[0].mxu0 %vm70_vm0, %v40_v25  ;;  %165 = vmatmul.mubr.msk.f32.vlgmr.msra.gmra.mrb[0].mxu1 %vm70_vm0, %v41_v26 }
 0x10b   :  { %v143_v34 = vpop.f32.mrb[0].mxu0  ;;  %v149_v35 = vpop.f32.mrb[0].mxu1 }
 0x10c   :  { %v144_v36 = vadd.f32 %v143_v34, %v63_v32  ;;  %v150_v37 = vadd.f32 %v149_v35, %v63_v32  ;;  %v145_v38 = vpop.f32.mrb[1].mxu0  ;;  %v151_v39 = vpop.f32.mrb[1].mxu1 }
 0x10d   :  { %v146_v40 = vadd.f32 %v145_v38, %v67_v33  ;;  %v152_v41 = vadd.f32 %v151_v39, %v67_v33 }
 0x10e   :  { %154 = vst [vmem:[%s317_s3] sm:$0xff] %v144_v36  ;;  %156 = vst [vmem:[%s317_s3 + $0x10] sm:$0xff] %v150_v37 }
 0x10f   :  { %155 = vst.msk [vmem:[%s317_s3 + $0x8] sm:$0xff] %vm70_vm0, %v146_v40  ;;  %157 = vst.msk [vmem:[%s317_s3 + $0x18] sm:$0xff] %vm70_vm0, %v152_v41 }
 0x110   :  { %162 = vsyncpa [#allocation3], 1 }
 0x111   :  { %163 = vsyncpa [#allocation5], 1 }

// kernel: _lambda_.25
= control target key start
LH: loop header
LB: loop body
LE: loop exit
PB: predicated region body
PF: predicated region fallthrough
CT: control target
= control target key end

     0   :  { %vm40_vm0 = vcmask 523264   ;;  %s325_s2 = inlined_call_operand.vmem [shape: f32[64,64], index: 2, kind: input, shape index: {}]   ;;  %s326_s0 = inlined_call_operand.vmem [shape: f32[16,64], index: 0, kind: input, shape index: {}]   ;;  %s327_s3 = inlined_call_operand.vmem [shape: f32[1,64], index: 3, kind: input, shape index: {}]   ;;  %s328_s1 = inlined_call_operand.vmem [shape: f32[16,64], index: 1, kind: input, shape index: {}]   ;;  %s329_s4 = inlined_call_operand.vmem [shape: f32[1,64], index: 4, kind: input, shape index: {}]   ;;  %s330_s5 = inlined_call_operand.vmem [shape: f32[1,64], index: 5, kind: input, shape index: {}]   ;;  %s331_s6 = inlined_call_operand.vmem [shape: f32[16,64], index: 6, kind: output, shape index: {}]  }
   0x1   :  { %v25_v0 = vld [vmem:[%s325_s2] sm:$0xff]  ;;  %v26_v1 = vld [vmem:[%s325_s2 + $0x8] sm:$0xff]  ;;  %v27_v2 = vld [vmem:[%s325_s2 + $0x10] sm:$0xff] }
   0x2   :  { %v211_v3 = vpack.c.bf16 %v26_v1, %v25_v0  ;;  %v28_v4 = vld [vmem:[%s325_s2 + $0x18] sm:$0xff]  ;;  %v29_v6 = vld [vmem:[%s325_s2 + $0x20] sm:$0xff]  ;;  %v30_v7 = vld [vmem:[%s325_s2 + $0x28] sm:$0xff] }
   0x3   :  { %v215_v5 = vpack.c.bf16 %v28_v4, %v27_v2  ;;  %v23_v8 = vld [vmem:[%s326_s0] sm:$0xff]  ;;  %v219_v9 = vpack.c.bf16 %v30_v7, %v29_v6  ;;  %v31_v10 = vld [vmem:[%s325_s2 + $0x30] sm:$0xff]  ;;  %v32_v11 = vld [vmem:[%s325_s2 + $0x38] sm:$0xff] }
   0x4   :  { %212 = vmatprep.subr.bf16.mxu0 %v211_v3  ;;  %208 = vmatprep.mubr.msk.f32.mxu0 %vm40_vm0, %v23_v8  ;;  %v223_v12 = vpack.c.bf16 %v32_v11, %v31_v10  ;;  %v24_v13 = vld [vmem:[%s326_s0 + $0x8] sm:$0xff]  ;;  %v177_v14 = vld [vmem:[%s327_s3] ss:$0 sm:$0xff] }
   0x5   :  { %214 = vmatpush3.bf16.msra.mxu0 %v211_v3  ;;  %v122_v17 = vld [vmem:[%s328_s1] sm:$0xff]  ;;  %v123_v20 = vld [vmem:[%s328_s1 + $0x8] sm:$0xff] }
   0x6   :  { %216 = vmatprep.subr.bf16.mxu0 %v215_v5  ;;  %v180_v42 = vld [vmem:[%s329_s4] ss:$0 sm:$0xff] }
   0x7   :  { %v181_v44 = vld [vmem:[%s330_s5] ss:$0 sm:$0xff] }
   0x9   :  { %218 = vmatpush3.bf16.msra.mxu0 %v215_v5 }
   0xa   :  { %220 = vmatprep.subr.bf16.mxu0 %v219_v9 }
   0xd   :  { %222 = vmatpush3.bf16.msra.mxu0 %v219_v9 }
   0xe   :  { %224 = vmatprep.subr.bf16.mxu0 %v223_v12 }
  0x11   :  { %226 = vmatpush3.bf16.msra.mxu0 %v223_v12 }
  0x14   :  { %209 = vmatmul.mubr.msk.f32.vlgmr.msra.gmra.mrb[0].mxu0 %vm40_vm0, %v24_v13 }
  0xe7   :  { %v210_v15 = vpop.f32.mrb[0].mxu0 }
  0xe8   :  { %v113_v16 = vpop.f32.mrb[1].mxu0  ;;  %v119_v18 = vadd.f32 %v210_v15, %v177_v14 }
  0xe9   :  { %v114_v19 = vadd.f32 %v177_v14, %v113_v16 }
  0xea   :  { %v125_v23 = vadd.f32 %v123_v20, %v119_v18 }
  0xeb   :  { %v124_v21 = vadd.f32 %v122_v17, %v114_v19 }
  0xec   :  { %v131_v24 = vsel %vm40_vm0, %v125_v23, 0.0 }
  0xed   :  { %v128_v22 = vsel %vm40_vm0, %v124_v21, 0.0 }
  0xee   :  { %129 = vadd.xlane.f32.xlu0 %v128_v22 }
  0xf2   :  { %132 = vadd.xlane.f32.xlu0 %v131_v24 }
 0x17b   :  { %v130_v25 = vpop.xlane.xlu0 %129 }
 0x17c   :  { %v135_v26 = vmul.f32 0.015625, %v130_v25 }
 0x17e   :  { %v137_v27 = vsub.f32 %v124_v21, %v135_v26 }
 0x17f   :  { %v133_v28 = vpop.xlane.xlu0 %132 }
 0x180   :  { %v136_v29 = vmul.f32 0.015625, %v133_v28  ;;  %v139_v30 = vmul.f32 %v137_v27, %v137_v27 }
 0x182   :  { %v138_v31 = vsub.f32 %v125_v23, %v136_v29  ;;  %v141_v32 = vsel %vm40_vm0, %v139_v30, 0.0 }
 0x183   :  { %142 = vadd.xlane.f32.xlu1 %v141_v32 }
 0x184   :  { %v140_v33 = vmul.f32 %v138_v31, %v138_v31 }
 0x186   :  { %v144_v34 = vsel %vm40_vm0, %v140_v33, 0.0 }
 0x187   :  { %145 = vadd.xlane.f32.xlu1 %v144_v34 }
 0x210   :  { %v143_v35 = vpop.xlane.xlu1 %142 }
 0x211   :  { %v147_v36 = vmul.f32 0.015625, %v143_v35 }
 0x213   :  { %v149_v37 = vadd.f32 1e-05, %v147_v36 }
 0x214   :  { %v146_v38 = vpop.xlane.xlu1 %145 }
 0x215   :  { %227 = vrsqrt.f32 %v149_v37  ;;  %v148_v39 = vmul.f32 0.015625, %v146_v38 }
 0x217   :  { %v150_v40 = vadd.f32 1e-05, %v148_v39 }
 0x219   :  { %229 = vrsqrt.f32 %v150_v40 }
 0x21f   :  { %v228_v41 = vpop.eup %227 }
 0x220   :  { %v153_v43 = vmul.f32 %v228_v41, %v137_v27 }
 0x222   :  { %v161_v45 = vmul.f32 %v180_v42, %v153_v43 }
 0x223   :  { %v230_v46 = vpop.eup %229 }
 0x224   :  { %v169_v47 = vadd.f32 %v181_v44, %v161_v45  ;;  %v154_v48 = vmul.f32 %v230_v46, %v138_v31 }
 0x226   :  { %171 = vst.msk [vmem:[%s331_s6] sm:$0xff] %vm40_vm0, %v169_v47  ;;  %v162_v49 = vmul.f32 %v180_v42, %v154_v48 }
 0x228   :  { %v170_v50 = vadd.f32 %v181_v44, %v162_v49 }
 0x22a   :  { %172 = vst.msk [vmem:[%s331_s6 + $0x8] sm:$0xff] %vm40_vm0, %v170_v50 }

// kernel: _lambda_.27
= control target key start
LH: loop header
LB: loop body
LE: loop exit
PB: predicated region body
PF: predicated region fallthrough
CT: control target
= control target key end

     0   :  { %v163_v3 = vmov 0.0   ;;  %vm44_vm0 = vcmask 523264   ;;  %v34_v27 = vlaneseq  ;;  %s257_s1 = inlined_call_operand.vmem [shape: f32[64,192], index: 1, kind: input, shape index: {}]   ;;  %s258_s0 = inlined_call_operand.vmem [shape: f32[16,64], index: 0, kind: input, shape index: {}]   ;;  %s259_s2 = inlined_call_operand.vmem [shape: f32[1,192], index: 2, kind: input, shape index: {}]   ;;  %s260_s3 = inlined_call_operand.vmem [shape: f32[16,192], index: 3, kind: output, shape index: {}]  }
   0x1   :  { %v17_v0 = vld [vmem:[%s257_s1 + $0x8] sm:$0xff]  ;;  %v19_v1 = vld [vmem:[%s257_s1 + $0x18] sm:$0xff]  ;;  %v16_v2 = vld [vmem:[%s257_s1] sm:$0xff]  ;;  %115 = vmatprep.mubr.f32.mxu0 %v163_v3  ;;  %121 = vmatprep.mubr.f32.mxu1 %v163_v3 }
   0x2   :  { %v138_v4 = vpack.c.bf16 %v19_v1, %v17_v0  ;;  %v18_v5 = vld [vmem:[%s257_s1 + $0x10] sm:$0xff]  ;;  %v21_v6 = vld [vmem:[%s257_s1 + $0x28] sm:$0xff]  ;;  %v23_v7 = vld [vmem:[%s257_s1 + $0x38] sm:$0xff]  ;;  %v35_v28 = vshrl.u32 %v34_v27, 7 }
   0x3   :  { %v140_v8 = vpack.c.bf16 %v18_v5, %v16_v2  ;;  %v142_v9 = vpack.c.bf16 %v23_v7, %v21_v6  ;;  %v20_v10 = vld [vmem:[%s257_s1 + $0x20] sm:$0xff]  ;;  %v22_v11 = vld [vmem:[%s257_s1 + $0x30] sm:$0xff]  ;;  %v25_v12 = vld [vmem:[%s257_s1 + $0x48] sm:$0xff] }
   0x4   :  { %139 = vmatprep.subr.bf16.mxu0 %v138_v4  ;;  %154 = vmatprep.subr.bf16.mxu1 %v138_v4  ;;  %v27_v13 = vld [vmem:[%s257_s1 + $0x58] sm:$0xff]  ;;  %v144_v14 = vpack.c.bf16 %v22_v11, %v20_v10  ;;  %v24_v16 = vld [vmem:[%s257_s1 + $0x40] sm:$0xff]  ;;  %v26_v17 = vld [vmem:[%s257_s1 + $0x50] sm:$0xff]  ;;  %v36_v29 = vsub.s32 0, %v35_v28  ;;  %v40_v31 = vsub.s32 1, %v35_v28 }
   0x5   :  { %141 = vmatpush1.bf16.msra.mxu0 %v140_v8  ;;  %158 = vmatpush1.bf16.msra.mxu1 %v140_v8  ;;  %v146_v15 = vpack.c.bf16 %v27_v13, %v25_v12  ;;  %v29_v18 = vld [vmem:[%s257_s1 + $0x68] sm:$0xff]  ;;  %v31_v19 = vld [vmem:[%s257_s1 + $0x78] sm:$0xff]  ;;  %v148_v20 = vpack.c.bf16 %v26_v17, %v24_v16  ;;  %v28_v22 = vld [vmem:[%s257_s1 + $0x60] sm:$0xff] }
   0x6   :  { %143 = vmatprep.subr.bf16.mxu0 %v142_v9  ;;  %155 = vmatprep.subr.bf16.mxu1 %v142_v9  ;;  %v150_v21 = vpack.c.bf16 %v31_v19, %v29_v18  ;;  %v30_v23 = vld [vmem:[%s257_s1 + $0x70] sm:$0xff]  ;;  %v14_v25 = vld [vmem:[%s258_s0] sm:$0xff]  ;;  %v15_v26 = vld [vmem:[%s258_s0 + $0x8] sm:$0xff] }
   0x7   :  { %v152_v24 = vpack.c.bf16 %v30_v23, %v28_v22  ;;  %v32_v30 = vld [vmem:[%s259_s2] sm:$0x3] }
   0x8   :  { %v37_v32 = vrot.slane %v32_v30, %v36_v29  ;;  %v41_v33 = vrot.slane %v32_v30, %v40_v31 }
   0x9   :  { %145 = vmatpush1.bf16.msra.mxu0 %v144_v14  ;;  %159 = vmatpush1.bf16.msra.mxu1 %v144_v14 }
   0xa   :  { %147 = vmatprep.subr.bf16.mxu0 %v146_v15  ;;  %156 = vmatprep.subr.bf16.mxu1 %v146_v15 }
   0xd   :  { %149 = vmatpush1.bf16.msra.mxu0 %v148_v20  ;;  %160 = vmatpush1.bf16.msra.mxu1 %v148_v20 }
   0xe   :  { %151 = vmatprep.subr.bf16.mxu0 %v150_v21  ;;  %157 = vmatprep.subr.bf16.mxu1 %v150_v21 }
  0x11   :  { %153 = vmatpush1.bf16.msra.mxu0 %v152_v24  ;;  %161 = vmatpush1.bf16.msra.mxu1 %v152_v24 }
  0x14   :  { %136 = vmatmul.mubr.msk.f32.vlgmr.msra.gmra.mrb[0].mxu0 %vm44_vm0, %v14_v25  ;;  %137 = vmatmul.mubr.msk.f32.vlgmr.msra.gmra.mrb[0].mxu1 %vm44_vm0, %v15_v26 }
  0xe7   :  { %v117_v34 = vpop.f32.mrb[0].mxu0  ;;  %v123_v35 = vpop.f32.mrb[0].mxu1 }
  0xe8   :  { %v118_v36 = vadd.f32 %v117_v34, %v37_v32  ;;  %v124_v37 = vadd.f32 %v123_v35, %v37_v32  ;;  %v119_v38 = vpop.f32.mrb[1].mxu0  ;;  %v125_v39 = vpop.f32.mrb[1].mxu1 }
  0xe9   :  { %v120_v40 = vadd.f32 %v119_v38, %v41_v33  ;;  %v126_v41 = vadd.f32 %v125_v39, %v41_v33 }
  0xea   :  { %128 = vst [vmem:[%s260_s3] sm:$0xff] %v118_v36  ;;  %130 = vst [vmem:[%s260_s3 + $0x10] sm:$0xff] %v124_v37 }
  0xeb   :  { %129 = vst.msk [vmem:[%s260_s3 + $0x8] sm:$0xff] %vm44_vm0, %v120_v40  ;;  %131 = vst.msk [vmem:[%s260_s3 + $0x18] sm:$0xff] %vm44_vm0, %v126_v41 }

// kernel: _lambda_.43
= control target key start
LH: loop header
LB: loop body
LE: loop exit
PB: predicated region body
PF: predicated region fallthrough
CT: control target
= control target key end

     0   :  { %vm51_vm0 = vcmask 523264   ;;  %vm445_vm1 = vcmask 7168   ;;  %s834_s1 = inlined_call_operand.vmem [shape: f32[64,64], index: 1, kind: input, shape index: {}]   ;;  %s835_s0 = inlined_call_operand.vmem [shape: f32[16,64], index: 0, kind: input, shape index: {}]   ;;  %s836_s3 = inlined_call_operand.vmem [shape: f32[64,64], index: 3, kind: input, shape index: {}]   ;;  %s837_s2 = inlined_call_operand.vmem [shape: f32[1,64], index: 2, kind: input, shape index: {}]   ;;  %s838_s5 = inlined_call_operand.vmem [shape: f32[64,64], index: 5, kind: input, shape index: {}]   ;;  %s839_s4 = inlined_call_operand.vmem [shape: f32[1,64], index: 4, kind: input, shape index: {}]   ;;  %s840_s7 = inlined_call_operand.vmem [shape: f32[64,1], index: 7, kind: input, shape index: {}]   ;;  %s841_s8 = inlined_call_operand.<no memory space> [shape: f32[1,1], index: 8, kind: input, shape index: {}]   ;;  %s842_s6 = inlined_call_operand.vmem [shape: f32[1,64], index: 6, kind: input, shape index: {}]   ;;  %s843_s9 = inlined_call_operand.vmem [shape: f32[16,1], index: 9, kind: output, shape index: {}]  }
   0x1   :  { %v36_v0 = vld [vmem:[%s834_s1] sm:$0xff]  ;;  %v37_v1 = vld [vmem:[%s834_s1 + $0x8] sm:$0xff]  ;;  %v38_v2 = vld [vmem:[%s834_s1 + $0x10] sm:$0xff] }
   0x2   :  { %v580_v3 = vpack.c.bf16 %v37_v1, %v36_v0  ;;  %v39_v4 = vld [vmem:[%s834_s1 + $0x18] sm:$0xff]  ;;  %v40_v6 = vld [vmem:[%s834_s1 + $0x20] sm:$0xff]  ;;  %v41_v7 = vld [vmem:[%s834_s1 + $0x28] sm:$0xff] }
   0x3   :  { %v584_v5 = vpack.c.bf16 %v39_v4, %v38_v2  ;;  %v34_v8 = vld [vmem:[%s835_s0] sm:$0xff]  ;;  %v588_v9 = vpack.c.bf16 %v41_v7, %v40_v6  ;;  %v42_v10 = vld [vmem:[%s834_s1 + $0x30] sm:$0xff]  ;;  %v43_v11 = vld [vmem:[%s834_s1 + $0x38] sm:$0xff] }
   0x4   :  { %581 = vmatprep.subr.bf16.mxu0 %v580_v3  ;;  %520 = vmatprep.mubr.msk.f32.mxu0 %vm51_vm0, %v34_v8  ;;  %v592_v12 = vpack.c.bf16 %v43_v11, %v42_v10  ;;  %v35_v13 = vld [vmem:[%s835_s0 + $0x8] sm:$0xff]  ;;  %v141_v14 = vld [vmem:[%s836_s3] sm:$0xff]  ;;  %v143_v17 = vld [vmem:[%s836_s3 + $0x10] sm:$0xff] }
   0x5   :  { %583 = vmatpush3.bf16.msra.mxu0 %v580_v3  ;;  %v142_v15 = vld [vmem:[%s836_s3 + $0x8] sm:$0xff]  ;;  %v144_v18 = vld [vmem:[%s836_s3 + $0x18] sm:$0xff]  ;;  %v145_v20 = vld [vmem:[%s836_s3 + $0x20] sm:$0xff] }
   0x6   :  { %585 = vmatprep.subr.bf16.mxu0 %v584_v5  ;;  %v596_v16 = vpack.c.bf16 %v142_v15, %v141_v14  ;;  %v600_v19 = vpack.c.bf16 %v144_v18, %v143_v17  ;;  %v146_v21 = vld [vmem:[%s836_s3 + $0x28] sm:$0xff]  ;;  %v147_v23 = vld [vmem:[%s836_s3 + $0x30] sm:$0xff]  ;;  %v148_v24 = vld [vmem:[%s836_s3 + $0x38] sm:$0xff] }
   0x7   :  { %v604_v22 = vpack.c.bf16 %v146_v21, %v145_v20  ;;  %v608_v25 = vpack.c.bf16 %v148_v24, %v147_v23  ;;  %v452_v26 = vld [vmem:[%s837_s2] ss:$0 sm:$0xff]  ;;  %v246_v40 = vld [vmem:[%s838_s5 + $0x8] sm:$0xff]  ;;  %v247_v42 = vld [vmem:[%s838_s5 + $0x10] sm:$0xff] }
   0x8   :  { %597 = vmatprep.subr.bf16.mxu1 %v596_v16  ;;  %v245_v39 = vld [vmem:[%s838_s5] sm:$0xff]  ;;  %v248_v43 = vld [vmem:[%s838_s5 + $0x18] sm:$0xff]  ;;  %v250_v46 = vld [vmem:[%s838_s5 + $0x28] sm:$0xff] }
   0x9   :  { %587 = vmatpush3.bf16.msra.mxu0 %v584_v5  ;;  %599 = vmatpush3.bf16.msra.mxu1 %v596_v16  ;;  %v612_v41 = vpack.c.bf16 %v246_v40, %v245_v39  ;;  %v616_v44 = vpack.c.bf16 %v248_v43, %v247_v42  ;;  %v249_v45 = vld [vmem:[%s838_s5 + $0x20] sm:$0xff]  ;;  %v251_v48 = vld [vmem:[%s838_s5 + $0x30] sm:$0xff]  ;;  %v252_v49 = vld [vmem:[%s838_s5 + $0x38] sm:$0xff] }
   0xa   :  { %589 = vmatprep.subr.bf16.mxu0 %v588_v9  ;;  %601 = vmatprep.subr.bf16.mxu1 %v600_v19  ;;  %v620_v47 = vpack.c.bf16 %v250_v46, %v249_v45  ;;  %v624_v50 = vpack.c.bf16 %v252_v49, %v251_v48  ;;  %v455_v51 = vld [vmem:[%s839_s4] ss:$0 sm:$0xff]  ;;  %v350_v1 = vld [vmem:[%s840_s7 + $0x8] sm:$0xff]  ;;  %v351_v3 = vld [vmem:[%s840_s7 + $0x10] sm:$0xff] }
   0xb   :  { %v349_v0 = vld [vmem:[%s840_s7] sm:$0xff]  ;;  %v352_v4 = vld [vmem:[%s840_s7 + $0x18] sm:$0xff]  ;;  %v354_v7 = vld [vmem:[%s840_s7 + $0x28] sm:$0xff] }
   0xc   :  { %v628_v2 = vpack.c.bf16 %v350_v1, %v349_v0  ;;  %v632_v5 = vpack.c.bf16 %v352_v4, %v351_v3  ;;  %v353_v6 = vld [vmem:[%s840_s7 + $0x20] sm:$0xff]  ;;  %v356_v10 = vld [vmem:[%s840_s7 + $0x38] sm:$0xff] }
   0xd   :  { %591 = vmatpush3.bf16.msra.mxu0 %v588_v9  ;;  %603 = vmatpush3.bf16.msra.mxu1 %v600_v19  ;;  %v636_v8 = vpack.c.bf16 %v354_v7, %v353_v6  ;;  %v355_v9 = vld [vmem:[%s840_s7 + $0x30] sm:$0xff] }
   0xe   :  { %593 = vmatprep.subr.bf16.mxu0 %v592_v12  ;;  %605 = vmatprep.subr.bf16.mxu1 %v604_v22  ;;  %v640_v11 = vpack.c.bf16 %v356_v10, %v355_v9 }
  0x11   :  { %595 = vmatpush3.bf16.msra.mxu0 %v592_v12  ;;  %607 = vmatpush3.bf16.msra.mxu1 %v604_v22  ;;  %v14_v12 = vstv %s841_s8 }
  0x12   :  { %609 = vmatprep.subr.bf16.mxu1 %v608_v25  ;;  %613 = vmatprep.subr.bf16.mxu0 %v612_v41  ;;  %15 = vst [vmem:[#allocation2] sm:$0x1] %v14_v12 }
  0x14   :  { %521 = vmatmul.mubr.msk.f32.vlgmr.msra.gmra.mrb[0].mxu0 %vm51_vm0, %v35_v13  ;;  %v458_v13 = vld [vmem:[%s842_s6] ss:$0 sm:$0xff] }
  0x15   :  { %611 = vmatpush3.bf16.msra.mxu1 %v608_v25  ;;  %615 = vmatpush3.bf16.msra.mxu0 %v612_v41 }
  0x16   :  { %617 = vmatprep.subr.bf16.mxu0 %v616_v44  ;;  %629 = vmatprep.subr.bf16.mxu1 %v628_v2 }
  0x19   :  { %619 = vmatpush3.bf16.msra.mxu0 %v616_v44 }
  0x1a   :  { %621 = vmatprep.subr.bf16.mxu0 %v620_v47 }
  0x1d   :  { %623 = vmatpush3.bf16.msra.mxu0 %v620_v47 }
  0x1e   :  { %625 = vmatprep.subr.bf16.mxu0 %v624_v50 }
  0x21   :  { %627 = vmatpush3.bf16.msra.mxu0 %v624_v50 }
  0xe7   :  { %v522_v27 = vpop.f32.mrb[0].mxu0 }
  0xe8   :  { %v130_v28 = vadd.f32 %v522_v27, %v452_v26  ;;  %v124_v29 = vpop.f32.mrb[1].mxu0 }
  0xe9   :  { %v125_v30 = vadd.f32 %v452_v26, %v124_v29  ;;  %v461_v26 = vld [vmem:[#allocation2] ss:$0 sm:$0xff] }
  0xea   :  { %v134_v31 = vand.u32 2147483647, %v130_v28 }
  0xeb   :  { %v133_v32 = vand.u32 2147483647, %v125_v30 }
  0xec   :  { %v136_v33 = vadd.f32 1.0, %v134_v31 }
  0xed   :  { %v135_v34 = vadd.f32 1.0, %v133_v32 }
  0xee   :  { %644 = vrcp.f32 %v136_v33 }
  0xef   :  { %646 = vrcp.f32 %v135_v34 }
  0xf8   :  { %v645_v35 = vpop.eup %644 }
  0xf9   :  { %v647_v36 = vpop.eup %646  ;;  %v140_v38 = vmul.f32 %v645_v35, %v130_v28 }
  0xfa   :  { %v138_v37 = vmul.f32 %v647_v36, %v125_v30 }
  0xfc   :  { %539 = vmatprep.mubr.msk.f32.mxu1 %vm51_vm0, %v138_v37 }
  0xfd   :  { %540 = vmatmul.mubr.msk.f32.vlgmr.msra.gmra.mrb[0].mxu1 %vm51_vm0, %v140_v38 }
  0xfe   :  { %631 = vmatpush3.bf16.msra.mxu1 %v628_v2 }
  0xff   :  { %633 = vmatprep.subr.bf16.mxu1 %v632_v5 }
 0x102   :  { %635 = vmatpush3.bf16.msra.mxu1 %v632_v5 }
 0x103   :  { %637 = vmatprep.subr.bf16.mxu1 %v636_v8 }
 0x106   :  { %639 = vmatpush3.bf16.msra.mxu1 %v636_v8 }
 0x107   :  { %641 = vmatprep.subr.bf16.mxu1 %v640_v11 }
 0x10a   :  { %643 = vmatpush3.bf16.msra.mxu1 %v640_v11 }
 0x1d0   :  { %v541_v52 = vpop.f32.mrb[0].mxu1 }
 0x1d1   :  { %v234_v53 = vadd.f32 %v541_v52, %v455_v51  ;;  %v228_v54 = vpop.f32.mrb[1].mxu1 }
 0x1d2   :  { %v229_v55 = vadd.f32 %v455_v51, %v228_v54 }
 0x1d3   :  { %v238_v56 = vand.u32 2147483647, %v234_v53 }
 0x1d4   :  { %v237_v57 = vand.u32 2147483647, %v229_v55 }
 0x1d5   :  { %v240_v58 = vadd.f32 1.0, %v238_v56 }
 0x1d6   :  { %v239_v59 = vadd.f32 1.0, %v237_v57 }
 0x1d7   :  { %648 = vrcp.f32 %v240_v58 }
 0x1d8   :  { %650 = vrcp.f32 %v239_v59 }
 0x1e1   :  { %v649_v60 = vpop.eup %648 }
 0x1e2   :  { %v651_v61 = vpop.eup %650  ;;  %v244_v63 = vmul.f32 %v649_v60, %v234_v53 }
 0x1e3   :  { %v242_v62 = vmul.f32 %v651_v61, %v229_v55 }
 0x1e5   :  { %558 = vmatprep.mubr.msk.f32.mxu0 %vm51_vm0, %v242_v62 }
 0x1e6   :  { %559 = vmatmul.mubr.msk.f32.vlgmr.msra.gmra.mrb[2].mxu0 %vm51_vm0, %v244_v63 }
 0x2b9   :  { %v560_v14 = vpop.f32.mrb[2].mxu0 }
 0x2ba   :  { %v338_v15 = vadd.f32 %v560_v14, %v458_v13  ;;  %v332_v16 = vpop.f32.mrb[3].mxu0 }
 0x2bb   :  { %v333_v17 = vadd.f32 %v458_v13, %v332_v16 }
 0x2bc   :  { %v342_v18 = vand.u32 2147483647, %v338_v15 }
 0x2bd   :  { %v341_v19 = vand.u32 2147483647, %v333_v17 }
 0x2be   :  { %v344_v20 = vadd.f32 1.0, %v342_v18 }
 0x2bf   :  { %v343_v21 = vadd.f32 1.0, %v341_v19 }
 0x2c0   :  { %652 = vrcp.f32 %v344_v20 }
 0x2c1   :  { %654 = vrcp.f32 %v343_v21 }
 0x2ca   :  { %v653_v22 = vpop.eup %652 }
 0x2cb   :  { %v655_v23 = vpop.eup %654  ;;  %v348_v25 = vmul.f32 %v653_v22, %v338_v15 }
 0x2cc   :  { %v346_v24 = vmul.f32 %v655_v23, %v333_v17 }
 0x2ce   :  { %577 = vmatprep.mubr.msk.f32.mxu1 %vm51_vm0, %v346_v24 }
 0x2cf   :  { %578 = vmatmul.mubr.msk.f32.vlgmr.msra.gmra.mrb[2].mxu1 %vm51_vm0, %v348_v25 }
 0x3a2   :  { %v579_v27 = vpop.f32.mrb[2].mxu1 }
 0x3a3   :  { %v442_v28 = vadd.f32 %v579_v27, %v461_v26  ;;  %v436_v29 = vpop.f32.mrb[3].mxu1 }
 0x3a4   :  { %v437_v30 = vadd.f32 %v461_v26, %v436_v29 }
 0x3a5   :  { %447 = vst.msk [vmem:[%s843_s9 + $0x8] sm:$0xff] %vm445_vm1, %v442_v28 }
 0x3a6   :  { %446 = vst.msk [vmem:[%s843_s9] sm:$0xff] %vm445_vm1, %v437_v30 }

// kernel: _lambda_.26
= control target key start
LH: loop header
LB: loop body
LE: loop exit
PB: predicated region body
PF: predicated region fallthrough
CT: control target
= control target key end

     0   :  { %v4947_v3 = vmov 0.0   ;;  %vm452_vm0 = vcmask 523264   ;;  %s7746_s1 = inlined_call_operand.vmem [shape: f32[64,4096], index: 1, kind: input, shape index: {}]   ;;  %s7747_s0 = inlined_call_operand.vmem [shape: f32[16,64], index: 0, kind: input, shape index: {}]   ;;  %s7748_s3 = inlined_call_operand.vmem [shape: f32[4096,64], index: 3, kind: input, shape index: {}]   ;;  %s7749_s2 = inlined_call_operand.vmem [shape: f32[1,4096], index: 2, kind: input, shape index: {}]   ;;  %s7750_s4 = inlined_call_operand.vmem [shape: f32[1,64], index: 4, kind: input, shape index: {}]   ;;  %s7751_s5 = inlined_call_operand.vmem [shape: f32[1,64], index: 5, kind: input, shape index: {}]   ;;  %s7752_s6 = inlined_call_operand.vmem [shape: f32[1,64], index: 6, kind: input, shape index: {}]   ;;  %s7753_s7 = inlined_call_operand.vmem [shape: f32[16,64], index: 7, kind: output, shape index: {}]  }
   0x1   :  { %v29_v0 = vld [vmem:[%s7746_s1 + $0x8] sm:$0xff]  ;;  %v31_v2 = vld [vmem:[%s7746_s1 + $0x18] sm:$0xff]  ;;  %523 = vmatprep.mubr.f32.mxu0 %v4947_v3  ;;  %600 = vmatprep.mubr.f32.mxu1 %v4947_v3  ;;  %v28_v6 = vld [vmem:[%s7746_s1] sm:$0xff] }
   0x2   :  { %v61_v1 = vld [vmem:[%s7746_s1 + $0x108] sm:$0xff]  ;;  %v63_v5 = vld [vmem:[%s7746_s1 + $0x118] sm:$0xff]  ;;  %v60_v7 = vld [vmem:[%s7746_s1 + $0x100] sm:$0xff] }
   0x3   :  { %v4170_v4 = vpack.c.bf16 %v61_v1, %v29_v0  ;;  %v4186_v8 = vpack.c.bf16 %v63_v5, %v31_v2  ;;  %v4172_v9 = vpack.c.bf16 %v60_v7, %v28_v6  ;;  %v30_v10 = vld [vmem:[%s7746_s1 + $0x10] sm:$0xff]  ;;  %v93_v12 = vld [vmem:[%s7746_s1 + $0x208] sm:$0xff]  ;;  %v95_v15 = vld [vmem:[%s7746_s1 + $0x218] sm:$0xff] }
   0x4   :  { %v62_v11 = vld [vmem:[%s7746_s1 + $0x110] sm:$0xff]  ;;  %v125_v14 = vld [vmem:[%s7746_s1 + $0x308] sm:$0xff]  ;;  %v127_v16 = vld [vmem:[%s7746_s1 + $0x318] sm:$0xff] }
   0x5   :  { %4171 = vmatprep.subr.bf16.mxu0 %v4170_v4  ;;  %v4188_v13 = vpack.c.bf16 %v62_v11, %v30_v10  ;;  %4187 = vmatprep.subr.bf16.mxu1 %v4186_v8  ;;  %v4174_v17 = vpack.c.bf16 %v125_v14, %v93_v12  ;;  %v4190_v18 = vpack.c.bf16 %v127_v16, %v95_v15  ;;  %v92_v19 = vld [vmem:[%s7746_s1 + $0x200] sm:$0xff]  ;;  %v94_v21 = vld [vmem:[%s7746_s1 + $0x210] sm:$0xff]  ;;  %v157_v24 = vld [vmem:[%s7746_s1 + $0x408] sm:$0xff] }
   0x6   :  { %4173 = vmatpush1.bf16.msra.mxu0 %v4172_v9  ;;  %v124_v20 = vld [vmem:[%s7746_s1 + $0x300] sm:$0xff]  ;;  %v126_v23 = vld [vmem:[%s7746_s1 + $0x310] sm:$0xff]  ;;  %v189_v25 = vld [vmem:[%s7746_s1 + $0x508] sm:$0xff] }
   0x7   :  { %4189 = vmatpush1.bf16.msra.mxu1 %v4188_v13  ;;  %v4176_v22 = vpack.c.bf16 %v124_v20, %v92_v19  ;;  %4175 = vmatprep.subr.bf16.mxu0 %v4174_v17  ;;  %v4192_v26 = vpack.c.bf16 %v126_v23, %v94_v21  ;;  %v4178_v27 = vpack.c.bf16 %v189_v25, %v157_v24  ;;  %v159_v28 = vld [vmem:[%s7746_s1 + $0x418] sm:$0xff]  ;;  %v156_v30 = vld [vmem:[%s7746_s1 + $0x400] sm:$0xff]  ;;  %v158_v33 = vld [vmem:[%s7746_s1 + $0x410] sm:$0xff] }
   0x8   :  { %4191 = vmatprep.subr.bf16.mxu1 %v4190_v18  ;;  %v191_v29 = vld [vmem:[%s7746_s1 + $0x518] sm:$0xff]  ;;  %v188_v32 = vld [vmem:[%s7746_s1 + $0x500] sm:$0xff]  ;;  %v190_v34 = vld [vmem:[%s7746_s1 + $0x510] sm:$0xff] }
   0x9   :  { %v4194_v31 = vpack.c.bf16 %v191_v29, %v159_v28  ;;  %v4180_v35 = vpack.c.bf16 %v188_v32, %v156_v30  ;;  %v221_v36 = vld [vmem:[%s7746_s1 + $0x608] sm:$0xff]  ;;  %v223_v38 = vld [vmem:[%s7746_s1 + $0x618] sm:$0xff]  ;;  %v4196_v39 = vpack.c.bf16 %v190_v34, %v158_v33  ;;  %v220_v42 = vld [vmem:[%s7746_s1 + $0x600] sm:$0xff] }
   0xa   :  { %4177 = vmatpush1.bf16.msra.mxu0 %v4176_v22  ;;  %v253_v37 = vld [vmem:[%s7746_s1 + $0x708] sm:$0xff]  ;;  %v255_v41 = vld [vmem:[%s7746_s1 + $0x718] sm:$0xff]  ;;  %v252_v43 = vld [vmem:[%s7746_s1 + $0x700] sm:$0xff] }
   0xb   :  { %4193 = vmatpush1.bf16.msra.mxu1 %v4192_v26  ;;  %4179 = vmatprep.subr.bf16.mxu0 %v4178_v27  ;;  %v4182_v40 = vpack.c.bf16 %v253_v37, %v221_v36  ;;  %v4198_v44 = vpack.c.bf16 %v255_v41, %v223_v38  ;;  %v222_v45 = vld [vmem:[%s7746_s1 + $0x610] sm:$0xff]  ;;  %v33_v47 = vld [vmem:[%s7746_s1 + $0x28] sm:$0xff]  ;;  %v35_v49 = vld [vmem:[%s7746_s1 + $0x38] sm:$0xff]  ;;  %v4184_v50 = vpack.c.bf16 %v252_v43, %v220_v42 }
   0xc   :  { %4195 = vmatprep.subr.bf16.mxu1 %v4194_v31  ;;  %v254_v46 = vld [vmem:[%s7746_s1 + $0x710] sm:$0xff]  ;;  %v65_v48 = vld [vmem:[%s7746_s1 + $0x128] sm:$0xff]  ;;  %v67_v51 = vld [vmem:[%s7746_s1 + $0x138] sm:$0xff] }
   0xd   :  { %v4200_v52 = vpack.c.bf16 %v254_v46, %v222_v45  ;;  %v4202_v53 = vpack.c.bf16 %v65_v48, %v33_v47  ;;  %v32_v54 = vld [vmem:[%s7746_s1 + $0x20] sm:$0xff]  ;;  %v34_v56 = vld [vmem:[%s7746_s1 + $0x30] sm:$0xff]  ;;  %v4218_v57 = vpack.c.bf16 %v67_v51, %v35_v49  ;;  %v97_v59 = vld [vmem:[%s7746_s1 + $0x228] sm:$0xff] }
   0xe   :  { %4181 = vmatpush1.bf16.msra.mxu0 %v4180_v35  ;;  %v64_v55 = vld [vmem:[%s7746_s1 + $0x120] sm:$0xff]  ;;  %v66_v58 = vld [vmem:[%s7746_s1 + $0x130] sm:$0xff]  ;;  %v129_v60 = vld [vmem:[%s7746_s1 + $0x328] sm:$0xff] }
   0xf   :  { %4197 = vmatpush1.bf16.msra.mxu1 %v4196_v39  ;;  %4183 = vmatprep.subr.bf16.mxu0 %v4182_v40  ;;  %v99_v61 = vld [vmem:[%s7746_s1 + $0x238] sm:$0xff]  ;;  %v5125_v63 = vld [vmem:[%s7747_s0] sm:$0xff]  ;;  %v4204_v0 = vpack.c.bf16 %v64_v55, %v32_v54  ;;  %v4220_v1 = vpack.c.bf16 %v66_v58, %v34_v56  ;;  %v4206_v2 = vpack.c.bf16 %v129_v60, %v97_v59  ;;  %v98_v6 = vld [vmem:[%s7746_s1 + $0x230] sm:$0xff] }
  0x10   :  { %4199 = vmatprep.subr.bf16.mxu1 %v4198_v44  ;;  %v131_v62 = vld [vmem:[%s7746_s1 + $0x338] sm:$0xff]  ;;  %v96_v4 = vld [vmem:[%s7746_s1 + $0x220] sm:$0xff]  ;;  %v130_v8 = vld [vmem:[%s7746_s1 + $0x330] sm:$0xff] }
  0x11   :  { %v128_v5 = vld [vmem:[%s7746_s1 + $0x320] sm:$0xff]  ;;  %v4222_v7 = vpack.c.bf16 %v131_v62, %v99_v61  ;;  %v161_v9 = vld [vmem:[%s7746_s1 + $0x428] sm:$0xff]  ;;  %v163_v11 = vld [vmem:[%s7746_s1 + $0x438] sm:$0xff]  ;;  %v4224_v15 = vpack.c.bf16 %v130_v8, %v98_v6 }
  0x12   :  { %4185 = vmatpush1.bf16.msra.mxu0 %v4184_v50  ;;  %v193_v10 = vld [vmem:[%s7746_s1 + $0x528] sm:$0xff]  ;;  %v195_v12 = vld [vmem:[%s7746_s1 + $0x538] sm:$0xff]  ;;  %v4208_v13 = vpack.c.bf16 %v128_v5, %v96_v4  ;;  %v160_v17 = vld [vmem:[%s7746_s1 + $0x420] sm:$0xff] }
  0x13   :  { %4201 = vmatpush1.bf16.msra.mxu1 %v4200_v52  ;;  %4203 = vmatprep.subr.bf16.mxu0 %v4202_v53  ;;  %v5158_v14 = vld [vmem:[%s7747_s0 + $0x8] sm:$0xff]  ;;  %v4210_v16 = vpack.c.bf16 %v193_v10, %v161_v9  ;;  %v192_v18 = vld [vmem:[%s7746_s1 + $0x520] sm:$0xff]  ;;  %v162_v19 = vld [vmem:[%s7746_s1 + $0x430] sm:$0xff]  ;;  %v4226_v20 = vpack.c.bf16 %v195_v12, %v163_v11 }
  0x14   :  { %4219 = vmatprep.subr.bf16.mxu1 %v4218_v57  ;;  %v194_v21 = vld [vmem:[%s7746_s1 + $0x530] sm:$0xff]  ;;  %v225_v22 = vld [vmem:[%s7746_s1 + $0x628] sm:$0xff]  ;;  %v227_v24 = vld [vmem:[%s7746_s1 + $0x638] sm:$0xff]  ;;  %v4212_v26 = vpack.c.bf16 %v192_v18, %v160_v17 }
  0x15   :  { %3527 = vmatmul.mubr.msk.f32.vlgmr.msra.gmra.mrb[0].mxu0 %vm452_vm0, %v5125_v63  ;;  %v257_v23 = vld [vmem:[%s7746_s1 + $0x728] sm:$0xff]  ;;  %v259_v25 = vld [vmem:[%s7746_s1 + $0x738] sm:$0xff]  ;;  %v4228_v27 = vpack.c.bf16 %v194_v21, %v162_v19  ;;  %v224_v29 = vld [vmem:[%s7746_s1 + $0x620] sm:$0xff] }
  0x16   :  { %3529 = vmatmul.mubr.msk.f32.vlgmr.msra.gmra.mrb[0].mxu1 %vm452_vm0, %v5125_v63  ;;  %4205 = vmatpush1.bf16.msra.mxu0 %v4204_v0  ;;  %v4214_v28 = vpack.c.bf16 %v257_v23, %v225_v22  ;;  %v256_v30 = vld [vmem:[%s7746_s1 + $0x720] sm:$0xff]  ;;  %v226_v31 = vld [vmem:[%s7746_s1 + $0x630] sm:$0xff]  ;;  %v4230_v32 = vpack.c.bf16 %v259_v25, %v227_v24  ;;  %v37_v34 = vld [vmem:[%s7746_s1 + $0x48] sm:$0xff] }
  0x17   :  { %4221 = vmatpush1.bf16.msra.mxu1 %v4220_v1  ;;  %4207 = vmatprep.subr.bf16.mxu0 %v4206_v2  ;;  %v258_v33 = vld [vmem:[%s7746_s1 + $0x730] sm:$0xff]  ;;  %v69_v35 = vld [vmem:[%s7746_s1 + $0x148] sm:$0xff]  ;;  %v39_v36 = vld [vmem:[%s7746_s1 + $0x58] sm:$0xff]  ;;  %v4216_v38 = vpack.c.bf16 %v256_v30, %v224_v29 }
  0x18   :  { %4223 = vmatprep.subr.bf16.mxu1 %v4222_v7  ;;  %529 = vmatprep.mubr.f32.mxu0 %v4947_v3  ;;  %v71_v37 = vld [vmem:[%s7746_s1 + $0x158] sm:$0xff]  ;;  %v4232_v39 = vpack.c.bf16 %v258_v33, %v226_v31  ;;  %v4234_v40 = vpack.c.bf16 %v69_v35, %v37_v34  ;;  %v36_v42 = vld [vmem:[%s7746_s1 + $0x40] sm:$0xff]  ;;  %v38_v44 = vld [vmem:[%s7746_s1 + $0x50] sm:$0xff] }
  0x19   :  { %3528 = vmatmul.mubr.msk.f32.gmra.mrb[2].mxu0 %vm452_vm0, %v5158_v14  ;;  %606 = vmatprep.mubr.f32.mxu1 %v4947_v3  ;;  %v4250_v41 = vpack.c.bf16 %v71_v37, %v39_v36  ;;  %v68_v43 = vld [vmem:[%s7746_s1 + $0x140] sm:$0xff]  ;;  %v70_v45 = vld [vmem:[%s7746_s1 + $0x150] sm:$0xff]  ;;  %v101_v46 = vld [vmem:[%s7746_s1 + $0x248] sm:$0xff] }
  0x1a   :  { %4209 = vmatpush1.bf16.msra.mxu0 %v4208_v13  ;;  %3530 = vmatmul.mubr.msk.f32.gmra.mrb[2].mxu1 %vm452_vm0, %v5158_v14  ;;  %v133_v47 = vld [vmem:[%s7746_s1 + $0x348] sm:$0xff]  ;;  %v103_v48 = vld [vmem:[%s7746_s1 + $0x258] sm:$0xff]  ;;  %v4236_v50 = vpack.c.bf16 %v68_v43, %v36_v42  ;;  %v4252_v51 = vpack.c.bf16 %v70_v45, %v38_v44  ;;  %v100_v53 = vld [vmem:[%s7746_s1 + $0x240] sm:$0xff] }
  0x1b   :  { %4225 = vmatpush1.bf16.msra.mxu1 %v4224_v15  ;;  %4211 = vmatprep.subr.bf16.mxu0 %v4210_v16  ;;  %v135_v49 = vld [vmem:[%s7746_s1 + $0x358] sm:$0xff]  ;;  %v4238_v52 = vpack.c.bf16 %v133_v47, %v101_v46  ;;  %v132_v54 = vld [vmem:[%s7746_s1 + $0x340] sm:$0xff]  ;;  %v102_v55 = vld [vmem:[%s7746_s1 + $0x250] sm:$0xff] }
  0x1c   :  { %4227 = vmatprep.subr.bf16.mxu1 %v4226_v20  ;;  %677 = vmatprep.mubr.f32.mxu0 %v4947_v3  ;;  %v4254_v56 = vpack.c.bf16 %v135_v49, %v103_v48  ;;  %v134_v57 = vld [vmem:[%s7746_s1 + $0x350] sm:$0xff]  ;;  %v165_v58 = vld [vmem:[%s7746_s1 + $0x448] sm:$0xff]  ;;  %v167_v60 = vld [vmem:[%s7746_s1 + $0x458] sm:$0xff]  ;;  %v4240_v62 = vpack.c.bf16 %v132_v54, %v100_v53 }
  0x1d   :  { %754 = vmatprep.mubr.f32.mxu1 %v4947_v3  ;;  %v197_v59 = vld [vmem:[%s7746_s1 + $0x548] sm:$0xff]  ;;  %v199_v61 = vld [vmem:[%s7746_s1 + $0x558] sm:$0xff]  ;;  %v4256_v0 = vpack.c.bf16 %v134_v57, %v102_v55  ;;  %v164_v2 = vld [vmem:[%s7746_s1 + $0x440] sm:$0xff] }
  0x1e   :  { %4213 = vmatpush1.bf16.msra.mxu0 %v4212_v26  ;;  %v4242_v1 = vpack.c.bf16 %v197_v59, %v165_v58  ;;  %v196_v4 = vld [vmem:[%s7746_s1 + $0x540] sm:$0xff]  ;;  %v166_v5 = vld [vmem:[%s7746_s1 + $0x450] sm:$0xff]  ;;  %v4258_v6 = vpack.c.bf16 %v199_v61, %v167_v60  ;;  %v229_v8 = vld [vmem:[%s7746_s1 + $0x648] sm:$0xff] }
  0x1f   :  { %4229 = vmatpush1.bf16.msra.mxu1 %v4228_v27  ;;  %4215 = vmatprep.subr.bf16.mxu0 %v4214_v28  ;;  %v198_v7 = vld [vmem:[%s7746_s1 + $0x550] sm:$0xff]  ;;  %v261_v9 = vld [vmem:[%s7746_s1 + $0x748] sm:$0xff]  ;;  %v231_v10 = vld [vmem:[%s7746_s1 + $0x658] sm:$0xff]  ;;  %v4244_v12 = vpack.c.bf16 %v196_v4, %v164_v2 }
  0x20   :  { %4231 = vmatprep.subr.bf16.mxu1 %v4230_v32  ;;  %v263_v11 = vld [vmem:[%s7746_s1 + $0x758] sm:$0xff]  ;;  %v4260_v13 = vpack.c.bf16 %v198_v7, %v166_v5  ;;  %v4246_v15 = vpack.c.bf16 %v261_v9, %v229_v8  ;;  %v228_v16 = vld [vmem:[%s7746_s1 + $0x640] sm:$0xff]  ;;  %v230_v18 = vld [vmem:[%s7746_s1 + $0x650] sm:$0xff] }
  0x21   :  { %v260_v17 = vld [vmem:[%s7746_s1 + $0x740] sm:$0xff]  ;;  %v4262_v19 = vpack.c.bf16 %v263_v11, %v231_v10  ;;  %v262_v20 = vld [vmem:[%s7746_s1 + $0x750] sm:$0xff]  ;;  %v41_v21 = vld [vmem:[%s7746_s1 + $0x68] sm:$0xff] }
  0x22   :  { %4217 = vmatpush1.bf16.msra.mxu0 %v4216_v38  ;;  %v73_v22 = vld [vmem:[%s7746_s1 + $0x168] sm:$0xff]  ;;  %v43_v23 = vld [vmem:[%s7746_s1 + $0x78] sm:$0xff]  ;;  %v4248_v25 = vpack.c.bf16 %v260_v17, %v228_v16  ;;  %v4264_v26 = vpack.c.bf16 %v262_v20, %v230_v18  ;;  %v40_v29 = vld [vmem:[%s7746_s1 + $0x60] sm:$0xff] }
  0x23   :  { %4233 = vmatpush1.bf16.msra.mxu1 %v4232_v39  ;;  %4235 = vmatprep.subr.bf16.mxu0 %v4234_v40  ;;  %v75_v24 = vld [vmem:[%s7746_s1 + $0x178] sm:$0xff]  ;;  %v4266_v27 = vpack.c.bf16 %v73_v22, %v41_v21  ;;  %v72_v30 = vld [vmem:[%s7746_s1 + $0x160] sm:$0xff]  ;;  %v42_v31 = vld [vmem:[%s7746_s1 + $0x70] sm:$0xff] }
  0x24   :  { %4251 = vmatprep.subr.bf16.mxu1 %v4250_v41  ;;  %v4282_v28 = vpack.c.bf16 %v75_v24, %v43_v23  ;;  %v74_v32 = vld [vmem:[%s7746_s1 + $0x170] sm:$0xff]  ;;  %v105_v33 = vld [vmem:[%s7746_s1 + $0x268] sm:$0xff]  ;;  %v107_v35 = vld [vmem:[%s7746_s1 + $0x278] sm:$0xff]  ;;  %v4268_v37 = vpack.c.bf16 %v72_v30, %v40_v29 }
  0x25   :  { %3531 = vmatmul.mubr.msk.f32.vlgmr.msra.gmra.mrb[4].mxu0 %vm452_vm0, %v5125_v63  ;;  %v137_v34 = vld [vmem:[%s7746_s1 + $0x368] sm:$0xff]  ;;  %v139_v36 = vld [vmem:[%s7746_s1 + $0x378] sm:$0xff]  ;;  %v4284_v38 = vpack.c.bf16 %v74_v32, %v42_v31  ;;  %v104_v40 = vld [vmem:[%s7746_s1 + $0x260] sm:$0xff] }
  0x26   :  { %3533 = vmatmul.mubr.msk.f32.vlgmr.msra.gmra.mrb[4].mxu1 %vm452_vm0, %v5125_v63  ;;  %683 = vmatprep.mubr.f32.mxu0 %v4947_v3  ;;  %v4270_v39 = vpack.c.bf16 %v137_v34, %v105_v33  ;;  %v136_v41 = vld [vmem:[%s7746_s1 + $0x360] sm:$0xff]  ;;  %v106_v42 = vld [vmem:[%s7746_s1 + $0x270] sm:$0xff]  ;;  %v4286_v43 = vpack.c.bf16 %v139_v36, %v107_v35  ;;  %v169_v45 = vld [vmem:[%s7746_s1 + $0x468] sm:$0xff] }
  0x27   :  { %760 = vmatprep.mubr.f32.mxu1 %v4947_v3  ;;  %4237 = vmatpush1.bf16.msra.mxu0 %v4236_v50  ;;  %v138_v44 = vld [vmem:[%s7746_s1 + $0x370] sm:$0xff]  ;;  %v201_v46 = vld [vmem:[%s7746_s1 + $0x568] sm:$0xff]  ;;  %v171_v47 = vld [vmem:[%s7746_s1 + $0x478] sm:$0xff]  ;;  %v4272_v49 = vpack.c.bf16 %v136_v41, %v104_v40 }
  0x28   :  { %4253 = vmatpush1.bf16.msra.mxu1 %v4252_v51  ;;  %4239 = vmatprep.subr.bf16.mxu0 %v4238_v52  ;;  %v203_v48 = vld [vmem:[%s7746_s1 + $0x578] sm:$0xff]  ;;  %v4288_v50 = vpack.c.bf16 %v138_v44, %v106_v42  ;;  %v4274_v51 = vpack.c.bf16 %v201_v46, %v169_v45  ;;  %v168_v52 = vld [vmem:[%s7746_s1 + $0x460] sm:$0xff]  ;;  %v170_v54 = vld [vmem:[%s7746_s1 + $0x470] sm:$0xff] }
  0x29   :  { %3532 = vmatmul.mubr.msk.f32.gmra.mrb[6].mxu0 %vm452_vm0, %v5158_v14  ;;  %4255 = vmatprep.subr.bf16.mxu1 %v4254_v56  ;;  %v200_v53 = vld [vmem:[%s7746_s1 + $0x560] sm:$0xff]  ;;  %v4290_v55 = vpack.c.bf16 %v203_v48, %v171_v47  ;;  %v202_v56 = vld [vmem:[%s7746_s1 + $0x570] sm:$0xff]  ;;  %v233_v57 = vld [vmem:[%s7746_s1 + $0x668] sm:$0xff] }
  0x2a   :  { %3534 = vmatmul.mubr.msk.f32.gmra.mrb[6].mxu1 %vm452_vm0, %v5158_v14  ;;  %831 = vmatprep.mubr.f32.mxu0 %v4947_v3  ;;  %v265_v58 = vld [vmem:[%s7746_s1 + $0x768] sm:$0xff]  ;;  %v235_v59 = vld [vmem:[%s7746_s1 + $0x678] sm:$0xff]  ;;  %v4276_v61 = vpack.c.bf16 %v200_v53, %v168_v52  ;;  %v264_v2 = vld [vmem:[%s7746_s1 + $0x760] sm:$0xff] }
  0x2b   :  { %4241 = vmatpush1.bf16.msra.mxu0 %v4240_v62  ;;  %908 = vmatprep.mubr.f32.mxu1 %v4947_v3  ;;  %v267_v60 = vld [vmem:[%s7746_s1 + $0x778] sm:$0xff]  ;;  %v4292_v62 = vpack.c.bf16 %v202_v56, %v170_v54  ;;  %v234_v4 = vld [vmem:[%s7746_s1 + $0x670] sm:$0xff]  ;;  %v45_v7 = vld [vmem:[%s7746_s1 + $0x88] sm:$0xff] }
  0x2c   :  { %4257 = vmatpush1.bf16.msra.mxu1 %v4256_v0  ;;  %4243 = vmatprep.subr.bf16.mxu0 %v4242_v1  ;;  %v4278_v0 = vpack.c.bf16 %v265_v58, %v233_v57  ;;  %v232_v1 = vld [vmem:[%s7746_s1 + $0x660] sm:$0xff]  ;;  %v4294_v5 = vpack.c.bf16 %v267_v60, %v235_v59  ;;  %v77_v8 = vld [vmem:[%s7746_s1 + $0x188] sm:$0xff]  ;;  %v47_v9 = vld [vmem:[%s7746_s1 + $0x98] sm:$0xff] }
  0x2d   :  { %4259 = vmatprep.subr.bf16.mxu1 %v4258_v6  ;;  %v266_v6 = vld [vmem:[%s7746_s1 + $0x770] sm:$0xff]  ;;  %v79_v10 = vld [vmem:[%s7746_s1 + $0x198] sm:$0xff]  ;;  %v4280_v11 = vpack.c.bf16 %v264_v2, %v232_v1  ;;  %v44_v16 = vld [vmem:[%s7746_s1 + $0x80] sm:$0xff] }
  0x2e   :  { %v76_v17 = vld [vmem:[%s7746_s1 + $0x180] sm:$0xff]  ;;  %v46_v18 = vld [vmem:[%s7746_s1 + $0x90] sm:$0xff]  ;;  %v109_v20 = vld [vmem:[%s7746_s1 + $0x288] sm:$0xff] }
  0x2f   :  { %4245 = vmatpush1.bf16.msra.mxu0 %v4244_v12  ;;  %v4296_v12 = vpack.c.bf16 %v266_v6, %v234_v4  ;;  %v141_v21 = vld [vmem:[%s7746_s1 + $0x388] sm:$0xff]  ;;  %v111_v22 = vld [vmem:[%s7746_s1 + $0x298] sm:$0xff]  ;;  %v4300_v24 = vpack.c.bf16 %v76_v17, %v44_v16  ;;  %v110_v29 = vld [vmem:[%s7746_s1 + $0x290] sm:$0xff] }
  0x30   :  { %4261 = vmatpush1.bf16.msra.mxu1 %v4260_v13  ;;  %4247 = vmatprep.subr.bf16.mxu0 %v4246_v15  ;;  %v4298_v13 = vpack.c.bf16 %v77_v8, %v45_v7  ;;  %v4314_v15 = vpack.c.bf16 %v79_v10, %v47_v9  ;;  %v143_v23 = vld [vmem:[%s7746_s1 + $0x398] sm:$0xff]  ;;  %v142_v31 = vld [vmem:[%s7746_s1 + $0x390] sm:$0xff]  ;;  %v173_v32 = vld [vmem:[%s7746_s1 + $0x488] sm:$0xff] }
  0x31   :  { %4263 = vmatprep.subr.bf16.mxu1 %v4262_v19  ;;  %v78_v19 = vld [vmem:[%s7746_s1 + $0x190] sm:$0xff]  ;;  %v4318_v30 = vpack.c.bf16 %v143_v23, %v111_v22  ;;  %v205_v33 = vld [vmem:[%s7746_s1 + $0x588] sm:$0xff]  ;;  %v175_v34 = vld [vmem:[%s7746_s1 + $0x498] sm:$0xff] }
  0x32   :  { %v207_v35 = vld [vmem:[%s7746_s1 + $0x598] sm:$0xff]  ;;  %v204_v40 = vld [vmem:[%s7746_s1 + $0x580] sm:$0xff]  ;;  %v174_v41 = vld [vmem:[%s7746_s1 + $0x490] sm:$0xff] }
  0x33   :  { %4249 = vmatpush1.bf16.msra.mxu0 %v4248_v25  ;;  %v4316_v25 = vpack.c.bf16 %v78_v19, %v46_v18  ;;  %v4322_v42 = vpack.c.bf16 %v207_v35, %v175_v34  ;;  %v237_v44 = vld [vmem:[%s7746_s1 + $0x688] sm:$0xff]  ;;  %v239_v46 = vld [vmem:[%s7746_s1 + $0x698] sm:$0xff]  ;;  %v268_v52 = vld [vmem:[%s7746_s1 + $0x780] sm:$0xff] }
  0x34   :  { %4265 = vmatpush1.bf16.msra.mxu1 %v4264_v26  ;;  %4267 = vmatprep.subr.bf16.mxu0 %v4266_v27  ;;  %v4302_v26 = vpack.c.bf16 %v141_v21, %v109_v20  ;;  %v108_v27 = vld [vmem:[%s7746_s1 + $0x280] sm:$0xff]  ;;  %v269_v45 = vld [vmem:[%s7746_s1 + $0x788] sm:$0xff]  ;;  %v271_v47 = vld [vmem:[%s7746_s1 + $0x798] sm:$0xff] }
  0x35   :  { %4283 = vmatprep.subr.bf16.mxu1 %v4282_v28  ;;  %v140_v28 = vld [vmem:[%s7746_s1 + $0x380] sm:$0xff]  ;;  %v238_v53 = vld [vmem:[%s7746_s1 + $0x690] sm:$0xff]  ;;  %v4326_v54 = vpack.c.bf16 %v271_v47, %v239_v46  ;;  %v49_v56 = vld [vmem:[%s7746_s1 + $0xa8] sm:$0xff] }
  0x36   :  { %3535 = vmatmul.mubr.msk.f32.vlgmr.msra.gmra.mrb[8].mxu0 %vm452_vm0, %v5125_v63  ;;  %v4304_v36 = vpack.c.bf16 %v140_v28, %v108_v27  ;;  %v81_v57 = vld [vmem:[%s7746_s1 + $0x1a8] sm:$0xff]  ;;  %v51_v58 = vld [vmem:[%s7746_s1 + $0xb8] sm:$0xff]  ;;  %v48_v1 = vld [vmem:[%s7746_s1 + $0xa0] sm:$0xff] }
  0x37   :  { %3537 = vmatmul.mubr.msk.f32.vlgmr.msra.gmra.mrb[8].mxu1 %vm452_vm0, %v5125_v63  ;;  %837 = vmatprep.mubr.f32.mxu0 %v4947_v3  ;;  %v83_v59 = vld [vmem:[%s7746_s1 + $0x1b8] sm:$0xff]  ;;  %v80_v2 = vld [vmem:[%s7746_s1 + $0x1a0] sm:$0xff]  ;;  %v50_v4 = vld [vmem:[%s7746_s1 + $0xb0] sm:$0xff] }
  0x38   :  { %914 = vmatprep.mubr.f32.mxu1 %v4947_v3  ;;  %4269 = vmatpush1.bf16.msra.mxu0 %v4268_v37  ;;  %v4320_v37 = vpack.c.bf16 %v142_v31, %v110_v29  ;;  %v113_v6 = vld [vmem:[%s7746_s1 + $0x2a8] sm:$0xff]  ;;  %v115_v8 = vld [vmem:[%s7746_s1 + $0x2b8] sm:$0xff]  ;;  %v4332_v10 = vpack.c.bf16 %v80_v2, %v48_v1  ;;  %v114_v16 = vld [vmem:[%s7746_s1 + $0x2b0] sm:$0xff] }
  0x39   :  { %4285 = vmatpush1.bf16.msra.mxu1 %v4284_v38  ;;  %4271 = vmatprep.subr.bf16.mxu0 %v4270_v39  ;;  %v4306_v38 = vpack.c.bf16 %v205_v33, %v173_v32  ;;  %v172_v39 = vld [vmem:[%s7746_s1 + $0x480] sm:$0xff]  ;;  %v145_v7 = vld [vmem:[%s7746_s1 + $0x3a8] sm:$0xff]  ;;  %v147_v9 = vld [vmem:[%s7746_s1 + $0x3b8] sm:$0xff] }
  0x3a   :  { %3536 = vmatmul.mubr.msk.f32.gmra.mrb[10].mxu0 %vm452_vm0, %v5158_v14  ;;  %4287 = vmatprep.subr.bf16.mxu1 %v4286_v43  ;;  %v206_v43 = vld [vmem:[%s7746_s1 + $0x590] sm:$0xff]  ;;  %v4308_v48 = vpack.c.bf16 %v204_v40, %v172_v39  ;;  %v4350_v17 = vpack.c.bf16 %v147_v9, %v115_v8  ;;  %v177_v19 = vld [vmem:[%s7746_s1 + $0x4a8] sm:$0xff]  ;;  %v179_v21 = vld [vmem:[%s7746_s1 + $0x4b8] sm:$0xff] }
  0x3b   :  { %3538 = vmatmul.mubr.msk.f32.gmra.mrb[10].mxu1 %vm452_vm0, %v5158_v14  ;;  %985 = vmatprep.mubr.f32.mxu0 %v4947_v3  ;;  %v146_v18 = vld [vmem:[%s7746_s1 + $0x3b0] sm:$0xff]  ;;  %v209_v20 = vld [vmem:[%s7746_s1 + $0x5a8] sm:$0xff]  ;;  %v211_v22 = vld [vmem:[%s7746_s1 + $0x5b8] sm:$0xff] }
  0x3c   :  { %4273 = vmatpush1.bf16.msra.mxu0 %v4272_v49  ;;  %1062 = vmatprep.mubr.f32.mxu1 %v4947_v3  ;;  %v4324_v49 = vpack.c.bf16 %v206_v43, %v174_v41  ;;  %v208_v27 = vld [vmem:[%s7746_s1 + $0x5a0] sm:$0xff]  ;;  %v178_v28 = vld [vmem:[%s7746_s1 + $0x4b0] sm:$0xff]  ;;  %v4354_v29 = vpack.c.bf16 %v211_v22, %v179_v21  ;;  %v241_v31 = vld [vmem:[%s7746_s1 + $0x6a8] sm:$0xff] }
  0x3d   :  { %4289 = vmatpush1.bf16.msra.mxu1 %v4288_v50  ;;  %4275 = vmatprep.subr.bf16.mxu0 %v4274_v51  ;;  %v4310_v50 = vpack.c.bf16 %v269_v45, %v237_v44  ;;  %v236_v51 = vld [vmem:[%s7746_s1 + $0x680] sm:$0xff]  ;;  %v273_v32 = vld [vmem:[%s7746_s1 + $0x7a8] sm:$0xff]  ;;  %v243_v33 = vld [vmem:[%s7746_s1 + $0x6b8] sm:$0xff] }
  0x3e   :  { %4291 = vmatprep.subr.bf16.mxu1 %v4290_v55  ;;  %v270_v55 = vld [vmem:[%s7746_s1 + $0x790] sm:$0xff]  ;;  %v4312_v60 = vpack.c.bf16 %v268_v52, %v236_v51  ;;  %v275_v34 = vld [vmem:[%s7746_s1 + $0x7b8] sm:$0xff]  ;;  %v272_v39 = vld [vmem:[%s7746_s1 + $0x7a0] sm:$0xff] }
  0x3f   :  { %v242_v40 = vld [vmem:[%s7746_s1 + $0x6b0] sm:$0xff]  ;;  %v4358_v41 = vpack.c.bf16 %v275_v34, %v243_v33  ;;  %v53_v43 = vld [vmem:[%s7746_s1 + $0xc8] sm:$0xff]  ;;  %v55_v45 = vld [vmem:[%s7746_s1 + $0xd8] sm:$0xff] }
  0x40   :  { %4277 = vmatpush1.bf16.msra.mxu0 %v4276_v61  ;;  %v4328_v61 = vpack.c.bf16 %v270_v55, %v238_v53  ;;  %v85_v44 = vld [vmem:[%s7746_s1 + $0x1c8] sm:$0xff]  ;;  %v87_v46 = vld [vmem:[%s7746_s1 + $0x1d8] sm:$0xff]  ;;  %v84_v51 = vld [vmem:[%s7746_s1 + $0x1c0] sm:$0xff] }
  0x41   :  { %4293 = vmatpush1.bf16.msra.mxu1 %v4292_v62  ;;  %4279 = vmatprep.subr.bf16.mxu0 %v4278_v0  ;;  %v4330_v62 = vpack.c.bf16 %v81_v57, %v49_v56  ;;  %v4346_v0 = vpack.c.bf16 %v83_v59, %v51_v58  ;;  %v54_v52 = vld [vmem:[%s7746_s1 + $0xd0] sm:$0xff]  ;;  %v4378_v53 = vpack.c.bf16 %v87_v46, %v55_v45  ;;  %v117_v55 = vld [vmem:[%s7746_s1 + $0x2c8] sm:$0xff]  ;;  %v119_v57 = vld [vmem:[%s7746_s1 + $0x2d8] sm:$0xff] }
  0x42   :  { %4295 = vmatprep.subr.bf16.mxu1 %v4294_v5  ;;  %v82_v5 = vld [vmem:[%s7746_s1 + $0x1b0] sm:$0xff]  ;;  %v149_v56 = vld [vmem:[%s7746_s1 + $0x3c8] sm:$0xff]  ;;  %v151_v58 = vld [vmem:[%s7746_s1 + $0x3d8] sm:$0xff] }
  0x43   :  { %v118_v1 = vld [vmem:[%s7746_s1 + $0x2d0] sm:$0xff]  ;;  %v4382_v2 = vpack.c.bf16 %v151_v58, %v119_v57  ;;  %v215_v8 = vld [vmem:[%s7746_s1 + $0x5d8] sm:$0xff] }
  0x44   :  { %4281 = vmatpush1.bf16.msra.mxu0 %v4280_v11  ;;  %v4348_v11 = vpack.c.bf16 %v82_v5, %v50_v4  ;;  %v150_v4 = vld [vmem:[%s7746_s1 + $0x3d0] sm:$0xff]  ;;  %v181_v5 = vld [vmem:[%s7746_s1 + $0x4c8] sm:$0xff]  ;;  %v279_v21 = vld [vmem:[%s7746_s1 + $0x7d8] sm:$0xff] }
  0x45   :  { %4297 = vmatpush1.bf16.msra.mxu1 %v4296_v12  ;;  %4299 = vmatprep.subr.bf16.mxu0 %v4298_v13  ;;  %v4334_v12 = vpack.c.bf16 %v145_v7, %v113_v6  ;;  %v112_v13 = vld [vmem:[%s7746_s1 + $0x2a0] sm:$0xff]  ;;  %v213_v6 = vld [vmem:[%s7746_s1 + $0x5c8] sm:$0xff]  ;;  %v183_v7 = vld [vmem:[%s7746_s1 + $0x4d8] sm:$0xff] }
  0x46   :  { %4315 = vmatprep.subr.bf16.mxu1 %v4314_v15  ;;  %v144_v15 = vld [vmem:[%s7746_s1 + $0x3a0] sm:$0xff]  ;;  %v91_v33 = vld [vmem:[%s7746_s1 + $0x1f8] sm:$0xff] }
  0x47   :  { %3539 = vmatmul.mubr.msk.f32.vlgmr.msra.gmra.mrb[12].mxu0 %vm452_vm0, %v5125_v63  ;;  %v4336_v23 = vpack.c.bf16 %v144_v15, %v112_v13  ;;  %v212_v13 = vld [vmem:[%s7746_s1 + $0x5c0] sm:$0xff]  ;;  %v182_v15 = vld [vmem:[%s7746_s1 + $0x4d0] sm:$0xff]  ;;  %v155_v45 = vld [vmem:[%s7746_s1 + $0x3f8] sm:$0xff] }
  0x48   :  { %3541 = vmatmul.mubr.msk.f32.vlgmr.msra.gmra.mrb[12].mxu1 %vm452_vm0, %v5125_v63  ;;  %991 = vmatprep.mubr.f32.mxu0 %v4947_v3  ;;  %v219_v57 = vld [vmem:[%s7746_s1 + $0x5f8] sm:$0xff] }
  0x49   :  { %1068 = vmatprep.mubr.f32.mxu1 %v4947_v3  ;;  %4301 = vmatpush1.bf16.msra.mxu0 %v4300_v24  ;;  %v4352_v24 = vpack.c.bf16 %v146_v18, %v114_v16  ;;  %v4386_v16 = vpack.c.bf16 %v215_v8, %v183_v7  ;;  %v245_v18 = vld [vmem:[%s7746_s1 + $0x6c8] sm:$0xff] }
  0x4a   :  { %4317 = vmatpush1.bf16.msra.mxu1 %v4316_v25  ;;  %4303 = vmatprep.subr.bf16.mxu0 %v4302_v26  ;;  %v4338_v25 = vpack.c.bf16 %v209_v20, %v177_v19  ;;  %v176_v26 = vld [vmem:[%s7746_s1 + $0x4a0] sm:$0xff]  ;;  %v277_v19 = vld [vmem:[%s7746_s1 + $0x7c8] sm:$0xff]  ;;  %v247_v20 = vld [vmem:[%s7746_s1 + $0x6d8] sm:$0xff] }
  0x4b   :  { %3540 = vmatmul.mubr.msk.f32.gmra.mrb[14].mxu0 %vm452_vm0, %v5158_v14  ;;  %4319 = vmatprep.subr.bf16.mxu1 %v4318_v30  ;;  %v210_v30 = vld [vmem:[%s7746_s1 + $0x5b0] sm:$0xff]  ;;  %v4340_v35 = vpack.c.bf16 %v208_v27, %v176_v26  ;;  %v276_v26 = vld [vmem:[%s7746_s1 + $0x7c0] sm:$0xff] }
  0x4c   :  { %3542 = vmatmul.mubr.msk.f32.gmra.mrb[14].mxu1 %vm452_vm0, %v5158_v14  ;;  %1139 = vmatprep.mubr.f32.mxu0 %v4947_v3  ;;  %v246_v27 = vld [vmem:[%s7746_s1 + $0x6d0] sm:$0xff] }
  0x4d   :  { %4305 = vmatpush1.bf16.msra.mxu0 %v4304_v36  ;;  %1216 = vmatprep.mubr.f32.mxu1 %v4947_v3  ;;  %v4356_v36 = vpack.c.bf16 %v210_v30, %v178_v28  ;;  %v4390_v28 = vpack.c.bf16 %v279_v21, %v247_v20  ;;  %v57_v30 = vld [vmem:[%s7746_s1 + $0xe8] sm:$0xff] }
  0x4e   :  { %4321 = vmatpush1.bf16.msra.mxu1 %v4320_v37  ;;  %4307 = vmatprep.subr.bf16.mxu0 %v4306_v38  ;;  %v4342_v37 = vpack.c.bf16 %v273_v32, %v241_v31  ;;  %v240_v38 = vld [vmem:[%s7746_s1 + $0x6a0] sm:$0xff]  ;;  %v89_v31 = vld [vmem:[%s7746_s1 + $0x1e8] sm:$0xff]  ;;  %v59_v32 = vld [vmem:[%s7746_s1 + $0xf8] sm:$0xff] }
  0x4f   :  { %4323 = vmatprep.subr.bf16.mxu1 %v4322_v42  ;;  %v274_v42 = vld [vmem:[%s7746_s1 + $0x7b0] sm:$0xff]  ;;  %v4344_v47 = vpack.c.bf16 %v272_v39, %v240_v38  ;;  %v88_v38 = vld [vmem:[%s7746_s1 + $0x1e0] sm:$0xff] }
  0x50   :  { %v58_v39 = vld [vmem:[%s7746_s1 + $0xf0] sm:$0xff] }
  0x51   :  { %4309 = vmatpush1.bf16.msra.mxu0 %v4308_v48  ;;  %v4360_v48 = vpack.c.bf16 %v274_v42, %v242_v40  ;;  %v4410_v40 = vpack.c.bf16 %v91_v33, %v59_v32  ;;  %v121_v42 = vld [vmem:[%s7746_s1 + $0x2e8] sm:$0xff] }
  0x52   :  { %4325 = vmatpush1.bf16.msra.mxu1 %v4324_v49  ;;  %4311 = vmatprep.subr.bf16.mxu0 %v4310_v50  ;;  %v4362_v49 = vpack.c.bf16 %v85_v44, %v53_v43  ;;  %v52_v50 = vld [vmem:[%s7746_s1 + $0xc0] sm:$0xff]  ;;  %v153_v43 = vld [vmem:[%s7746_s1 + $0x3e8] sm:$0xff]  ;;  %v123_v44 = vld [vmem:[%s7746_s1 + $0x2f8] sm:$0xff] }
  0x53   :  { %4327 = vmatprep.subr.bf16.mxu1 %v4326_v54  ;;  %v86_v54 = vld [vmem:[%s7746_s1 + $0x1d0] sm:$0xff]  ;;  %v4364_v59 = vpack.c.bf16 %v84_v51, %v52_v50  ;;  %v152_v50 = vld [vmem:[%s7746_s1 + $0x3e0] sm:$0xff] }
  0x54   :  { %v122_v51 = vld [vmem:[%s7746_s1 + $0x2f0] sm:$0xff] }
  0x55   :  { %4313 = vmatpush1.bf16.msra.mxu0 %v4312_v60  ;;  %v4380_v60 = vpack.c.bf16 %v86_v54, %v54_v52  ;;  %v4414_v52 = vpack.c.bf16 %v155_v45, %v123_v44  ;;  %v185_v54 = vld [vmem:[%s7746_s1 + $0x4e8] sm:$0xff] }
  0x56   :  { %4329 = vmatpush1.bf16.msra.mxu1 %v4328_v61  ;;  %4331 = vmatprep.subr.bf16.mxu0 %v4330_v62  ;;  %v4366_v61 = vpack.c.bf16 %v149_v56, %v117_v55  ;;  %v116_v62 = vld [vmem:[%s7746_s1 + $0x2c0] sm:$0xff]  ;;  %v217_v55 = vld [vmem:[%s7746_s1 + $0x5e8] sm:$0xff]  ;;  %v187_v56 = vld [vmem:[%s7746_s1 + $0x4f8] sm:$0xff] }
  0x57   :  { %4347 = vmatprep.subr.bf16.mxu1 %v4346_v0  ;;  %v148_v0 = vld [vmem:[%s7746_s1 + $0x3c0] sm:$0xff] }
  0x58   :  { %3543 = vmatmul.mubr.msk.f32.vlgmr.msra.gmra.mrb[16].mxu0 %vm452_vm0, %v5125_v63  ;;  %v4368_v9 = vpack.c.bf16 %v148_v0, %v116_v62  ;;  %v216_v62 = vld [vmem:[%s7746_s1 + $0x5e0] sm:$0xff]  ;;  %v186_v0 = vld [vmem:[%s7746_s1 + $0x4f0] sm:$0xff] }
  0x59   :  { %3545 = vmatmul.mubr.msk.f32.vlgmr.msra.gmra.mrb[16].mxu1 %vm452_vm0, %v5125_v63  ;;  %1145 = vmatprep.mubr.f32.mxu0 %v4947_v3 }
  0x5a   :  { %1222 = vmatprep.mubr.f32.mxu1 %v4947_v3  ;;  %4333 = vmatpush1.bf16.msra.mxu0 %v4332_v10  ;;  %v4384_v10 = vpack.c.bf16 %v150_v4, %v118_v1  ;;  %v218_v1 = vld [vmem:[%s7746_s1 + $0x5f0] sm:$0xff]  ;;  %v281_v4 = vld [vmem:[%s7746_s1 + $0x7e8] sm:$0xff] }
  0x5b   :  { %4349 = vmatpush1.bf16.msra.mxu1 %v4348_v11  ;;  %4335 = vmatprep.subr.bf16.mxu0 %v4334_v12  ;;  %v4370_v11 = vpack.c.bf16 %v213_v6, %v181_v5  ;;  %v180_v12 = vld [vmem:[%s7746_s1 + $0x4c0] sm:$0xff]  ;;  %v251_v5 = vld [vmem:[%s7746_s1 + $0x6f8] sm:$0xff]  ;;  %v4420_v8 = vpack.c.bf16 %v218_v1, %v186_v0  ;;  %v1780_v1 = vld [vmem:[%s7748_s3 + $0xc8] sm:$0xff] }
  0x5c   :  { %3544 = vmatmul.mubr.msk.f32.gmra.mrb[18].mxu0 %vm452_vm0, %v5158_v14  ;;  %4351 = vmatprep.subr.bf16.mxu1 %v4350_v17  ;;  %v214_v17 = vld [vmem:[%s7746_s1 + $0x5d0] sm:$0xff]  ;;  %v4372_v22 = vpack.c.bf16 %v212_v13, %v180_v12  ;;  %v283_v6 = vld [vmem:[%s7746_s1 + $0x7f8] sm:$0xff] }
  0x5d   :  { %3546 = vmatmul.mubr.msk.f32.gmra.mrb[18].mxu1 %vm452_vm0, %v5158_v14  ;;  %1293 = vmatprep.mubr.f32.mxu0 %v4947_v3  ;;  %v250_v12 = vld [vmem:[%s7746_s1 + $0x6f0] sm:$0xff]  ;;  %v4422_v13 = vpack.c.bf16 %v283_v6, %v251_v5  ;;  %v1794_v0 = vld [vmem:[%s7748_s3 + $0x138] sm:$0xff] }
  0x5e   :  { %4337 = vmatpush1.bf16.msra.mxu0 %v4336_v23  ;;  %1370 = vmatprep.mubr.f32.mxu1 %v4947_v3  ;;  %v4388_v23 = vpack.c.bf16 %v214_v17, %v182_v15  ;;  %v1771_v15 = vld [vmem:[%s7748_s3 + $0x80] sm:$0xff] }
  0x5f   :  { %4353 = vmatpush1.bf16.msra.mxu1 %v4352_v24  ;;  %4339 = vmatprep.subr.bf16.mxu0 %v4338_v25  ;;  %v4374_v24 = vpack.c.bf16 %v277_v19, %v245_v18  ;;  %v244_v25 = vld [vmem:[%s7746_s1 + $0x6c0] sm:$0xff]  ;;  %v1804_v18 = vld [vmem:[%s7748_s3 + $0x188] sm:$0xff] }
  0x60   :  { %4355 = vmatprep.subr.bf16.mxu1 %v4354_v29  ;;  %v278_v29 = vld [vmem:[%s7746_s1 + $0x7d0] sm:$0xff]  ;;  %v4376_v34 = vpack.c.bf16 %v276_v26, %v244_v25  ;;  %v1803_v17 = vld [vmem:[%s7748_s3 + $0x180] sm:$0xff]  ;;  %v1788_v26 = vld [vmem:[%s7748_s3 + $0x108] sm:$0xff] }
  0x61   :  { %v4458_v25 = vpack.c.bf16 %v1804_v18, %v1803_v17 }
  0x62   :  { %4341 = vmatpush1.bf16.msra.mxu0 %v4340_v35  ;;  %v4392_v35 = vpack.c.bf16 %v278_v29, %v246_v27  ;;  %v1773_v27 = vld [vmem:[%s7748_s3 + $0x90] sm:$0xff] }
  0x63   :  { %4357 = vmatpush1.bf16.msra.mxu1 %v4356_v36  ;;  %4343 = vmatprep.subr.bf16.mxu0 %v4342_v37  ;;  %v4394_v36 = vpack.c.bf16 %v89_v31, %v57_v30  ;;  %v56_v37 = vld [vmem:[%s7746_s1 + $0xe0] sm:$0xff]  ;;  %v1805_v29 = vld [vmem:[%s7748_s3 + $0x190] sm:$0xff]  ;;  %v1806_v30 = vld [vmem:[%s7748_s3 + $0x198] sm:$0xff] }
  0x64   :  { %4359 = vmatprep.subr.bf16.mxu1 %v4358_v41  ;;  %v90_v41 = vld [vmem:[%s7746_s1 + $0x1f0] sm:$0xff]  ;;  %v4396_v46 = vpack.c.bf16 %v88_v38, %v56_v37  ;;  %v4462_v37 = vpack.c.bf16 %v1806_v30, %v1805_v29  ;;  %v1790_v38 = vld [vmem:[%s7748_s3 + $0x118] sm:$0xff] }
  0x66   :  { %4345 = vmatpush1.bf16.msra.mxu0 %v4344_v47  ;;  %v4412_v47 = vpack.c.bf16 %v90_v41, %v58_v39  ;;  %v1775_v39 = vld [vmem:[%s7748_s3 + $0xa0] sm:$0xff] }
  0x67   :  { %4361 = vmatpush1.bf16.msra.mxu1 %v4360_v48  ;;  %4363 = vmatprep.subr.bf16.mxu0 %v4362_v49  ;;  %v4398_v48 = vpack.c.bf16 %v153_v43, %v121_v42  ;;  %v120_v49 = vld [vmem:[%s7746_s1 + $0x2e0] sm:$0xff]  ;;  %v1808_v43 = vld [vmem:[%s7748_s3 + $0x1a8] sm:$0xff] }
  0x68   :  { %4379 = vmatprep.subr.bf16.mxu1 %v4378_v53  ;;  %v154_v53 = vld [vmem:[%s7746_s1 + $0x3f0] sm:$0xff]  ;;  %v4400_v58 = vpack.c.bf16 %v152_v50, %v120_v49  ;;  %v4943_v41 = vld [vmem:[%s7747_s0] sm:$0xff] }
  0x69   :  { %3547 = vmatmul.mubr.msk.f32.vlgmr.msra.gmra.mrb[20].mxu0 %vm452_vm0, %v5125_v63  ;;  %v1807_v42 = vld [vmem:[%s7748_s3 + $0x1a0] sm:$0xff] }
  0x6a   :  { %3549 = vmatmul.mubr.msk.f32.vlgmr.msra.gmra.mrb[20].mxu1 %vm452_vm0, %v5125_v63  ;;  %4365 = vmatpush1.bf16.msra.mxu0 %v4364_v59  ;;  %v4416_v59 = vpack.c.bf16 %v154_v53, %v122_v51  ;;  %v1791_v49 = vld [vmem:[%s7748_s3 + $0x120] sm:$0xff]  ;;  %v4466_v50 = vpack.c.bf16 %v1808_v43, %v1807_v42  ;;  %v1792_v51 = vld [vmem:[%s7748_s3 + $0x128] sm:$0xff]  ;;  %v1778_v53 = vld [vmem:[%s7748_s3 + $0xb8] sm:$0xff] }
  0x6b   :  { %4381 = vmatpush1.bf16.msra.mxu1 %v4380_v60  ;;  %4367 = vmatprep.subr.bf16.mxu0 %v4366_v61  ;;  %v4402_v60 = vpack.c.bf16 %v217_v55, %v185_v54  ;;  %v184_v61 = vld [vmem:[%s7746_s1 + $0x4e0] sm:$0xff]  ;;  %v1809_v54 = vld [vmem:[%s7748_s3 + $0x1b0] sm:$0xff]  ;;  %v1810_v55 = vld [vmem:[%s7748_s3 + $0x1b8] sm:$0xff] }
  0x6c   :  { %4383 = vmatprep.subr.bf16.mxu1 %v4382_v2  ;;  %1299 = vmatprep.mubr.f32.mxu0 %v4947_v3  ;;  %v249_v2 = vld [vmem:[%s7746_s1 + $0x6e8] sm:$0xff]  ;;  %v4404_v7 = vpack.c.bf16 %v216_v62, %v184_v61  ;;  %v1762_v61 = vld [vmem:[%s7748_s3 + $0x38] sm:$0xff]  ;;  %v4470_v62 = vpack.c.bf16 %v1810_v55, %v1809_v54 }
  0x6d   :  { %3548 = vmatmul.mubr.msk.f32.gmra.mrb[22].mxu0 %vm452_vm0, %v5158_v14  ;;  %1376 = vmatprep.mubr.f32.mxu1 %v4947_v3 }
  0x6e   :  { %4369 = vmatpush1.bf16.msra.mxu0 %v4368_v9  ;;  %3550 = vmatmul.mubr.msk.f32.gmra.mrb[22].mxu1 %vm452_vm0, %v5158_v14  ;;  %v4406_v9 = vpack.c.bf16 %v281_v4, %v249_v2  ;;  %v1811_v2 = vld [vmem:[%s7748_s3 + $0x1c0] sm:$0xff]  ;;  %v1812_v4 = vld [vmem:[%s7748_s3 + $0x1c8] sm:$0xff] }
  0x6f   :  { %4385 = vmatpush1.bf16.msra.mxu1 %v4384_v10  ;;  %4371 = vmatprep.subr.bf16.mxu0 %v4370_v11  ;;  %v248_v10 = vld [vmem:[%s7746_s1 + $0x6e0] sm:$0xff] }
  0x70   :  { %4387 = vmatprep.subr.bf16.mxu1 %v4386_v16  ;;  %1447 = vmatprep.mubr.f32.mxu0 %v4947_v3  ;;  %v280_v11 = vld [vmem:[%s7746_s1 + $0x7e0] sm:$0xff]  ;;  %v1772_v16 = vld [vmem:[%s7748_s3 + $0x88] sm:$0xff] }
  0x71   :  { %1524 = vmatprep.mubr.f32.mxu1 %v4947_v3  ;;  %v4408_v19 = vpack.c.bf16 %v280_v11, %v248_v10  ;;  %v4426_v21 = vpack.c.bf16 %v1772_v16, %v1771_v15  ;;  %v1795_v10 = vld [vmem:[%s7748_s3 + $0x140] sm:$0xff]  ;;  %v4474_v11 = vpack.c.bf16 %v1812_v4, %v1811_v2  ;;  %v1813_v15 = vld [vmem:[%s7748_s3 + $0x1d0] sm:$0xff]  ;;  %v1814_v16 = vld [vmem:[%s7748_s3 + $0x1d8] sm:$0xff] }
  0x72   :  { %4373 = vmatpush1.bf16.msra.mxu0 %v4372_v22  ;;  %v1755_v22 = vld [vmem:[%s7748_s3] sm:$0xff] }
  0x73   :  { %4389 = vmatpush1.bf16.msra.mxu1 %v4388_v23  ;;  %4375 = vmatprep.subr.bf16.mxu0 %v4374_v24  ;;  %v1756_v23 = vld [vmem:[%s7748_s3 + $0x8] sm:$0xff]  ;;  %v1787_v24 = vld [vmem:[%s7748_s3 + $0x100] sm:$0xff] }
  0x74   :  { %4391 = vmatprep.subr.bf16.mxu1 %v4390_v28  ;;  %v1774_v28 = vld [vmem:[%s7748_s3 + $0x98] sm:$0xff]  ;;  %v4428_v31 = vpack.c.bf16 %v1756_v23, %v1755_v22  ;;  %v4460_v32 = vpack.c.bf16 %v1788_v26, %v1787_v24  ;;  %v1797_v22 = vld [vmem:[%s7748_s3 + $0x150] sm:$0xff]  ;;  %v4478_v23 = vpack.c.bf16 %v1814_v16, %v1813_v15  ;;  %v1784_v26 = vld [vmem:[%s7748_s3 + $0xe8] sm:$0xff] }
  0x75   :  { %v4430_v33 = vpack.c.bf16 %v1774_v28, %v1773_v27  ;;  %v1798_v24 = vld [vmem:[%s7748_s3 + $0x158] sm:$0xff]  ;;  %v1815_v27 = vld [vmem:[%s7748_s3 + $0x1e0] sm:$0xff]  ;;  %v1816_v28 = vld [vmem:[%s7748_s3 + $0x1e8] sm:$0xff] }
  0x76   :  { %4377 = vmatpush1.bf16.msra.mxu0 %v4376_v34  ;;  %v1757_v34 = vld [vmem:[%s7748_s3 + $0x10] sm:$0xff]  ;;  %v4480_v30 = vpack.c.bf16 %v1798_v24, %v1797_v22  ;;  %v1838_v16 = vld [vmem:[%s7748_s3 + $0x298] sm:$0xff] }
  0x77   :  { %4393 = vmatpush1.bf16.msra.mxu1 %v4392_v35  ;;  %4395 = vmatprep.subr.bf16.mxu0 %v4394_v36  ;;  %v1758_v35 = vld [vmem:[%s7748_s3 + $0x18] sm:$0xff]  ;;  %v1789_v36 = vld [vmem:[%s7748_s3 + $0x110] sm:$0xff] }
  0x78   :  { %4411 = vmatprep.subr.bf16.mxu1 %v4410_v40  ;;  %v1776_v40 = vld [vmem:[%s7748_s3 + $0xa8] sm:$0xff]  ;;  %v4432_v44 = vpack.c.bf16 %v1758_v35, %v1757_v34  ;;  %v4464_v45 = vpack.c.bf16 %v1790_v38, %v1789_v36  ;;  %v1799_v34 = vld [vmem:[%s7748_s3 + $0x160] sm:$0xff]  ;;  %v4482_v35 = vpack.c.bf16 %v1816_v28, %v1815_v27  ;;  %v1786_v38 = vld [vmem:[%s7748_s3 + $0xf8] sm:$0xff] }
  0x79   :  { %3551 = vmatmul.mubr.msk.f32.vlgmr.msra.gmra.mrb[24].mxu0 %vm452_vm0, %v5125_v63  ;;  %v1800_v36 = vld [vmem:[%s7748_s3 + $0x168] sm:$0xff]  ;;  %v1837_v15 = vld [vmem:[%s7748_s3 + $0x290] sm:$0xff] }
  0x7a   :  { %3553 = vmatmul.mubr.msk.f32.vlgmr.msra.gmra.mrb[24].mxu1 %vm452_vm0, %v5125_v63  ;;  %4397 = vmatpush1.bf16.msra.mxu0 %v4396_v46  ;;  %v4418_v63 = vpack.c.bf16 %v219_v57, %v187_v56  ;;  %v4434_v46 = vpack.c.bf16 %v1776_v40, %v1775_v39  ;;  %v4944_v56 = vld [vmem:[%s7747_s0 + $0x8] sm:$0xff]  ;;  %v1817_v39 = vld [vmem:[%s7748_s3 + $0x1f0] sm:$0xff]  ;;  %v1818_v40 = vld [vmem:[%s7748_s3 + $0x1f8] sm:$0xff]  ;;  %v4484_v42 = vpack.c.bf16 %v1800_v36, %v1799_v34 }
  0x7b   :  { %4413 = vmatpush1.bf16.msra.mxu1 %v4412_v47  ;;  %4399 = vmatprep.subr.bf16.mxu0 %v4398_v48  ;;  %v1759_v47 = vld [vmem:[%s7748_s3 + $0x20] sm:$0xff]  ;;  %v1760_v48 = vld [vmem:[%s7748_s3 + $0x28] sm:$0xff]  ;;  %v1821_v24 = vld [vmem:[%s7748_s3 + $0x210] sm:$0xff]  ;;  %v4494_v28 = vpack.c.bf16 %v1838_v16, %v1837_v15 }
  0x7c   :  { %4415 = vmatprep.subr.bf16.mxu1 %v4414_v52  ;;  %1453 = vmatprep.mubr.f32.mxu0 %v4947_v3  ;;  %v1777_v52 = vld [vmem:[%s7748_s3 + $0xb0] sm:$0xff]  ;;  %v4436_v57 = vpack.c.bf16 %v1760_v48, %v1759_v47  ;;  %v4486_v47 = vpack.c.bf16 %v1818_v40, %v1817_v39  ;;  %v1802_v48 = vld [vmem:[%s7748_s3 + $0x178] sm:$0xff]  ;;  %v1839_v36 = vld [vmem:[%s7748_s3 + $0x2a0] sm:$0xff] }
  0x7d   :  { %3552 = vmatmul.mubr.msk.f32.gmra.mrb[26].mxu0 %vm452_vm0, %v5158_v14  ;;  %1530 = vmatprep.mubr.f32.mxu1 %v4947_v3  ;;  %v1875_v15 = vld [vmem:[%s7748_s3 + $0x3c0] sm:$0xff]  ;;  %v1876_v16 = vld [vmem:[%s7748_s3 + $0x3c8] sm:$0xff] }
  0x7e   :  { %4401 = vmatpush1.bf16.msra.mxu0 %v4400_v58  ;;  %3554 = vmatmul.mubr.msk.f32.gmra.mrb[26].mxu1 %vm452_vm0, %v5158_v14  ;;  %v282_v14 = vld [vmem:[%s7746_s1 + $0x7f0] sm:$0xff]  ;;  %v4468_v58 = vpack.c.bf16 %v1792_v51, %v1791_v49  ;;  %v1835_v49 = vld [vmem:[%s7748_s3 + $0x280] sm:$0xff] }
  0x7f   :  { %4417 = vmatpush1.bf16.msra.mxu1 %v4416_v59  ;;  %4403 = vmatprep.subr.bf16.mxu0 %v4402_v60  ;;  %v4424_v20 = vpack.c.bf16 %v282_v14, %v250_v12  ;;  %v4438_v59 = vpack.c.bf16 %v1778_v53, %v1777_v52  ;;  %v1761_v60 = vld [vmem:[%s7748_s3 + $0x30] sm:$0xff]  ;;  %v1796_v12 = vld [vmem:[%s7748_s3 + $0x148] sm:$0xff]  ;;  %v1782_v14 = vld [vmem:[%s7748_s3 + $0xd8] sm:$0xff] }
  0x80   :  { %4419 = vmatprep.subr.bf16.mxu1 %v4418_v63  ;;  %1601 = vmatprep.mubr.f32.mxu0 %v4947_v3  ;;  %v1779_v63 = vld [vmem:[%s7748_s3 + $0xc0] sm:$0xff]  ;;  %v4440_v5 = vpack.c.bf16 %v1762_v61, %v1761_v60  ;;  %v4476_v18 = vpack.c.bf16 %v1796_v12, %v1795_v10  ;;  %v1868_v52 = vld [vmem:[%s7748_s3 + $0x388] sm:$0xff] }
  0x81   :  { %1678 = vmatprep.mubr.f32.mxu1 %v4947_v3  ;;  %v1867_v51 = vld [vmem:[%s7748_s3 + $0x380] sm:$0xff] }
  0x82   :  { %4405 = vmatpush1.bf16.msra.mxu0 %v4404_v7  ;;  %v4442_v7 = vpack.c.bf16 %v1780_v1, %v1779_v63  ;;  %v6076_v60 = vld [vmem:[%s7749_s2] sm:$0xff] }
  0x83   :  { %4421 = vmatpush1.bf16.msra.mxu1 %v4420_v8  ;;  %4407 = vmatprep.subr.bf16.mxu0 %v4406_v9  ;;  %v1763_v8 = vld [vmem:[%s7748_s3 + $0x40] sm:$0xff]  ;;  %v1764_v9 = vld [vmem:[%s7748_s3 + $0x48] sm:$0xff] }
  0x84   :  { %4423 = vmatprep.subr.bf16.mxu1 %v4422_v13  ;;  %v1781_v13 = vld [vmem:[%s7748_s3 + $0xd0] sm:$0xff]  ;;  %v4444_v17 = vpack.c.bf16 %v1764_v9, %v1763_v8  ;;  %v1820_v9 = vld [vmem:[%s7748_s3 + $0x208] sm:$0xff]  ;;  %v1851_v10 = vld [vmem:[%s7748_s3 + $0x300] sm:$0xff] }
  0x86   :  { %4409 = vmatpush1.bf16.msra.mxu0 %v4408_v19  ;;  %v4446_v19 = vpack.c.bf16 %v1782_v14, %v1781_v13 }
  0x87   :  { %4425 = vmatpush1.bf16.msra.mxu1 %v4424_v20  ;;  %4427 = vmatprep.subr.bf16.mxu0 %v4426_v21  ;;  %v1765_v20 = vld [vmem:[%s7748_s3 + $0x50] sm:$0xff]  ;;  %v1766_v21 = vld [vmem:[%s7748_s3 + $0x58] sm:$0xff] }
  0x88   :  { %4459 = vmatprep.subr.bf16.mxu1 %v4458_v25  ;;  %v1783_v25 = vld [vmem:[%s7748_s3 + $0xe0] sm:$0xff]  ;;  %v4448_v29 = vpack.c.bf16 %v1766_v21, %v1765_v20 }
  0x89   :  { %3555 = vmatmul.mubr.msk.f32.vlgmr.msra.gmra.mrb[28].mxu0 %vm452_vm0, %v4943_v41 }
  0x8a   :  { %3557 = vmatmul.mubr.msk.f32.vlgmr.msra.gmra.mrb[28].mxu1 %vm452_vm0, %v4943_v41  ;;  %4429 = vmatpush3.bf16.msra.mxu0 %v4428_v31  ;;  %v4450_v31 = vpack.c.bf16 %v1784_v26, %v1783_v25 }
  0x8b   :  { %4461 = vmatpush3.bf16.msra.mxu1 %v4460_v32  ;;  %4431 = vmatprep.subr.bf16.mxu0 %v4430_v33  ;;  %v1767_v32 = vld [vmem:[%s7748_s3 + $0x60] sm:$0xff]  ;;  %v1768_v33 = vld [vmem:[%s7748_s3 + $0x68] sm:$0xff] }
  0x8c   :  { %4463 = vmatprep.subr.bf16.mxu1 %v4462_v37  ;;  %1607 = vmatprep.mubr.f32.mxu0 %v4947_v3  ;;  %v1785_v37 = vld [vmem:[%s7748_s3 + $0xf0] sm:$0xff]  ;;  %v4452_v41 = vpack.c.bf16 %v1768_v33, %v1767_v32 }
  0x8d   :  { %3556 = vmatmul.mubr.msk.f32.gmra.mrb[30].mxu0 %vm452_vm0, %v4944_v56  ;;  %1684 = vmatprep.mubr.f32.mxu1 %v4947_v3  ;;  %v1793_v3 = vld [vmem:[%s7748_s3 + $0x130] sm:$0xff]  ;;  %v4454_v43 = vpack.c.bf16 %v1786_v38, %v1785_v37  ;;  %v1840_v37 = vld [vmem:[%s7748_s3 + $0x2a8] sm:$0xff] }
  0x8e   :  { %4433 = vmatpush3.bf16.msra.mxu0 %v4432_v44  ;;  %3558 = vmatmul.mubr.msk.f32.gmra.mrb[30].mxu1 %vm452_vm0, %v4944_v56  ;;  %v4472_v6 = vpack.c.bf16 %v1794_v0, %v1793_v3  ;;  %v1769_v44 = vld [vmem:[%s7748_s3 + $0x70] sm:$0xff]  ;;  %v4522_v56 = vpack.c.bf16 %v1868_v52, %v1867_v51  ;;  %v1824_v51 = vld [vmem:[%s7748_s3 + $0x228] sm:$0xff]  ;;  %v1855_v52 = vld [vmem:[%s7748_s3 + $0x320] sm:$0xff] }
  0x8f   :  { %4465 = vmatpush3.bf16.msra.mxu1 %v4464_v45  ;;  %4435 = vmatprep.subr.bf16.mxu0 %v4434_v46  ;;  %v1770_v45 = vld [vmem:[%s7748_s3 + $0x78] sm:$0xff]  ;;  %v1801_v46 = vld [vmem:[%s7748_s3 + $0x170] sm:$0xff] }
  0x90   :  { %4467 = vmatprep.subr.bf16.mxu1 %v4466_v50  ;;  %v1836_v50 = vld [vmem:[%s7748_s3 + $0x288] sm:$0xff]  ;;  %v4456_v53 = vpack.c.bf16 %v1770_v45, %v1769_v44  ;;  %v4488_v54 = vpack.c.bf16 %v1802_v48, %v1801_v46 }
  0x91   :  { %v4490_v55 = vpack.c.bf16 %v1836_v50, %v1835_v49  ;;  %v4498_v49 = vpack.c.bf16 %v1840_v37, %v1839_v36  ;;  %v1823_v50 = vld [vmem:[%s7748_s3 + $0x220] sm:$0xff] }
  0x92   :  { %4437 = vmatpush3.bf16.msra.mxu0 %v4436_v57  ;;  %v292_v57 = vlaneseq }
  0x93   :  { %4469 = vmatpush3.bf16.msra.mxu1 %v4468_v58  ;;  %4439 = vmatprep.subr.bf16.mxu0 %v4438_v59 }
  0x94   :  { %4471 = vmatprep.subr.bf16.mxu1 %v4470_v62  ;;  %v6068_v58 = vshrl.u32 %v292_v57, 7  ;;  %v1842_v57 = vld [vmem:[%s7748_s3 + $0x2b8] sm:$0xff] }
  0x96   :  { %4441 = vmatpush3.bf16.msra.mxu0 %v4440_v5  ;;  %v6071_v59 = vsub.s32 0, %v6068_v58  ;;  %v6079_v61 = vsub.s32 2, %v6068_v58  ;;  %v6082_v3 = vsub.s32 1, %v6068_v58  ;;  %v6085_v62 = vsub.s32 3, %v6068_v58  ;;  %v1819_v5 = vld [vmem:[%s7748_s3 + $0x200] sm:$0xff] }
  0x97   :  { %4473 = vmatpush3.bf16.msra.mxu1 %v4472_v6  ;;  %4443 = vmatprep.subr.bf16.mxu0 %v4442_v7  ;;  %v4492_v22 = vpack.c.bf16 %v1820_v9, %v1819_v5  ;;  %v1857_v9 = vld [vmem:[%s7748_s3 + $0x330] sm:$0xff] }
  0x98   :  { %4475 = vmatprep.subr.bf16.mxu1 %v4474_v11  ;;  %v295_v0 = vrot.slane %v6076_v60, %v6071_v59  ;;  %v303_v63 = vrot.slane %v6076_v60, %v6079_v61  ;;  %v299_v1 = vrot.slane %v6076_v60, %v6082_v3  ;;  %v307_v2 = vrot.slane %v6076_v60, %v6085_v62  ;;  %v1852_v11 = vld [vmem:[%s7748_s3 + $0x308] sm:$0xff] }
  0x9a   :  { %4445 = vmatpush3.bf16.msra.mxu0 %v4444_v17 }
  0x9b   :  { %4477 = vmatpush3.bf16.msra.mxu1 %v4476_v18  ;;  %4447 = vmatprep.subr.bf16.mxu0 %v4446_v19  ;;  %v1869_v18 = vld [vmem:[%s7748_s3 + $0x390] sm:$0xff]  ;;  %v1870_v19 = vld [vmem:[%s7748_s3 + $0x398] sm:$0xff] }
  0x9c   :  { %4479 = vmatprep.subr.bf16.mxu1 %v4478_v23  ;;  %v4524_v23 = vpack.c.bf16 %v1852_v11, %v1851_v10  ;;  %v4526_v34 = vpack.c.bf16 %v1870_v19, %v1869_v18  ;;  %v1858_v11 = vld [vmem:[%s7748_s3 + $0x338] sm:$0xff] }
  0x9e   :  { %4449 = vmatpush3.bf16.msra.mxu0 %v4448_v29  ;;  %v1822_v29 = vld [vmem:[%s7748_s3 + $0x218] sm:$0xff] }
  0x9f   :  { %4481 = vmatpush3.bf16.msra.mxu1 %v4480_v30  ;;  %4451 = vmatprep.subr.bf16.mxu0 %v4450_v31  ;;  %v1853_v30 = vld [vmem:[%s7748_s3 + $0x310] sm:$0xff]  ;;  %v4496_v45 = vpack.c.bf16 %v1822_v29, %v1821_v24  ;;  %v1859_v24 = vld [vmem:[%s7748_s3 + $0x340] sm:$0xff] }
  0xa0   :  { %4483 = vmatprep.subr.bf16.mxu1 %v4482_v35  ;;  %v1854_v35 = vld [vmem:[%s7748_s3 + $0x318] sm:$0xff]  ;;  %v1845_v29 = vld [vmem:[%s7748_s3 + $0x2d0] sm:$0xff] }
  0xa1   :  { %v4528_v48 = vpack.c.bf16 %v1854_v35, %v1853_v30  ;;  %v1846_v30 = vld [vmem:[%s7748_s3 + $0x2d8] sm:$0xff] }
  0xa2   :  { %4453 = vmatpush3.bf16.msra.mxu0 %v4452_v41  ;;  %v1871_v41 = vld [vmem:[%s7748_s3 + $0x3a0] sm:$0xff] }
  0xa3   :  { %4485 = vmatpush3.bf16.msra.mxu1 %v4484_v42  ;;  %4455 = vmatprep.subr.bf16.mxu0 %v4454_v43  ;;  %v1872_v42 = vld [vmem:[%s7748_s3 + $0x3a8] sm:$0xff] }
  0xa4   :  { %4487 = vmatprep.subr.bf16.mxu1 %v4486_v47 }
  0xa6   :  { %4457 = vmatpush3.bf16.msra.mxu0 %v4456_v53 }
  0xa7   :  { %4489 = vmatpush3.bf16.msra.mxu1 %v4488_v54  ;;  %4491 = vmatprep.subr.bf16.mxu0 %v4490_v55  ;;  %v4530_v54 = vpack.c.bf16 %v1872_v42, %v1871_v41  ;;  %v1856_v55 = vld [vmem:[%s7748_s3 + $0x328] sm:$0xff]  ;;  %v1829_v41 = vld [vmem:[%s7748_s3 + $0x250] sm:$0xff]  ;;  %v1830_v42 = vld [vmem:[%s7748_s3 + $0x258] sm:$0xff] }
  0xa8   :  { %4523 = vmatprep.subr.bf16.mxu1 %v4522_v56  ;;  %v1841_v56 = vld [vmem:[%s7748_s3 + $0x2b0] sm:$0xff]  ;;  %v4532_v5 = vpack.c.bf16 %v1856_v55, %v1855_v52  ;;  %v1879_v52 = vld [vmem:[%s7748_s3 + $0x3e0] sm:$0xff]  ;;  %v4512_v55 = vpack.c.bf16 %v1830_v42, %v1829_v41 }
  0xe8   :  { %v525_v4 = vpop.f32.mrb[0].mxu0 }
  0xe9   :  { %v526_v6 = vadd.f32 %v525_v4, %v295_v0  ;;  %v602_v7 = vpop.f32.mrb[0].mxu1  ;;  %v527_v8 = vpop.f32.mrb[1].mxu0  ;;  %v4500_v4 = vpack.c.bf16 %v1824_v51, %v1823_v50  ;;  %v1848_v50 = vld [vmem:[%s7748_s3 + $0x2e8] sm:$0xff] }
  0xea   :  { %v603_v12 = vadd.f32 %v602_v7, %v303_v63  ;;  %v528_v13 = vadd.f32 %v527_v8, %v299_v1  ;;  %v604_v14 = vpop.f32.mrb[1].mxu1  ;;  %v1825_v7 = vld [vmem:[%s7748_s3 + $0x230] sm:$0xff]  ;;  %v1826_v8 = vld [vmem:[%s7748_s3 + $0x238] sm:$0xff] }
  0xeb   :  { %v605_v17 = vadd.f32 %v604_v14, %v307_v2  ;;  %v1691_v26 = vmax.f32 %v526_v6, 0.0  ;;  %v4502_v6 = vpack.c.bf16 %v1842_v57, %v1841_v56  ;;  %v4504_v18 = vpack.c.bf16 %v1826_v8, %v1825_v7  ;;  %v1849_v7 = vld [vmem:[%s7748_s3 + $0x2f0] sm:$0xff]  ;;  %v1850_v8 = vld [vmem:[%s7748_s3 + $0x2f8] sm:$0xff] }
  0xec   :  { %v1693_v20 = vmax.f32 %v603_v12, 0.0  ;;  %v1692_v21 = vmax.f32 %v528_v13, 0.0  ;;  %v531_v25 = vpop.f32.mrb[2].mxu0  ;;  %v1843_v12 = vld [vmem:[%s7748_s3 + $0x2c0] sm:$0xff]  ;;  %v1844_v13 = vld [vmem:[%s7748_s3 + $0x2c8] sm:$0xff]  ;;  %v6269_v56 = vsub.s32 6, %v6068_v58 }
  0xed   :  { %v1694_v27 = vmax.f32 %v605_v17, 0.0  ;;  %v532_v31 = vadd.f32 %v531_v25, %v295_v0  ;;  %v533_v32 = vpop.f32.mrb[3].mxu0  ;;  %v608_v33 = vpop.f32.mrb[2].mxu1  ;;  %v6162_v0 = vsub.s32 5, %v6068_v58 }
  0xee   :  { %2338 = vmatprep.mubr.f32.mxu0 %v1692_v21  ;;  %v534_v38 = vadd.f32 %v533_v32, %v299_v1  ;;  %v609_v39 = vadd.f32 %v608_v33, %v303_v63  ;;  %v610_v40 = vpop.f32.mrb[3].mxu1  ;;  %v1873_v63 = vld [vmem:[%s7748_s3 + $0x3b0] sm:$0xff]  ;;  %v1874_v1 = vld [vmem:[%s7748_s3 + $0x3b8] sm:$0xff]  ;;  %v4506_v21 = vpack.c.bf16 %v1844_v13, %v1843_v12  ;;  %v319_v12 = vrot.slane %v6076_v60, %v6269_v56 }
  0xef   :  { %2413 = vmatprep.mubr.f32.mxu1 %v1694_v27  ;;  %2339 = vmatmul.mubr.f32.vlgmr.msra.gmra.mrb[32].mxu0 %v1691_v26  ;;  %v1723_v43 = vmax.f32 %v532_v31, 0.0  ;;  %v611_v44 = vadd.f32 %v610_v40, %v307_v2  ;;  %v6171_v2 = vsub.s32 7, %v6068_v58  ;;  %v4534_v10 = vpack.c.bf16 %v1874_v1, %v1873_v63  ;;  %v1877_v33 = vld [vmem:[%s7748_s3 + $0x3d0] sm:$0xff]  ;;  %v1831_v1 = vld [vmem:[%s7748_s3 + $0x260] sm:$0xff] }
  0xf0   :  { %2414 = vmatmul.mubr.f32.vlgmr.msra.gmra.mrb[32].mxu1 %v1693_v20  ;;  %4493 = vmatpush3.bf16.msra.mxu0 %v4492_v22  ;;  %v1724_v46 = vmax.f32 %v534_v38, 0.0  ;;  %v1725_v47 = vmax.f32 %v609_v39, 0.0  ;;  %v6193_v14 = vrot.slane %v6076_v60, %v6162_v0  ;;  %v4536_v20 = vpack.c.bf16 %v1858_v11, %v1857_v9  ;;  %v1827_v22 = vld [vmem:[%s7748_s3 + $0x240] sm:$0xff]  ;;  %v1882_v11 = vld [vmem:[%s7748_s3 + $0x3f8] sm:$0xff] }
  0xf1   :  { %4525 = vmatpush3.bf16.msra.mxu1 %v4524_v23  ;;  %4495 = vmatprep.subr.bf16.mxu0 %v4494_v28  ;;  %v1726_v53 = vmax.f32 %v611_v44, 0.0  ;;  %v6203_v17 = vrot.slane %v6076_v60, %v6171_v2  ;;  %v1828_v23 = vld [vmem:[%s7748_s3 + $0x248] sm:$0xff]  ;;  %v4538_v27 = vpack.c.bf16 %v1876_v16, %v1875_v15  ;;  %v4510_v40 = vpack.c.bf16 %v1846_v30, %v1845_v29 }
  0xf2   :  { %4527 = vmatprep.subr.bf16.mxu1 %v4526_v34  ;;  %2343 = vmatprep.mubr.f32.mxu0 %v1724_v46  ;;  %v1860_v28 = vld [vmem:[%s7748_s3 + $0x348] sm:$0xff]  ;;  %v1878_v34 = vld [vmem:[%s7748_s3 + $0x3d8] sm:$0xff]  ;;  %v4508_v36 = vpack.c.bf16 %v1828_v23, %v1827_v22  ;;  %v4518_v16 = vpack.c.bf16 %v1850_v8, %v1849_v7  ;;  %v1899_v23 = vld [vmem:[%s7748_s3 + $0x480] sm:$0xff] }
  0xf3   :  { %2344 = vmatmul.mubr.f32.gmra.mrb[34].mxu0 %v1723_v43  ;;  %2418 = vmatprep.mubr.f32.mxu1 %v1726_v53  ;;  %v4540_v39 = vpack.c.bf16 %v1860_v28, %v1859_v24  ;;  %v1861_v43 = vld [vmem:[%s7748_s3 + $0x350] sm:$0xff]  ;;  %v1880_v53 = vld [vmem:[%s7748_s3 + $0x3e8] sm:$0xff] }
  0xf4   :  { %4497 = vmatpush3.bf16.msra.mxu0 %v4496_v45  ;;  %2419 = vmatmul.mubr.f32.gmra.mrb[34].mxu1 %v1725_v47  ;;  %v4542_v47 = vpack.c.bf16 %v1878_v34, %v1877_v33  ;;  %v1900_v24 = vld [vmem:[%s7748_s3 + $0x488] sm:$0xff]  ;;  %v1883_v34 = vld [vmem:[%s7748_s3 + $0x400] sm:$0xff] }
  0xf5   :  { %4529 = vmatpush3.bf16.msra.mxu1 %v4528_v48  ;;  %4499 = vmatprep.subr.bf16.mxu0 %v4498_v49  ;;  %v1862_v48 = vld [vmem:[%s7748_s3 + $0x358] sm:$0xff]  ;;  %v1847_v49 = vld [vmem:[%s7748_s3 + $0x2e0] sm:$0xff]  ;;  %v1932_v28 = vld [vmem:[%s7748_s3 + $0x588] sm:$0xff]  ;;  %v4554_v33 = vpack.c.bf16 %v1900_v24, %v1899_v23 }
  0xf6   :  { %4531 = vmatprep.subr.bf16.mxu1 %v4530_v54  ;;  %v6266_v54 = vsub.s32 4, %v6068_v58  ;;  %v4544_v57 = vpack.c.bf16 %v1862_v48, %v1861_v43  ;;  %v4514_v63 = vpack.c.bf16 %v1848_v50, %v1847_v49  ;;  %v1864_v58 = vld [vmem:[%s7748_s3 + $0x368] sm:$0xff]  ;;  %v1933_v48 = vld [vmem:[%s7748_s3 + $0x590] sm:$0xff]  ;;  %v1934_v49 = vld [vmem:[%s7748_s3 + $0x598] sm:$0xff] }
  0xf7   :  { %v6327_v29 = vld [vmem:[%s7749_s2 + $0x8] sm:$0xff]  ;;  %v1887_v23 = vld [vmem:[%s7748_s3 + $0x420] sm:$0xff] }
  0xf8   :  { %4501 = vmatpush3.bf16.msra.mxu0 %v4500_v4  ;;  %v6205_v19 = vpop.f32.mrb[4].mxu0  ;;  %v1832_v4 = vld [vmem:[%s7748_s3 + $0x268] sm:$0xff]  ;;  %v311_v9 = vrot.slane %v6076_v60, %v6266_v54  ;;  %v1866_v60 = vld [vmem:[%s7748_s3 + $0x378] sm:$0xff]  ;;  %v6352_v41 = vrot.slane %v6327_v29, %v6082_v3  ;;  %v6368_v50 = vrot.slane %v6327_v29, %v6085_v62 }
  0xf9   :  { %4533 = vmatpush3.bf16.msra.mxu1 %v4532_v5  ;;  %4503 = vmatprep.subr.bf16.mxu0 %v4502_v6  ;;  %v6216_v25 = vpop.f32.mrb[4].mxu1  ;;  %v681_v26 = vpop.f32.mrb[5].mxu0  ;;  %v1863_v5 = vld [vmem:[%s7748_s3 + $0x360] sm:$0xff]  ;;  %v4546_v6 = vpack.c.bf16 %v1880_v53, %v1879_v52  ;;  %v4516_v13 = vpack.c.bf16 %v1832_v4, %v1831_v1  ;;  %v1917_v1 = vld [vmem:[%s7748_s3 + $0x510] sm:$0xff]  ;;  %v1904_v7 = vld [vmem:[%s7748_s3 + $0x4a8] sm:$0xff] }
  0xfa   :  { %4535 = vmatprep.subr.bf16.mxu1 %v4534_v10  ;;  %v682_v31 = vadd.f32 %v681_v26, %v6193_v14  ;;  %v758_v32 = vpop.f32.mrb[5].mxu1  ;;  %v1881_v10 = vld [vmem:[%s7748_s3 + $0x3f0] sm:$0xff]  ;;  %v4548_v15 = vpack.c.bf16 %v1864_v58, %v1863_v5  ;;  %v680_v26 = vadd.f32 %v6205_v19, %v311_v9  ;;  %v757_v30 = vadd.f32 %v6216_v25, %v319_v12  ;;  %v1903_v58 = vld [vmem:[%s7748_s3 + $0x4a0] sm:$0xff]  ;;  %v1888_v24 = vld [vmem:[%s7748_s3 + $0x428] sm:$0xff] }
  0xfb   :  { %v759_v35 = vadd.f32 %v758_v32, %v6203_v17  ;;  %v4550_v22 = vpack.c.bf16 %v1882_v11, %v1881_v10  ;;  %v4590_v5 = vpack.c.bf16 %v1934_v49, %v1933_v48  ;;  %v1939_v48 = vld [vmem:[%s7748_s3 + $0x5c0] sm:$0xff]  ;;  %v1940_v49 = vld [vmem:[%s7748_s3 + $0x5c8] sm:$0xff] }
  0xfc   :  { %4505 = vmatpush3.bf16.msra.mxu0 %v4504_v18  ;;  %v1696_v37 = vmax.f32 %v682_v31, 0.0  ;;  %v6235_v38 = vpop.f32.mrb[6].mxu0  ;;  %v1833_v18 = vld [vmem:[%s7748_s3 + $0x270] sm:$0xff]  ;;  %v1695_v43 = vmax.f32 %v680_v26, 0.0  ;;  %v1697_v52 = vmax.f32 %v757_v30, 0.0  ;;  %v1919_v26 = vld [vmem:[%s7748_s3 + $0x520] sm:$0xff] }
  0xfd   :  { %4537 = vmatpush3.bf16.msra.mxu1 %v4536_v20  ;;  %4507 = vmatprep.subr.bf16.mxu0 %v4506_v21  ;;  %v1698_v44 = vmax.f32 %v759_v35, 0.0  ;;  %v687_v45 = vpop.f32.mrb[7].mxu0  ;;  %v6246_v46 = vpop.f32.mrb[6].mxu1  ;;  %v1834_v20 = vld [vmem:[%s7748_s3 + $0x278] sm:$0xff]  ;;  %v1865_v21 = vld [vmem:[%s7748_s3 + $0x370] sm:$0xff]  ;;  %v1884_v35 = vld [vmem:[%s7748_s3 + $0x408] sm:$0xff] }
  0xfe   :  { %4539 = vmatprep.subr.bf16.mxu1 %v4538_v27  ;;  %2488 = vmatprep.mubr.f32.mxu0 %v1696_v37  ;;  %v6257_v51 = vpop.f32.mrb[7].mxu1  ;;  %v1931_v27 = vld [vmem:[%s7748_s3 + $0x580] sm:$0xff]  ;;  %v4520_v31 = vpack.c.bf16 %v1834_v20, %v1833_v18  ;;  %v4552_v19 = vpack.c.bf16 %v1866_v60, %v1865_v21  ;;  %v688_v32 = vadd.f32 %v687_v45, %v6193_v14  ;;  %v1916_v14 = vld [vmem:[%s7748_s3 + $0x508] sm:$0xff]  ;;  %v1905_v30 = vld [vmem:[%s7748_s3 + $0x4b0] sm:$0xff] }
  0xff   :  { %2563 = vmatprep.mubr.f32.mxu1 %v1698_v44  ;;  %v4586_v25 = vpack.c.bf16 %v1932_v28, %v1931_v27  ;;  %v1915_v37 = vld [vmem:[%s7748_s3 + $0x500] sm:$0xff]  ;;  %v686_v44 = vadd.f32 %v6235_v38, %v311_v9  ;;  %v765_v45 = vadd.f32 %v6257_v51, %v6203_v17  ;;  %v763_v17 = vadd.f32 %v6246_v46, %v319_v12  ;;  %v1920_v28 = vld [vmem:[%s7748_s3 + $0x528] sm:$0xff] }
 0x100   :  { %4509 = vmatpush3.bf16.msra.mxu0 %v4508_v36  ;;  %v4556_v51 = vpack.c.bf16 %v1884_v35, %v1883_v34  ;;  %v1728_v53 = vmax.f32 %v688_v32, 0.0  ;;  %v4562_v60 = vpack.c.bf16 %v1904_v7, %v1903_v58  ;;  %v1937_v32 = vld [vmem:[%s7748_s3 + $0x5b0] sm:$0xff]  ;;  %v4564_v35 = vpack.c.bf16 %v1888_v24, %v1887_v23  ;;  %v1942_v58 = vld [vmem:[%s7748_s3 + $0x5d8] sm:$0xff]  ;;  %v1911_v23 = vld [vmem:[%s7748_s3 + $0x4e0] sm:$0xff] }
 0x101   :  { %4541 = vmatpush3.bf16.msra.mxu1 %v4540_v39  ;;  %4511 = vmatprep.subr.bf16.mxu0 %v4510_v40  ;;  %v1901_v39 = vld [vmem:[%s7748_s3 + $0x490] sm:$0xff]  ;;  %v1727_v11 = vmax.f32 %v686_v44, 0.0  ;;  %v1730_v12 = vmax.f32 %v765_v45, 0.0  ;;  %v1729_v20 = vmax.f32 %v763_v17, 0.0  ;;  %v1922_v44 = vld [vmem:[%s7748_s3 + $0x538] sm:$0xff]  ;;  %v1907_v45 = vld [vmem:[%s7748_s3 + $0x4c0] sm:$0xff] }
 0x102   :  { %4543 = vmatprep.subr.bf16.mxu1 %v4542_v47  ;;  %v1902_v47 = vld [vmem:[%s7748_s3 + $0x498] sm:$0xff]  ;;  %v1912_v24 = vld [vmem:[%s7748_s3 + $0x4e8] sm:$0xff] }
 0x103   :  { %v4558_v46 = vpack.c.bf16 %v1902_v47, %v1901_v39  ;;  %v1890_v39 = vld [vmem:[%s7748_s3 + $0x438] sm:$0xff]  ;;  %v1908_v47 = vld [vmem:[%s7748_s3 + $0x4c8] sm:$0xff] }
 0x104   :  { %4513 = vmatpush3.bf16.msra.mxu0 %v4512_v55  ;;  %v4588_v55 = vpack.c.bf16 %v1916_v14, %v1915_v37  ;;  %v1889_v14 = vld [vmem:[%s7748_s3 + $0x430] sm:$0xff]  ;;  %v4570_v17 = vpack.c.bf16 %v1908_v47, %v1907_v45  ;;  %v1946_v47 = vld [vmem:[%s7748_s3 + $0x5f8] sm:$0xff] }
 0x105   :  { %4545 = vmatpush3.bf16.msra.mxu1 %v4544_v57  ;;  %4515 = vmatprep.subr.bf16.mxu0 %v4514_v63  ;;  %v1885_v57 = vld [vmem:[%s7748_s3 + $0x410] sm:$0xff]  ;;  %v1886_v63 = vld [vmem:[%s7748_s3 + $0x418] sm:$0xff] }
 0x106   :  { %4547 = vmatprep.subr.bf16.mxu1 %v4546_v6  ;;  %v1918_v6 = vld [vmem:[%s7748_s3 + $0x518] sm:$0xff]  ;;  %v4560_v21 = vpack.c.bf16 %v1886_v63, %v1885_v57  ;;  %v4602_v57 = vpack.c.bf16 %v1940_v49, %v1939_v48  ;;  %v1924_v63 = vld [vmem:[%s7748_s3 + $0x548] sm:$0xff]  ;;  %v1945_v45 = vld [vmem:[%s7748_s3 + $0x5f0] sm:$0xff]  ;;  %v335_v48 = vrot.slane %v6327_v29, %v6079_v61 }
 0x108   :  { %4517 = vmatpush3.bf16.msra.mxu0 %v4516_v13  ;;  %v1935_v13 = vld [vmem:[%s7748_s3 + $0x5a0] sm:$0xff] }
 0x109   :  { %4549 = vmatpush3.bf16.msra.mxu1 %v4548_v15  ;;  %4519 = vmatprep.subr.bf16.mxu0 %v4518_v16  ;;  %v6337_v36 = vpop.f32.mrb[8].mxu0  ;;  %v1936_v15 = vld [vmem:[%s7748_s3 + $0x5a8] sm:$0xff] }
 0x10a   :  { %4551 = vmatprep.subr.bf16.mxu1 %v4550_v22  ;;  %v6348_v40 = vpop.f32.mrb[8].mxu1  ;;  %v835_v42 = vpop.f32.mrb[9].mxu0  ;;  %v4592_v22 = vpack.c.bf16 %v1918_v6, %v1917_v1  ;;  %v4594_v27 = vpack.c.bf16 %v1936_v15, %v1935_v13  ;;  %v1909_v1 = vld [vmem:[%s7748_s3 + $0x4d0] sm:$0xff] }
 0x10b   :  { %v912_v38 = vpop.f32.mrb[9].mxu1  ;;  %v836_v8 = vadd.f32 %v835_v42, %v6352_v41  ;;  %v1921_v42 = vld [vmem:[%s7748_s3 + $0x530] sm:$0xff] }
 0x10c   :  { %4521 = vmatpush3.bf16.msra.mxu0 %v4520_v31  ;;  %v913_v16 = vadd.f32 %v912_v38, %v6368_v50  ;;  %v1906_v31 = vld [vmem:[%s7748_s3 + $0x4b8] sm:$0xff]  ;;  %v4568_v38 = vpack.c.bf16 %v1890_v39, %v1889_v14  ;;  %v1941_v6 = vld [vmem:[%s7748_s3 + $0x5d0] sm:$0xff]  ;;  %v1928_v39 = vld [vmem:[%s7748_s3 + $0x568] sm:$0xff] }
 0x10d   :  { %4553 = vmatpush3.bf16.msra.mxu1 %v4552_v19  ;;  %4555 = vmatprep.subr.bf16.mxu0 %v4554_v33  ;;  %v6380_v4 = vpop.f32.mrb[10].mxu0  ;;  %v1700_v19 = vmax.f32 %v836_v8, 0.0  ;;  %v1938_v33 = vld [vmem:[%s7748_s3 + $0x5b8] sm:$0xff]  ;;  %v4566_v37 = vpack.c.bf16 %v1906_v31, %v1905_v30 }
 0x10e   :  { %4587 = vmatprep.subr.bf16.mxu1 %v4586_v25  ;;  %v6392_v9 = vpop.f32.mrb[11].mxu0  ;;  %v6394_v10 = vpop.f32.mrb[10].mxu1  ;;  %v1702_v34 = vmax.f32 %v913_v16, 0.0  ;;  %v4596_v25 = vpack.c.bf16 %v1920_v28, %v1919_v26  ;;  %v1893_v16 = vld [vmem:[%s7748_s3 + $0x450] sm:$0xff]  ;;  %v1944_v28 = vld [vmem:[%s7748_s3 + $0x5e8] sm:$0xff] }
 0x10f   :  { %2489 = vmatmul.mubr.f32.vlgmr.msra.gmra.mrb[36].mxu0 %v1695_v43  ;;  %v6403_v18 = vpop.f32.mrb[11].mxu1  ;;  %v4598_v43 = vpack.c.bf16 %v1938_v33, %v1937_v32 }
 0x110   :  { %2564 = vmatmul.mubr.f32.vlgmr.msra.gmra.mrb[36].mxu1 %v1697_v52  ;;  %4557 = vmatpush3.bf16.msra.mxu0 %v4556_v51  ;;  %v4600_v52 = vpack.c.bf16 %v1922_v44, %v1921_v42  ;;  %v1891_v51 = vld [vmem:[%s7748_s3 + $0x440] sm:$0xff]  ;;  %v1913_v42 = vld [vmem:[%s7748_s3 + $0x4f0] sm:$0xff]  ;;  %v327_v44 = vrot.slane %v6327_v29, %v6071_v59 }
 0x111   :  { %4589 = vmatpush3.bf16.msra.mxu1 %v4588_v55  ;;  %2493 = vmatprep.mubr.f32.mxu0 %v1728_v53  ;;  %v1892_v53 = vld [vmem:[%s7748_s3 + $0x448] sm:$0xff]  ;;  %v1923_v55 = vld [vmem:[%s7748_s3 + $0x540] sm:$0xff] }
 0x112   :  { %4559 = vmatprep.subr.bf16.mxu0 %v4558_v46  ;;  %4591 = vmatprep.subr.bf16.mxu1 %v4590_v5  ;;  %v1910_v46 = vld [vmem:[%s7748_s3 + $0x4d8] sm:$0xff]  ;;  %v4604_v13 = vpack.c.bf16 %v1924_v63, %v1923_v55  ;;  %v4614_v55 = vpack.c.bf16 %v1946_v47, %v1945_v45  ;;  %v1963_v63 = vld [vmem:[%s7748_s3 + $0x680] sm:$0xff] }
 0x113   :  { %2494 = vmatmul.mubr.f32.gmra.mrb[38].mxu0 %v1727_v11  ;;  %2568 = vmatprep.mubr.f32.mxu1 %v1730_v12  ;;  %v4572_v11 = vpack.c.bf16 %v1892_v53, %v1891_v51  ;;  %v4574_v15 = vpack.c.bf16 %v1910_v46, %v1909_v1  ;;  %v1898_v51 = vld [vmem:[%s7748_s3 + $0x478] sm:$0xff]  ;;  %v1929_v53 = vld [vmem:[%s7748_s3 + $0x570] sm:$0xff]  ;;  %v1964_v1 = vld [vmem:[%s7748_s3 + $0x688] sm:$0xff]  ;;  %v834_v46 = vadd.f32 %v6337_v36, %v327_v44 }
 0x114   :  { %4561 = vmatpush3.bf16.msra.mxu0 %v4560_v21  ;;  %2569 = vmatmul.mubr.f32.gmra.mrb[38].mxu1 %v1729_v20  ;;  %v1894_v20 = vld [vmem:[%s7748_s3 + $0x458] sm:$0xff]  ;;  %v1925_v21 = vld [vmem:[%s7748_s3 + $0x550] sm:$0xff]  ;;  %v1947_v36 = vld [vmem:[%s7748_s3 + $0x600] sm:$0xff] }
 0x115   :  { %4593 = vmatpush3.bf16.msra.mxu1 %v4592_v22  ;;  %4563 = vmatprep.subr.bf16.mxu0 %v4562_v60  ;;  %v4606_v22 = vpack.c.bf16 %v1942_v58, %v1941_v6  ;;  %v1926_v60 = vld [vmem:[%s7748_s3 + $0x558] sm:$0xff]  ;;  %v1995_v6 = vld [vmem:[%s7748_s3 + $0x780] sm:$0xff]  ;;  %v1996_v58 = vld [vmem:[%s7748_s3 + $0x788] sm:$0xff] }
 0x116   :  { %4595 = vmatprep.subr.bf16.mxu1 %v4594_v27  ;;  %2638 = vmatprep.mubr.f32.mxu0 %v1700_v19  ;;  %v1943_v27 = vld [vmem:[%s7748_s3 + $0x5e0] sm:$0xff]  ;;  %v4576_v19 = vpack.c.bf16 %v1894_v20, %v1893_v16  ;;  %v4608_v33 = vpack.c.bf16 %v1926_v60, %v1925_v21  ;;  %v842_v16 = vadd.f32 %v6392_v9, %v6352_v41  ;;  %v1948_v21 = vld [vmem:[%s7748_s3 + $0x608] sm:$0xff]  ;;  %v1965_v41 = vld [vmem:[%s7748_s3 + $0x690] sm:$0xff] }
 0x117   :  { %2713 = vmatprep.mubr.f32.mxu1 %v1702_v34  ;;  %v4578_v34 = vpack.c.bf16 %v1912_v24, %v1911_v23  ;;  %v4610_v14 = vpack.c.bf16 %v1944_v28, %v1943_v27  ;;  %v4618_v20 = vpack.c.bf16 %v1964_v1, %v1963_v63  ;;  %v1980_v60 = vld [vmem:[%s7748_s3 + $0x708] sm:$0xff]  ;;  %v6590_v9 = vrot.slane %v6327_v29, %v6162_v0  ;;  %v1966_v28 = vld [vmem:[%s7748_s3 + $0x698] sm:$0xff] }
 0x118   :  { %4565 = vmatpush3.bf16.msra.mxu0 %v4564_v35  ;;  %v1895_v35 = vld [vmem:[%s7748_s3 + $0x460] sm:$0xff]  ;;  %v1699_v23 = vmax.f32 %v834_v46, 0.0  ;;  %v840_v24 = vadd.f32 %v6380_v4, %v327_v44  ;;  %v919_v27 = vadd.f32 %v6403_v18, %v6368_v50  ;;  %v917_v50 = vadd.f32 %v6394_v10, %v335_v48  ;;  %v1981_v10 = vld [vmem:[%s7748_s3 + $0x710] sm:$0xff] }
 0x119   :  { %4597 = vmatpush3.bf16.msra.mxu1 %v4596_v25  ;;  %4567 = vmatprep.subr.bf16.mxu0 %v4566_v37  ;;  %v1896_v25 = vld [vmem:[%s7748_s3 + $0x468] sm:$0xff]  ;;  %v1927_v37 = vld [vmem:[%s7748_s3 + $0x560] sm:$0xff]  ;;  %v4620_v18 = vpack.c.bf16 %v1948_v21, %v1947_v36  ;;  %v4622_v45 = vpack.c.bf16 %v1966_v28, %v1965_v41  ;;  %v1969_v21 = vld [vmem:[%s7748_s3 + $0x6b0] sm:$0xff] }
 0x11a   :  { %4599 = vmatprep.subr.bf16.mxu1 %v4598_v43  ;;  %v6471_v5 = vpop.f32.mrb[12].mxu0  ;;  %v1914_v43 = vld [vmem:[%s7748_s3 + $0x4f8] sm:$0xff]  ;;  %v4580_v49 = vpack.c.bf16 %v1896_v25, %v1895_v35  ;;  %v1733_v1 = vmax.f32 %v917_v50, 0.0  ;;  %v1984_v36 = vld [vmem:[%s7748_s3 + $0x728] sm:$0xff] }
 0x11b   :  { %v6479_v7 = vpop.f32.mrb[12].mxu1  ;;  %v6481_v8 = vpop.f32.mrb[13].mxu0  ;;  %v2002_v41 = vld [vmem:[%s7748_s3 + $0x7b8] sm:$0xff] }
 0x11c   :  { %4569 = vmatpush3.bf16.msra.mxu0 %v4568_v38  ;;  %v6483_v12 = vpop.f32.mrb[13].mxu1  ;;  %v4612_v38 = vpack.c.bf16 %v1928_v39, %v1927_v37 }
 0x11d   :  { %4601 = vmatpush3.bf16.msra.mxu1 %v4600_v52  ;;  %4571 = vmatprep.subr.bf16.mxu0 %v4570_v17  ;;  %v4582_v52 = vpack.c.bf16 %v1914_v43, %v1913_v42  ;;  %v1897_v17 = vld [vmem:[%s7748_s3 + $0x470] sm:$0xff]  ;;  %v1950_v43 = vld [vmem:[%s7748_s3 + $0x618] sm:$0xff] }
 0x11e   :  { %4603 = vmatprep.subr.bf16.mxu1 %v4602_v57  ;;  %v6503_v26 = vpop.f32.mrb[14].mxu0  ;;  %v1930_v57 = vld [vmem:[%s7748_s3 + $0x578] sm:$0xff]  ;;  %v1949_v42 = vld [vmem:[%s7748_s3 + $0x610] sm:$0xff] }
 0x11f   :  { %v6511_v30 = vpop.f32.mrb[15].mxu0  ;;  %v6513_v31 = vpop.f32.mrb[14].mxu1 }
 0x120   :  { %4573 = vmatpush3.bf16.msra.mxu0 %v4572_v11  ;;  %v6515_v32 = vpop.f32.mrb[15].mxu1  ;;  %v911_v11 = vadd.f32 %v6348_v40, %v335_v48  ;;  %v1979_v40 = vld [vmem:[%s7748_s3 + $0x700] sm:$0xff]  ;;  %v1982_v48 = vld [vmem:[%s7748_s3 + $0x718] sm:$0xff] }
 0x121   :  { %4605 = vmatpush3.bf16.msra.mxu1 %v4604_v13  ;;  %4575 = vmatprep.subr.bf16.mxu0 %v4574_v15  ;;  %v4584_v13 = vpack.c.bf16 %v1898_v51, %v1897_v17  ;;  %v4616_v15 = vpack.c.bf16 %v1930_v57, %v1929_v53  ;;  %v4652_v39 = vpack.c.bf16 %v1980_v60, %v1979_v40  ;;  %v1731_v17 = vmax.f32 %v840_v24, 0.0  ;;  %v1999_v53 = vld [vmem:[%s7748_s3 + $0x7a0] sm:$0xff]  ;;  %v2001_v60 = vld [vmem:[%s7748_s3 + $0x7b0] sm:$0xff] }
 0x122   :  { %4607 = vmatprep.subr.bf16.mxu1 %v4606_v22  ;;  %v4650_v22 = vpack.c.bf16 %v1996_v58, %v1995_v6  ;;  %v1701_v35 = vmax.f32 %v911_v11, 0.0  ;;  %v1734_v51 = vmax.f32 %v919_v27, 0.0  ;;  %v4656_v58 = vpack.c.bf16 %v1982_v48, %v1981_v10  ;;  %v1955_v48 = vld [vmem:[%s7748_s3 + $0x640] sm:$0xff] }
 0x123   :  { %v4662_v50 = vpack.c.bf16 %v2002_v41, %v2001_v60  ;;  %v1976_v60 = vld [vmem:[%s7748_s3 + $0x6e8] sm:$0xff] }
 0x124   :  { %4577 = vmatpush3.bf16.msra.mxu0 %v4576_v19  ;;  %v1997_v19 = vld [vmem:[%s7748_s3 + $0x790] sm:$0xff] }
 0x125   :  { %4609 = vmatpush3.bf16.msra.mxu1 %v4608_v33  ;;  %4579 = vmatprep.subr.bf16.mxu0 %v4578_v34  ;;  %v1998_v33 = vld [vmem:[%s7748_s3 + $0x798] sm:$0xff]  ;;  %v6606_v34 = vrot.slane %v6327_v29, %v6171_v2 }
 0x126   :  { %4611 = vmatprep.subr.bf16.mxu1 %v4610_v14  ;;  %v1732_v14 = vmax.f32 %v842_v16, 0.0  ;;  %v4654_v47 = vpack.c.bf16 %v1998_v33, %v1997_v19  ;;  %v1953_v19 = vld [vmem:[%s7748_s3 + $0x630] sm:$0xff]  ;;  %v1954_v33 = vld [vmem:[%s7748_s3 + $0x638] sm:$0xff] }
 0x127   :  { %v1067_v57 = vadd.f32 %v6483_v12, %v6606_v34  ;;  %v1952_v12 = vld [vmem:[%s7748_s3 + $0x628] sm:$0xff]  ;;  %v4632_v10 = vpack.c.bf16 %v1954_v33, %v1953_v19 }
 0x128   :  { %4581 = vmatpush3.bf16.msra.mxu0 %v4580_v49  ;;  %v1967_v49 = vld [vmem:[%s7748_s3 + $0x6a0] sm:$0xff] }
 0x129   :  { %4613 = vmatpush3.bf16.msra.mxu1 %v4612_v38  ;;  %4583 = vmatprep.subr.bf16.mxu0 %v4582_v52  ;;  %v1968_v38 = vld [vmem:[%s7748_s3 + $0x6a8] sm:$0xff]  ;;  %v990_v52 = vadd.f32 %v6481_v8, %v6590_v9  ;;  %v4624_v8 = vpack.c.bf16 %v1950_v43, %v1949_v42  ;;  %v2003_v42 = vld [vmem:[%s7748_s3 + $0x7c0] sm:$0xff] }
 0x12a   :  { %4615 = vmatprep.subr.bf16.mxu1 %v4614_v55  ;;  %v2000_v55 = vld [vmem:[%s7748_s3 + $0x7a8] sm:$0xff]  ;;  %v4626_v11 = vpack.c.bf16 %v1968_v38, %v1967_v49  ;;  %v1987_v38 = vld [vmem:[%s7748_s3 + $0x740] sm:$0xff] }
 0x12b   :  { %v6608_v4 = vpop.f32.mrb[16].mxu0  ;;  %v1704_v40 = vmax.f32 %v990_v52, 0.0  ;;  %v2004_v43 = vld [vmem:[%s7748_s3 + $0x7c8] sm:$0xff] }
 0x12c   :  { %4585 = vmatpush3.bf16.msra.mxu0 %v4584_v13  ;;  %v6611_v25 = vpop.f32.mrb[16].mxu1  ;;  %v6613_v37 = vpop.f32.mrb[17].mxu0  ;;  %v1951_v13 = vld [vmem:[%s7748_s3 + $0x620] sm:$0xff]  ;;  %v1956_v49 = vld [vmem:[%s7748_s3 + $0x648] sm:$0xff]  ;;  %v4666_v52 = vpack.c.bf16 %v2004_v43, %v2003_v42 }
 0x12d   :  { %4617 = vmatpush3.bf16.msra.mxu1 %v4616_v15  ;;  %4619 = vmatprep.subr.bf16.mxu0 %v4618_v20  ;;  %v6624_v44 = vpop.f32.mrb[17].mxu1  ;;  %v1983_v15 = vld [vmem:[%s7748_s3 + $0x720] sm:$0xff]  ;;  %v4658_v20 = vpack.c.bf16 %v2000_v55, %v1999_v53  ;;  %v4628_v24 = vpack.c.bf16 %v1952_v12, %v1951_v13  ;;  %v1974_v53 = vld [vmem:[%s7748_s3 + $0x6d8] sm:$0xff]  ;;  %v2005_v55 = vld [vmem:[%s7748_s3 + $0x7d0] sm:$0xff] }
 0x12e   :  { %4651 = vmatprep.subr.bf16.mxu1 %v4650_v22  ;;  %v1970_v22 = vld [vmem:[%s7748_s3 + $0x6b8] sm:$0xff]  ;;  %v4660_v27 = vpack.c.bf16 %v1984_v36, %v1983_v15  ;;  %v1957_v13 = vld [vmem:[%s7748_s3 + $0x650] sm:$0xff]  ;;  %v1992_v43 = vld [vmem:[%s7748_s3 + $0x768] sm:$0xff] }
 0x12f   :  { %2639 = vmatmul.mubr.f32.vlgmr.msra.gmra.mrb[40].mxu0 %v1699_v23  ;;  %v6645_v63 = vpop.f32.mrb[18].mxu0  ;;  %v1706_v23 = vmax.f32 %v1067_v57, 0.0  ;;  %v4630_v28 = vpack.c.bf16 %v1970_v22, %v1969_v21  ;;  %v2006_v57 = vld [vmem:[%s7748_s3 + $0x7d8] sm:$0xff]  ;;  %v1989_v15 = vld [vmem:[%s7748_s3 + $0x750] sm:$0xff] }
 0x130   :  { %2714 = vmatmul.mubr.f32.vlgmr.msra.gmra.mrb[40].mxu1 %v1701_v35  ;;  %4621 = vmatpush3.bf16.msra.mxu0 %v4620_v18  ;;  %v6647_v46 = vpop.f32.mrb[19].mxu0  ;;  %v6649_v6 = vpop.f32.mrb[18].mxu1  ;;  %v1985_v35 = vld [vmem:[%s7748_s3 + $0x730] sm:$0xff]  ;;  %v1986_v18 = vld [vmem:[%s7748_s3 + $0x738] sm:$0xff]  ;;  %v4670_v21 = vpack.c.bf16 %v2006_v57, %v2005_v55 }
 0x131   :  { %4653 = vmatpush3.bf16.msra.mxu1 %v4652_v39  ;;  %2643 = vmatprep.mubr.f32.mxu0 %v1732_v14  ;;  %v6660_v16 = vpop.f32.mrb[19].mxu1  ;;  %v1971_v14 = vld [vmem:[%s7748_s3 + $0x6c0] sm:$0xff]  ;;  %v1972_v39 = vld [vmem:[%s7748_s3 + $0x6c8] sm:$0xff]  ;;  %v1958_v12 = vld [vmem:[%s7748_s3 + $0x658] sm:$0xff] }
 0x132   :  { %4623 = vmatprep.subr.bf16.mxu0 %v4622_v45  ;;  %4655 = vmatprep.subr.bf16.mxu1 %v4654_v47  ;;  %v4664_v45 = vpack.c.bf16 %v1986_v18, %v1985_v35  ;;  %v4634_v47 = vpack.c.bf16 %v1972_v39, %v1971_v14  ;;  %v1990_v22 = vld [vmem:[%s7748_s3 + $0x758] sm:$0xff]  ;;  %v1959_v35 = vld [vmem:[%s7748_s3 + $0x660] sm:$0xff]  ;;  %v1961_v55 = vld [vmem:[%s7748_s3 + $0x670] sm:$0xff] }
 0x133   :  { %2644 = vmatmul.mubr.f32.gmra.mrb[42].mxu0 %v1731_v17  ;;  %2718 = vmatprep.mubr.f32.mxu1 %v1734_v51  ;;  %v1988_v17 = vld [vmem:[%s7748_s3 + $0x748] sm:$0xff]  ;;  %v1973_v51 = vld [vmem:[%s7748_s3 + $0x6d0] sm:$0xff]  ;;  %v4672_v19 = vpack.c.bf16 %v1990_v22, %v1989_v15  ;;  %v1991_v18 = vld [vmem:[%s7748_s3 + $0x760] sm:$0xff] }
 0x134   :  { %4625 = vmatpush3.bf16.msra.mxu0 %v4624_v8  ;;  %2719 = vmatmul.mubr.f32.gmra.mrb[42].mxu1 %v1733_v1  ;;  %v4636_v1 = vpack.c.bf16 %v1956_v49, %v1955_v48  ;;  %v343_v48 = vrot.slane %v6327_v29, %v6266_v54  ;;  %v2009_v49 = vld [vmem:[%s7748_s3 + $0x7f0] sm:$0xff]  ;;  %v1962_v57 = vld [vmem:[%s7748_s3 + $0x678] sm:$0xff]  ;;  %v2059_v15 = vld [vmem:[%s7748_s3 + $0x980] sm:$0xff] }
 0x135   :  { %4657 = vmatpush3.bf16.msra.mxu1 %v4656_v58  ;;  %4627 = vmatprep.subr.bf16.mxu0 %v4626_v11  ;;  %v4668_v58 = vpack.c.bf16 %v1988_v17, %v1987_v38  ;;  %v4638_v11 = vpack.c.bf16 %v1974_v53, %v1973_v51  ;;  %v2010_v38 = vld [vmem:[%s7748_s3 + $0x7f8] sm:$0xff]  ;;  %v4676_v51 = vpack.c.bf16 %v1992_v43, %v1991_v18  ;;  %v6821_v22 = vld [vmem:[%s7749_s2 + $0x10] sm:$0xff] }
 0x136   :  { %4659 = vmatprep.subr.bf16.mxu1 %v4658_v20  ;;  %2788 = vmatprep.mubr.f32.mxu0 %v1704_v40  ;;  %v1975_v40 = vld [vmem:[%s7748_s3 + $0x6e0] sm:$0xff]  ;;  %v994_v18 = vadd.f32 %v6503_v26, %v343_v48  ;;  %v2030_v43 = vld [vmem:[%s7748_s3 + $0x898] sm:$0xff] }
 0x137   :  { %2863 = vmatprep.mubr.f32.mxu1 %v1706_v23  ;;  %v2007_v23 = vld [vmem:[%s7748_s3 + $0x7e0] sm:$0xff]  ;;  %v4642_v33 = vpack.c.bf16 %v1976_v60, %v1975_v40  ;;  %v4648_v60 = vpack.c.bf16 %v1962_v57, %v1961_v55  ;;  %v2045_v55 = vld [vmem:[%s7748_s3 + $0x910] sm:$0xff] }
 0x138   :  { %4629 = vmatpush3.bf16.msra.mxu0 %v4628_v24  ;;  %v2008_v24 = vld [vmem:[%s7748_s3 + $0x7e8] sm:$0xff] }
 0x139   :  { %4661 = vmatpush3.bf16.msra.mxu1 %v4660_v27  ;;  %4631 = vmatprep.subr.bf16.mxu0 %v4630_v28  ;;  %v4640_v27 = vpack.c.bf16 %v1958_v12, %v1957_v13  ;;  %v4674_v42 = vpack.c.bf16 %v2008_v24, %v2007_v23  ;;  %v2028_v13 = vld [vmem:[%s7748_s3 + $0x888] sm:$0xff]  ;;  %v988_v12 = vadd.f32 %v6471_v5, %v343_v48 }
 0x13a   :  { %4663 = vmatprep.subr.bf16.mxu1 %v4662_v50  ;;  %v1960_v50 = vld [vmem:[%s7748_s3 + $0x668] sm:$0xff]  ;;  %v996_v23 = vadd.f32 %v6511_v30, %v6590_v9  ;;  %v2029_v30 = vld [vmem:[%s7748_s3 + $0x890] sm:$0xff]  ;;  %v6843_v9 = vrot.slane %v6821_v22, %v6082_v3 }
 0x13b   :  { %v4644_v17 = vpack.c.bf16 %v1960_v50, %v1959_v35  ;;  %v2044_v35 = vld [vmem:[%s7748_s3 + $0x908] sm:$0xff]  ;;  %v1703_v50 = vmax.f32 %v988_v12, 0.0  ;;  %v4686_v57 = vpack.c.bf16 %v2030_v43, %v2029_v30  ;;  %v2034_v43 = vld [vmem:[%s7748_s3 + $0x8b8] sm:$0xff] }
 0x13c   :  { %4633 = vmatpush3.bf16.msra.mxu0 %v4632_v10  ;;  %v6725_v8 = vpop.f32.mrb[20].mxu0  ;;  %v1977_v10 = vld [vmem:[%s7748_s3 + $0x6f0] sm:$0xff] }
 0x13d   :  { %4665 = vmatpush3.bf16.msra.mxu1 %v4664_v45  ;;  %4635 = vmatprep.subr.bf16.mxu0 %v4634_v47  ;;  %v6736_v20 = vpop.f32.mrb[21].mxu0  ;;  %v6738_v36 = vpop.f32.mrb[20].mxu1  ;;  %v1978_v45 = vld [vmem:[%s7748_s3 + $0x6f8] sm:$0xff] }
 0x13e   :  { %4667 = vmatprep.subr.bf16.mxu1 %v4666_v52  ;;  %v6749_v41 = vpop.f32.mrb[21].mxu1  ;;  %v351_v52 = vrot.slane %v6327_v29, %v6269_v56  ;;  %v4646_v53 = vpack.c.bf16 %v1978_v45, %v1977_v10  ;;  %v1994_v29 = vld [vmem:[%s7748_s3 + $0x778] sm:$0xff]  ;;  %v2061_v10 = vld [vmem:[%s7748_s3 + $0x990] sm:$0xff] }
 0x13f   :  { %v2062_v45 = vld [vmem:[%s7748_s3 + $0x998] sm:$0xff] }
 0x140   :  { %4637 = vmatpush3.bf16.msra.mxu0 %v4636_v1  ;;  %v6757_v28 = vpop.f32.mrb[22].mxu0  ;;  %v1993_v1 = vld [vmem:[%s7748_s3 + $0x770] sm:$0xff]  ;;  %v1065_v40 = vadd.f32 %v6479_v7, %v351_v52  ;;  %v2043_v7 = vld [vmem:[%s7748_s3 + $0x900] sm:$0xff] }
 0x141   :  { %4669 = vmatpush3.bf16.msra.mxu1 %v4668_v58  ;;  %4639 = vmatprep.subr.bf16.mxu0 %v4638_v11  ;;  %v6768_v14 = vpop.f32.mrb[23].mxu0  ;;  %v6770_v39 = vpop.f32.mrb[22].mxu1  ;;  %v4678_v58 = vpack.c.bf16 %v2010_v38, %v2009_v49  ;;  %v2027_v11 = vld [vmem:[%s7748_s3 + $0x880] sm:$0xff]  ;;  %v4680_v5 = vpack.c.bf16 %v1994_v29, %v1993_v1  ;;  %v6859_v49 = vrot.slane %v6821_v22, %v6085_v62  ;;  %v1736_v38 = vmax.f32 %v996_v23, 0.0 }
 0x142   :  { %4671 = vmatprep.subr.bf16.mxu1 %v4670_v21  ;;  %v6781_v47 = vpop.f32.mrb[23].mxu1  ;;  %v2060_v21 = vld [vmem:[%s7748_s3 + $0x988] sm:$0xff]  ;;  %v4682_v24 = vpack.c.bf16 %v2028_v13, %v2027_v11  ;;  %v1705_v26 = vmax.f32 %v1065_v40, 0.0  ;;  %v4718_v1 = vpack.c.bf16 %v2062_v45, %v2061_v10  ;;  %v2031_v29 = vld [vmem:[%s7748_s3 + $0x8a0] sm:$0xff]  ;;  %v1144_v13 = vadd.f32 %v6613_v37, %v6843_v9 }
 0x143   :  { %v2032_v11 = vld [vmem:[%s7748_s3 + $0x8a8] sm:$0xff]  ;;  %v2063_v40 = vld [vmem:[%s7748_s3 + $0x9a0] sm:$0xff] }
 0x144   :  { %4641 = vmatpush3.bf16.msra.mxu0 %v4640_v27  ;;  %v2011_v27 = vld [vmem:[%s7748_s3 + $0x800] sm:$0xff]  ;;  %v1708_v10 = vmax.f32 %v1144_v13, 0.0 }
 0x145   :  { %4673 = vmatpush3.bf16.msra.mxu1 %v4672_v19  ;;  %4643 = vmatprep.subr.bf16.mxu0 %v4642_v33  ;;  %v2012_v19 = vld [vmem:[%s7748_s3 + $0x808] sm:$0xff]  ;;  %v4714_v33 = vpack.c.bf16 %v2060_v21, %v2059_v15  ;;  %v1735_v15 = vmax.f32 %v994_v18, 0.0  ;;  %v2067_v13 = vld [vmem:[%s7748_s3 + $0x9c0] sm:$0xff] }
 0x146   :  { %4675 = vmatprep.subr.bf16.mxu1 %v4674_v42  ;;  %v1073_v42 = vadd.f32 %v6515_v32, %v6606_v34  ;;  %v1071_v32 = vadd.f32 %v6513_v31, %v351_v52  ;;  %v4684_v34 = vpack.c.bf16 %v2012_v19, %v2011_v27  ;;  %v4690_v19 = vpack.c.bf16 %v2032_v11, %v2031_v29  ;;  %v2048_v18 = vld [vmem:[%s7748_s3 + $0x928] sm:$0xff]  ;;  %v2035_v29 = vld [vmem:[%s7748_s3 + $0x8c0] sm:$0xff] }
 0x147   :  { %v2036_v11 = vld [vmem:[%s7748_s3 + $0x8c8] sm:$0xff] }
 0x148   :  { %4645 = vmatpush3.bf16.msra.mxu0 %v4644_v17  ;;  %v4716_v17 = vpack.c.bf16 %v2044_v35, %v2043_v7  ;;  %v1738_v21 = vmax.f32 %v1073_v42, 0.0  ;;  %v1737_v23 = vmax.f32 %v1071_v32, 0.0  ;;  %v2016_v7 = vld [vmem:[%s7748_s3 + $0x828] sm:$0xff]  ;;  %v2033_v42 = vld [vmem:[%s7748_s3 + $0x8b0] sm:$0xff]  ;;  %v2066_v32 = vld [vmem:[%s7748_s3 + $0x9b8] sm:$0xff] }
 0x149   :  { %4677 = vmatpush3.bf16.msra.mxu1 %v4676_v51  ;;  %4647 = vmatprep.subr.bf16.mxu0 %v4646_v53  ;;  %v2013_v51 = vld [vmem:[%s7748_s3 + $0x810] sm:$0xff]  ;;  %v2014_v53 = vld [vmem:[%s7748_s3 + $0x818] sm:$0xff] }
 0x14a   :  { %4679 = vmatprep.subr.bf16.mxu1 %v4678_v58  ;;  %v2046_v58 = vld [vmem:[%s7748_s3 + $0x918] sm:$0xff]  ;;  %v4688_v37 = vpack.c.bf16 %v2014_v53, %v2013_v51  ;;  %v4694_v51 = vpack.c.bf16 %v2034_v43, %v2033_v42  ;;  %v2017_v53 = vld [vmem:[%s7748_s3 + $0x830] sm:$0xff] }
 0x14b   :  { %v4720_v27 = vpack.c.bf16 %v2046_v58, %v2045_v55  ;;  %v2018_v55 = vld [vmem:[%s7748_s3 + $0x838] sm:$0xff] }
 0x14c   :  { %4649 = vmatpush3.bf16.msra.mxu0 %v4648_v60  ;;  %v6862_v48 = vpop.f32.mrb[24].mxu0  ;;  %v2064_v60 = vld [vmem:[%s7748_s3 + $0x9a8] sm:$0xff]  ;;  %v2050_v58 = vld [vmem:[%s7748_s3 + $0x938] sm:$0xff] }
 0x14d   :  { %4681 = vmatpush3.bf16.msra.mxu1 %v4680_v5  ;;  %4683 = vmatprep.subr.bf16.mxu0 %v4682_v24  ;;  %v6873_v31 = vpop.f32.mrb[25].mxu0  ;;  %v6875_v52 = vpop.f32.mrb[24].mxu1  ;;  %v1221_v5 = vadd.f32 %v6624_v44, %v6859_v49  ;;  %v2047_v44 = vld [vmem:[%s7748_s3 + $0x920] sm:$0xff] }
 0x14e   :  { %4715 = vmatprep.subr.bf16.mxu1 %v4714_v33  ;;  %v6888_v12 = vpop.f32.mrb[25].mxu1  ;;  %v2015_v33 = vld [vmem:[%s7748_s3 + $0x820] sm:$0xff] }
 0x14f   :  { %2789 = vmatmul.mubr.f32.vlgmr.msra.gmra.mrb[44].mxu0 %v1703_v50  ;;  %v4722_v50 = vpack.c.bf16 %v2064_v60, %v2063_v40  ;;  %v4698_v60 = vpack.c.bf16 %v2036_v11, %v2035_v29  ;;  %v2072_v29 = vld [vmem:[%s7748_s3 + $0x9e8] sm:$0xff] }
 0x150   :  { %2864 = vmatmul.mubr.f32.vlgmr.msra.gmra.mrb[44].mxu1 %v1705_v26  ;;  %4685 = vmatpush3.bf16.msra.mxu0 %v4684_v34  ;;  %v6898_v24 = vpop.f32.mrb[26].mxu0  ;;  %v2065_v26 = vld [vmem:[%s7748_s3 + $0x9b0] sm:$0xff]  ;;  %v1710_v34 = vmax.f32 %v1221_v5, 0.0  ;;  %v2019_v5 = vld [vmem:[%s7748_s3 + $0x840] sm:$0xff] }
 0x151   :  { %4717 = vmatpush3.bf16.msra.mxu1 %v4716_v17  ;;  %2793 = vmatprep.mubr.f32.mxu0 %v1736_v38  ;;  %v6909_v35 = vpop.f32.mrb[27].mxu0  ;;  %v6911_v30 = vpop.f32.mrb[26].mxu1  ;;  %v4692_v38 = vpack.c.bf16 %v2016_v7, %v2015_v33  ;;  %v4724_v17 = vpack.c.bf16 %v2048_v18, %v2047_v44  ;;  %v2037_v33 = vld [vmem:[%s7748_s3 + $0x8d0] sm:$0xff]  ;;  %v2038_v7 = vld [vmem:[%s7748_s3 + $0x8d8] sm:$0xff] }
 0x152   :  { %4687 = vmatprep.subr.bf16.mxu0 %v4686_v57  ;;  %4719 = vmatprep.subr.bf16.mxu1 %v4718_v1  ;;  %v6922_v45 = vpop.f32.mrb[27].mxu1  ;;  %v2049_v57 = vld [vmem:[%s7748_s3 + $0x930] sm:$0xff]  ;;  %v4726_v1 = vpack.c.bf16 %v2066_v32, %v2065_v26  ;;  %v2022_v32 = vld [vmem:[%s7748_s3 + $0x858] sm:$0xff] }
 0x153   :  { %2794 = vmatmul.mubr.f32.gmra.mrb[46].mxu0 %v1735_v15  ;;  %2868 = vmatprep.mubr.f32.mxu1 %v1738_v21  ;;  %v2068_v15 = vld [vmem:[%s7748_s3 + $0x9c8] sm:$0xff]  ;;  %v4696_v21 = vpack.c.bf16 %v2018_v55, %v2017_v53  ;;  %v4728_v40 = vpack.c.bf16 %v2050_v58, %v2049_v57  ;;  %v2069_v44 = vld [vmem:[%s7748_s3 + $0x9d0] sm:$0xff]  ;;  %v2054_v53 = vld [vmem:[%s7748_s3 + $0x958] sm:$0xff] }
 0x154   :  { %4689 = vmatpush3.bf16.msra.mxu0 %v4688_v37  ;;  %2869 = vmatmul.mubr.f32.gmra.mrb[46].mxu1 %v1737_v23  ;;  %v2020_v23 = vld [vmem:[%s7748_s3 + $0x848] sm:$0xff]  ;;  %v2051_v37 = vld [vmem:[%s7748_s3 + $0x940] sm:$0xff]  ;;  %v2021_v26 = vld [vmem:[%s7748_s3 + $0x850] sm:$0xff] }
 0x155   :  { %4721 = vmatpush3.bf16.msra.mxu1 %v4720_v27  ;;  %4691 = vmatprep.subr.bf16.mxu0 %v4690_v19  ;;  %v4730_v27 = vpack.c.bf16 %v2068_v15, %v2067_v13  ;;  %v2052_v19 = vld [vmem:[%s7748_s3 + $0x948] sm:$0xff]  ;;  %v4700_v18 = vpack.c.bf16 %v2020_v23, %v2019_v5  ;;  %v2039_v55 = vld [vmem:[%s7748_s3 + $0x8e0] sm:$0xff]  ;;  %v4704_v11 = vpack.c.bf16 %v2022_v32, %v2021_v26 }
 0x156   :  { %4723 = vmatprep.subr.bf16.mxu1 %v4722_v50  ;;  %2938 = vmatprep.mubr.f32.mxu0 %v1708_v10  ;;  %v2070_v50 = vld [vmem:[%s7748_s3 + $0x9d8] sm:$0xff]  ;;  %v4732_v43 = vpack.c.bf16 %v2052_v19, %v2051_v37  ;;  %v4702_v10 = vpack.c.bf16 %v2038_v7, %v2037_v33  ;;  %v2040_v57 = vld [vmem:[%s7748_s3 + $0x8e8] sm:$0xff]  ;;  %v2071_v58 = vld [vmem:[%s7748_s3 + $0x9e0] sm:$0xff] }
 0x157   :  { %3013 = vmatprep.mubr.f32.mxu1 %v1710_v34  ;;  %v2053_v34 = vld [vmem:[%s7748_s3 + $0x950] sm:$0xff]  ;;  %v2055_v5 = vld [vmem:[%s7748_s3 + $0x960] sm:$0xff]  ;;  %v2056_v19 = vld [vmem:[%s7748_s3 + $0x968] sm:$0xff] }
 0x158   :  { %4693 = vmatpush3.bf16.msra.mxu0 %v4692_v38  ;;  %v4736_v15 = vpack.c.bf16 %v2054_v53, %v2053_v34  ;;  %v2041_v33 = vld [vmem:[%s7748_s3 + $0x8f0] sm:$0xff]  ;;  %v2042_v7 = vld [vmem:[%s7748_s3 + $0x8f8] sm:$0xff]  ;;  %v4740_v32 = vpack.c.bf16 %v2056_v19, %v2055_v5  ;;  %v1150_v19 = vadd.f32 %v6647_v46, %v6843_v9  ;;  %v7091_v9 = vrot.slane %v6821_v22, %v6162_v0 }
 0x159   :  { %4725 = vmatpush3.bf16.msra.mxu1 %v4724_v17  ;;  %4695 = vmatprep.subr.bf16.mxu0 %v4694_v51  ;;  %v4734_v51 = vpack.c.bf16 %v2070_v50, %v2069_v44  ;;  %v359_v50 = vrot.slane %v6821_v22, %v6071_v59  ;;  %v4710_v34 = vpack.c.bf16 %v2042_v7, %v2041_v33  ;;  %v2026_v53 = vld [vmem:[%s7748_s3 + $0x878] sm:$0xff]  ;;  %v2076_v7 = vld [vmem:[%s7748_s3 + $0xa08] sm:$0xff]  ;;  %v2093_v46 = vld [vmem:[%s7748_s3 + $0xa90] sm:$0xff] }
 0x15a   :  { %4727 = vmatprep.subr.bf16.mxu1 %v4726_v1 }
 0x15c   :  { %4697 = vmatpush3.bf16.msra.mxu0 %v4696_v21  ;;  %v6978_v42 = vpop.f32.mrb[28].mxu0  ;;  %v4706_v21 = vpack.c.bf16 %v2040_v57, %v2039_v55  ;;  %v2057_v55 = vld [vmem:[%s7748_s3 + $0x970] sm:$0xff] }
 0x15d   :  { %4729 = vmatpush3.bf16.msra.mxu1 %v4728_v40  ;;  %4699 = vmatprep.subr.bf16.mxu0 %v4698_v60  ;;  %v6989_v38 = vpop.f32.mrb[29].mxu0  ;;  %v6991_v17 = vpop.f32.mrb[28].mxu1  ;;  %v2023_v40 = vld [vmem:[%s7748_s3 + $0x860] sm:$0xff]  ;;  %v2024_v60 = vld [vmem:[%s7748_s3 + $0x868] sm:$0xff] }
 0x15e   :  { %4731 = vmatprep.subr.bf16.mxu1 %v4730_v27  ;;  %v7002_v1 = vpop.f32.mrb[29].mxu1  ;;  %v4738_v27 = vpack.c.bf16 %v2072_v29, %v2071_v58  ;;  %v4708_v26 = vpack.c.bf16 %v2024_v60, %v2023_v40  ;;  %v2058_v58 = vld [vmem:[%s7748_s3 + $0x978] sm:$0xff]  ;;  %v2091_v29 = vld [vmem:[%s7748_s3 + $0xa80] sm:$0xff]  ;;  %v2124_v40 = vld [vmem:[%s7748_s3 + $0xb88] sm:$0xff] }
 0x160   :  { %4701 = vmatpush3.bf16.msra.mxu0 %v4700_v18  ;;  %v7010_v13 = vpop.f32.mrb[30].mxu0  ;;  %v2073_v18 = vld [vmem:[%s7748_s3 + $0x9f0] sm:$0xff] }
 0x161   :  { %4733 = vmatpush3.bf16.msra.mxu1 %v4732_v43  ;;  %4703 = vmatprep.subr.bf16.mxu0 %v4702_v10  ;;  %v7021_v23 = vpop.f32.mrb[31].mxu0  ;;  %v7023_v37 = vpop.f32.mrb[30].mxu1  ;;  %v2074_v43 = vld [vmem:[%s7748_s3 + $0x9f8] sm:$0xff]  ;;  %v367_v10 = vrot.slane %v6821_v22, %v6079_v61 }
 0x162   :  { %4735 = vmatprep.subr.bf16.mxu1 %v4734_v51  ;;  %v7034_v44 = vpop.f32.mrb[31].mxu1  ;;  %v2025_v51 = vld [vmem:[%s7748_s3 + $0x870] sm:$0xff]  ;;  %v4742_v57 = vpack.c.bf16 %v2074_v43, %v2073_v18  ;;  %v2108_v43 = vld [vmem:[%s7748_s3 + $0xb08] sm:$0xff] }
 0x163   :  { %v1219_v60 = vadd.f32 %v6611_v25, %v367_v10  ;;  %v4712_v5 = vpack.c.bf16 %v2026_v53, %v2025_v51  ;;  %v2107_v25 = vld [vmem:[%s7748_s3 + $0xb00] sm:$0xff]  ;;  %v2094_v51 = vld [vmem:[%s7748_s3 + $0xa98] sm:$0xff]  ;;  %v2125_v53 = vld [vmem:[%s7748_s3 + $0xb90] sm:$0xff] }
 0x164   :  { %4705 = vmatpush3.bf16.msra.mxu0 %v4704_v11  ;;  %v2092_v11 = vld [vmem:[%s7748_s3 + $0xa88] sm:$0xff] }
 0x165   :  { %4737 = vmatpush3.bf16.msra.mxu1 %v4736_v15  ;;  %4707 = vmatprep.subr.bf16.mxu0 %v4706_v21  ;;  %v1142_v15 = vadd.f32 %v6608_v4, %v359_v50  ;;  %v2123_v21 = vld [vmem:[%s7748_s3 + $0xb80] sm:$0xff]  ;;  %v4746_v33 = vpack.c.bf16 %v2092_v11, %v2091_v29  ;;  %v2077_v29 = vld [vmem:[%s7748_s3 + $0xa10] sm:$0xff]  ;;  %v2078_v11 = vld [vmem:[%s7748_s3 + $0xa18] sm:$0xff] }
 0x166   :  { %4739 = vmatprep.subr.bf16.mxu1 %v4738_v27  ;;  %v4744_v27 = vpack.c.bf16 %v2058_v58, %v2057_v55  ;;  %v2075_v4 = vld [vmem:[%s7748_s3 + $0xa00] sm:$0xff]  ;;  %v4778_v18 = vpack.c.bf16 %v2124_v40, %v2123_v21  ;;  %v2126_v55 = vld [vmem:[%s7748_s3 + $0xb98] sm:$0xff]  ;;  %v4780_v58 = vpack.c.bf16 %v2108_v43, %v2107_v25  ;;  %v4750_v21 = vpack.c.bf16 %v2094_v51, %v2093_v46  ;;  %v2097_v51 = vld [vmem:[%s7748_s3 + $0xab0] sm:$0xff] }
 0x167   :  { %v2095_v40 = vld [vmem:[%s7748_s3 + $0xaa0] sm:$0xff]  ;;  %v4752_v25 = vpack.c.bf16 %v2078_v11, %v2077_v29  ;;  %v2081_v11 = vld [vmem:[%s7748_s3 + $0xa30] sm:$0xff] }
 0x168   :  { %4709 = vmatpush3.bf16.msra.mxu0 %v4708_v26  ;;  %v1707_v26 = vmax.f32 %v1142_v15, 0.0  ;;  %v2109_v15 = vld [vmem:[%s7748_s3 + $0xb10] sm:$0xff]  ;;  %v2079_v46 = vld [vmem:[%s7748_s3 + $0xa20] sm:$0xff] }
 0x169   :  { %4741 = vmatpush3.bf16.msra.mxu1 %v4740_v32  ;;  %4711 = vmatprep.subr.bf16.mxu0 %v4710_v34  ;;  %v1148_v32 = vadd.f32 %v6645_v63, %v359_v50  ;;  %v1227_v34 = vadd.f32 %v6660_v16, %v6859_v49  ;;  %v1709_v63 = vmax.f32 %v1219_v60, 0.0  ;;  %v1225_v16 = vadd.f32 %v6649_v6, %v367_v10  ;;  %v2110_v10 = vld [vmem:[%s7748_s3 + $0xb18] sm:$0xff]  ;;  %v2096_v60 = vld [vmem:[%s7748_s3 + $0xaa8] sm:$0xff] }
 0x16a   :  { %4743 = vmatprep.subr.bf16.mxu1 %v4742_v57  ;;  %v7107_v57 = vrot.slane %v6821_v22, %v6171_v2  ;;  %v4748_v49 = vpack.c.bf16 %v2076_v7, %v2075_v4  ;;  %v1740_v50 = vmax.f32 %v1150_v19, 0.0  ;;  %v4782_v6 = vpack.c.bf16 %v2126_v55, %v2125_v53  ;;  %v2128_v4 = vld [vmem:[%s7748_s3 + $0xba8] sm:$0xff]  ;;  %v2098_v53 = vld [vmem:[%s7748_s3 + $0xab8] sm:$0xff] }
 0x16b   :  { %v1742_v19 = vmax.f32 %v1227_v34, 0.0  ;;  %v4754_v43 = vpack.c.bf16 %v2096_v60, %v2095_v40  ;;  %v2112_v34 = vld [vmem:[%s7748_s3 + $0xb28] sm:$0xff]  ;;  %v4758_v29 = vpack.c.bf16 %v2098_v53, %v2097_v51  ;;  %v2099_v40 = vld [vmem:[%s7748_s3 + $0xac0] sm:$0xff] }
 0x16c   :  { %4713 = vmatpush3.bf16.msra.mxu0 %v4712_v5  ;;  %v1298_v5 = vadd.f32 %v6736_v20, %v7091_v9  ;;  %v1375_v7 = vadd.f32 %v6749_v41, %v7107_v57  ;;  %v4784_v20 = vpack.c.bf16 %v2110_v10, %v2109_v15  ;;  %v2111_v41 = vld [vmem:[%s7748_s3 + $0xb20] sm:$0xff]  ;;  %v2082_v15 = vld [vmem:[%s7748_s3 + $0xa38] sm:$0xff]  ;;  %v2100_v60 = vld [vmem:[%s7748_s3 + $0xac8] sm:$0xff] }
 0x16d   :  { %4745 = vmatpush3.bf16.msra.mxu1 %v4744_v27  ;;  %4747 = vmatprep.subr.bf16.mxu0 %v4746_v33  ;;  %v1739_v27 = vmax.f32 %v1148_v32, 0.0  ;;  %v2127_v33 = vld [vmem:[%s7748_s3 + $0xba0] sm:$0xff]  ;;  %v2114_v10 = vld [vmem:[%s7748_s3 + $0xb38] sm:$0xff] }
 0x16e   :  { %4779 = vmatprep.subr.bf16.mxu1 %v4778_v18  ;;  %v1741_v18 = vmax.f32 %v1225_v16, 0.0  ;;  %v4786_v32 = vpack.c.bf16 %v2128_v4, %v2127_v33  ;;  %v1712_v55 = vmax.f32 %v1298_v5, 0.0  ;;  %v2130_v16 = vld [vmem:[%s7748_s3 + $0xbb8] sm:$0xff]  ;;  %v2131_v5 = vld [vmem:[%s7748_s3 + $0xbc0] sm:$0xff]  ;;  %v4762_v4 = vpack.c.bf16 %v2100_v60, %v2099_v40  ;;  %v2088_v60 = vld [vmem:[%s7748_s3 + $0xa68] sm:$0xff] }
 0x16f   :  { %2939 = vmatmul.mubr.f32.vlgmr.msra.gmra.mrb[48].mxu0 %v1707_v26  ;;  %v2080_v26 = vld [vmem:[%s7748_s3 + $0xa28] sm:$0xff]  ;;  %v2087_v40 = vld [vmem:[%s7748_s3 + $0xa60] sm:$0xff] }
 0x170   :  { %3014 = vmatmul.mubr.f32.vlgmr.msra.gmra.mrb[48].mxu1 %v1709_v63  ;;  %4749 = vmatpush3.bf16.msra.mxu0 %v4748_v49  ;;  %v2129_v63 = vld [vmem:[%s7748_s3 + $0xbb0] sm:$0xff]  ;;  %v1714_v49 = vmax.f32 %v1375_v7, 0.0  ;;  %v2083_v7 = vld [vmem:[%s7748_s3 + $0xa40] sm:$0xff] }
 0x171   :  { %4781 = vmatpush3.bf16.msra.mxu1 %v4780_v58  ;;  %2943 = vmatprep.mubr.f32.mxu0 %v1740_v50  ;;  %v4756_v50 = vpack.c.bf16 %v2080_v26, %v2079_v46  ;;  %v4788_v58 = vpack.c.bf16 %v2112_v34, %v2111_v41  ;;  %v2101_v46 = vld [vmem:[%s7748_s3 + $0xad0] sm:$0xff]  ;;  %v2102_v26 = vld [vmem:[%s7748_s3 + $0xad8] sm:$0xff] }
 0x172   :  { %4751 = vmatprep.subr.bf16.mxu0 %v4750_v21  ;;  %4783 = vmatprep.subr.bf16.mxu1 %v4782_v6  ;;  %v2113_v21 = vld [vmem:[%s7748_s3 + $0xb30] sm:$0xff]  ;;  %v4790_v6 = vpack.c.bf16 %v2130_v16, %v2129_v63  ;;  %v4766_v53 = vpack.c.bf16 %v2102_v26, %v2101_v46  ;;  %v2086_v63 = vld [vmem:[%s7748_s3 + $0xa58] sm:$0xff] }
 0x173   :  { %2944 = vmatmul.mubr.f32.gmra.mrb[50].mxu0 %v1739_v27  ;;  %3018 = vmatprep.mubr.f32.mxu1 %v1742_v19  ;;  %v2132_v27 = vld [vmem:[%s7748_s3 + $0xbc8] sm:$0xff]  ;;  %v4760_v19 = vpack.c.bf16 %v2082_v15, %v2081_v11  ;;  %v4792_v33 = vpack.c.bf16 %v2114_v10, %v2113_v21  ;;  %v2133_v41 = vld [vmem:[%s7748_s3 + $0xbd0] sm:$0xff]  ;;  %v2135_v11 = vld [vmem:[%s7748_s3 + $0xbe0] sm:$0xff] }
 0x174   :  { %4753 = vmatpush3.bf16.msra.mxu0 %v4752_v25  ;;  %3019 = vmatmul.mubr.f32.gmra.mrb[50].mxu1 %v1741_v18  ;;  %v2084_v18 = vld [vmem:[%s7748_s3 + $0xa48] sm:$0xff]  ;;  %v2115_v25 = vld [vmem:[%s7748_s3 + $0xb40] sm:$0xff]  ;;  %v2117_v16 = vld [vmem:[%s7748_s3 + $0xb50] sm:$0xff] }
 0x175   :  { %4785 = vmatpush3.bf16.msra.mxu1 %v4784_v20  ;;  %4755 = vmatprep.subr.bf16.mxu0 %v4754_v43  ;;  %v4794_v20 = vpack.c.bf16 %v2132_v27, %v2131_v5  ;;  %v2116_v43 = vld [vmem:[%s7748_s3 + $0xb48] sm:$0xff]  ;;  %v4764_v34 = vpack.c.bf16 %v2084_v18, %v2083_v7  ;;  %v2119_v5 = vld [vmem:[%s7748_s3 + $0xb60] sm:$0xff]  ;;  %v2137_v7 = vld [vmem:[%s7748_s3 + $0xbf0] sm:$0xff] }
 0x176   :  { %4787 = vmatprep.subr.bf16.mxu1 %v4786_v32  ;;  %3088 = vmatprep.mubr.f32.mxu0 %v1712_v55  ;;  %v2134_v32 = vld [vmem:[%s7748_s3 + $0xbd8] sm:$0xff]  ;;  %v4796_v51 = vpack.c.bf16 %v2116_v43, %v2115_v25  ;;  %v2085_v55 = vld [vmem:[%s7748_s3 + $0xa50] sm:$0xff]  ;;  %v2136_v15 = vld [vmem:[%s7748_s3 + $0xbe8] sm:$0xff]  ;;  %v4772_v25 = vpack.c.bf16 %v2088_v60, %v2087_v40  ;;  %v375_v43 = vrot.slane %v6821_v22, %v6266_v54 }
 0x177   :  { %3163 = vmatprep.mubr.f32.mxu1 %v1714_v49  ;;  %v4798_v49 = vpack.c.bf16 %v2134_v32, %v2133_v41  ;;  %v4768_v21 = vpack.c.bf16 %v2086_v63, %v2085_v55  ;;  %v4802_v27 = vpack.c.bf16 %v2136_v15, %v2135_v11  ;;  %v2138_v18 = vld [vmem:[%s7748_s3 + $0xbf8] sm:$0xff]  ;;  %v2121_v32 = vld [vmem:[%s7748_s3 + $0xb70] sm:$0xff]  ;;  %v2155_v55 = vld [vmem:[%s7748_s3 + $0xc80] sm:$0xff]  ;;  %v1304_v11 = vadd.f32 %v6768_v14, %v7091_v9 }
 0x178   :  { %4757 = vmatpush3.bf16.msra.mxu0 %v4756_v50  ;;  %v2118_v50 = vld [vmem:[%s7748_s3 + $0xb58] sm:$0xff]  ;;  %v2156_v63 = vld [vmem:[%s7748_s3 + $0xc88] sm:$0xff]  ;;  %v2157_v60 = vld [vmem:[%s7748_s3 + $0xc90] sm:$0xff] }
 0x179   :  { %4789 = vmatpush3.bf16.msra.mxu1 %v4788_v58  ;;  %4759 = vmatprep.subr.bf16.mxu0 %v4758_v29  ;;  %v2103_v58 = vld [vmem:[%s7748_s3 + $0xae0] sm:$0xff]  ;;  %v2104_v29 = vld [vmem:[%s7748_s3 + $0xae8] sm:$0xff]  ;;  %v2090_v41 = vld [vmem:[%s7748_s3 + $0xa78] sm:$0xff]  ;;  %v4810_v15 = vpack.c.bf16 %v2156_v63, %v2155_v55 }
 0x17a   :  { %4791 = vmatprep.subr.bf16.mxu1 %v4790_v6  ;;  %v4800_v6 = vpack.c.bf16 %v2118_v50, %v2117_v16  ;;  %v4770_v10 = vpack.c.bf16 %v2104_v29, %v2103_v58  ;;  %v2187_v16 = vld [vmem:[%s7748_s3 + $0xd80] sm:$0xff]  ;;  %v1296_v29 = vadd.f32 %v6725_v8, %v375_v43  ;;  %v2172_v14 = vld [vmem:[%s7748_s3 + $0xd08] sm:$0xff] }
 0x17b   :  { %v2171_v8 = vld [vmem:[%s7748_s3 + $0xd00] sm:$0xff]  ;;  %v2192_v55 = vld [vmem:[%s7748_s3 + $0xda8] sm:$0xff] }
 0x17c   :  { %4761 = vmatpush3.bf16.msra.mxu0 %v4760_v19  ;;  %v2120_v19 = vld [vmem:[%s7748_s3 + $0xb68] sm:$0xff] }
 0x17d   :  { %4793 = vmatpush3.bf16.msra.mxu1 %v4792_v33  ;;  %4763 = vmatprep.subr.bf16.mxu0 %v4762_v4  ;;  %v2105_v33 = vld [vmem:[%s7748_s3 + $0xaf0] sm:$0xff]  ;;  %v2106_v4 = vld [vmem:[%s7748_s3 + $0xaf8] sm:$0xff]  ;;  %v4804_v46 = vpack.c.bf16 %v2120_v19, %v2119_v5  ;;  %v1381_v5 = vadd.f32 %v6781_v47, %v7107_v57  ;;  %v1711_v57 = vmax.f32 %v1296_v29, 0.0  ;;  %v2175_v29 = vld [vmem:[%s7748_s3 + $0xd20] sm:$0xff] }
 0x17e   :  { %4795 = vmatprep.subr.bf16.mxu1 %v4794_v20  ;;  %v2089_v20 = vld [vmem:[%s7748_s3 + $0xa70] sm:$0xff]  ;;  %v4774_v26 = vpack.c.bf16 %v2106_v4, %v2105_v33  ;;  %v1744_v4 = vmax.f32 %v1304_v11, 0.0 }
 0x17f   :  { %v4776_v50 = vpack.c.bf16 %v2090_v41, %v2089_v20  ;;  %v2189_v19 = vld [vmem:[%s7748_s3 + $0xd90] sm:$0xff]  ;;  %v2159_v41 = vld [vmem:[%s7748_s3 + $0xca0] sm:$0xff] }
 0x180   :  { %4765 = vmatpush3.bf16.msra.mxu0 %v4764_v34  ;;  %v2122_v34 = vld [vmem:[%s7748_s3 + $0xb78] sm:$0xff] }
 0x181   :  { %4797 = vmatpush3.bf16.msra.mxu1 %v4796_v51  ;;  %4767 = vmatprep.subr.bf16.mxu0 %v4766_v53  ;;  %v383_v51 = vrot.slane %v6821_v22, %v6269_v56  ;;  %v4806_v53 = vpack.c.bf16 %v2138_v18, %v2137_v7  ;;  %v7289_v22 = vld [vmem:[%s7749_s2 + $0x18] sm:$0xff]  ;;  %v4808_v58 = vpack.c.bf16 %v2122_v34, %v2121_v32  ;;  %v2141_v18 = vld [vmem:[%s7748_s3 + $0xc10] sm:$0xff]  ;;  %v2160_v32 = vld [vmem:[%s7748_s3 + $0xca8] sm:$0xff] }
 0x182   :  { %4799 = vmatprep.subr.bf16.mxu1 %v4798_v49  ;;  %v2188_v49 = vld [vmem:[%s7748_s3 + $0xd88] sm:$0xff]  ;;  %v7309_v9 = vrot.slane %v7289_v22, %v6082_v3  ;;  %v2190_v3 = vld [vmem:[%s7748_s3 + $0xd98] sm:$0xff]  ;;  %v7328_v33 = vrot.slane %v7289_v22, %v6085_v62  ;;  %v4844_v7 = vpack.c.bf16 %v2172_v14, %v2171_v8  ;;  %v2173_v62 = vld [vmem:[%s7748_s3 + $0xd10] sm:$0xff] }
 0x183   :  { %v4842_v40 = vpack.c.bf16 %v2188_v49, %v2187_v16  ;;  %v2193_v8 = vld [vmem:[%s7748_s3 + $0xdb0] sm:$0xff]  ;;  %v2194_v14 = vld [vmem:[%s7748_s3 + $0xdb8] sm:$0xff] }
 0x184   :  { %4769 = vmatpush3.bf16.msra.mxu0 %v4768_v21  ;;  %v2139_v21 = vld [vmem:[%s7748_s3 + $0xc00] sm:$0xff] }
 0x185   :  { %4801 = vmatpush3.bf16.msra.mxu1 %v4800_v6  ;;  %4771 = vmatprep.subr.bf16.mxu0 %v4770_v10  ;;  %v2140_v6 = vld [vmem:[%s7748_s3 + $0xc08] sm:$0xff]  ;;  %v1373_v10 = vadd.f32 %v6738_v36, %v383_v51  ;;  %v1302_v36 = vadd.f32 %v6757_v28, %v375_v43  ;;  %v1379_v28 = vadd.f32 %v6770_v39, %v383_v51  ;;  %v1746_v51 = vmax.f32 %v1381_v5, 0.0 }
 0x186   :  { %4803 = vmatprep.subr.bf16.mxu1 %v4802_v27  ;;  %v2158_v27 = vld [vmem:[%s7748_s3 + $0xc98] sm:$0xff]  ;;  %v4812_v47 = vpack.c.bf16 %v2140_v6, %v2139_v21  ;;  %v1452_v39 = vadd.f32 %v6873_v31, %v7309_v9  ;;  %v1529_v31 = vadd.f32 %v6888_v12, %v7328_v33  ;;  %v2143_v12 = vld [vmem:[%s7748_s3 + $0xc20] sm:$0xff]  ;;  %v2176_v21 = vld [vmem:[%s7748_s3 + $0xd28] sm:$0xff] }
 0x187   :  { %v1713_v20 = vmax.f32 %v1373_v10, 0.0  ;;  %v4814_v43 = vpack.c.bf16 %v2158_v27, %v2157_v60  ;;  %v1743_v34 = vmax.f32 %v1302_v36, 0.0  ;;  %v1745_v63 = vmax.f32 %v1379_v28, 0.0  ;;  %v2161_v6 = vld [vmem:[%s7748_s3 + $0xcb0] sm:$0xff]  ;;  %v2162_v10 = vld [vmem:[%s7748_s3 + $0xcb8] sm:$0xff] }
 0x188   :  { %4773 = vmatpush3.bf16.msra.mxu0 %v4772_v25  ;;  %v2142_v25 = vld [vmem:[%s7748_s3 + $0xc18] sm:$0xff]  ;;  %v1716_v11 = vmax.f32 %v1452_v39, 0.0  ;;  %v4852_v36 = vpack.c.bf16 %v2176_v21, %v2175_v29  ;;  %v4822_v5 = vpack.c.bf16 %v2162_v10, %v2161_v6  ;;  %v2145_v27 = vld [vmem:[%s7748_s3 + $0xc30] sm:$0xff]  ;;  %v4854_v28 = vpack.c.bf16 %v2194_v14, %v2193_v8  ;;  %v2147_v39 = vld [vmem:[%s7748_s3 + $0xc40] sm:$0xff] }
 0x189   :  { %4805 = vmatpush3.bf16.msra.mxu1 %v4804_v46  ;;  %4775 = vmatprep.subr.bf16.mxu0 %v4774_v26  ;;  %v4846_v46 = vpack.c.bf16 %v2190_v3, %v2189_v19  ;;  %v2174_v26 = vld [vmem:[%s7748_s3 + $0xd18] sm:$0xff]  ;;  %v4816_v16 = vpack.c.bf16 %v2142_v25, %v2141_v18  ;;  %v2177_v3 = vld [vmem:[%s7748_s3 + $0xd30] sm:$0xff]  ;;  %v2196_v18 = vld [vmem:[%s7748_s3 + $0xdc8] sm:$0xff] }
 0x18a   :  { %4807 = vmatprep.subr.bf16.mxu1 %v4806_v53  ;;  %v2191_v53 = vld [vmem:[%s7748_s3 + $0xda0] sm:$0xff]  ;;  %v4848_v49 = vpack.c.bf16 %v2174_v26, %v2173_v62  ;;  %v2146_v19 = vld [vmem:[%s7748_s3 + $0xc38] sm:$0xff]  ;;  %v2200_v21 = vld [vmem:[%s7748_s3 + $0xde8] sm:$0xff] }
 0x18b   :  { %v4824_v25 = vpack.c.bf16 %v2146_v19, %v2145_v27  ;;  %v2167_v29 = vld [vmem:[%s7748_s3 + $0xce0] sm:$0xff]  ;;  %v2152_v14 = vld [vmem:[%s7748_s3 + $0xc68] sm:$0xff]  ;;  %v2169_v27 = vld [vmem:[%s7748_s3 + $0xcf0] sm:$0xff] }
 0x18c   :  { %4777 = vmatpush3.bf16.msra.mxu0 %v4776_v50  ;;  %v4818_v50 = vpack.c.bf16 %v2160_v32, %v2159_v41  ;;  %v2180_v41 = vld [vmem:[%s7748_s3 + $0xd48] sm:$0xff]  ;;  %v2165_v32 = vld [vmem:[%s7748_s3 + $0xcd0] sm:$0xff]  ;;  %v2151_v8 = vld [vmem:[%s7748_s3 + $0xc60] sm:$0xff] }
 0x18d   :  { %4809 = vmatpush3.bf16.msra.mxu1 %v4808_v58  ;;  %4811 = vmatprep.subr.bf16.mxu0 %v4810_v15  ;;  %v2144_v58 = vld [vmem:[%s7748_s3 + $0xc28] sm:$0xff]  ;;  %v4850_v15 = vpack.c.bf16 %v2192_v55, %v2191_v53  ;;  %v2170_v19 = vld [vmem:[%s7748_s3 + $0xcf8] sm:$0xff] }
 0x18e   :  { %4843 = vmatprep.subr.bf16.mxu1 %v4842_v40  ;;  %v1718_v40 = vmax.f32 %v1529_v31, 0.0  ;;  %v4820_v60 = vpack.c.bf16 %v2144_v58, %v2143_v12  ;;  %v2198_v31 = vld [vmem:[%s7748_s3 + $0xdd8] sm:$0xff] }
 0x18f   :  { %3089 = vmatmul.mubr.f32.vlgmr.msra.gmra.mrb[52].mxu0 %v1711_v57  ;;  %v2163_v57 = vld [vmem:[%s7748_s3 + $0xcc0] sm:$0xff]  ;;  %v2182_v58 = vld [vmem:[%s7748_s3 + $0xd58] sm:$0xff] }
 0x190   :  { %3164 = vmatmul.mubr.f32.vlgmr.msra.gmra.mrb[52].mxu1 %v1713_v20  ;;  %4813 = vmatpush3.bf16.msra.mxu0 %v4812_v47  ;;  %v2178_v47 = vld [vmem:[%s7748_s3 + $0xd38] sm:$0xff] }
 0x191   :  { %4845 = vmatpush3.bf16.msra.mxu1 %v4844_v7  ;;  %3093 = vmatprep.mubr.f32.mxu0 %v1744_v4  ;;  %v2164_v4 = vld [vmem:[%s7748_s3 + $0xcc8] sm:$0xff]  ;;  %v2195_v7 = vld [vmem:[%s7748_s3 + $0xdc0] sm:$0xff]  ;;  %v4856_v62 = vpack.c.bf16 %v2178_v47, %v2177_v3  ;;  %v2201_v3 = vld [vmem:[%s7748_s3 + $0xdf0] sm:$0xff]  ;;  %v4836_v47 = vpack.c.bf16 %v2152_v14, %v2151_v8 }
 0x192   :  { %4815 = vmatprep.subr.bf16.mxu0 %v4814_v43  ;;  %4847 = vmatprep.subr.bf16.mxu1 %v4846_v46  ;;  %v4826_v20 = vpack.c.bf16 %v2164_v4, %v2163_v57  ;;  %v2148_v43 = vld [vmem:[%s7748_s3 + $0xc48] sm:$0xff]  ;;  %v2179_v46 = vld [vmem:[%s7748_s3 + $0xd40] sm:$0xff]  ;;  %v4858_v26 = vpack.c.bf16 %v2196_v18, %v2195_v7  ;;  %v391_v57 = vrot.slane %v7289_v22, %v6071_v59  ;;  %v2153_v18 = vld [vmem:[%s7748_s3 + $0xc70] sm:$0xff] }
 0x193   :  { %3094 = vmatmul.mubr.f32.gmra.mrb[54].mxu0 %v1743_v34  ;;  %3168 = vmatprep.mubr.f32.mxu1 %v1746_v51  ;;  %v2166_v34 = vld [vmem:[%s7748_s3 + $0xcd8] sm:$0xff]  ;;  %v2197_v51 = vld [vmem:[%s7748_s3 + $0xdd0] sm:$0xff]  ;;  %v4828_v53 = vpack.c.bf16 %v2148_v43, %v2147_v39  ;;  %v4860_v55 = vpack.c.bf16 %v2180_v41, %v2179_v46  ;;  %v4838_v7 = vpack.c.bf16 %v2170_v19, %v2169_v27  ;;  %v2219_v43 = vld [vmem:[%s7748_s3 + $0xe80] sm:$0xff] }
 0x194   :  { %4817 = vmatpush3.bf16.msra.mxu0 %v4816_v16  ;;  %3169 = vmatmul.mubr.f32.gmra.mrb[54].mxu1 %v1745_v63  ;;  %v4830_v63 = vpack.c.bf16 %v2166_v34, %v2165_v32  ;;  %v2149_v16 = vld [vmem:[%s7748_s3 + $0xc50] sm:$0xff]  ;;  %v4862_v12 = vpack.c.bf16 %v2198_v31, %v2197_v51  ;;  %v2186_v39 = vld [vmem:[%s7748_s3 + $0xd78] sm:$0xff]  ;;  %v2220_v46 = vld [vmem:[%s7748_s3 + $0xe88] sm:$0xff]  ;;  %v1450_v32 = vadd.f32 %v6862_v48, %v391_v57 }
 0x195   :  { %4849 = vmatpush3.bf16.msra.mxu1 %v4848_v49  ;;  %4819 = vmatprep.subr.bf16.mxu0 %v4818_v50  ;;  %v2150_v49 = vld [vmem:[%s7748_s3 + $0xc58] sm:$0xff]  ;;  %v2181_v50 = vld [vmem:[%s7748_s3 + $0xd50] sm:$0xff]  ;;  %v4874_v51 = vpack.c.bf16 %v2220_v46, %v2219_v43  ;;  %v2203_v31 = vld [vmem:[%s7748_s3 + $0xe00] sm:$0xff]  ;;  %v1458_v48 = vadd.f32 %v6909_v35, %v7309_v9  ;;  %v1535_v35 = vadd.f32 %v6922_v45, %v7328_v33 }
 0x196   :  { %4851 = vmatprep.subr.bf16.mxu1 %v4850_v15  ;;  %3238 = vmatprep.mubr.f32.mxu0 %v1716_v11  ;;  %v2168_v11 = vld [vmem:[%s7748_s3 + $0xce8] sm:$0xff]  ;;  %v2199_v15 = vld [vmem:[%s7748_s3 + $0xde0] sm:$0xff]  ;;  %v4832_v6 = vpack.c.bf16 %v2150_v49, %v2149_v16  ;;  %v4864_v10 = vpack.c.bf16 %v2182_v58, %v2181_v50  ;;  %v7522_v16 = vrot.slane %v7289_v22, %v6162_v0  ;;  %v2253_v58 = vld [vmem:[%s7748_s3 + $0xf90] sm:$0xff] }
 0x197   :  { %3313 = vmatprep.mubr.f32.mxu1 %v1718_v40  ;;  %v4834_v40 = vpack.c.bf16 %v2168_v11, %v2167_v29  ;;  %v2236_v50 = vld [vmem:[%s7748_s3 + $0xf08] sm:$0xff]  ;;  %v7537_v0 = vrot.slane %v7289_v22, %v6171_v2  ;;  %v2254_v29 = vld [vmem:[%s7748_s3 + $0xf98] sm:$0xff]  ;;  %v1715_v11 = vmax.f32 %v1450_v32, 0.0  ;;  %v1748_v2 = vmax.f32 %v1458_v48, 0.0  ;;  %v2237_v8 = vld [vmem:[%s7748_s3 + $0xf10] sm:$0xff] }
 0x198   :  { %4821 = vmatpush3.bf16.msra.mxu0 %v4820_v60  ;;  %v2183_v60 = vld [vmem:[%s7748_s3 + $0xd60] sm:$0xff]  ;;  %v1750_v14 = vmax.f32 %v1535_v35, 0.0  ;;  %v2256_v27 = vld [vmem:[%s7748_s3 + $0xfa8] sm:$0xff]  ;;  %v2226_v43 = vld [vmem:[%s7748_s3 + $0xeb8] sm:$0xff] }
 0x199   :  { %4853 = vmatpush3.bf16.msra.mxu1 %v4852_v36  ;;  %4823 = vmatprep.subr.bf16.mxu0 %v4822_v5  ;;  %v4866_v36 = vpack.c.bf16 %v2200_v21, %v2199_v15  ;;  %v2184_v5 = vld [vmem:[%s7748_s3 + $0xd68] sm:$0xff]  ;;  %v1456_v15 = vadd.f32 %v6898_v24, %v391_v57  ;;  %v2206_v24 = vld [vmem:[%s7748_s3 + $0xe18] sm:$0xff]  ;;  %v2257_v46 = vld [vmem:[%s7748_s3 + $0xfb0] sm:$0xff] }
 0x19a   :  { %4855 = vmatprep.subr.bf16.mxu1 %v4854_v28  ;;  %v2202_v28 = vld [vmem:[%s7748_s3 + $0xdf8] sm:$0xff]  ;;  %v4868_v4 = vpack.c.bf16 %v2184_v5, %v2183_v60  ;;  %v4910_v60 = vpack.c.bf16 %v2254_v29, %v2253_v58  ;;  %v2224_v5 = vld [vmem:[%s7748_s3 + $0xea8] sm:$0xff]  ;;  %v2243_v29 = vld [vmem:[%s7748_s3 + $0xf40] sm:$0xff] }
 0x19b   :  { %v4870_v59 = vpack.c.bf16 %v2202_v28, %v2201_v3  ;;  %v1747_v19 = vmax.f32 %v1456_v15, 0.0  ;;  %v2228_v48 = vld [vmem:[%s7748_s3 + $0xec8] sm:$0xff] }
 0x19c   :  { %4825 = vmatpush3.bf16.msra.mxu0 %v4824_v25  ;;  %v2154_v25 = vld [vmem:[%s7748_s3 + $0xc78] sm:$0xff]  ;;  %v2212_v58 = vld [vmem:[%s7748_s3 + $0xe48] sm:$0xff] }
 0x19d   :  { %4857 = vmatpush3.bf16.msra.mxu1 %v4856_v62  ;;  %4827 = vmatprep.subr.bf16.mxu0 %v4826_v20  ;;  %v2185_v62 = vld [vmem:[%s7748_s3 + $0xd70] sm:$0xff]  ;;  %v399_v20 = vrot.slane %v7289_v22, %v6079_v61  ;;  %v2252_v61 = vld [vmem:[%s7748_s3 + $0xf88] sm:$0xff]  ;;  %v4840_v41 = vpack.c.bf16 %v2154_v25, %v2153_v18  ;;  %v2239_v25 = vld [vmem:[%s7748_s3 + $0xf20] sm:$0xff] }
 0x19e   :  { %4859 = vmatprep.subr.bf16.mxu1 %v4858_v26  ;;  %v2251_v26 = vld [vmem:[%s7748_s3 + $0xf80] sm:$0xff]  ;;  %v4872_v34 = vpack.c.bf16 %v2186_v39, %v2185_v62  ;;  %v2208_v18 = vld [vmem:[%s7748_s3 + $0xe28] sm:$0xff]  ;;  %v2225_v39 = vld [vmem:[%s7748_s3 + $0xeb0] sm:$0xff] }
 0x19f   :  { %v4906_v49 = vpack.c.bf16 %v2252_v61, %v2251_v26  ;;  %v2258_v26 = vld [vmem:[%s7748_s3 + $0xfb8] sm:$0xff]  ;;  %v4886_v32 = vpack.c.bf16 %v2226_v43, %v2225_v39  ;;  %v2244_v15 = vld [vmem:[%s7748_s3 + $0xf48] sm:$0xff] }
 0x1a0   :  { %4829 = vmatpush3.bf16.msra.mxu0 %v4828_v53  ;;  %v2204_v53 = vld [vmem:[%s7748_s3 + $0xe08] sm:$0xff]  ;;  %v2234_v39 = vld [vmem:[%s7748_s3 + $0xef8] sm:$0xff] }
 0x1a1   :  { %4861 = vmatpush3.bf16.msra.mxu1 %v4860_v55  ;;  %4831 = vmatprep.subr.bf16.mxu0 %v4830_v63  ;;  %v2235_v55 = vld [vmem:[%s7748_s3 + $0xf00] sm:$0xff]  ;;  %v1527_v63 = vadd.f32 %v6875_v52, %v399_v20  ;;  %v2222_v52 = vld [vmem:[%s7748_s3 + $0xe98] sm:$0xff]  ;;  %v4876_v9 = vpack.c.bf16 %v2204_v53, %v2203_v31  ;;  %v2241_v31 = vld [vmem:[%s7748_s3 + $0xf30] sm:$0xff]  ;;  %v4918_v53 = vpack.c.bf16 %v2258_v26, %v2257_v46 }
 0x1a2   :  { %4863 = vmatprep.subr.bf16.mxu1 %v4862_v12  ;;  %v2221_v12 = vld [vmem:[%s7748_s3 + $0xe90] sm:$0xff]  ;;  %v4908_v45 = vpack.c.bf16 %v2236_v50, %v2235_v55  ;;  %v2242_v55 = vld [vmem:[%s7748_s3 + $0xf38] sm:$0xff]  ;;  %v2260_v50 = vld [vmem:[%s7748_s3 + $0xfc8] sm:$0xff] }
 0x1a3   :  { %v4878_v33 = vpack.c.bf16 %v2222_v52, %v2221_v12  ;;  %v1717_v21 = vmax.f32 %v1527_v63, 0.0  ;;  %v2227_v63 = vld [vmem:[%s7748_s3 + $0xec0] sm:$0xff]  ;;  %v4920_v52 = vpack.c.bf16 %v2242_v55, %v2241_v31  ;;  %v2265_v26 = vld [vmem:[%s7748_s3 + $0xff0] sm:$0xff] }
 0x1a4   :  { %4833 = vmatpush3.bf16.msra.mxu0 %v4832_v6  ;;  %v1533_v6 = vadd.f32 %v6911_v30, %v399_v20  ;;  %v1683_v30 = vadd.f32 %v7002_v1, %v7537_v0  ;;  %v2255_v1 = vld [vmem:[%s7748_s3 + $0xfa0] sm:$0xff]  ;;  %v4890_v35 = vpack.c.bf16 %v2228_v48, %v2227_v63  ;;  %v2217_v55 = vld [vmem:[%s7748_s3 + $0xe70] sm:$0xff]  ;;  %v2218_v63 = vld [vmem:[%s7748_s3 + $0xe78] sm:$0xff] }
 0x1a5   :  { %4865 = vmatpush3.bf16.msra.mxu1 %v4864_v10  ;;  %4835 = vmatprep.subr.bf16.mxu0 %v4834_v40  ;;  %v1606_v10 = vadd.f32 %v6989_v38, %v7522_v16  ;;  %v2205_v40 = vld [vmem:[%s7748_s3 + $0xe10] sm:$0xff]  ;;  %v2238_v38 = vld [vmem:[%s7748_s3 + $0xf18] sm:$0xff]  ;;  %v4914_v20 = vpack.c.bf16 %v2256_v27, %v2255_v1  ;;  %v2264_v1 = vld [vmem:[%s7748_s3 + $0xfe8] sm:$0xff] }
 0x1a6   :  { %4867 = vmatprep.subr.bf16.mxu1 %v4866_v36  ;;  %v2223_v36 = vld [vmem:[%s7748_s3 + $0xea0] sm:$0xff]  ;;  %v4880_v3 = vpack.c.bf16 %v2206_v24, %v2205_v40  ;;  %v1749_v28 = vmax.f32 %v1533_v6, 0.0  ;;  %v4912_v57 = vpack.c.bf16 %v2238_v38, %v2237_v8  ;;  %v1722_v62 = vmax.f32 %v1683_v30, 0.0  ;;  %v2213_v24 = vld [vmem:[%s7748_s3 + $0xe50] sm:$0xff]  ;;  %v2214_v8 = vld [vmem:[%s7748_s3 + $0xe58] sm:$0xff] }
 0x1a7   :  { %v2231_v38 = vld [vmem:[%s7748_s3 + $0xee0] sm:$0xff] }
 0x1a8   :  { %4837 = vmatpush3.bf16.msra.mxu0 %v4836_v47  ;;  %v1720_v47 = vmax.f32 %v1606_v10, 0.0  ;;  %v4924_v10 = vpack.c.bf16 %v2244_v15, %v2243_v29  ;;  %v3559_v27 = vld [vmem:[%s7750_s4] ss:$0 sm:$0xff] }
 0x1a9   :  { %4869 = vmatpush3.bf16.msra.mxu1 %v4868_v4  ;;  %4839 = vmatprep.subr.bf16.mxu0 %v4838_v7  ;;  %v4882_v4 = vpack.c.bf16 %v2224_v5, %v2223_v36  ;;  %v2207_v7 = vld [vmem:[%s7748_s3 + $0xe20] sm:$0xff]  ;;  %v2232_v36 = vld [vmem:[%s7748_s3 + $0xee8] sm:$0xff] }
 0x1aa   :  { %4871 = vmatprep.subr.bf16.mxu1 %v4870_v59  ;;  %v2240_v59 = vld [vmem:[%s7748_s3 + $0xf28] sm:$0xff]  ;;  %v4884_v61 = vpack.c.bf16 %v2208_v18, %v2207_v7  ;;  %v2263_v5 = vld [vmem:[%s7748_s3 + $0xfe0] sm:$0xff] }
 0x1ab   :  { %v2247_v7 = vld [vmem:[%s7748_s3 + $0xf60] sm:$0xff] }
 0x1ac   :  { %4841 = vmatpush3.bf16.msra.mxu0 %v4840_v41  ;;  %v4916_v41 = vpack.c.bf16 %v2240_v59, %v2239_v25  ;;  %v2233_v59 = vld [vmem:[%s7748_s3 + $0xef0] sm:$0xff] }
 0x1ad   :  { %4873 = vmatpush3.bf16.msra.mxu1 %v4872_v34  ;;  %4875 = vmatprep.subr.bf16.mxu0 %v4874_v51  ;;  %v2209_v34 = vld [vmem:[%s7748_s3 + $0xe30] sm:$0xff]  ;;  %v2210_v51 = vld [vmem:[%s7748_s3 + $0xe38] sm:$0xff] }
 0x1ae   :  { %4907 = vmatprep.subr.bf16.mxu1 %v4906_v49  ;;  %v2259_v49 = vld [vmem:[%s7748_s3 + $0xfc0] sm:$0xff]  ;;  %v4888_v12 = vpack.c.bf16 %v2210_v51, %v2209_v34 }
 0x1af   :  { %3239 = vmatmul.mubr.f32.vlgmr.msra.gmra.mrb[56].mxu0 %v1715_v11  ;;  %v4922_v11 = vpack.c.bf16 %v2260_v50, %v2259_v49  ;;  %v2249_v50 = vld [vmem:[%s7748_s3 + $0xf70] sm:$0xff] }
 0x1b0   :  { %3314 = vmatmul.mubr.f32.vlgmr.msra.gmra.mrb[56].mxu1 %v1717_v21  ;;  %3243 = vmatprep.mubr.f32.mxu0 %v1748_v2  ;;  %v2261_v21 = vld [vmem:[%s7748_s3 + $0xfd0] sm:$0xff]  ;;  %v2262_v2 = vld [vmem:[%s7748_s3 + $0xfd8] sm:$0xff] }
 0x1b1   :  { %3318 = vmatprep.mubr.f32.mxu1 %v1750_v14  ;;  %4877 = vmatpush3.bf16.msra.mxu0 %v4876_v9  ;;  %v2211_v9 = vld [vmem:[%s7748_s3 + $0xe40] sm:$0xff]  ;;  %v2245_v14 = vld [vmem:[%s7748_s3 + $0xf50] sm:$0xff]  ;;  %v4926_v30 = vpack.c.bf16 %v2262_v2, %v2261_v21  ;;  %v1612_v21 = vadd.f32 %v7021_v23, %v7522_v16  ;;  %v1689_v2 = vadd.f32 %v7034_v44, %v7537_v0 }
 0x1b2   :  { %4909 = vmatpush3.bf16.msra.mxu1 %v4908_v45  ;;  %4879 = vmatprep.subr.bf16.mxu0 %v4878_v33  ;;  %v2229_v45 = vld [vmem:[%s7748_s3 + $0xed0] sm:$0xff]  ;;  %v2230_v33 = vld [vmem:[%s7748_s3 + $0xed8] sm:$0xff]  ;;  %v4892_v6 = vpack.c.bf16 %v2212_v58, %v2211_v9 }
 0x1b3   :  { %3244 = vmatmul.mubr.f32.gmra.mrb[58].mxu0 %v1747_v19  ;;  %4911 = vmatprep.subr.bf16.mxu1 %v4910_v60  ;;  %v4894_v40 = vpack.c.bf16 %v2230_v33, %v2229_v45  ;;  %v2246_v60 = vld [vmem:[%s7748_s3 + $0xf58] sm:$0xff]  ;;  %v4896_v19 = vpack.c.bf16 %v2214_v8, %v2213_v24  ;;  %v1752_v24 = vmax.f32 %v1612_v21, 0.0 }
 0x1b4   :  { %3319 = vmatmul.mubr.f32.gmra.mrb[58].mxu1 %v1749_v28  ;;  %3388 = vmatprep.mubr.f32.mxu0 %v1720_v47  ;;  %v4928_v28 = vpack.c.bf16 %v2246_v60, %v2245_v14  ;;  %v4898_v47 = vpack.c.bf16 %v2232_v36, %v2231_v38  ;;  %v1754_v14 = vmax.f32 %v1689_v2, 0.0 }
 0x1b5   :  { %4881 = vmatpush3.bf16.msra.mxu0 %v4880_v3  ;;  %3463 = vmatprep.mubr.f32.mxu1 %v1722_v62  ;;  %v4930_v62 = vpack.c.bf16 %v2264_v1, %v2263_v5 }
 0x1b6   :  { %4913 = vmatpush3.bf16.msra.mxu1 %v4912_v57  ;;  %4883 = vmatprep.subr.bf16.mxu0 %v4882_v4  ;;  %v2215_v57 = vld [vmem:[%s7748_s3 + $0xe60] sm:$0xff]  ;;  %v2216_v4 = vld [vmem:[%s7748_s3 + $0xe68] sm:$0xff] }
 0x1b7   :  { %4915 = vmatprep.subr.bf16.mxu1 %v4914_v20  ;;  %v2248_v20 = vld [vmem:[%s7748_s3 + $0xf68] sm:$0xff]  ;;  %v4900_v34 = vpack.c.bf16 %v2216_v4, %v2215_v57 }
 0x1b8   :  { %v4932_v31 = vpack.c.bf16 %v2248_v20, %v2247_v7 }
 0x1b9   :  { %4885 = vmatpush3.bf16.msra.mxu0 %v4884_v61  ;;  %v2266_v61 = vld [vmem:[%s7748_s3 + $0xff8] sm:$0xff] }
 0x1ba   :  { %4917 = vmatpush3.bf16.msra.mxu1 %v4916_v41  ;;  %4887 = vmatprep.subr.bf16.mxu0 %v4886_v32  ;;  %v407_v41 = vrot.slane %v7289_v22, %v6266_v54  ;;  %v415_v54 = vrot.slane %v7289_v22, %v6269_v56  ;;  %v4934_v49 = vpack.c.bf16 %v2266_v61, %v2265_v26 }
 0x1bb   :  { %4919 = vmatprep.subr.bf16.mxu1 %v4918_v53  ;;  %v4902_v53 = vpack.c.bf16 %v2234_v39, %v2233_v59 }
 0x1bc   :  { %v1604_v56 = vadd.f32 %v6978_v42, %v407_v41  ;;  %v1681_v33 = vadd.f32 %v6991_v17, %v415_v54  ;;  %v1687_v8 = vadd.f32 %v7023_v37, %v415_v54 }
 0x1bd   :  { %4889 = vmatpush3.bf16.msra.mxu0 %v4888_v12  ;;  %v2250_v12 = vld [vmem:[%s7748_s3 + $0xf78] sm:$0xff] }
 0x1be   :  { %4921 = vmatpush3.bf16.msra.mxu1 %v4920_v52  ;;  %4891 = vmatprep.subr.bf16.mxu0 %v4890_v35  ;;  %v4936_v22 = vpack.c.bf16 %v2250_v12, %v2249_v50  ;;  %v1721_v42 = vmax.f32 %v1681_v33, 0.0  ;;  %v1753_v23 = vmax.f32 %v1687_v8, 0.0 }
 0x1bf   :  { %4923 = vmatprep.subr.bf16.mxu1 %v4922_v11  ;;  %v4904_v11 = vpack.c.bf16 %v2218_v63, %v2217_v55 }
 0x1c1   :  { %4893 = vmatpush3.bf16.msra.mxu0 %v4892_v6 }
 0x1c2   :  { %4925 = vmatpush3.bf16.msra.mxu1 %v4924_v10  ;;  %v3594_v3 = vpop.f32.mrb[32].mxu0  ;;  %4895 = vmatprep.subr.bf16.mxu0 %v4894_v40  ;;  %v1719_v10 = vmax.f32 %v1604_v56, 0.0  ;;  %v1610_v40 = vadd.f32 %v7010_v13, %v407_v41 }
 0x1c3   :  { %v3632_v18 = vpop.f32.mrb[32].mxu1  ;;  %4927 = vmatprep.subr.bf16.mxu1 %v4926_v30  ;;  %v3595_v25 = vpop.f32.mrb[33].mxu0 }
 0x1c4   :  { %v3596_v43 = vadd.f32 %v3595_v25, %v3594_v3  ;;  %v3633_v46 = vpop.f32.mrb[33].mxu1  ;;  %v1751_v17 = vmax.f32 %v1610_v40, 0.0 }
 0x1c5   :  { %v3634_v32 = vadd.f32 %v3633_v46, %v3632_v18  ;;  %4897 = vmatpush3.bf16.msra.mxu0 %v4896_v19 }
 0x1c6   :  { %v2341_v51 = vadd.f32 %v3596_v43, %v3559_v27  ;;  %4929 = vmatpush3.bf16.msra.mxu1 %v4928_v28  ;;  %4899 = vmatprep.subr.bf16.mxu0 %v4898_v47  ;;  %v3597_v48 = vpop.f32.mrb[34].mxu0 }
 0x1c7   :  { %4931 = vmatprep.subr.bf16.mxu1 %v4930_v62  ;;  %v3598_v52 = vpop.f32.mrb[35].mxu0  ;;  %v3635_v35 = vpop.f32.mrb[34].mxu1 }
 0x1c8   :  { %v2416_v9 = vadd.f32 %v3634_v32, %v2341_v51  ;;  %v3599_v58 = vadd.f32 %v3598_v52, %v3597_v48  ;;  %v3636_v29 = vpop.f32.mrb[35].mxu1 }
 0x1c9   :  { %4901 = vmatpush3.bf16.msra.mxu0 %v4900_v34  ;;  %v3637_v15 = vadd.f32 %v3636_v29, %v3635_v35 }
 0x1ca   :  { %4933 = vmatpush3.bf16.msra.mxu1 %v4932_v31  ;;  %4903 = vmatprep.subr.bf16.mxu0 %v4902_v53  ;;  %v2346_v45 = vadd.f32 %v3599_v58, %v3559_v27 }
 0x1cb   :  { %4935 = vmatprep.subr.bf16.mxu1 %v4934_v49 }
 0x1cc   :  { %v2421_v6 = vadd.f32 %v3637_v15, %v2346_v45 }
 0x1cd   :  { %4905 = vmatpush3.bf16.msra.mxu0 %v4904_v11 }
 0x1ce   :  { %4937 = vmatpush3.bf16.msra.mxu1 %v4936_v22 }
 0x1d0   :  { %3389 = vmatmul.mubr.f32.vlgmr.msra.gmra.mrb[60].mxu0 %v1719_v10 }
 0x1d1   :  { %3464 = vmatmul.mubr.f32.vlgmr.msra.gmra.mrb[60].mxu1 %v1721_v42  ;;  %3393 = vmatprep.mubr.f32.mxu0 %v1752_v24 }
 0x1d2   :  { %3468 = vmatprep.mubr.f32.mxu1 %v1754_v14 }
 0x1d4   :  { %3394 = vmatmul.mubr.f32.gmra.mrb[62].mxu0 %v1751_v17 }
 0x1d5   :  { %3469 = vmatmul.mubr.f32.gmra.mrb[62].mxu1 %v1753_v23 }
 0x1e2   :  { %v3670_v44 = vpop.f32.mrb[36].mxu0 }
 0x1e3   :  { %v3708_v16 = vpop.f32.mrb[36].mxu1  ;;  %v3671_v0 = vpop.f32.mrb[37].mxu0 }
 0x1e4   :  { %v3672_v30 = vadd.f32 %v3671_v0, %v3670_v44  ;;  %v3709_v60 = vpop.f32.mrb[37].mxu1 }
 0x1e5   :  { %v3710_v13 = vadd.f32 %v3709_v60, %v3708_v16 }
 0x1e6   :  { %v2491_v38 = vadd.f32 %v3672_v30, %v2416_v9  ;;  %v3673_v36 = vpop.f32.mrb[38].mxu0 }
 0x1e7   :  { %v3674_v5 = vpop.f32.mrb[39].mxu0  ;;  %v3711_v1 = vpop.f32.mrb[38].mxu1 }
 0x1e8   :  { %v2566_v37 = vadd.f32 %v3710_v13, %v2491_v38  ;;  %v3675_v27 = vadd.f32 %v3674_v5, %v3673_v36  ;;  %v3712_v19 = vpop.f32.mrb[39].mxu1 }
 0x1e9   :  { %v3713_v3 = vadd.f32 %v3712_v19, %v3711_v1 }
 0x1ea   :  { %v2496_v28 = vadd.f32 %v3675_v27, %v2421_v6 }
 0x1ec   :  { %v2571_v47 = vadd.f32 %v3713_v3, %v2496_v28 }
 0x202   :  { %v3746_v57 = vpop.f32.mrb[40].mxu0 }
 0x203   :  { %v3784_v4 = vpop.f32.mrb[40].mxu1  ;;  %v3747_v7 = vpop.f32.mrb[41].mxu0 }
 0x204   :  { %v3748_v18 = vadd.f32 %v3747_v7, %v3746_v57  ;;  %v3785_v25 = vpop.f32.mrb[41].mxu1 }
 0x205   :  { %v3786_v62 = vadd.f32 %v3785_v25, %v3784_v4 }
 0x206   :  { %v2641_v20 = vadd.f32 %v3748_v18, %v2566_v37  ;;  %v3749_v59 = vpop.f32.mrb[42].mxu0 }
 0x207   :  { %v3750_v39 = vpop.f32.mrb[43].mxu0  ;;  %v3787_v43 = vpop.f32.mrb[42].mxu1 }
 0x208   :  { %v2716_v46 = vadd.f32 %v3786_v62, %v2641_v20  ;;  %v3751_v26 = vadd.f32 %v3750_v39, %v3749_v59  ;;  %v3788_v61 = vpop.f32.mrb[43].mxu1 }
 0x209   :  { %v3789_v41 = vadd.f32 %v3788_v61, %v3787_v43 }
 0x20a   :  { %v2646_v32 = vadd.f32 %v3751_v26, %v2571_v47 }
 0x20c   :  { %v2721_v34 = vadd.f32 %v3789_v41, %v2646_v32 }
 0x222   :  { %v3822_v51 = vpop.f32.mrb[44].mxu0 }
 0x223   :  { %v3860_v31 = vpop.f32.mrb[44].mxu1  ;;  %v3823_v53 = vpop.f32.mrb[45].mxu0 }
 0x224   :  { %v3824_v55 = vadd.f32 %v3823_v53, %v3822_v51  ;;  %v3861_v63 = vpop.f32.mrb[45].mxu1 }
 0x225   :  { %v3862_v48 = vadd.f32 %v3861_v63, %v3860_v31 }
 0x226   :  { %v2791_v54 = vadd.f32 %v3824_v55, %v2716_v46  ;;  %v3825_v49 = vpop.f32.mrb[46].mxu0 }
 0x227   :  { %v3826_v50 = vpop.f32.mrb[47].mxu0  ;;  %v3863_v12 = vpop.f32.mrb[46].mxu1 }
 0x228   :  { %v2866_v52 = vadd.f32 %v3862_v48, %v2791_v54  ;;  %v3827_v35 = vadd.f32 %v3826_v50, %v3825_v49  ;;  %v3864_v9 = vpop.f32.mrb[47].mxu1 }
 0x229   :  { %v3865_v58 = vadd.f32 %v3864_v9, %v3863_v12 }
 0x22a   :  { %v2796_v29 = vadd.f32 %v3827_v35, %v2721_v34 }
 0x22c   :  { %v2871_v11 = vadd.f32 %v3865_v58, %v2796_v29 }
 0x242   :  { %v3898_v15 = vpop.f32.mrb[48].mxu0 }
 0x243   :  { %v3936_v56 = vpop.f32.mrb[48].mxu1  ;;  %v3899_v22 = vpop.f32.mrb[49].mxu0 }
 0x244   :  { %v3900_v45 = vadd.f32 %v3899_v22, %v3898_v15  ;;  %v3937_v33 = vpop.f32.mrb[49].mxu1 }
 0x245   :  { %v3938_v21 = vadd.f32 %v3937_v33, %v3936_v56 }
 0x246   :  { %v2941_v2 = vadd.f32 %v3900_v45, %v2866_v52  ;;  %v3901_v6 = vpop.f32.mrb[50].mxu0  ;;  %v4946_v45 = vld [vmem:[%s7747_s0 + $0x8] sm:$0xff] }
 0x247   :  { %v3902_v10 = vpop.f32.mrb[51].mxu0  ;;  %v3939_v40 = vpop.f32.mrb[50].mxu1 }
 0x248   :  { %v3016_v42 = vadd.f32 %v3938_v21, %v2941_v2  ;;  %v3903_v24 = vadd.f32 %v3902_v10, %v3901_v6  ;;  %v3940_v8 = vpop.f32.mrb[51].mxu1 }
 0x249   :  { %v3941_v14 = vadd.f32 %v3940_v8, %v3939_v40 }
 0x24a   :  { %v2946_v17 = vadd.f32 %v3903_v24, %v2871_v11  ;;  %v4945_v11 = vld [vmem:[%s7747_s0] sm:$0xff] }
 0x24c   :  { %v3021_v23 = vadd.f32 %v3941_v14, %v2946_v17 }
 0x262   :  { %v3974_v44 = vpop.f32.mrb[52].mxu0 }
 0x263   :  { %v4012_v16 = vpop.f32.mrb[52].mxu1  ;;  %v3975_v0 = vpop.f32.mrb[53].mxu0 }
 0x264   :  { %v3976_v30 = vadd.f32 %v3975_v0, %v3974_v44  ;;  %v4013_v60 = vpop.f32.mrb[53].mxu1 }
 0x265   :  { %v4014_v13 = vadd.f32 %v4013_v60, %v4012_v16 }
 0x266   :  { %v3091_v38 = vadd.f32 %v3976_v30, %v3016_v42  ;;  %v3977_v36 = vpop.f32.mrb[54].mxu0 }
 0x267   :  { %v3978_v5 = vpop.f32.mrb[55].mxu0  ;;  %v4015_v1 = vpop.f32.mrb[54].mxu1 }
 0x268   :  { %v3166_v37 = vadd.f32 %v4014_v13, %v3091_v38  ;;  %v3979_v27 = vadd.f32 %v3978_v5, %v3977_v36  ;;  %v4016_v19 = vpop.f32.mrb[55].mxu1  ;;  %v3560_v36 = vld [vmem:[%s7751_s5] ss:$0 sm:$0xff] }
 0x269   :  { %v4017_v3 = vadd.f32 %v4016_v19, %v4015_v1  ;;  %v3561_v1 = vld [vmem:[%s7752_s6] ss:$0 sm:$0xff] }
 0x26a   :  { %v3096_v28 = vadd.f32 %v3979_v27, %v3021_v23 }
 0x26c   :  { %v3171_v47 = vadd.f32 %v4017_v3, %v3096_v28 }
 0x282   :  { %v4050_v57 = vpop.f32.mrb[56].mxu0 }
 0x283   :  { %v4088_v4 = vpop.f32.mrb[56].mxu1  ;;  %v4051_v7 = vpop.f32.mrb[57].mxu0 }
 0x284   :  { %v4052_v18 = vadd.f32 %v4051_v7, %v4050_v57  ;;  %v4089_v25 = vpop.f32.mrb[57].mxu1 }
 0x285   :  { %v4090_v62 = vadd.f32 %v4089_v25, %v4088_v4 }
 0x286   :  { %v3241_v20 = vadd.f32 %v4052_v18, %v3166_v37  ;;  %v4053_v59 = vpop.f32.mrb[58].mxu0 }
 0x287   :  { %v4091_v39 = vpop.f32.mrb[58].mxu1  ;;  %v4054_v43 = vpop.f32.mrb[59].mxu0 }
 0x288   :  { %v3316_v46 = vadd.f32 %v4090_v62, %v3241_v20  ;;  %v4055_v26 = vadd.f32 %v4054_v43, %v4053_v59  ;;  %v4092_v61 = vpop.f32.mrb[59].mxu1 }
 0x289   :  { %v4093_v41 = vadd.f32 %v4092_v61, %v4091_v39 }
 0x28a   :  { %v3246_v32 = vadd.f32 %v4055_v26, %v3171_v47 }
 0x28c   :  { %v3321_v34 = vadd.f32 %v4093_v41, %v3246_v32 }
 0x2a3   :  { %v4126_v51 = vpop.f32.mrb[60].mxu0 }
 0x2a4   :  { %v4164_v31 = vpop.f32.mrb[60].mxu1  ;;  %v4127_v53 = vpop.f32.mrb[61].mxu0 }
 0x2a5   :  { %v4128_v55 = vadd.f32 %v4127_v53, %v4126_v51  ;;  %v4165_v63 = vpop.f32.mrb[61].mxu1 }
 0x2a6   :  { %v4166_v48 = vadd.f32 %v4165_v63, %v4164_v31 }
 0x2a7   :  { %v3391_v54 = vadd.f32 %v4128_v55, %v3316_v46  ;;  %v4129_v49 = vpop.f32.mrb[62].mxu0 }
 0x2a8   :  { %v4167_v50 = vpop.f32.mrb[62].mxu1  ;;  %v4130_v12 = vpop.f32.mrb[63].mxu0 }
 0x2a9   :  { %v3466_v52 = vadd.f32 %v4166_v48, %v3391_v54  ;;  %v4131_v35 = vadd.f32 %v4130_v12, %v4129_v49  ;;  %v4168_v9 = vpop.f32.mrb[63].mxu1 }
 0x2aa   :  { %v4169_v58 = vadd.f32 %v4168_v9, %v4167_v50 }
 0x2ab   :  { %v3396_v29 = vadd.f32 %v4131_v35, %v3321_v34  ;;  %v3474_v15 = vadd.f32 %v4945_v11, %v3466_v52 }
 0x2ad   :  { %v3471_v56 = vadd.f32 %v4169_v58, %v3396_v29  ;;  %v3478_v22 = vsel %vm452_vm0, %v3474_v15, 0.0 }
 0x2ae   :  { %3479 = vadd.xlane.f32.xlu0 %v3478_v22 }
 0x2af   :  { %v3475_v33 = vadd.f32 %v4946_v45, %v3471_v56 }
 0x2b1   :  { %v3481_v21 = vsel %vm452_vm0, %v3475_v33, 0.0 }
 0x2b2   :  { %3482 = vadd.xlane.f32.xlu0 %v3481_v21 }
 0x33b   :  { %v3480_v2 = vpop.xlane.xlu0 %3479 }
 0x33c   :  { %v3485_v6 = vmul.f32 0.015625, %v3480_v2 }
 0x33e   :  { %v3487_v10 = vsub.f32 %v3474_v15, %v3485_v6 }
 0x33f   :  { %v3483_v40 = vpop.xlane.xlu0 %3482 }
 0x340   :  { %v3486_v42 = vmul.f32 0.015625, %v3483_v40  ;;  %v3489_v24 = vmul.f32 %v3487_v10, %v3487_v10 }
 0x342   :  { %v3488_v8 = vsub.f32 %v3475_v33, %v3486_v42  ;;  %v3491_v14 = vsel %vm452_vm0, %v3489_v24, 0.0 }
 0x343   :  { %3492 = vadd.xlane.f32.xlu1 %v3491_v14 }
 0x344   :  { %v3490_v17 = vmul.f32 %v3488_v8, %v3488_v8 }
 0x346   :  { %v3494_v23 = vsel %vm452_vm0, %v3490_v17, 0.0 }
 0x347   :  { %3495 = vadd.xlane.f32.xlu1 %v3494_v23 }
 0x3d0   :  { %v3493_v44 = vpop.xlane.xlu1 %3492 }
 0x3d1   :  { %v3497_v16 = vmul.f32 0.015625, %v3493_v44 }
 0x3d3   :  { %v3499_v0 = vadd.f32 1e-05, %v3497_v16 }
 0x3d4   :  { %v3496_v30 = vpop.xlane.xlu1 %3495 }
 0x3d5   :  { %4939 = vrsqrt.f32 %v3499_v0  ;;  %v3498_v60 = vmul.f32 0.015625, %v3496_v30 }
 0x3d7   :  { %v3500_v13 = vadd.f32 1e-05, %v3498_v60 }
 0x3d9   :  { %4941 = vrsqrt.f32 %v3500_v13 }
 0x3df   :  { %v4940_v38 = vpop.eup %4939 }
 0x3e0   :  { %v3503_v5 = vmul.f32 %v4940_v38, %v3487_v10 }
 0x3e2   :  { %v3511_v37 = vmul.f32 %v3560_v36, %v3503_v5 }
 0x3e3   :  { %v4942_v27 = vpop.eup %4941 }
 0x3e4   :  { %v3519_v19 = vadd.f32 %v3561_v1, %v3511_v37  ;;  %v3504_v3 = vmul.f32 %v4942_v27, %v3488_v8 }
 0x3e6   :  { %3521 = vst.msk [vmem:[%s7753_s7] sm:$0xff] %vm452_vm0, %v3519_v19  ;;  %v3512_v28 = vmul.f32 %v3560_v36, %v3504_v3 }
 0x3e8   :  { %v3520_v47 = vadd.f32 %v3561_v1, %v3512_v28 }
 0x3ea   :  { %3522 = vst.msk [vmem:[%s7753_s7 + $0x8] sm:$0xff] %vm452_vm0, %v3520_v47 }

// kernel: _lambda_.24
= control target key start
LH: loop header
LB: loop body
LE: loop exit
PB: predicated region body
PF: predicated region fallthrough
CT: control target
= control target key end

     0   :  { %vm206_vm0 = vcmask 15360   ;;  %v14000_v0 = vmov 0.0   ;;  %vm11927_vm1 = vmmov 0   ;;  %vm5071_vm2 = vcmask 64512   ;;  %s13996_s1 = inlined_call_operand.vmem [shape: f32[64,8,2], index: 1, kind: input, shape index: {}]   ;;  %s13997_s0 = inlined_call_operand.vmem [shape: f32[64,8,2], index: 0, kind: input, shape index: {}]   ;;  %s13998_s2 = inlined_call_operand.vmem [shape: f32[64,8,2], index: 2, kind: input, shape index: {}]   ;;  %s13999_s3 = inlined_call_operand.vmem [shape: f32[64,8,2], index: 3, kind: output, shape index: {}]  }
   0x1   :  { %11028 = vmatprep.subr.mxu0 %v14000_v0  ;;  %v142_v1 = vld [vmem:[%s13996_s1] sm:$0xff]  ;;  %11030 = vmatprep.mubr.msk.f32.mxu0 %vm11927_vm1, %v14000_v0  ;;  %v143_v3 = vld [vmem:[%s13996_s1 + $0x8] sm:$0xff]  ;;  %v16_v6 = vld [vmem:[%s13997_s0 + $0x10] sm:$0xff] }
   0x2   :  { %v14_v2 = vld [vmem:[%s13997_s0] sm:$0xff]  ;;  %11029 = vmatpush3.xpose.msk.msra.mxu0 %vm206_vm0, %v142_v1  ;;  %11033 = vmatprep.subr.mxu1 %v14000_v0  ;;  %v15_v5 = vld [vmem:[%s13997_s0 + $0x8] sm:$0xff]  ;;  %v144_v7 = vld [vmem:[%s13996_s1 + $0x10] sm:$0xff]  ;;  %v80_v10 = vmul.f32 0.70710677, %v16_v6 }
   0x3   :  { %v78_v4 = vmul.f32 0.70710677, %v14_v2  ;;  %11038 = vmatprep.subr.mxu0 %v14000_v0  ;;  %11034 = vmatpush3.xpose.msk.msra.mxu1 %vm206_vm0, %v143_v3  ;;  %v79_v8 = vmul.f32 0.70710677, %v15_v5  ;;  %v17_v9 = vld [vmem:[%s13997_s0 + $0x18] sm:$0xff]  ;;  %v18_v12 = vld [vmem:[%s13997_s0 + $0x20] sm:$0xff] }
   0x4   :  { %11035 = vmatprep.mubr.msk.f32.mxu1 %vm11927_vm1, %v14000_v0  ;;  %11043 = vmatprep.subr.mxu1 %v14000_v0  ;;  %v145_v11 = vld [vmem:[%s13996_s1 + $0x18] sm:$0xff]  ;;  %v146_v13 = vld [vmem:[%s13996_s1 + $0x20] sm:$0xff]  ;;  %v81_v14 = vmul.f32 0.70710677, %v17_v9  ;;  %v19_v15 = vld [vmem:[%s13997_s0 + $0x28] sm:$0xff] }
   0x5   :  { %11031 = vmatmul.mubr.msk.f32.vlgmr.msra.gmra.mrb[0].mxu0 %vm206_vm0, %v78_v4  ;;  %v82_v16 = vmul.f32 0.70710677, %v18_v12  ;;  %v147_v17 = vld [vmem:[%s13996_s1 + $0x28] sm:$0xff]  ;;  %v20_v18 = vld [vmem:[%s13997_s0 + $0x30] sm:$0xff]  ;;  %v83_v20 = vmul.f32 0.70710677, %v19_v15 }
   0x6   :  { %11039 = vmatpush3.xpose.msk.msra.mxu0 %vm206_vm0, %v144_v7  ;;  %11040 = vmatprep.mubr.msk.f32.mxu0 %vm11927_vm1, %v14000_v0  ;;  %v148_v19 = vld [vmem:[%s13996_s1 + $0x30] sm:$0xff]  ;;  %v21_v21 = vld [vmem:[%s13997_s0 + $0x38] sm:$0xff]  ;;  %v84_v22 = vmul.f32 0.70710677, %v20_v18  ;;  %v22_v24 = vld [vmem:[%s13997_s0 + $0x40] sm:$0xff] }
   0x7   :  { %11036 = vmatmul.mubr.msk.f32.vlgmr.msra.gmra.mrb[0].mxu1 %vm206_vm0, %v79_v8  ;;  %11048 = vmatprep.subr.mxu0 %v14000_v0  ;;  %v149_v23 = vld [vmem:[%s13996_s1 + $0x38] sm:$0xff]  ;;  %v150_v25 = vld [vmem:[%s13996_s1 + $0x40] sm:$0xff]  ;;  %v85_v26 = vmul.f32 0.70710677, %v21_v21  ;;  %v23_v27 = vld [vmem:[%s13997_s0 + $0x48] sm:$0xff] }
   0x8   :  { %11044 = vmatpush3.xpose.msk.msra.mxu1 %vm206_vm0, %v145_v11  ;;  %11045 = vmatprep.mubr.msk.f32.mxu1 %vm11927_vm1, %v14000_v0  ;;  %v86_v28 = vmul.f32 0.70710677, %v22_v24  ;;  %v151_v29 = vld [vmem:[%s13996_s1 + $0x48] sm:$0xff]  ;;  %v24_v30 = vld [vmem:[%s13997_s0 + $0x50] sm:$0xff]  ;;  %v87_v32 = vmul.f32 0.70710677, %v23_v27 }
   0x9   :  { %11041 = vmatmul.mubr.msk.f32.vlgmr.msra.gmra.mrb[2].mxu0 %vm206_vm0, %v80_v10  ;;  %11053 = vmatprep.subr.mxu1 %v14000_v0  ;;  %v152_v31 = vld [vmem:[%s13996_s1 + $0x50] sm:$0xff]  ;;  %v25_v33 = vld [vmem:[%s13997_s0 + $0x58] sm:$0xff]  ;;  %v88_v34 = vmul.f32 0.70710677, %v24_v30  ;;  %v26_v36 = vld [vmem:[%s13997_s0 + $0x60] sm:$0xff] }
   0xa   :  { %11049 = vmatpush3.xpose.msk.msra.mxu0 %vm206_vm0, %v146_v13  ;;  %11050 = vmatprep.mubr.msk.f32.mxu0 %vm11927_vm1, %v14000_v0  ;;  %v153_v35 = vld [vmem:[%s13996_s1 + $0x58] sm:$0xff]  ;;  %v154_v37 = vld [vmem:[%s13996_s1 + $0x60] sm:$0xff]  ;;  %v89_v38 = vmul.f32 0.70710677, %v25_v33  ;;  %v27_v39 = vld [vmem:[%s13997_s0 + $0x68] sm:$0xff] }
   0xb   :  { %11046 = vmatmul.mubr.msk.f32.vlgmr.msra.gmra.mrb[2].mxu1 %vm206_vm0, %v81_v14  ;;  %11058 = vmatprep.subr.mxu0 %v14000_v0  ;;  %v90_v40 = vmul.f32 0.70710677, %v26_v36  ;;  %v155_v41 = vld [vmem:[%s13996_s1 + $0x68] sm:$0xff]  ;;  %v28_v42 = vld [vmem:[%s13997_s0 + $0x70] sm:$0xff]  ;;  %v91_v44 = vmul.f32 0.70710677, %v27_v39 }
   0xc   :  { %11054 = vmatpush3.xpose.msk.msra.mxu1 %vm206_vm0, %v147_v17  ;;  %11055 = vmatprep.mubr.msk.f32.mxu1 %vm11927_vm1, %v14000_v0  ;;  %v156_v43 = vld [vmem:[%s13996_s1 + $0x70] sm:$0xff]  ;;  %v29_v45 = vld [vmem:[%s13997_s0 + $0x78] sm:$0xff]  ;;  %v92_v46 = vmul.f32 0.70710677, %v28_v42  ;;  %v30_v48 = vld [vmem:[%s13997_s0 + $0x80] sm:$0xff] }
   0xd   :  { %11051 = vmatmul.mubr.msk.f32.vlgmr.msra.gmra.mrb[4].mxu0 %vm206_vm0, %v82_v16  ;;  %11063 = vmatprep.subr.mxu1 %v14000_v0  ;;  %v157_v47 = vld [vmem:[%s13996_s1 + $0x78] sm:$0xff]  ;;  %v158_v49 = vld [vmem:[%s13996_s1 + $0x80] sm:$0xff]  ;;  %v93_v50 = vmul.f32 0.70710677, %v29_v45  ;;  %v31_v51 = vld [vmem:[%s13997_s0 + $0x88] sm:$0xff] }
   0xe   :  { %11059 = vmatpush3.xpose.msk.msra.mxu0 %vm206_vm0, %v148_v19  ;;  %11060 = vmatprep.mubr.msk.f32.mxu0 %vm11927_vm1, %v14000_v0  ;;  %v94_v52 = vmul.f32 0.70710677, %v30_v48  ;;  %v159_v53 = vld [vmem:[%s13996_s1 + $0x88] sm:$0xff]  ;;  %v32_v54 = vld [vmem:[%s13997_s0 + $0x90] sm:$0xff]  ;;  %v95_v56 = vmul.f32 0.70710677, %v31_v51 }
   0xf   :  { %11056 = vmatmul.mubr.msk.f32.vlgmr.msra.gmra.mrb[4].mxu1 %vm206_vm0, %v83_v20  ;;  %11068 = vmatprep.subr.mxu0 %v14000_v0  ;;  %v160_v55 = vld [vmem:[%s13996_s1 + $0x90] sm:$0xff]  ;;  %v33_v57 = vld [vmem:[%s13997_s0 + $0x98] sm:$0xff]  ;;  %v96_v58 = vmul.f32 0.70710677, %v32_v54  ;;  %v34_v60 = vld [vmem:[%s13997_s0 + $0xa0] sm:$0xff] }
  0x10   :  { %11064 = vmatpush3.xpose.msk.msra.mxu1 %vm206_vm0, %v149_v23  ;;  %11065 = vmatprep.mubr.msk.f32.mxu1 %vm11927_vm1, %v14000_v0  ;;  %v161_v59 = vld [vmem:[%s13996_s1 + $0x98] sm:$0xff]  ;;  %v162_v61 = vld [vmem:[%s13996_s1 + $0xa0] sm:$0xff]  ;;  %v97_v62 = vmul.f32 0.70710677, %v33_v57  ;;  %v35_v63 = vld [vmem:[%s13997_s0 + $0xa8] sm:$0xff] }
  0x11   :  { %11061 = vmatmul.mubr.msk.f32.vlgmr.msra.gmra.mrb[6].mxu0 %vm206_vm0, %v84_v22  ;;  %11073 = vmatprep.subr.mxu1 %v14000_v0  ;;  %v98_v1 = vmul.f32 0.70710677, %v34_v60  ;;  %v163_v2 = vld [vmem:[%s13996_s1 + $0xa8] sm:$0xff]  ;;  %v36_v3 = vld [vmem:[%s13997_s0 + $0xb0] sm:$0xff]  ;;  %v99_v5 = vmul.f32 0.70710677, %v35_v63 }
  0x12   :  { %11069 = vmatpush3.xpose.msk.msra.mxu0 %vm206_vm0, %v150_v25  ;;  %11070 = vmatprep.mubr.msk.f32.mxu0 %vm11927_vm1, %v14000_v0  ;;  %v164_v4 = vld [vmem:[%s13996_s1 + $0xb0] sm:$0xff]  ;;  %v37_v6 = vld [vmem:[%s13997_s0 + $0xb8] sm:$0xff]  ;;  %v100_v7 = vmul.f32 0.70710677, %v36_v3  ;;  %v38_v9 = vld [vmem:[%s13997_s0 + $0xc0] sm:$0xff] }
  0x13   :  { %11066 = vmatmul.mubr.msk.f32.vlgmr.msra.gmra.mrb[6].mxu1 %vm206_vm0, %v85_v26  ;;  %11078 = vmatprep.subr.mxu0 %v14000_v0  ;;  %v165_v8 = vld [vmem:[%s13996_s1 + $0xb8] sm:$0xff]  ;;  %v166_v10 = vld [vmem:[%s13996_s1 + $0xc0] sm:$0xff]  ;;  %v101_v11 = vmul.f32 0.70710677, %v37_v6  ;;  %v39_v12 = vld [vmem:[%s13997_s0 + $0xc8] sm:$0xff] }
  0x14   :  { %11074 = vmatpush3.xpose.msk.msra.mxu1 %vm206_vm0, %v151_v29  ;;  %11075 = vmatprep.mubr.msk.f32.mxu1 %vm11927_vm1, %v14000_v0  ;;  %v102_v13 = vmul.f32 0.70710677, %v38_v9  ;;  %v167_v14 = vld [vmem:[%s13996_s1 + $0xc8] sm:$0xff]  ;;  %v40_v15 = vld [vmem:[%s13997_s0 + $0xd0] sm:$0xff]  ;;  %v103_v17 = vmul.f32 0.70710677, %v39_v12 }
  0x15   :  { %11071 = vmatmul.mubr.msk.f32.vlgmr.msra.gmra.mrb[8].mxu0 %vm206_vm0, %v86_v28  ;;  %11083 = vmatprep.subr.mxu1 %v14000_v0  ;;  %v168_v16 = vld [vmem:[%s13996_s1 + $0xd0] sm:$0xff]  ;;  %v41_v18 = vld [vmem:[%s13997_s0 + $0xd8] sm:$0xff]  ;;  %v104_v19 = vmul.f32 0.70710677, %v40_v15  ;;  %v42_v21 = vld [vmem:[%s13997_s0 + $0xe0] sm:$0xff] }
  0x16   :  { %11079 = vmatpush3.xpose.msk.msra.mxu0 %vm206_vm0, %v152_v31  ;;  %11080 = vmatprep.mubr.msk.f32.mxu0 %vm11927_vm1, %v14000_v0  ;;  %v169_v20 = vld [vmem:[%s13996_s1 + $0xd8] sm:$0xff]  ;;  %v170_v22 = vld [vmem:[%s13996_s1 + $0xe0] sm:$0xff]  ;;  %v105_v23 = vmul.f32 0.70710677, %v41_v18  ;;  %v43_v24 = vld [vmem:[%s13997_s0 + $0xe8] sm:$0xff] }
  0x17   :  { %11076 = vmatmul.mubr.msk.f32.vlgmr.msra.gmra.mrb[8].mxu1 %vm206_vm0, %v87_v32  ;;  %11088 = vmatprep.subr.mxu0 %v14000_v0  ;;  %v106_v25 = vmul.f32 0.70710677, %v42_v21  ;;  %v171_v26 = vld [vmem:[%s13996_s1 + $0xe8] sm:$0xff]  ;;  %v44_v27 = vld [vmem:[%s13997_s0 + $0xf0] sm:$0xff]  ;;  %v107_v29 = vmul.f32 0.70710677, %v43_v24 }
  0x18   :  { %11084 = vmatpush3.xpose.msk.msra.mxu1 %vm206_vm0, %v153_v35  ;;  %11085 = vmatprep.mubr.msk.f32.mxu1 %vm11927_vm1, %v14000_v0  ;;  %v172_v28 = vld [vmem:[%s13996_s1 + $0xf0] sm:$0xff]  ;;  %v45_v30 = vld [vmem:[%s13997_s0 + $0xf8] sm:$0xff]  ;;  %v108_v31 = vmul.f32 0.70710677, %v44_v27  ;;  %v46_v33 = vld [vmem:[%s13997_s0 + $0x100] sm:$0xff] }
  0x19   :  { %11081 = vmatmul.mubr.msk.f32.vlgmr.msra.gmra.mrb[10].mxu0 %vm206_vm0, %v88_v34  ;;  %11093 = vmatprep.subr.mxu1 %v14000_v0  ;;  %v173_v32 = vld [vmem:[%s13996_s1 + $0xf8] sm:$0xff]  ;;  %v174_v34 = vld [vmem:[%s13996_s1 + $0x100] sm:$0xff]  ;;  %v109_v35 = vmul.f32 0.70710677, %v45_v30  ;;  %v47_v36 = vld [vmem:[%s13997_s0 + $0x108] sm:$0xff] }
  0x1a   :  { %11089 = vmatpush3.xpose.msk.msra.mxu0 %vm206_vm0, %v154_v37  ;;  %11090 = vmatprep.mubr.msk.f32.mxu0 %vm11927_vm1, %v14000_v0  ;;  %v110_v37 = vmul.f32 0.70710677, %v46_v33  ;;  %v48_v39 = vld [vmem:[%s13997_s0 + $0x110] sm:$0xff]  ;;  %v49_v42 = vld [vmem:[%s13997_s0 + $0x118] sm:$0xff]  ;;  %v50_v45 = vld [vmem:[%s13997_s0 + $0x120] sm:$0xff] }
  0x1b   :  { %11086 = vmatmul.mubr.msk.f32.vlgmr.msra.gmra.mrb[10].mxu1 %vm206_vm0, %v89_v38  ;;  %11098 = vmatprep.subr.mxu0 %v14000_v0  ;;  %v175_v38 = vld [vmem:[%s13996_s1 + $0x108] sm:$0xff]  ;;  %v52_v51 = vld [vmem:[%s13997_s0 + $0x130] sm:$0xff]  ;;  %v53_v54 = vld [vmem:[%s13997_s0 + $0x138] sm:$0xff] }
  0x1c   :  { %11094 = vmatpush3.xpose.msk.msra.mxu1 %vm206_vm0, %v155_v41  ;;  %11095 = vmatprep.mubr.msk.f32.mxu1 %vm11927_vm1, %v14000_v0  ;;  %v111_v41 = vmul.f32 0.70710677, %v47_v36  ;;  %v51_v48 = vld [vmem:[%s13997_s0 + $0x128] sm:$0xff]  ;;  %v54_v57 = vld [vmem:[%s13997_s0 + $0x140] sm:$0xff]  ;;  %v56_v63 = vld [vmem:[%s13997_s0 + $0x150] sm:$0xff] }
  0x1d   :  { %11091 = vmatmul.mubr.msk.f32.vlgmr.msra.gmra.mrb[12].mxu0 %vm206_vm0, %v90_v40  ;;  %11103 = vmatprep.subr.mxu1 %v14000_v0  ;;  %v176_v40 = vld [vmem:[%s13996_s1 + $0x110] sm:$0xff]  ;;  %v55_v60 = vld [vmem:[%s13997_s0 + $0x148] sm:$0xff]  ;;  %v57_v3 = vld [vmem:[%s13997_s0 + $0x158] sm:$0xff] }
  0x1e   :  { %11099 = vmatpush3.xpose.msk.msra.mxu0 %vm206_vm0, %v156_v43  ;;  %11100 = vmatprep.mubr.msk.f32.mxu0 %vm11927_vm1, %v14000_v0  ;;  %v112_v43 = vmul.f32 0.70710677, %v48_v39  ;;  %v58_v6 = vld [vmem:[%s13997_s0 + $0x160] sm:$0xff]  ;;  %v59_v9 = vld [vmem:[%s13997_s0 + $0x168] sm:$0xff]  ;;  %v60_v12 = vld [vmem:[%s13997_s0 + $0x170] sm:$0xff] }
  0x1f   :  { %11096 = vmatmul.mubr.msk.f32.vlgmr.msra.gmra.mrb[12].mxu1 %vm206_vm0, %v91_v44  ;;  %11108 = vmatprep.subr.mxu0 %v14000_v0  ;;  %v177_v44 = vld [vmem:[%s13996_s1 + $0x118] sm:$0xff]  ;;  %v62_v18 = vld [vmem:[%s13997_s0 + $0x180] sm:$0xff]  ;;  %v63_v21 = vld [vmem:[%s13997_s0 + $0x188] sm:$0xff] }
  0x20   :  { %11104 = vmatpush3.xpose.msk.msra.mxu1 %vm206_vm0, %v157_v47  ;;  %11105 = vmatprep.mubr.msk.f32.mxu1 %vm11927_vm1, %v14000_v0  ;;  %v113_v47 = vmul.f32 0.70710677, %v49_v42  ;;  %v61_v15 = vld [vmem:[%s13997_s0 + $0x178] sm:$0xff]  ;;  %v64_v24 = vld [vmem:[%s13997_s0 + $0x190] sm:$0xff]  ;;  %v66_v30 = vld [vmem:[%s13997_s0 + $0x1a0] sm:$0xff] }
  0x21   :  { %11101 = vmatmul.mubr.msk.f32.vlgmr.msra.gmra.mrb[14].mxu0 %vm206_vm0, %v92_v46  ;;  %11113 = vmatprep.subr.mxu1 %v14000_v0  ;;  %v178_v46 = vld [vmem:[%s13996_s1 + $0x120] sm:$0xff]  ;;  %v65_v27 = vld [vmem:[%s13997_s0 + $0x198] sm:$0xff]  ;;  %v67_v33 = vld [vmem:[%s13997_s0 + $0x1a8] sm:$0xff] }
  0x22   :  { %11109 = vmatpush3.xpose.msk.msra.mxu0 %vm206_vm0, %v158_v49  ;;  %11110 = vmatprep.mubr.msk.f32.mxu0 %vm11927_vm1, %v14000_v0  ;;  %v114_v49 = vmul.f32 0.70710677, %v50_v45  ;;  %v68_v36 = vld [vmem:[%s13997_s0 + $0x1b0] sm:$0xff]  ;;  %v69_v39 = vld [vmem:[%s13997_s0 + $0x1b8] sm:$0xff]  ;;  %v70_v42 = vld [vmem:[%s13997_s0 + $0x1c0] sm:$0xff] }
  0x23   :  { %11106 = vmatmul.mubr.msk.f32.vlgmr.msra.gmra.mrb[14].mxu1 %vm206_vm0, %v93_v50  ;;  %11118 = vmatprep.subr.mxu0 %v14000_v0  ;;  %v179_v50 = vld [vmem:[%s13996_s1 + $0x128] sm:$0xff] }
  0x24   :  { %11114 = vmatpush3.xpose.msk.msra.mxu1 %vm206_vm0, %v159_v53  ;;  %11115 = vmatprep.mubr.msk.f32.mxu1 %vm11927_vm1, %v14000_v0  ;;  %v115_v53 = vmul.f32 0.70710677, %v51_v48  ;;  %v71_v45 = vld [vmem:[%s13997_s0 + $0x1c8] sm:$0xff]  ;;  %v72_v48 = vld [vmem:[%s13997_s0 + $0x1d0] sm:$0xff] }
  0x25   :  { %11111 = vmatmul.mubr.msk.f32.vlgmr.msra.gmra.mrb[16].mxu0 %vm206_vm0, %v94_v52  ;;  %11123 = vmatprep.subr.mxu1 %v14000_v0  ;;  %v180_v52 = vld [vmem:[%s13996_s1 + $0x130] sm:$0xff] }
  0x26   :  { %11119 = vmatpush3.xpose.msk.msra.mxu0 %vm206_vm0, %v160_v55  ;;  %11120 = vmatprep.mubr.msk.f32.mxu0 %vm11927_vm1, %v14000_v0  ;;  %v116_v55 = vmul.f32 0.70710677, %v52_v51  ;;  %v73_v51 = vld [vmem:[%s13997_s0 + $0x1d8] sm:$0xff] }
  0x27   :  { %11116 = vmatmul.mubr.msk.f32.vlgmr.msra.gmra.mrb[16].mxu1 %vm206_vm0, %v95_v56  ;;  %11128 = vmatprep.subr.mxu0 %v14000_v0  ;;  %v181_v56 = vld [vmem:[%s13996_s1 + $0x138] sm:$0xff] }
  0x28   :  { %11124 = vmatpush3.xpose.msk.msra.mxu1 %vm206_vm0, %v161_v59  ;;  %11125 = vmatprep.mubr.msk.f32.mxu1 %vm11927_vm1, %v14000_v0  ;;  %v117_v59 = vmul.f32 0.70710677, %v53_v54  ;;  %v74_v54 = vld [vmem:[%s13997_s0 + $0x1e0] sm:$0xff] }
  0x29   :  { %11121 = vmatmul.mubr.msk.f32.vlgmr.msra.gmra.mrb[18].mxu0 %vm206_vm0, %v96_v58  ;;  %11133 = vmatprep.subr.mxu1 %v14000_v0  ;;  %v182_v58 = vld [vmem:[%s13996_s1 + $0x140] sm:$0xff] }
  0x2a   :  { %11129 = vmatpush3.xpose.msk.msra.mxu0 %vm206_vm0, %v162_v61  ;;  %11130 = vmatprep.mubr.msk.f32.mxu0 %vm11927_vm1, %v14000_v0  ;;  %v118_v61 = vmul.f32 0.70710677, %v54_v57  ;;  %v75_v57 = vld [vmem:[%s13997_s0 + $0x1e8] sm:$0xff] }
  0x2b   :  { %11126 = vmatmul.mubr.msk.f32.vlgmr.msra.gmra.mrb[18].mxu1 %vm206_vm0, %v97_v62  ;;  %11138 = vmatprep.subr.mxu0 %v14000_v0  ;;  %v183_v62 = vld [vmem:[%s13996_s1 + $0x148] sm:$0xff] }
  0x2c   :  { %11134 = vmatpush3.xpose.msk.msra.mxu1 %vm206_vm0, %v163_v2  ;;  %11135 = vmatprep.mubr.msk.f32.mxu1 %vm11927_vm1, %v14000_v0  ;;  %v119_v2 = vmul.f32 0.70710677, %v55_v60  ;;  %v76_v60 = vld [vmem:[%s13997_s0 + $0x1f0] sm:$0xff] }
  0x2d   :  { %11131 = vmatmul.mubr.msk.f32.vlgmr.msra.gmra.mrb[20].mxu0 %vm206_vm0, %v98_v1  ;;  %11143 = vmatprep.subr.mxu1 %v14000_v0  ;;  %v184_v1 = vld [vmem:[%s13996_s1 + $0x150] sm:$0xff] }
  0x2e   :  { %11139 = vmatpush3.xpose.msk.msra.mxu0 %vm206_vm0, %v164_v4  ;;  %11140 = vmatprep.mubr.msk.f32.mxu0 %vm11927_vm1, %v14000_v0  ;;  %v120_v4 = vmul.f32 0.70710677, %v56_v63  ;;  %v77_v63 = vld [vmem:[%s13997_s0 + $0x1f8] sm:$0xff] }
  0x2f   :  { %11136 = vmatmul.mubr.msk.f32.vlgmr.msra.gmra.mrb[20].mxu1 %vm206_vm0, %v99_v5  ;;  %11148 = vmatprep.subr.mxu0 %v14000_v0  ;;  %v185_v5 = vld [vmem:[%s13996_s1 + $0x158] sm:$0xff] }
  0x30   :  { %11144 = vmatpush3.xpose.msk.msra.mxu1 %vm206_vm0, %v165_v8  ;;  %11145 = vmatprep.mubr.msk.f32.mxu1 %vm11927_vm1, %v14000_v0  ;;  %v121_v8 = vmul.f32 0.70710677, %v57_v3  ;;  %v141_v3 = vmul.f32 0.70710677, %v77_v63 }
  0x31   :  { %11141 = vmatmul.mubr.msk.f32.vlgmr.msra.gmra.mrb[22].mxu0 %vm206_vm0, %v100_v7  ;;  %11153 = vmatprep.subr.mxu1 %v14000_v0  ;;  %v186_v7 = vld [vmem:[%s13996_s1 + $0x160] sm:$0xff] }
  0x32   :  { %11149 = vmatpush3.xpose.msk.msra.mxu0 %vm206_vm0, %v166_v10  ;;  %11150 = vmatprep.mubr.msk.f32.mxu0 %vm11927_vm1, %v14000_v0  ;;  %v122_v10 = vmul.f32 0.70710677, %v58_v6 }
  0x33   :  { %11146 = vmatmul.mubr.msk.f32.vlgmr.msra.gmra.mrb[22].mxu1 %vm206_vm0, %v101_v11  ;;  %11158 = vmatprep.subr.mxu0 %v14000_v0  ;;  %v187_v11 = vld [vmem:[%s13996_s1 + $0x168] sm:$0xff] }
  0x34   :  { %11154 = vmatpush3.xpose.msk.msra.mxu1 %vm206_vm0, %v167_v14  ;;  %11155 = vmatprep.mubr.msk.f32.mxu1 %vm11927_vm1, %v14000_v0  ;;  %v123_v14 = vmul.f32 0.70710677, %v59_v9 }
  0x35   :  { %11151 = vmatmul.mubr.msk.f32.vlgmr.msra.gmra.mrb[24].mxu0 %vm206_vm0, %v102_v13  ;;  %11163 = vmatprep.subr.mxu1 %v14000_v0  ;;  %v188_v13 = vld [vmem:[%s13996_s1 + $0x170] sm:$0xff] }
  0x36   :  { %11159 = vmatpush3.xpose.msk.msra.mxu0 %vm206_vm0, %v168_v16  ;;  %11160 = vmatprep.mubr.msk.f32.mxu0 %vm11927_vm1, %v14000_v0  ;;  %v124_v16 = vmul.f32 0.70710677, %v60_v12 }
  0x37   :  { %11156 = vmatmul.mubr.msk.f32.vlgmr.msra.gmra.mrb[24].mxu1 %vm206_vm0, %v103_v17  ;;  %11168 = vmatprep.subr.mxu0 %v14000_v0  ;;  %v189_v17 = vld [vmem:[%s13996_s1 + $0x178] sm:$0xff] }
  0x38   :  { %11164 = vmatpush3.xpose.msk.msra.mxu1 %vm206_vm0, %v169_v20  ;;  %11165 = vmatprep.mubr.msk.f32.mxu1 %vm11927_vm1, %v14000_v0  ;;  %v125_v20 = vmul.f32 0.70710677, %v61_v15 }
  0x39   :  { %11161 = vmatmul.mubr.msk.f32.vlgmr.msra.gmra.mrb[26].mxu0 %vm206_vm0, %v104_v19  ;;  %11173 = vmatprep.subr.mxu1 %v14000_v0  ;;  %v190_v19 = vld [vmem:[%s13996_s1 + $0x180] sm:$0xff] }
  0x3a   :  { %11169 = vmatpush3.xpose.msk.msra.mxu0 %vm206_vm0, %v170_v22  ;;  %11170 = vmatprep.mubr.msk.f32.mxu0 %vm11927_vm1, %v14000_v0  ;;  %v126_v22 = vmul.f32 0.70710677, %v62_v18 }
  0x3b   :  { %11166 = vmatmul.mubr.msk.f32.vlgmr.msra.gmra.mrb[26].mxu1 %vm206_vm0, %v105_v23  ;;  %11178 = vmatprep.subr.mxu0 %v14000_v0  ;;  %v191_v23 = vld [vmem:[%s13996_s1 + $0x188] sm:$0xff] }
  0x3c   :  { %11174 = vmatpush3.xpose.msk.msra.mxu1 %vm206_vm0, %v171_v26  ;;  %11175 = vmatprep.mubr.msk.f32.mxu1 %vm11927_vm1, %v14000_v0  ;;  %v127_v26 = vmul.f32 0.70710677, %v63_v21 }
  0x3d   :  { %11171 = vmatmul.mubr.msk.f32.vlgmr.msra.gmra.mrb[28].mxu0 %vm206_vm0, %v106_v25  ;;  %11183 = vmatprep.subr.mxu1 %v14000_v0  ;;  %v192_v25 = vld [vmem:[%s13996_s1 + $0x190] sm:$0xff] }
  0x3e   :  { %11179 = vmatpush3.xpose.msk.msra.mxu0 %vm206_vm0, %v172_v28  ;;  %11180 = vmatprep.mubr.msk.f32.mxu0 %vm11927_vm1, %v14000_v0  ;;  %v128_v28 = vmul.f32 0.70710677, %v64_v24 }
  0x3f   :  { %11176 = vmatmul.mubr.msk.f32.vlgmr.msra.gmra.mrb[28].mxu1 %vm206_vm0, %v107_v29  ;;  %11188 = vmatprep.subr.mxu0 %v14000_v0  ;;  %v193_v29 = vld [vmem:[%s13996_s1 + $0x198] sm:$0xff] }
  0x40   :  { %11184 = vmatpush3.xpose.msk.msra.mxu1 %vm206_vm0, %v173_v32  ;;  %11185 = vmatprep.mubr.msk.f32.mxu1 %vm11927_vm1, %v14000_v0  ;;  %v129_v32 = vmul.f32 0.70710677, %v65_v27 }
  0x41   :  { %11181 = vmatmul.mubr.msk.f32.vlgmr.msra.gmra.mrb[30].mxu0 %vm206_vm0, %v108_v31  ;;  %11193 = vmatprep.subr.mxu1 %v14000_v0  ;;  %v194_v31 = vld [vmem:[%s13996_s1 + $0x1a0] sm:$0xff] }
  0x42   :  { %11189 = vmatpush3.xpose.msk.msra.mxu0 %vm206_vm0, %v174_v34  ;;  %11190 = vmatprep.mubr.msk.f32.mxu0 %vm11927_vm1, %v14000_v0  ;;  %v130_v34 = vmul.f32 0.70710677, %v66_v30 }
  0x43   :  { %11186 = vmatmul.mubr.msk.f32.vlgmr.msra.gmra.mrb[30].mxu1 %vm206_vm0, %v109_v35  ;;  %11198 = vmatprep.subr.mxu0 %v14000_v0  ;;  %v195_v35 = vld [vmem:[%s13996_s1 + $0x1a8] sm:$0xff] }
  0x44   :  { %11194 = vmatpush3.xpose.msk.msra.mxu1 %vm206_vm0, %v175_v38  ;;  %11195 = vmatprep.mubr.msk.f32.mxu1 %vm11927_vm1, %v14000_v0  ;;  %v131_v38 = vmul.f32 0.70710677, %v67_v33 }
  0x45   :  { %11191 = vmatmul.mubr.msk.f32.vlgmr.msra.gmra.mrb[32].mxu0 %vm206_vm0, %v110_v37  ;;  %11203 = vmatprep.subr.mxu1 %v14000_v0  ;;  %v196_v37 = vld [vmem:[%s13996_s1 + $0x1b0] sm:$0xff] }
  0x46   :  { %11199 = vmatpush3.xpose.msk.msra.mxu0 %vm206_vm0, %v176_v40  ;;  %11200 = vmatprep.mubr.msk.f32.mxu0 %vm11927_vm1, %v14000_v0  ;;  %v132_v40 = vmul.f32 0.70710677, %v68_v36 }
  0x47   :  { %11196 = vmatmul.mubr.msk.f32.vlgmr.msra.gmra.mrb[32].mxu1 %vm206_vm0, %v111_v41  ;;  %11208 = vmatprep.subr.mxu0 %v14000_v0  ;;  %v197_v41 = vld [vmem:[%s13996_s1 + $0x1b8] sm:$0xff] }
  0x48   :  { %11204 = vmatpush3.xpose.msk.msra.mxu1 %vm206_vm0, %v177_v44  ;;  %11205 = vmatprep.mubr.msk.f32.mxu1 %vm11927_vm1, %v14000_v0  ;;  %v133_v44 = vmul.f32 0.70710677, %v69_v39 }
  0x49   :  { %11201 = vmatmul.mubr.msk.f32.vlgmr.msra.gmra.mrb[34].mxu0 %vm206_vm0, %v112_v43  ;;  %11213 = vmatprep.subr.mxu1 %v14000_v0  ;;  %v198_v43 = vld [vmem:[%s13996_s1 + $0x1c0] sm:$0xff] }
  0x4a   :  { %11209 = vmatpush3.xpose.msk.msra.mxu0 %vm206_vm0, %v178_v46  ;;  %11210 = vmatprep.mubr.msk.f32.mxu0 %vm11927_vm1, %v14000_v0  ;;  %v134_v46 = vmul.f32 0.70710677, %v70_v42 }
  0x4b   :  { %11206 = vmatmul.mubr.msk.f32.vlgmr.msra.gmra.mrb[34].mxu1 %vm206_vm0, %v113_v47  ;;  %11218 = vmatprep.subr.mxu0 %v14000_v0  ;;  %v199_v47 = vld [vmem:[%s13996_s1 + $0x1c8] sm:$0xff] }
  0x4c   :  { %11214 = vmatpush3.xpose.msk.msra.mxu1 %vm206_vm0, %v179_v50  ;;  %11215 = vmatprep.mubr.msk.f32.mxu1 %vm11927_vm1, %v14000_v0  ;;  %v135_v50 = vmul.f32 0.70710677, %v71_v45 }
  0x4d   :  { %11211 = vmatmul.mubr.msk.f32.vlgmr.msra.gmra.mrb[36].mxu0 %vm206_vm0, %v114_v49  ;;  %11223 = vmatprep.subr.mxu1 %v14000_v0  ;;  %v200_v49 = vld [vmem:[%s13996_s1 + $0x1d0] sm:$0xff] }
  0x4e   :  { %11219 = vmatpush3.xpose.msk.msra.mxu0 %vm206_vm0, %v180_v52  ;;  %11220 = vmatprep.mubr.msk.f32.mxu0 %vm11927_vm1, %v14000_v0  ;;  %v136_v52 = vmul.f32 0.70710677, %v72_v48 }
  0x4f   :  { %11216 = vmatmul.mubr.msk.f32.vlgmr.msra.gmra.mrb[36].mxu1 %vm206_vm0, %v115_v53  ;;  %11228 = vmatprep.subr.mxu0 %v14000_v0  ;;  %v201_v53 = vld [vmem:[%s13996_s1 + $0x1d8] sm:$0xff] }
  0x50   :  { %11224 = vmatpush3.xpose.msk.msra.mxu1 %vm206_vm0, %v181_v56  ;;  %11225 = vmatprep.mubr.msk.f32.mxu1 %vm11927_vm1, %v14000_v0  ;;  %v137_v56 = vmul.f32 0.70710677, %v73_v51 }
  0x51   :  { %11221 = vmatmul.mubr.msk.f32.vlgmr.msra.gmra.mrb[38].mxu0 %vm206_vm0, %v116_v55  ;;  %11233 = vmatprep.subr.mxu1 %v14000_v0  ;;  %v202_v55 = vld [vmem:[%s13996_s1 + $0x1e0] sm:$0xff] }
  0x52   :  { %11229 = vmatpush3.xpose.msk.msra.mxu0 %vm206_vm0, %v182_v58  ;;  %11230 = vmatprep.mubr.msk.f32.mxu0 %vm11927_vm1, %v14000_v0  ;;  %v138_v58 = vmul.f32 0.70710677, %v74_v54 }
  0x53   :  { %11226 = vmatmul.mubr.msk.f32.vlgmr.msra.gmra.mrb[38].mxu1 %vm206_vm0, %v117_v59  ;;  %11238 = vmatprep.subr.mxu0 %v14000_v0  ;;  %v203_v59 = vld [vmem:[%s13996_s1 + $0x1e8] sm:$0xff] }
  0x54   :  { %11234 = vmatpush3.xpose.msk.msra.mxu1 %vm206_vm0, %v183_v62  ;;  %11235 = vmatprep.mubr.msk.f32.mxu1 %vm11927_vm1, %v14000_v0  ;;  %v139_v62 = vmul.f32 0.70710677, %v75_v57 }
  0x55   :  { %11231 = vmatmul.mubr.msk.f32.vlgmr.msra.gmra.mrb[40].mxu0 %vm206_vm0, %v118_v61  ;;  %11243 = vmatprep.subr.mxu1 %v14000_v0  ;;  %v204_v61 = vld [vmem:[%s13996_s1 + $0x1f0] sm:$0xff] }
  0x56   :  { %11239 = vmatpush3.xpose.msk.msra.mxu0 %vm206_vm0, %v184_v1  ;;  %11240 = vmatprep.mubr.msk.f32.mxu0 %vm11927_vm1, %v14000_v0  ;;  %v140_v1 = vmul.f32 0.70710677, %v76_v60 }
  0x57   :  { %11236 = vmatmul.mubr.msk.f32.vlgmr.msra.gmra.mrb[40].mxu1 %vm206_vm0, %v119_v2  ;;  %11248 = vmatprep.subr.mxu0 %v14000_v0  ;;  %v205_v2 = vld [vmem:[%s13996_s1 + $0x1f8] sm:$0xff] }
  0x58   :  { %11244 = vmatpush3.xpose.msk.msra.mxu1 %vm206_vm0, %v185_v5  ;;  %11245 = vmatprep.mubr.msk.f32.mxu1 %vm11927_vm1, %v14000_v0 }
  0x59   :  { %11241 = vmatmul.mubr.msk.f32.vlgmr.msra.gmra.mrb[42].mxu0 %vm206_vm0, %v120_v4  ;;  %11253 = vmatprep.subr.mxu1 %v14000_v0 }
  0x5a   :  { %11249 = vmatpush3.xpose.msk.msra.mxu0 %vm206_vm0, %v186_v7  ;;  %11250 = vmatprep.mubr.msk.f32.mxu0 %vm11927_vm1, %v14000_v0 }
  0x5b   :  { %11246 = vmatmul.mubr.msk.f32.vlgmr.msra.gmra.mrb[42].mxu1 %vm206_vm0, %v121_v8  ;;  %11258 = vmatprep.subr.mxu0 %v14000_v0 }
  0x5c   :  { %11254 = vmatpush3.xpose.msk.msra.mxu1 %vm206_vm0, %v187_v11  ;;  %11255 = vmatprep.mubr.msk.f32.mxu1 %vm11927_vm1, %v14000_v0 }
  0x5d   :  { %11251 = vmatmul.mubr.msk.f32.vlgmr.msra.gmra.mrb[44].mxu0 %vm206_vm0, %v122_v10  ;;  %11263 = vmatprep.subr.mxu1 %v14000_v0 }
  0x5e   :  { %11259 = vmatpush3.xpose.msk.msra.mxu0 %vm206_vm0, %v188_v13  ;;  %11260 = vmatprep.mubr.msk.f32.mxu0 %vm11927_vm1, %v14000_v0 }
  0x5f   :  { %11256 = vmatmul.mubr.msk.f32.vlgmr.msra.gmra.mrb[44].mxu1 %vm206_vm0, %v123_v14  ;;  %11268 = vmatprep.subr.mxu0 %v14000_v0 }
  0x60   :  { %11264 = vmatpush3.xpose.msk.msra.mxu1 %vm206_vm0, %v189_v17  ;;  %11265 = vmatprep.mubr.msk.f32.mxu1 %vm11927_vm1, %v14000_v0 }
  0x61   :  { %11261 = vmatmul.mubr.msk.f32.vlgmr.msra.gmra.mrb[46].mxu0 %vm206_vm0, %v124_v16  ;;  %11273 = vmatprep.subr.mxu1 %v14000_v0 }
  0x62   :  { %11269 = vmatpush3.xpose.msk.msra.mxu0 %vm206_vm0, %v190_v19  ;;  %11270 = vmatprep.mubr.msk.f32.mxu0 %vm11927_vm1, %v14000_v0 }
  0x63   :  { %11266 = vmatmul.mubr.msk.f32.vlgmr.msra.gmra.mrb[46].mxu1 %vm206_vm0, %v125_v20  ;;  %11278 = vmatprep.subr.mxu0 %v14000_v0 }
  0x64   :  { %11274 = vmatpush3.xpose.msk.msra.mxu1 %vm206_vm0, %v191_v23  ;;  %11275 = vmatprep.mubr.msk.f32.mxu1 %vm11927_vm1, %v14000_v0 }
  0x65   :  { %11271 = vmatmul.mubr.msk.f32.vlgmr.msra.gmra.mrb[48].mxu0 %vm206_vm0, %v126_v22  ;;  %11283 = vmatprep.subr.mxu1 %v14000_v0 }
  0x66   :  { %11279 = vmatpush3.xpose.msk.msra.mxu0 %vm206_vm0, %v192_v25  ;;  %11280 = vmatprep.mubr.msk.f32.mxu0 %vm11927_vm1, %v14000_v0 }
  0x67   :  { %11276 = vmatmul.mubr.msk.f32.vlgmr.msra.gmra.mrb[48].mxu1 %vm206_vm0, %v127_v26  ;;  %11288 = vmatprep.subr.mxu0 %v14000_v0 }
  0x68   :  { %11284 = vmatpush3.xpose.msk.msra.mxu1 %vm206_vm0, %v193_v29  ;;  %11285 = vmatprep.mubr.msk.f32.mxu1 %vm11927_vm1, %v14000_v0 }
  0x69   :  { %11281 = vmatmul.mubr.msk.f32.vlgmr.msra.gmra.mrb[50].mxu0 %vm206_vm0, %v128_v28  ;;  %11293 = vmatprep.subr.mxu1 %v14000_v0 }
  0x6a   :  { %11289 = vmatpush3.xpose.msk.msra.mxu0 %vm206_vm0, %v194_v31  ;;  %11290 = vmatprep.mubr.msk.f32.mxu0 %vm11927_vm1, %v14000_v0 }
  0x6b   :  { %11286 = vmatmul.mubr.msk.f32.vlgmr.msra.gmra.mrb[50].mxu1 %vm206_vm0, %v129_v32  ;;  %11298 = vmatprep.subr.mxu0 %v14000_v0 }
  0x6c   :  { %11294 = vmatpush3.xpose.msk.msra.mxu1 %vm206_vm0, %v195_v35  ;;  %11295 = vmatprep.mubr.msk.f32.mxu1 %vm11927_vm1, %v14000_v0 }
  0x6d   :  { %11291 = vmatmul.mubr.msk.f32.vlgmr.msra.gmra.mrb[52].mxu0 %vm206_vm0, %v130_v34  ;;  %11303 = vmatprep.subr.mxu1 %v14000_v0 }
  0x6e   :  { %11299 = vmatpush3.xpose.msk.msra.mxu0 %vm206_vm0, %v196_v37  ;;  %11300 = vmatprep.mubr.msk.f32.mxu0 %vm11927_vm1, %v14000_v0 }
  0x6f   :  { %11296 = vmatmul.mubr.msk.f32.vlgmr.msra.gmra.mrb[52].mxu1 %vm206_vm0, %v131_v38  ;;  %11308 = vmatprep.subr.mxu0 %v14000_v0 }
  0x70   :  { %11304 = vmatpush3.xpose.msk.msra.mxu1 %vm206_vm0, %v197_v41  ;;  %11305 = vmatprep.mubr.msk.f32.mxu1 %vm11927_vm1, %v14000_v0 }
  0x71   :  { %11301 = vmatmul.mubr.msk.f32.vlgmr.msra.gmra.mrb[54].mxu0 %vm206_vm0, %v132_v40  ;;  %11313 = vmatprep.subr.mxu1 %v14000_v0 }
  0x72   :  { %11309 = vmatpush3.xpose.msk.msra.mxu0 %vm206_vm0, %v198_v43  ;;  %11310 = vmatprep.mubr.msk.f32.mxu0 %vm11927_vm1, %v14000_v0 }
  0x73   :  { %11306 = vmatmul.mubr.msk.f32.vlgmr.msra.gmra.mrb[54].mxu1 %vm206_vm0, %v133_v44  ;;  %11318 = vmatprep.subr.mxu0 %v14000_v0 }
  0x74   :  { %11314 = vmatpush3.xpose.msk.msra.mxu1 %vm206_vm0, %v199_v47  ;;  %11315 = vmatprep.mubr.msk.f32.mxu1 %vm11927_vm1, %v14000_v0 }
  0x75   :  { %11311 = vmatmul.mubr.msk.f32.vlgmr.msra.gmra.mrb[56].mxu0 %vm206_vm0, %v134_v46  ;;  %11323 = vmatprep.subr.mxu1 %v14000_v0 }
  0x76   :  { %11319 = vmatpush3.xpose.msk.msra.mxu0 %vm206_vm0, %v200_v49  ;;  %11320 = vmatprep.mubr.msk.f32.mxu0 %vm11927_vm1, %v14000_v0 }
  0x77   :  { %11316 = vmatmul.mubr.msk.f32.vlgmr.msra.gmra.mrb[56].mxu1 %vm206_vm0, %v135_v50  ;;  %11328 = vmatprep.subr.mxu0 %v14000_v0 }
  0x78   :  { %11324 = vmatpush3.xpose.msk.msra.mxu1 %vm206_vm0, %v201_v53  ;;  %11325 = vmatprep.mubr.msk.f32.mxu1 %vm11927_vm1, %v14000_v0 }
  0x79   :  { %11321 = vmatmul.mubr.msk.f32.vlgmr.msra.gmra.mrb[58].mxu0 %vm206_vm0, %v136_v52  ;;  %11333 = vmatprep.subr.mxu1 %v14000_v0 }
  0x7a   :  { %11329 = vmatpush3.xpose.msk.msra.mxu0 %vm206_vm0, %v202_v55  ;;  %11330 = vmatprep.mubr.msk.f32.mxu0 %vm11927_vm1, %v14000_v0 }
  0x7b   :  { %11326 = vmatmul.mubr.msk.f32.vlgmr.msra.gmra.mrb[58].mxu1 %vm206_vm0, %v137_v56  ;;  %11338 = vmatprep.subr.mxu0 %v14000_v0 }
  0x7c   :  { %11334 = vmatpush3.xpose.msk.msra.mxu1 %vm206_vm0, %v203_v59  ;;  %11335 = vmatprep.mubr.msk.f32.mxu1 %vm11927_vm1, %v14000_v0 }
  0x7d   :  { %11331 = vmatmul.mubr.msk.f32.vlgmr.msra.gmra.mrb[60].mxu0 %vm206_vm0, %v138_v58  ;;  %11343 = vmatprep.subr.mxu1 %v14000_v0 }
  0x7e   :  { %11339 = vmatpush3.xpose.msk.msra.mxu0 %vm206_vm0, %v204_v61  ;;  %11340 = vmatprep.mubr.msk.f32.mxu0 %vm11927_vm1, %v14000_v0 }
  0x7f   :  { %11336 = vmatmul.mubr.msk.f32.vlgmr.msra.gmra.mrb[60].mxu1 %vm206_vm0, %v139_v62  ;;  %11348 = vmatprep.subr.mxu0 %v14000_v0 }
  0x80   :  { %11344 = vmatpush3.xpose.msk.msra.mxu1 %vm206_vm0, %v205_v2  ;;  %11345 = vmatprep.mubr.msk.f32.mxu1 %vm11927_vm1, %v14000_v0 }
  0x81   :  { %11341 = vmatmul.mubr.msk.f32.vlgmr.msra.gmra.mrb[62].mxu0 %vm206_vm0, %v140_v1  ;;  %11353 = vmatprep.subr.mxu1 %v14000_v0 }
  0x82   :  { %11350 = vmatprep.mubr.msk.f32.mxu0 %vm11927_vm1, %v14000_v0 }
  0x83   :  { %11346 = vmatmul.mubr.msk.f32.vlgmr.msra.gmra.mrb[62].mxu1 %vm206_vm0, %v141_v3 }
  0x84   :  { %11355 = vmatprep.mubr.msk.f32.mxu1 %vm11927_vm1, %v14000_v0 }
  0xd8   :  { %v12658_v4 = vpop.f32.mrb[0].mxu0 }
  0xd9   :  { %v11032_v5 = vpop.f32.mrb[1].mxu0  ;;  %v5072_v6 = vsel %vm5071_vm2, %v12658_v4, -inf }
  0xda   :  { %5073 = vmax.xlane.f32.xlu0 %v5072_v6  ;;  %v12662_v7 = vpop.f32.mrb[0].mxu1 }
  0xdb   :  { %v11037_v8 = vpop.f32.mrb[1].mxu1  ;;  %v5075_v9 = vsel %vm5071_vm2, %v12662_v7, -inf }
  0xdc   :  { %v12666_v10 = vpop.f32.mrb[2].mxu0 }
  0xdd   :  { %v11042_v11 = vpop.f32.mrb[3].mxu0  ;;  %v5078_v12 = vsel %vm5071_vm2, %v12666_v10, -inf }
  0xde   :  { %5076 = vmax.xlane.f32.xlu0 %v5075_v9  ;;  %5079 = vmax.xlane.f32.xlu1 %v5078_v12  ;;  %v12670_v13 = vpop.f32.mrb[2].mxu1 }
  0xdf   :  { %v11047_v14 = vpop.f32.mrb[3].mxu1  ;;  %v5081_v15 = vsel %vm5071_vm2, %v12670_v13, -inf }
  0xe0   :  { %v12674_v16 = vpop.f32.mrb[4].mxu0 }
  0xe1   :  { %v5084_v17 = vsel %vm5071_vm2, %v12674_v16, -inf  ;;  %v11052_v18 = vpop.f32.mrb[5].mxu0 }
  0xe2   :  { %5082 = vmax.xlane.f32.xlu1 %v5081_v15  ;;  %5085 = vmax.xlane.f32.xlu0 %v5084_v17  ;;  %v12678_v19 = vpop.f32.mrb[4].mxu1 }
  0xe3   :  { %v11057_v20 = vpop.f32.mrb[5].mxu1  ;;  %v5087_v21 = vsel %vm5071_vm2, %v12678_v19, -inf }
  0xe4   :  { %v12682_v22 = vpop.f32.mrb[6].mxu0 }
  0xe5   :  { %v5090_v23 = vsel %vm5071_vm2, %v12682_v22, -inf  ;;  %v11062_v24 = vpop.f32.mrb[7].mxu0 }
  0xe6   :  { %5088 = vmax.xlane.f32.xlu1 %v5087_v21  ;;  %5091 = vmax.xlane.f32.xlu0 %v5090_v23  ;;  %v12686_v25 = vpop.f32.mrb[6].mxu1 }
  0xe7   :  { %v11067_v26 = vpop.f32.mrb[7].mxu1  ;;  %v5093_v27 = vsel %vm5071_vm2, %v12686_v25, -inf }
  0xe8   :  { %v12690_v28 = vpop.f32.mrb[8].mxu0 }
  0xe9   :  { %v5096_v29 = vsel %vm5071_vm2, %v12690_v28, -inf  ;;  %v11072_v30 = vpop.f32.mrb[9].mxu0 }
  0xea   :  { %5094 = vmax.xlane.f32.xlu1 %v5093_v27  ;;  %5097 = vmax.xlane.f32.xlu0 %v5096_v29  ;;  %v12694_v31 = vpop.f32.mrb[8].mxu1 }
  0xeb   :  { %v11077_v32 = vpop.f32.mrb[9].mxu1  ;;  %v5099_v33 = vsel %vm5071_vm2, %v12694_v31, -inf }
  0xec   :  { %v12698_v34 = vpop.f32.mrb[10].mxu0 }
  0xed   :  { %v5102_v35 = vsel %vm5071_vm2, %v12698_v34, -inf  ;;  %v11082_v36 = vpop.f32.mrb[11].mxu0 }
  0xee   :  { %5100 = vmax.xlane.f32.xlu1 %v5099_v33  ;;  %5103 = vmax.xlane.f32.xlu0 %v5102_v35  ;;  %v12702_v37 = vpop.f32.mrb[10].mxu1 }
  0xef   :  { %v11087_v38 = vpop.f32.mrb[11].mxu1  ;;  %v5105_v39 = vsel %vm5071_vm2, %v12702_v37, -inf }
  0xf0   :  { %v12706_v40 = vpop.f32.mrb[12].mxu0 }
  0xf1   :  { %v5108_v41 = vsel %vm5071_vm2, %v12706_v40, -inf  ;;  %v11092_v42 = vpop.f32.mrb[13].mxu0 }
  0xf2   :  { %5106 = vmax.xlane.f32.xlu1 %v5105_v39  ;;  %5109 = vmax.xlane.f32.xlu0 %v5108_v41  ;;  %v12710_v43 = vpop.f32.mrb[12].mxu1 }
  0xf3   :  { %v11097_v44 = vpop.f32.mrb[13].mxu1  ;;  %v5111_v45 = vsel %vm5071_vm2, %v12710_v43, -inf }
  0xf4   :  { %v12714_v46 = vpop.f32.mrb[14].mxu0 }
  0xf5   :  { %v5114_v47 = vsel %vm5071_vm2, %v12714_v46, -inf  ;;  %v11102_v48 = vpop.f32.mrb[15].mxu0 }
  0xf6   :  { %5112 = vmax.xlane.f32.xlu1 %v5111_v45  ;;  %5115 = vmax.xlane.f32.xlu0 %v5114_v47  ;;  %v12718_v49 = vpop.f32.mrb[14].mxu1 }
  0xf7   :  { %v11107_v50 = vpop.f32.mrb[15].mxu1  ;;  %v5117_v51 = vsel %vm5071_vm2, %v12718_v49, -inf }
  0xf8   :  { %v12722_v52 = vpop.f32.mrb[16].mxu0 }
  0xf9   :  { %v5120_v53 = vsel %vm5071_vm2, %v12722_v52, -inf  ;;  %v11112_v54 = vpop.f32.mrb[17].mxu0 }
  0xfa   :  { %5118 = vmax.xlane.f32.xlu1 %v5117_v51  ;;  %5121 = vmax.xlane.f32.xlu0 %v5120_v53  ;;  %v12726_v55 = vpop.f32.mrb[16].mxu1 }
  0xfb   :  { %v11117_v56 = vpop.f32.mrb[17].mxu1  ;;  %v5123_v57 = vsel %vm5071_vm2, %v12726_v55, -inf }
  0xfc   :  { %v12730_v58 = vpop.f32.mrb[18].mxu0 }
  0xfd   :  { %v5126_v59 = vsel %vm5071_vm2, %v12730_v58, -inf  ;;  %v11122_v60 = vpop.f32.mrb[19].mxu0 }
  0xfe   :  { %5124 = vmax.xlane.f32.xlu1 %v5123_v57  ;;  %5127 = vmax.xlane.f32.xlu0 %v5126_v59  ;;  %v12734_v61 = vpop.f32.mrb[18].mxu1 }
  0xff   :  { %v11127_v62 = vpop.f32.mrb[19].mxu1  ;;  %v5129_v63 = vsel %vm5071_vm2, %v12734_v61, -inf }
 0x100   :  { %v12738_v1 = vpop.f32.mrb[20].mxu0 }
 0x101   :  { %v5132_v2 = vsel %vm5071_vm2, %v12738_v1, -inf  ;;  %v11132_v3 = vpop.f32.mrb[21].mxu0 }
 0x102   :  { %5130 = vmax.xlane.f32.xlu1 %v5129_v63  ;;  %5133 = vmax.xlane.f32.xlu0 %v5132_v2  ;;  %v12742_v5 = vpop.f32.mrb[20].mxu1 }
 0x103   :  { %v11137_v6 = vpop.f32.mrb[21].mxu1  ;;  %v5135_v8 = vsel %vm5071_vm2, %v12742_v5, -inf }
 0x104   :  { %v12746_v9 = vpop.f32.mrb[22].mxu0 }
 0x105   :  { %v5138_v11 = vsel %vm5071_vm2, %v12746_v9, -inf  ;;  %v11142_v12 = vpop.f32.mrb[23].mxu0 }
 0x106   :  { %5136 = vmax.xlane.f32.xlu1 %v5135_v8  ;;  %5139 = vmax.xlane.f32.xlu0 %v5138_v11  ;;  %v12750_v14 = vpop.f32.mrb[22].mxu1 }
 0x107   :  { %v11147_v15 = vpop.f32.mrb[23].mxu1  ;;  %v5141_v17 = vsel %vm5071_vm2, %v12750_v14, -inf }
 0x108   :  { %v12754_v18 = vpop.f32.mrb[24].mxu0 }
 0x109   :  { %v5144_v20 = vsel %vm5071_vm2, %v12754_v18, -inf  ;;  %v11152_v21 = vpop.f32.mrb[25].mxu0 }
 0x10a   :  { %5142 = vmax.xlane.f32.xlu1 %v5141_v17  ;;  %5145 = vmax.xlane.f32.xlu0 %v5144_v20  ;;  %v12758_v23 = vpop.f32.mrb[24].mxu1 }
 0x10b   :  { %v11157_v24 = vpop.f32.mrb[25].mxu1  ;;  %v5147_v26 = vsel %vm5071_vm2, %v12758_v23, -inf }
 0x10c   :  { %v12762_v27 = vpop.f32.mrb[26].mxu0 }
 0x10d   :  { %v5150_v29 = vsel %vm5071_vm2, %v12762_v27, -inf  ;;  %v11162_v30 = vpop.f32.mrb[27].mxu0 }
 0x10e   :  { %5148 = vmax.xlane.f32.xlu1 %v5147_v26  ;;  %5151 = vmax.xlane.f32.xlu0 %v5150_v29  ;;  %v12766_v32 = vpop.f32.mrb[26].mxu1 }
 0x10f   :  { %v11167_v33 = vpop.f32.mrb[27].mxu1  ;;  %v5153_v35 = vsel %vm5071_vm2, %v12766_v32, -inf }
 0x110   :  { %v12770_v36 = vpop.f32.mrb[28].mxu0 }
 0x111   :  { %v5156_v38 = vsel %vm5071_vm2, %v12770_v36, -inf  ;;  %v11172_v39 = vpop.f32.mrb[29].mxu0 }
 0x112   :  { %5154 = vmax.xlane.f32.xlu1 %v5153_v35  ;;  %5157 = vmax.xlane.f32.xlu0 %v5156_v38  ;;  %v12774_v41 = vpop.f32.mrb[28].mxu1 }
 0x113   :  { %v11177_v42 = vpop.f32.mrb[29].mxu1  ;;  %v5159_v44 = vsel %vm5071_vm2, %v12774_v41, -inf }
 0x114   :  { %v12778_v45 = vpop.f32.mrb[30].mxu0 }
 0x115   :  { %v5162_v47 = vsel %vm5071_vm2, %v12778_v45, -inf  ;;  %v11182_v48 = vpop.f32.mrb[31].mxu0 }
 0x116   :  { %5160 = vmax.xlane.f32.xlu1 %v5159_v44  ;;  %5163 = vmax.xlane.f32.xlu0 %v5162_v47  ;;  %v12782_v50 = vpop.f32.mrb[30].mxu1 }
 0x117   :  { %v11187_v51 = vpop.f32.mrb[31].mxu1  ;;  %v5165_v53 = vsel %vm5071_vm2, %v12782_v50, -inf }
 0x118   :  { %v12786_v54 = vpop.f32.mrb[32].mxu0 }
 0x119   :  { %v5168_v56 = vsel %vm5071_vm2, %v12786_v54, -inf  ;;  %v11192_v57 = vpop.f32.mrb[33].mxu0 }
 0x11a   :  { %5166 = vmax.xlane.f32.xlu1 %v5165_v53  ;;  %5169 = vmax.xlane.f32.xlu0 %v5168_v56  ;;  %v12790_v59 = vpop.f32.mrb[32].mxu1 }
 0x11b   :  { %v11197_v60 = vpop.f32.mrb[33].mxu1  ;;  %v5171_v62 = vsel %vm5071_vm2, %v12790_v59, -inf }
 0x11c   :  { %v12794_v63 = vpop.f32.mrb[34].mxu0 }
 0x11d   :  { %v5174_v2 = vsel %vm5071_vm2, %v12794_v63, -inf  ;;  %v11202_v3 = vpop.f32.mrb[35].mxu0 }
 0x11e   :  { %5172 = vmax.xlane.f32.xlu1 %v5171_v62  ;;  %5175 = vmax.xlane.f32.xlu0 %v5174_v2  ;;  %v12798_v6 = vpop.f32.mrb[34].mxu1 }
 0x11f   :  { %v11207_v8 = vpop.f32.mrb[35].mxu1  ;;  %v5177_v11 = vsel %vm5071_vm2, %v12798_v6, -inf }
 0x120   :  { %v12802_v12 = vpop.f32.mrb[36].mxu0 }
 0x121   :  { %v5180_v15 = vsel %vm5071_vm2, %v12802_v12, -inf  ;;  %v11212_v17 = vpop.f32.mrb[37].mxu0 }
 0x122   :  { %5178 = vmax.xlane.f32.xlu1 %v5177_v11  ;;  %5181 = vmax.xlane.f32.xlu0 %v5180_v15  ;;  %v12806_v20 = vpop.f32.mrb[36].mxu1 }
 0x123   :  { %v11217_v21 = vpop.f32.mrb[37].mxu1  ;;  %v5183_v24 = vsel %vm5071_vm2, %v12806_v20, -inf }
 0x124   :  { %v12810_v26 = vpop.f32.mrb[38].mxu0 }
 0x125   :  { %v5186_v29 = vsel %vm5071_vm2, %v12810_v26, -inf  ;;  %v11222_v30 = vpop.f32.mrb[39].mxu0 }
 0x126   :  { %5184 = vmax.xlane.f32.xlu1 %v5183_v24  ;;  %5187 = vmax.xlane.f32.xlu0 %v5186_v29  ;;  %v12814_v33 = vpop.f32.mrb[38].mxu1 }
 0x127   :  { %v11227_v35 = vpop.f32.mrb[39].mxu1  ;;  %v5189_v38 = vsel %vm5071_vm2, %v12814_v33, -inf }
 0x128   :  { %v12818_v39 = vpop.f32.mrb[40].mxu0 }
 0x129   :  { %v5192_v42 = vsel %vm5071_vm2, %v12818_v39, -inf  ;;  %v11232_v44 = vpop.f32.mrb[41].mxu0 }
 0x12a   :  { %5190 = vmax.xlane.f32.xlu1 %v5189_v38  ;;  %5193 = vmax.xlane.f32.xlu0 %v5192_v42  ;;  %v12822_v47 = vpop.f32.mrb[40].mxu1 }
 0x12b   :  { %v11237_v48 = vpop.f32.mrb[41].mxu1  ;;  %v5195_v51 = vsel %vm5071_vm2, %v12822_v47, -inf }
 0x12c   :  { %v12826_v53 = vpop.f32.mrb[42].mxu0 }
 0x12d   :  { %v5198_v56 = vsel %vm5071_vm2, %v12826_v53, -inf  ;;  %v11242_v57 = vpop.f32.mrb[43].mxu0 }
 0x12e   :  { %5196 = vmax.xlane.f32.xlu1 %v5195_v51  ;;  %5199 = vmax.xlane.f32.xlu0 %v5198_v56  ;;  %v12830_v60 = vpop.f32.mrb[42].mxu1 }
 0x12f   :  { %v11247_v62 = vpop.f32.mrb[43].mxu1  ;;  %v5201_v2 = vsel %vm5071_vm2, %v12830_v60, -inf }
 0x130   :  { %v12834_v3 = vpop.f32.mrb[44].mxu0 }
 0x131   :  { %v5204_v8 = vsel %vm5071_vm2, %v12834_v3, -inf  ;;  %v11252_v11 = vpop.f32.mrb[45].mxu0 }
 0x132   :  { %5202 = vmax.xlane.f32.xlu1 %v5201_v2  ;;  %5205 = vmax.xlane.f32.xlu0 %v5204_v8  ;;  %v12838_v15 = vpop.f32.mrb[44].mxu1 }
 0x133   :  { %v11257_v17 = vpop.f32.mrb[45].mxu1  ;;  %v5207_v21 = vsel %vm5071_vm2, %v12838_v15, -inf }
 0x134   :  { %v12842_v24 = vpop.f32.mrb[46].mxu0 }
 0x135   :  { %v5210_v29 = vsel %vm5071_vm2, %v12842_v24, -inf  ;;  %v11262_v30 = vpop.f32.mrb[47].mxu0 }
 0x136   :  { %5208 = vmax.xlane.f32.xlu1 %v5207_v21  ;;  %5211 = vmax.xlane.f32.xlu0 %v5210_v29  ;;  %v12846_v35 = vpop.f32.mrb[46].mxu1 }
 0x137   :  { %v11267_v38 = vpop.f32.mrb[47].mxu1  ;;  %v5213_v42 = vsel %vm5071_vm2, %v12846_v35, -inf }
 0x138   :  { %v12850_v44 = vpop.f32.mrb[48].mxu0 }
 0x139   :  { %v5216_v48 = vsel %vm5071_vm2, %v12850_v44, -inf  ;;  %v11272_v51 = vpop.f32.mrb[49].mxu0 }
 0x13a   :  { %5214 = vmax.xlane.f32.xlu1 %v5213_v42  ;;  %5217 = vmax.xlane.f32.xlu0 %v5216_v48  ;;  %v12854_v56 = vpop.f32.mrb[48].mxu1 }
 0x13b   :  { %v11277_v57 = vpop.f32.mrb[49].mxu1  ;;  %v5219_v62 = vsel %vm5071_vm2, %v12854_v56, -inf }
 0x13c   :  { %v12858_v2 = vpop.f32.mrb[50].mxu0 }
 0x13d   :  { %14027 = vst [vmem:[#allocation2_spill] sm:$0xff] %v12858_v2  ;;  %v5222_v8 = vsel %vm5071_vm2, %v12858_v2, -inf  ;;  %v11282_v11 = vpop.f32.mrb[51].mxu0 }
 0x13e   :  { %5220 = vmax.xlane.f32.xlu1 %v5219_v62  ;;  %5223 = vmax.xlane.f32.xlu0 %v5222_v8  ;;  %v12862_v17 = vpop.f32.mrb[50].mxu1 }
 0x13f   :  { %14028 = vst [vmem:[#allocation3_spill] sm:$0xff] %v12862_v17  ;;  %v11287_v21 = vpop.f32.mrb[51].mxu1  ;;  %v5225_v29 = vsel %vm5071_vm2, %v12862_v17, -inf }
 0x140   :  { %v12866_v30 = vpop.f32.mrb[52].mxu0 }
 0x141   :  { %14029 = vst [vmem:[#allocation4_spill] sm:$0xff] %v12866_v30  ;;  %v5228_v38 = vsel %vm5071_vm2, %v12866_v30, -inf  ;;  %v11292_v42 = vpop.f32.mrb[53].mxu0 }
 0x142   :  { %5226 = vmax.xlane.f32.xlu1 %v5225_v29  ;;  %5229 = vmax.xlane.f32.xlu0 %v5228_v38  ;;  %v12870_v48 = vpop.f32.mrb[52].mxu1 }
 0x143   :  { %14030 = vst [vmem:[#allocation5_spill] sm:$0xff] %v12870_v48  ;;  %v11297_v51 = vpop.f32.mrb[53].mxu1  ;;  %v5231_v57 = vsel %vm5071_vm2, %v12870_v48, -inf }
 0x144   :  { %v12874_v62 = vpop.f32.mrb[54].mxu0 }
 0x145   :  { %14031 = vst [vmem:[#allocation6_spill] sm:$0xff] %v12874_v62  ;;  %v5234_v8 = vsel %vm5071_vm2, %v12874_v62, -inf  ;;  %v11302_v11 = vpop.f32.mrb[55].mxu0 }
 0x146   :  { %5232 = vmax.xlane.f32.xlu1 %v5231_v57  ;;  %5235 = vmax.xlane.f32.xlu0 %v5234_v8  ;;  %v12878_v21 = vpop.f32.mrb[54].mxu1 }
 0x147   :  { %14032 = vst [vmem:[#allocation7_spill] sm:$0xff] %v12878_v21  ;;  %v11307_v0 = vpop.f32.mrb[55].mxu1  ;;  %v5237_v29 = vsel %vm5071_vm2, %v12878_v21, -inf }
 0x148   :  { %v12882_v38 = vpop.f32.mrb[56].mxu0 }
 0x149   :  { %14033 = vst [vmem:[#allocation8_spill] sm:$0xff] %v12882_v38  ;;  %v5240_v42 = vsel %vm5071_vm2, %v12882_v38, -inf  ;;  %v11312_v51 = vpop.f32.mrb[57].mxu0 }
 0x14a   :  { %5238 = vmax.xlane.f32.xlu1 %v5237_v29  ;;  %5241 = vmax.xlane.f32.xlu0 %v5240_v42  ;;  %v12886_v48 = vpop.f32.mrb[56].mxu1 }
 0x14b   :  { %14034 = vst [vmem:[#allocation9_spill] sm:$0xff] %v12886_v48  ;;  %v11317_v62 = vpop.f32.mrb[57].mxu1  ;;  %v5243_v57 = vsel %vm5071_vm2, %v12886_v48, -inf }
 0x14c   :  { %v12890_v8 = vpop.f32.mrb[58].mxu0 }
 0x14d   :  { %14035 = vst [vmem:[#allocation10_spill] sm:$0xff] %v12890_v8  ;;  %v5246_v0 = vsel %vm5071_vm2, %v12890_v8, -inf  ;;  %v11322_v11 = vpop.f32.mrb[59].mxu0 }
 0x14e   :  { %5244 = vmax.xlane.f32.xlu1 %v5243_v57  ;;  %5247 = vmax.xlane.f32.xlu0 %v5246_v0  ;;  %v12894_v21 = vpop.f32.mrb[58].mxu1 }
 0x14f   :  { %14036 = vst [vmem:[#allocation11_spill] sm:$0xff] %v12894_v21  ;;  %v11327_v38 = vpop.f32.mrb[59].mxu1  ;;  %v5249_v29 = vsel %vm5071_vm2, %v12894_v21, -inf }
 0x150   :  { %v12898_v42 = vpop.f32.mrb[60].mxu0 }
 0x151   :  { %14037 = vst [vmem:[#allocation12_spill] sm:$0xff] %v12898_v42  ;;  %v5252_v62 = vsel %vm5071_vm2, %v12898_v42, -inf  ;;  %v11332_v51 = vpop.f32.mrb[61].mxu0 }
 0x152   :  { %5250 = vmax.xlane.f32.xlu1 %v5249_v29  ;;  %5253 = vmax.xlane.f32.xlu0 %v5252_v62  ;;  %v12902_v48 = vpop.f32.mrb[60].mxu1 }
 0x153   :  { %14038 = vst [vmem:[#allocation13_spill] sm:$0xff] %v12902_v48  ;;  %v11337_v8 = vpop.f32.mrb[61].mxu1  ;;  %v5255_v57 = vsel %vm5071_vm2, %v12902_v48, -inf }
 0x154   :  { %v12906_v0 = vpop.f32.mrb[62].mxu0 }
 0x155   :  { %14039 = vst [vmem:[#allocation14_spill] sm:$0xff] %v12906_v0  ;;  %v5258_v38 = vsel %vm5071_vm2, %v12906_v0, -inf  ;;  %v11342_v11 = vpop.f32.mrb[63].mxu0 }
 0x156   :  { %5256 = vmax.xlane.f32.xlu1 %v5255_v57  ;;  %5259 = vmax.xlane.f32.xlu0 %v5258_v38  ;;  %v12910_v21 = vpop.f32.mrb[62].mxu1 }
 0x157   :  { %14040 = vst [vmem:[#allocation15_spill] sm:$0xff] %v12910_v21  ;;  %v11347_v42 = vpop.f32.mrb[63].mxu1  ;;  %v5261_v29 = vsel %vm5071_vm2, %v12910_v21, -inf }
 0x15a   :  { %5262 = vmax.xlane.f32.xlu1 %v5261_v29 }
 0x167   :  { %v5074_v62 = vpop.xlane.xlu0 %5073 }
 0x168   :  { %v5264_v8 = vsub.f32 %v12658_v4, %v5074_v62 }
 0x16a   :  { %v5328_v51 = vmul.f32 1.442695, %v5264_v8 }
 0x16b   :  { %v5077_v48 = vpop.xlane.xlu0 %5076  ;;  %v5080_v30 = vpop.xlane.xlu1 %5079 }
 0x16c   :  { %11670 = vpow2.f32 %v5328_v51  ;;  %v5265_v17 = vsub.f32 %v12662_v7, %v5077_v48  ;;  %v5266_v11 = vsub.f32 %v12666_v10, %v5080_v30 }
 0x16e   :  { %v5330_v57 = vmul.f32 1.442695, %v5265_v17  ;;  %v5332_v38 = vmul.f32 1.442695, %v5266_v11 }
 0x16f   :  { %v5083_v0 = vpop.xlane.xlu1 %5082  ;;  %v5086_v2 = vpop.xlane.xlu0 %5085 }
 0x170   :  { %11672 = vpow2.f32 %v5330_v57  ;;  %v5267_v42 = vsub.f32 %v12670_v13, %v5083_v0  ;;  %v5268_v29 = vsub.f32 %v12674_v16, %v5086_v2 }
 0x171   :  { %11674 = vpow2.f32 %v5332_v38 }
 0x172   :  { %v5334_v21 = vmul.f32 1.442695, %v5267_v42  ;;  %v5336_v4 = vmul.f32 1.442695, %v5268_v29 }
 0x173   :  { %v5089_v62 = vpop.xlane.xlu1 %5088  ;;  %v5092_v8 = vpop.xlane.xlu0 %5091 }
 0x174   :  { %11676 = vpow2.f32 %v5334_v21  ;;  %v5269_v51 = vsub.f32 %v12678_v19, %v5089_v62  ;;  %v5270_v7 = vsub.f32 %v12682_v22, %v5092_v8 }
 0x175   :  { %11678 = vpow2.f32 %v5336_v4 }
 0x176   :  { %v12921_v10 = vpop.eup %11670  ;;  %v5338_v17 = vmul.f32 1.442695, %v5269_v51  ;;  %v5340_v30 = vmul.f32 1.442695, %v5270_v7 }
 0x177   :  { %v5095_v48 = vpop.xlane.xlu1 %5094  ;;  %v5098_v11 = vpop.xlane.xlu0 %5097  ;;  %v5456_v13 = vsel %vm5071_vm2, %v12921_v10, 0.0 }
 0x178   :  { %11680 = vpow2.f32 %v5338_v17  ;;  %v5271_v16 = vsub.f32 %v12686_v25, %v5095_v48  ;;  %v5272_v2 = vsub.f32 %v12690_v28, %v5098_v11  ;;  %5457 = vadd.xlane.f32.xlu0 %v5456_v13 }
 0x179   :  { %11682 = vpow2.f32 %v5340_v30 }
 0x17a   :  { %v12927_v19 = vpop.eup %11672  ;;  %v5342_v22 = vmul.f32 1.442695, %v5271_v16  ;;  %v5344_v21 = vmul.f32 1.442695, %v5272_v2 }
 0x17b   :  { %v12929_v0 = vpop.eup %11674  ;;  %v5101_v57 = vpop.xlane.xlu1 %5100  ;;  %v5459_v42 = vsel %vm5071_vm2, %v12927_v19, 0.0 }
 0x17c   :  { %v5104_v38 = vpop.xlane.xlu0 %5103  ;;  %11684 = vpow2.f32 %v5342_v22  ;;  %v5273_v29 = vsub.f32 %v12694_v31, %v5101_v57  ;;  %5460 = vadd.xlane.f32.xlu1 %v5459_v42  ;;  %v5462_v28 = vsel %vm5071_vm2, %v12929_v0, 0.0 }
 0x17d   :  { %v5274_v25 = vsub.f32 %v12698_v34, %v5104_v38  ;;  %11686 = vpow2.f32 %v5344_v21  ;;  %5463 = vadd.xlane.f32.xlu0 %v5462_v28 }
 0x17e   :  { %v12937_v4 = vpop.eup %11676  ;;  %v5346_v62 = vmul.f32 1.442695, %v5273_v29 }
 0x17f   :  { %v5348_v8 = vmul.f32 1.442695, %v5274_v25  ;;  %v12939_v51 = vpop.eup %11678  ;;  %v5107_v7 = vpop.xlane.xlu1 %5106  ;;  %v5465_v30 = vsel %vm5071_vm2, %v12937_v4, 0.0 }
 0x180   :  { %v5110_v17 = vpop.xlane.xlu0 %5109  ;;  %11688 = vpow2.f32 %v5346_v62  ;;  %v5275_v31 = vsub.f32 %v12702_v37, %v5107_v7  ;;  %5466 = vadd.xlane.f32.xlu1 %v5465_v30  ;;  %v5468_v48 = vsel %vm5071_vm2, %v12939_v51, 0.0 }
 0x181   :  { %v5276_v34 = vsub.f32 %v12706_v40, %v5110_v17  ;;  %11690 = vpow2.f32 %v5348_v8  ;;  %5469 = vadd.xlane.f32.xlu0 %v5468_v48 }
 0x182   :  { %v12947_v11 = vpop.eup %11680  ;;  %v5350_v13 = vmul.f32 1.442695, %v5275_v31 }
 0x183   :  { %v5352_v16 = vmul.f32 1.442695, %v5276_v34  ;;  %v12949_v2 = vpop.eup %11682  ;;  %v5113_v22 = vpop.xlane.xlu1 %5112  ;;  %v5471_v57 = vsel %vm5071_vm2, %v12947_v11, 0.0 }
 0x184   :  { %v5116_v21 = vpop.xlane.xlu0 %5115  ;;  %11692 = vpow2.f32 %v5350_v13  ;;  %v5277_v37 = vsub.f32 %v12710_v43, %v5113_v22  ;;  %5472 = vadd.xlane.f32.xlu1 %v5471_v57  ;;  %v5474_v38 = vsel %vm5071_vm2, %v12949_v2, 0.0 }
 0x185   :  { %v5278_v40 = vsub.f32 %v12714_v46, %v5116_v21  ;;  %11694 = vpow2.f32 %v5352_v16  ;;  %5475 = vadd.xlane.f32.xlu0 %v5474_v38 }
 0x186   :  { %v12957_v42 = vpop.eup %11684  ;;  %v5354_v29 = vmul.f32 1.442695, %v5277_v37 }
 0x187   :  { %v5356_v25 = vmul.f32 1.442695, %v5278_v40  ;;  %v12959_v28 = vpop.eup %11686  ;;  %v5119_v62 = vpop.xlane.xlu1 %5118  ;;  %v5477_v7 = vsel %vm5071_vm2, %v12957_v42, 0.0 }
 0x188   :  { %v5122_v8 = vpop.xlane.xlu0 %5121  ;;  %11696 = vpow2.f32 %v5354_v29  ;;  %v5279_v43 = vsub.f32 %v12718_v49, %v5119_v62  ;;  %5478 = vadd.xlane.f32.xlu1 %v5477_v7  ;;  %v5480_v17 = vsel %vm5071_vm2, %v12959_v28, 0.0 }
 0x189   :  { %v5280_v46 = vsub.f32 %v12722_v52, %v5122_v8  ;;  %11698 = vpow2.f32 %v5356_v25  ;;  %5481 = vadd.xlane.f32.xlu0 %v5480_v17  ;;  %v5776_v17 = vld [vmem:[%s13998_s2] sm:$0xff] }
 0x18a   :  { %v12967_v30 = vpop.eup %11688  ;;  %v5358_v31 = vmul.f32 1.442695, %v5279_v43  ;;  %11349 = vmatpush3.msra.mxu0 %v5776_v17 }
 0x18b   :  { %v5360_v34 = vmul.f32 1.442695, %v5280_v46  ;;  %v12969_v48 = vpop.eup %11690  ;;  %v5125_v13 = vpop.xlane.xlu1 %5124  ;;  %v5483_v22 = vsel %vm5071_vm2, %v12967_v30, 0.0 }
 0x18c   :  { %v5128_v16 = vpop.xlane.xlu0 %5127  ;;  %11700 = vpow2.f32 %v5358_v31  ;;  %v5281_v49 = vsub.f32 %v12726_v55, %v5125_v13  ;;  %5484 = vadd.xlane.f32.xlu1 %v5483_v22  ;;  %v5486_v21 = vsel %vm5071_vm2, %v12969_v48, 0.0 }
 0x18d   :  { %v5282_v52 = vsub.f32 %v12730_v58, %v5128_v16  ;;  %11702 = vpow2.f32 %v5360_v34  ;;  %5487 = vadd.xlane.f32.xlu0 %v5486_v21 }
 0x18e   :  { %v12977_v57 = vpop.eup %11692  ;;  %v5362_v37 = vmul.f32 1.442695, %v5281_v49  ;;  %v14041_v49 = vmov 0.0  }
 0x18f   :  { %v5364_v40 = vmul.f32 1.442695, %v5282_v52  ;;  %v12979_v38 = vpop.eup %11694  ;;  %v5131_v29 = vpop.xlane.xlu1 %5130  ;;  %v5489_v62 = vsel %vm5071_vm2, %v12977_v57, 0.0  ;;  %11358 = vmatprep.subr.mxu0 %v14041_v49 }
 0x190   :  { %v5134_v25 = vpop.xlane.xlu0 %5133  ;;  %11704 = vpow2.f32 %v5362_v37  ;;  %v5283_v55 = vsub.f32 %v12734_v61, %v5131_v29  ;;  %5490 = vadd.xlane.f32.xlu1 %v5489_v62  ;;  %v5492_v8 = vsel %vm5071_vm2, %v12979_v38, 0.0 }
 0x191   :  { %v5284_v58 = vsub.f32 %v12738_v1, %v5134_v25  ;;  %11706 = vpow2.f32 %v5364_v40  ;;  %5493 = vadd.xlane.f32.xlu0 %v5492_v8  ;;  %v5777_v40 = vld [vmem:[%s13998_s2 + $0x8] sm:$0xff] }
 0x192   :  { %v12987_v7 = vpop.eup %11696  ;;  %v5366_v43 = vmul.f32 1.442695, %v5283_v55  ;;  %11354 = vmatpush3.msra.mxu1 %v5777_v40 }
 0x193   :  { %v5368_v46 = vmul.f32 1.442695, %v5284_v58  ;;  %v12992_v31 = vpop.eup %11698  ;;  %v5137_v34 = vpop.xlane.xlu1 %5136  ;;  %v5495_v1 = vsel %vm5071_vm2, %v12987_v7, 0.0  ;;  %11363 = vmatprep.subr.mxu1 %v14041_v49 }
 0x194   :  { %v5140_v61 = vpop.xlane.xlu0 %5139  ;;  %11708 = vpow2.f32 %v5366_v43  ;;  %v5285_v13 = vsub.f32 %v12742_v5, %v5137_v34  ;;  %5496 = vadd.xlane.f32.xlu1 %v5495_v1  ;;  %v5498_v22 = vsel %vm5071_vm2, %v12992_v31, 0.0 }
 0x195   :  { %v5286_v16 = vsub.f32 %v12746_v9, %v5140_v61  ;;  %11710 = vpow2.f32 %v5368_v46  ;;  %5499 = vadd.xlane.f32.xlu0 %v5498_v22 }
 0x196   :  { %v13001_v52 = vpop.eup %11700  ;;  %v5370_v21 = vmul.f32 1.442695, %v5285_v13 }
 0x197   :  { %v5372_v37 = vmul.f32 1.442695, %v5286_v16  ;;  %v13006_v29 = vpop.eup %11702  ;;  %v5143_v5 = vpop.xlane.xlu1 %5142  ;;  %v5501_v25 = vsel %vm5071_vm2, %v13001_v52, 0.0 }
 0x198   :  { %v5146_v9 = vpop.xlane.xlu0 %5145  ;;  %11712 = vpow2.f32 %v5370_v21  ;;  %v5287_v62 = vsub.f32 %v12750_v14, %v5143_v5  ;;  %5502 = vadd.xlane.f32.xlu1 %v5501_v25  ;;  %v5504_v58 = vsel %vm5071_vm2, %v13006_v29, 0.0 }
 0x199   :  { %v5288_v55 = vsub.f32 %v12754_v18, %v5146_v9  ;;  %11714 = vpow2.f32 %v5372_v37  ;;  %5505 = vadd.xlane.f32.xlu0 %v5504_v58 }
 0x19a   :  { %v13015_v8 = vpop.eup %11704  ;;  %v5374_v43 = vmul.f32 1.442695, %v5287_v62 }
 0x19b   :  { %v5376_v46 = vmul.f32 1.442695, %v5288_v55  ;;  %v13017_v17 = vpop.eup %11706  ;;  %v5149_v34 = vpop.xlane.xlu1 %5148  ;;  %v5507_v14 = vsel %vm5071_vm2, %v13015_v8, 0.0 }
 0x19c   :  { %v5152_v61 = vpop.xlane.xlu0 %5151  ;;  %11716 = vpow2.f32 %v5374_v43  ;;  %v5289_v18 = vsub.f32 %v12758_v23, %v5149_v34  ;;  %5508 = vadd.xlane.f32.xlu1 %v5507_v14  ;;  %v5510_v13 = vsel %vm5071_vm2, %v13017_v17, 0.0 }
 0x19d   :  { %v5290_v1 = vsub.f32 %v12762_v27, %v5152_v61  ;;  %11718 = vpow2.f32 %v5376_v46  ;;  %5511 = vadd.xlane.f32.xlu0 %v5510_v13 }
 0x19e   :  { %v13025_v16 = vpop.eup %11708  ;;  %v5378_v22 = vmul.f32 1.442695, %v5289_v18 }
 0x19f   :  { %v5380_v21 = vmul.f32 1.442695, %v5290_v1  ;;  %v13027_v37 = vpop.eup %11710  ;;  %v5155_v40 = vpop.xlane.xlu1 %5154  ;;  %v5513_v9 = vsel %vm5071_vm2, %v13025_v16, 0.0 }
 0x1a0   :  { %v5158_v5 = vpop.xlane.xlu0 %5157  ;;  %11720 = vpow2.f32 %v5378_v22  ;;  %v5291_v23 = vsub.f32 %v12766_v32, %v5155_v40  ;;  %5514 = vadd.xlane.f32.xlu1 %v5513_v9  ;;  %v5516_v25 = vsel %vm5071_vm2, %v13027_v37, 0.0 }
 0x1a1   :  { %v5292_v27 = vsub.f32 %v12770_v36, %v5158_v5  ;;  %11722 = vpow2.f32 %v5380_v21  ;;  %5517 = vadd.xlane.f32.xlu0 %v5516_v25 }
 0x1a2   :  { %v13035_v62 = vpop.eup %11712  ;;  %v5382_v55 = vmul.f32 1.442695, %v5291_v23 }
 0x1a3   :  { %v5384_v58 = vmul.f32 1.442695, %v5292_v27  ;;  %v13037_v43 = vpop.eup %11714  ;;  %v5161_v46 = vpop.xlane.xlu1 %5160  ;;  %v5519_v61 = vsel %vm5071_vm2, %v13035_v62, 0.0 }
 0x1a4   :  { %v5164_v34 = vpop.xlane.xlu0 %5163  ;;  %11724 = vpow2.f32 %v5382_v55  ;;  %v5293_v32 = vsub.f32 %v12774_v41, %v5161_v46  ;;  %5520 = vadd.xlane.f32.xlu1 %v5519_v61  ;;  %v5522_v14 = vsel %vm5071_vm2, %v13037_v43, 0.0 }
 0x1a5   :  { %v5294_v36 = vsub.f32 %v12778_v45, %v5164_v34  ;;  %11726 = vpow2.f32 %v5384_v58  ;;  %5523 = vadd.xlane.f32.xlu0 %v5522_v14 }
 0x1a6   :  { %v13045_v18 = vpop.eup %11716  ;;  %v5386_v1 = vmul.f32 1.442695, %v5293_v32 }
 0x1a7   :  { %v5388_v13 = vmul.f32 1.442695, %v5294_v36  ;;  %v13047_v22 = vpop.eup %11718  ;;  %v5167_v21 = vpop.xlane.xlu1 %5166  ;;  %v5525_v5 = vsel %vm5071_vm2, %v13045_v18, 0.0 }
 0x1a8   :  { %v5170_v40 = vpop.xlane.xlu0 %5169  ;;  %11728 = vpow2.f32 %v5386_v1  ;;  %v5295_v41 = vsub.f32 %v12782_v50, %v5167_v21  ;;  %5526 = vadd.xlane.f32.xlu1 %v5525_v5  ;;  %v5528_v9 = vsel %vm5071_vm2, %v13047_v22, 0.0 }
 0x1a9   :  { %v5296_v45 = vsub.f32 %v12786_v54, %v5170_v40  ;;  %11730 = vpow2.f32 %v5388_v13  ;;  %5529 = vadd.xlane.f32.xlu0 %v5528_v9 }
 0x1aa   :  { %v13055_v23 = vpop.eup %11720  ;;  %v5390_v27 = vmul.f32 1.442695, %v5295_v41 }
 0x1ab   :  { %v5392_v25 = vmul.f32 1.442695, %v5296_v45  ;;  %v13057_v55 = vpop.eup %11722  ;;  %v5173_v58 = vpop.xlane.xlu1 %5172  ;;  %v5531_v34 = vsel %vm5071_vm2, %v13055_v23, 0.0 }
 0x1ac   :  { %v5176_v46 = vpop.xlane.xlu0 %5175  ;;  %11732 = vpow2.f32 %v5390_v27  ;;  %v5297_v50 = vsub.f32 %v12790_v59, %v5173_v58  ;;  %5532 = vadd.xlane.f32.xlu1 %v5531_v34  ;;  %v5534_v61 = vsel %vm5071_vm2, %v13057_v55, 0.0 }
 0x1ad   :  { %v5298_v54 = vsub.f32 %v12794_v63, %v5176_v46  ;;  %11734 = vpow2.f32 %v5392_v25  ;;  %5535 = vadd.xlane.f32.xlu0 %v5534_v61 }
 0x1ae   :  { %v13065_v32 = vpop.eup %11724  ;;  %v5394_v36 = vmul.f32 1.442695, %v5297_v50 }
 0x1af   :  { %v5396_v14 = vmul.f32 1.442695, %v5298_v54  ;;  %v13067_v1 = vpop.eup %11726  ;;  %v5179_v13 = vpop.xlane.xlu1 %5178  ;;  %v5537_v40 = vsel %vm5071_vm2, %v13065_v32, 0.0 }
 0x1b0   :  { %v5182_v21 = vpop.xlane.xlu0 %5181  ;;  %11736 = vpow2.f32 %v5394_v36  ;;  %v5299_v59 = vsub.f32 %v12798_v6, %v5179_v13  ;;  %5538 = vadd.xlane.f32.xlu1 %v5537_v40  ;;  %v5540_v5 = vsel %vm5071_vm2, %v13067_v1, 0.0 }
 0x1b1   :  { %v5300_v63 = vsub.f32 %v12802_v12, %v5182_v21  ;;  %11738 = vpow2.f32 %v5396_v14  ;;  %5541 = vadd.xlane.f32.xlu0 %v5540_v5 }
 0x1b2   :  { %v13075_v41 = vpop.eup %11728  ;;  %v5398_v45 = vmul.f32 1.442695, %v5299_v59 }
 0x1b3   :  { %v5400_v9 = vmul.f32 1.442695, %v5300_v63  ;;  %v13077_v27 = vpop.eup %11730  ;;  %v5185_v25 = vpop.xlane.xlu1 %5184  ;;  %v5543_v46 = vsel %vm5071_vm2, %v13075_v41, 0.0 }
 0x1b4   :  { %v5188_v58 = vpop.xlane.xlu0 %5187  ;;  %11740 = vpow2.f32 %v5398_v45  ;;  %v5301_v6 = vsub.f32 %v12806_v20, %v5185_v25  ;;  %5544 = vadd.xlane.f32.xlu1 %v5543_v46  ;;  %v5546_v34 = vsel %vm5071_vm2, %v13077_v27, 0.0 }
 0x1b5   :  { %v5302_v12 = vsub.f32 %v12810_v26, %v5188_v58  ;;  %11742 = vpow2.f32 %v5400_v9  ;;  %5547 = vadd.xlane.f32.xlu0 %v5546_v34 }
 0x1b6   :  { %v13085_v50 = vpop.eup %11732  ;;  %v5402_v54 = vmul.f32 1.442695, %v5301_v6 }
 0x1b7   :  { %v5404_v61 = vmul.f32 1.442695, %v5302_v12  ;;  %v13087_v36 = vpop.eup %11734  ;;  %v5191_v14 = vpop.xlane.xlu1 %5190  ;;  %v5549_v21 = vsel %vm5071_vm2, %v13085_v50, 0.0 }
 0x1b8   :  { %v5194_v13 = vpop.xlane.xlu0 %5193  ;;  %11744 = vpow2.f32 %v5402_v54  ;;  %v5303_v20 = vsub.f32 %v12814_v33, %v5191_v14  ;;  %5550 = vadd.xlane.f32.xlu1 %v5549_v21  ;;  %v5552_v40 = vsel %vm5071_vm2, %v13087_v36, 0.0 }
 0x1b9   :  { %v5304_v26 = vsub.f32 %v12818_v39, %v5194_v13  ;;  %11746 = vpow2.f32 %v5404_v61  ;;  %5553 = vadd.xlane.f32.xlu0 %v5552_v40 }
 0x1ba   :  { %v13095_v59 = vpop.eup %11736  ;;  %v5406_v63 = vmul.f32 1.442695, %v5303_v20 }
 0x1bb   :  { %v5408_v5 = vmul.f32 1.442695, %v5304_v26  ;;  %v13097_v45 = vpop.eup %11738  ;;  %v5197_v9 = vpop.xlane.xlu1 %5196  ;;  %v5555_v58 = vsel %vm5071_vm2, %v13095_v59, 0.0 }
 0x1bc   :  { %v5200_v25 = vpop.xlane.xlu0 %5199  ;;  %11748 = vpow2.f32 %v5406_v63  ;;  %v5305_v33 = vsub.f32 %v12822_v47, %v5197_v9  ;;  %5556 = vadd.xlane.f32.xlu1 %v5555_v58  ;;  %v5558_v46 = vsel %vm5071_vm2, %v13097_v45, 0.0 }
 0x1bd   :  { %v5306_v39 = vsub.f32 %v12826_v53, %v5200_v25  ;;  %11750 = vpow2.f32 %v5408_v5  ;;  %5559 = vadd.xlane.f32.xlu0 %v5558_v46 }
 0x1be   :  { %v13105_v6 = vpop.eup %11740  ;;  %v5410_v12 = vmul.f32 1.442695, %v5305_v33 }
 0x1bf   :  { %v5412_v34 = vmul.f32 1.442695, %v5306_v39  ;;  %v13107_v54 = vpop.eup %11742  ;;  %v5203_v61 = vpop.xlane.xlu1 %5202  ;;  %v5561_v13 = vsel %vm5071_vm2, %v13105_v6, 0.0 }
 0x1c0   :  { %v5206_v14 = vpop.xlane.xlu0 %5205  ;;  %11752 = vpow2.f32 %v5410_v12  ;;  %v5307_v47 = vsub.f32 %v12830_v60, %v5203_v61  ;;  %5562 = vadd.xlane.f32.xlu1 %v5561_v13  ;;  %v5564_v21 = vsel %vm5071_vm2, %v13107_v54, 0.0 }
 0x1c1   :  { %v5308_v53 = vsub.f32 %v12834_v3, %v5206_v14  ;;  %11754 = vpow2.f32 %v5412_v34  ;;  %5565 = vadd.xlane.f32.xlu0 %v5564_v21 }
 0x1c2   :  { %v13115_v20 = vpop.eup %11744  ;;  %v5414_v26 = vmul.f32 1.442695, %v5307_v47 }
 0x1c3   :  { %v5416_v40 = vmul.f32 1.442695, %v5308_v53  ;;  %v13117_v63 = vpop.eup %11746  ;;  %v5209_v5 = vpop.xlane.xlu1 %5208  ;;  %v5567_v25 = vsel %vm5071_vm2, %v13115_v20, 0.0 }
 0x1c4   :  { %v5212_v9 = vpop.xlane.xlu0 %5211  ;;  %11756 = vpow2.f32 %v5414_v26  ;;  %v5309_v60 = vsub.f32 %v12838_v15, %v5209_v5  ;;  %5568 = vadd.xlane.f32.xlu1 %v5567_v25  ;;  %v5570_v58 = vsel %vm5071_vm2, %v13117_v63, 0.0 }
 0x1c5   :  { %v5310_v3 = vsub.f32 %v12842_v24, %v5212_v9  ;;  %11758 = vpow2.f32 %v5416_v40  ;;  %5571 = vadd.xlane.f32.xlu0 %v5570_v58 }
 0x1c6   :  { %v13125_v33 = vpop.eup %11748  ;;  %v5418_v39 = vmul.f32 1.442695, %v5309_v60 }
 0x1c7   :  { %v5420_v46 = vmul.f32 1.442695, %v5310_v3  ;;  %v13127_v12 = vpop.eup %11750  ;;  %v5215_v34 = vpop.xlane.xlu1 %5214  ;;  %v5573_v14 = vsel %vm5071_vm2, %v13125_v33, 0.0 }
 0x1c8   :  { %v5218_v61 = vpop.xlane.xlu0 %5217  ;;  %11760 = vpow2.f32 %v5418_v39  ;;  %v5311_v15 = vsub.f32 %v12846_v35, %v5215_v34  ;;  %5574 = vadd.xlane.f32.xlu1 %v5573_v14  ;;  %v5576_v13 = vsel %vm5071_vm2, %v13127_v12, 0.0 }
 0x1c9   :  { %v5312_v24 = vsub.f32 %v12850_v44, %v5218_v61  ;;  %11762 = vpow2.f32 %v5420_v46  ;;  %5577 = vadd.xlane.f32.xlu0 %v5576_v13  ;;  %v14042_v44 = vld [vmem:[#allocation2_spill] sm:$0xff] }
 0x1ca   :  { %v13135_v47 = vpop.eup %11752  ;;  %v5422_v53 = vmul.f32 1.442695, %v5311_v15 }
 0x1cb   :  { %v5424_v21 = vmul.f32 1.442695, %v5312_v24  ;;  %v13137_v26 = vpop.eup %11754  ;;  %v5221_v40 = vpop.xlane.xlu1 %5220  ;;  %v5579_v9 = vsel %vm5071_vm2, %v13135_v47, 0.0  ;;  %v14044_v24 = vld [vmem:[#allocation4_spill] sm:$0xff] }
 0x1cc   :  { %v5224_v5 = vpop.xlane.xlu0 %5223  ;;  %11764 = vpow2.f32 %v5422_v53  ;;  %v5313_v35 = vsub.f32 %v12854_v56, %v5221_v40  ;;  %5580 = vadd.xlane.f32.xlu1 %v5579_v9  ;;  %v5582_v60 = vsel %vm5071_vm2, %v13137_v26, 0.0  ;;  %v14043_v56 = vld [vmem:[#allocation3_spill] sm:$0xff] }
 0x1cd   :  { %v5314_v25 = vsub.f32 %v14042_v44, %v5224_v5  ;;  %11766 = vpow2.f32 %v5424_v21  ;;  %5583 = vadd.xlane.f32.xlu0 %v5582_v60  ;;  %v14047_v60 = vld [vmem:[#allocation5_spill] sm:$0xff] }
 0x1ce   :  { %v13145_v3 = vpop.eup %11756  ;;  %v5426_v58 = vmul.f32 1.442695, %v5313_v35 }
 0x1cf   :  { %v5428_v39 = vmul.f32 1.442695, %v5314_v25  ;;  %v13147_v46 = vpop.eup %11758  ;;  %v5227_v34 = vpop.xlane.xlu1 %5226  ;;  %v5585_v14 = vsel %vm5071_vm2, %v13145_v3, 0.0 }
 0x1d0   :  { %v5230_v61 = vpop.xlane.xlu0 %5229  ;;  %11768 = vpow2.f32 %v5426_v58  ;;  %v5315_v15 = vsub.f32 %v14043_v56, %v5227_v34  ;;  %5586 = vadd.xlane.f32.xlu1 %v5585_v14  ;;  %v5588_v53 = vsel %vm5071_vm2, %v13147_v46, 0.0  ;;  %v14048_v34 = vld [vmem:[#allocation6_spill] sm:$0xff] }
 0x1d1   :  { %v5316_v13 = vsub.f32 %v14044_v24, %v5230_v61  ;;  %11770 = vpow2.f32 %v5428_v39  ;;  %5589 = vadd.xlane.f32.xlu0 %v5588_v53 }
 0x1d2   :  { %v13155_v21 = vpop.eup %11760  ;;  %v5430_v40 = vmul.f32 1.442695, %v5315_v15 }
 0x1d3   :  { %14045 = vst [vmem:[#allocation2_spill] sm:$0xff] %v13155_v21  ;;  %v5432_v5 = vmul.f32 1.442695, %v5316_v13  ;;  %v13157_v9 = vpop.eup %11762  ;;  %v5233_v35 = vpop.xlane.xlu1 %5232  ;;  %v5591_v25 = vsel %vm5071_vm2, %v13155_v21, 0.0 }
 0x1d4   :  { %14046 = vst [vmem:[#allocation3_spill] sm:$0xff] %v13157_v9  ;;  %v5236_v44 = vpop.xlane.xlu0 %5235  ;;  %11772 = vpow2.f32 %v5430_v40  ;;  %v5317_v58 = vsub.f32 %v14047_v60, %v5233_v35  ;;  %5592 = vadd.xlane.f32.xlu1 %v5591_v25  ;;  %v5594_v39 = vsel %vm5071_vm2, %v13157_v9, 0.0  ;;  %v14051_v35 = vld [vmem:[#allocation7_spill] sm:$0xff]  ;;  %v14052_v25 = vld [vmem:[#allocation8_spill] sm:$0xff] }
 0x1d5   :  { %v5318_v61 = vsub.f32 %v14048_v34, %v5236_v44  ;;  %11774 = vpow2.f32 %v5432_v5  ;;  %5595 = vadd.xlane.f32.xlu0 %v5594_v39 }
 0x1d6   :  { %v13165_v14 = vpop.eup %11764  ;;  %v5434_v56 = vmul.f32 1.442695, %v5317_v58 }
 0x1d7   :  { %14049 = vst [vmem:[#allocation4_spill] sm:$0xff] %v13165_v14  ;;  %v5436_v15 = vmul.f32 1.442695, %v5318_v61  ;;  %v13167_v24 = vpop.eup %11766  ;;  %v5239_v13 = vpop.xlane.xlu1 %5238  ;;  %v5597_v40 = vsel %vm5071_vm2, %v13165_v14, 0.0 }
 0x1d8   :  { %14050 = vst [vmem:[#allocation5_spill] sm:$0xff] %v13167_v24  ;;  %v5242_v53 = vpop.xlane.xlu0 %5241  ;;  %11776 = vpow2.f32 %v5434_v56  ;;  %v5319_v44 = vsub.f32 %v14051_v35, %v5239_v13  ;;  %5598 = vadd.xlane.f32.xlu1 %v5597_v40  ;;  %v5600_v5 = vsel %vm5071_vm2, %v13167_v24, 0.0  ;;  %v14055_v13 = vld [vmem:[#allocation9_spill] sm:$0xff]  ;;  %v14056_v40 = vld [vmem:[#allocation10_spill] sm:$0xff] }
 0x1d9   :  { %v5320_v60 = vsub.f32 %v14052_v25, %v5242_v53  ;;  %11778 = vpow2.f32 %v5436_v15  ;;  %5601 = vadd.xlane.f32.xlu0 %v5600_v5 }
 0x1da   :  { %v13175_v58 = vpop.eup %11768  ;;  %v5438_v34 = vmul.f32 1.442695, %v5319_v44 }
 0x1db   :  { %14053 = vst [vmem:[#allocation6_spill] sm:$0xff] %v13175_v58  ;;  %v5440_v61 = vmul.f32 1.442695, %v5320_v60  ;;  %v13177_v39 = vpop.eup %11770  ;;  %v5245_v9 = vpop.xlane.xlu1 %5244  ;;  %v5603_v56 = vsel %vm5071_vm2, %v13175_v58, 0.0 }
 0x1dc   :  { %14054 = vst [vmem:[#allocation7_spill] sm:$0xff] %v13177_v39  ;;  %v5248_v21 = vpop.xlane.xlu0 %5247  ;;  %11780 = vpow2.f32 %v5438_v34  ;;  %v5321_v53 = vsub.f32 %v14055_v13, %v5245_v9  ;;  %5604 = vadd.xlane.f32.xlu1 %v5603_v56  ;;  %v5606_v15 = vsel %vm5071_vm2, %v13177_v39, 0.0  ;;  %v14058_v9 = vld [vmem:[#allocation11_spill] sm:$0xff]  ;;  %v14059_v56 = vld [vmem:[#allocation12_spill] sm:$0xff] }
 0x1dd   :  { %v5322_v35 = vsub.f32 %v14056_v40, %v5248_v21  ;;  %11782 = vpow2.f32 %v5440_v61  ;;  %5607 = vadd.xlane.f32.xlu0 %v5606_v15 }
 0x1de   :  { %v13185_v44 = vpop.eup %11772  ;;  %v5442_v25 = vmul.f32 1.442695, %v5321_v53 }
 0x1df   :  { %v5444_v60 = vmul.f32 1.442695, %v5322_v35  ;;  %v13187_v5 = vpop.eup %11774  ;;  %v5251_v24 = vpop.xlane.xlu1 %5250  ;;  %v5609_v34 = vsel %vm5071_vm2, %v13185_v44, 0.0 }
 0x1e0   :  { %14057 = vst [vmem:[#allocation8_spill] sm:$0xff] %v13187_v5  ;;  %v5254_v14 = vpop.xlane.xlu0 %5253  ;;  %11784 = vpow2.f32 %v5442_v25  ;;  %v5323_v21 = vsub.f32 %v14058_v9, %v5251_v24  ;;  %5610 = vadd.xlane.f32.xlu1 %v5609_v34  ;;  %v5612_v61 = vsel %vm5071_vm2, %v13187_v5, 0.0  ;;  %v14060_v24 = vld [vmem:[#allocation13_spill] sm:$0xff]  ;;  %v14061_v34 = vld [vmem:[#allocation14_spill] sm:$0xff] }
 0x1e1   :  { %v5324_v13 = vsub.f32 %v14059_v56, %v5254_v14  ;;  %11786 = vpow2.f32 %v5444_v60  ;;  %5613 = vadd.xlane.f32.xlu0 %v5612_v61 }
 0x1e2   :  { %v13195_v53 = vpop.eup %11776  ;;  %v5446_v40 = vmul.f32 1.442695, %v5323_v21 }
 0x1e3   :  { %v5448_v35 = vmul.f32 1.442695, %v5324_v13  ;;  %v13197_v15 = vpop.eup %11778  ;;  %v5257_v39 = vpop.xlane.xlu1 %5256  ;;  %v5615_v25 = vsel %vm5071_vm2, %v13195_v53, 0.0 }
 0x1e4   :  { %v5260_v58 = vpop.xlane.xlu0 %5259  ;;  %11788 = vpow2.f32 %v5446_v40  ;;  %v5325_v14 = vsub.f32 %v14060_v24, %v5257_v39  ;;  %5616 = vadd.xlane.f32.xlu1 %v5615_v25  ;;  %v5618_v60 = vsel %vm5071_vm2, %v13197_v15, 0.0  ;;  %v14062_v39 = vld [vmem:[#allocation15_spill] sm:$0xff] }
 0x1e5   :  { %v5326_v9 = vsub.f32 %v14061_v34, %v5260_v58  ;;  %11790 = vpow2.f32 %v5448_v35  ;;  %5619 = vadd.xlane.f32.xlu0 %v5618_v60 }
 0x1e6   :  { %v13205_v21 = vpop.eup %11780  ;;  %v5450_v56 = vmul.f32 1.442695, %v5325_v14 }
 0x1e7   :  { %v5452_v13 = vmul.f32 1.442695, %v5326_v9  ;;  %v13207_v61 = vpop.eup %11782  ;;  %v5263_v5 = vpop.xlane.xlu1 %5262  ;;  %v5621_v40 = vsel %vm5071_vm2, %v13205_v21, 0.0 }
 0x1e8   :  { %11792 = vpow2.f32 %v5450_v56  ;;  %v5327_v24 = vsub.f32 %v14062_v39, %v5263_v5  ;;  %5622 = vadd.xlane.f32.xlu1 %v5621_v40  ;;  %v5624_v58 = vsel %vm5071_vm2, %v13207_v61, 0.0 }
 0x1e9   :  { %11794 = vpow2.f32 %v5452_v13  ;;  %5625 = vadd.xlane.f32.xlu0 %v5624_v58 }
 0x1ea   :  { %v13214_v35 = vpop.eup %11784  ;;  %v5454_v25 = vmul.f32 1.442695, %v5327_v24 }
 0x1eb   :  { %v13216_v14 = vpop.eup %11786  ;;  %v5627_v34 = vsel %vm5071_vm2, %v13214_v35, 0.0 }
 0x1ec   :  { %11796 = vpow2.f32 %v5454_v25  ;;  %5628 = vadd.xlane.f32.xlu1 %v5627_v34  ;;  %v5630_v9 = vsel %vm5071_vm2, %v13216_v14, 0.0 }
 0x1ed   :  { %5631 = vadd.xlane.f32.xlu0 %v5630_v9 }
 0x1ee   :  { %v13222_v5 = vpop.eup %11788 }
 0x1ef   :  { %14063 = vst [vmem:[#allocation9_spill] sm:$0xff] %v13222_v5  ;;  %v13224_v60 = vpop.eup %11790  ;;  %v5633_v56 = vsel %vm5071_vm2, %v13222_v5, 0.0  ;;  %v5778_v5 = vld [vmem:[%s13998_s2 + $0x10] sm:$0xff] }
 0x1f0   :  { %14064 = vst [vmem:[#allocation10_spill] sm:$0xff] %v13224_v60  ;;  %5634 = vadd.xlane.f32.xlu1 %v5633_v56  ;;  %v5636_v13 = vsel %vm5071_vm2, %v13224_v60, 0.0 }
 0x1f1   :  { %5637 = vadd.xlane.f32.xlu0 %v5636_v13 }
 0x1f2   :  { %v13230_v40 = vpop.eup %11792 }
 0x1f3   :  { %14065 = vst [vmem:[#allocation11_spill] sm:$0xff] %v13230_v40  ;;  %v13232_v39 = vpop.eup %11794  ;;  %v5639_v24 = vsel %vm5071_vm2, %v13230_v40, 0.0 }
 0x1f4   :  { %14066 = vst [vmem:[#allocation12_spill] sm:$0xff] %v13232_v39  ;;  %5640 = vadd.xlane.f32.xlu1 %v5639_v24  ;;  %v5642_v58 = vsel %vm5071_vm2, %v13232_v39, 0.0 }
 0x1f5   :  { %5643 = vadd.xlane.f32.xlu0 %v5642_v58 }
 0x1f6   :  { %v13238_v25 = vpop.eup %11796 }
 0x1f7   :  { %v5645_v34 = vsel %vm5071_vm2, %v13238_v25, 0.0 }
 0x1f8   :  { %5646 = vadd.xlane.f32.xlu1 %v5645_v34 }
 0x205   :  { %v5458_v9 = vpop.xlane.xlu0 %5457 }
 0x206   :  { %11798 = vrcp.f32 %v5458_v9 }
 0x209   :  { %v5461_v56 = vpop.xlane.xlu1 %5460 }
 0x20a   :  { %11800 = vrcp.f32 %v5461_v56  ;;  %v5464_v13 = vpop.xlane.xlu0 %5463 }
 0x20b   :  { %11802 = vrcp.f32 %v5464_v13 }
 0x20d   :  { %v5467_v60 = vpop.xlane.xlu1 %5466 }
 0x20e   :  { %11804 = vrcp.f32 %v5467_v60  ;;  %v5470_v40 = vpop.xlane.xlu0 %5469 }
 0x20f   :  { %11806 = vrcp.f32 %v5470_v40 }
 0x210   :  { %v11799_v24 = vpop.eup %11798 }
 0x211   :  { %v5649_v39 = vmul.f32 %v11799_v24, %v12921_v10  ;;  %v5473_v58 = vpop.xlane.xlu1 %5472  ;;  %v5779_v10 = vld [vmem:[%s13998_s2 + $0x18] sm:$0xff] }
 0x212   :  { %11808 = vrcp.f32 %v5473_v58  ;;  %v5476_v34 = vpop.xlane.xlu0 %5475 }
 0x213   :  { %11810 = vrcp.f32 %v5476_v34  ;;  %11351 = vmatmul.mubr.msk.f32.vlgmr.msra.gmra.mrb[64].mxu0 %vm5071_vm2, %v5649_v39 }
 0x214   :  { %v11801_v9 = vpop.eup %11800  ;;  %11359 = vmatpush3.msra.mxu0 %v5778_v5  ;;  %11360 = vmatprep.mubr.msk.f32.mxu0 %vm11927_vm1, %v14041_v49  ;;  %v5780_v5 = vld [vmem:[%s13998_s2 + $0x20] sm:$0xff] }
 0x215   :  { %v11803_v60 = vpop.eup %11802  ;;  %v5651_v40 = vmul.f32 %v11801_v9, %v12927_v19  ;;  %v5479_v56 = vpop.xlane.xlu1 %5478  ;;  %11368 = vmatprep.subr.mxu0 %v14041_v49 }
 0x216   :  { %v5653_v13 = vmul.f32 %v11803_v60, %v12929_v0  ;;  %11812 = vrcp.f32 %v5479_v56  ;;  %v5482_v24 = vpop.xlane.xlu0 %5481  ;;  %v5781_v0 = vld [vmem:[%s13998_s2 + $0x28] sm:$0xff] }
 0x217   :  { %11814 = vrcp.f32 %v5482_v24  ;;  %11356 = vmatmul.mubr.msk.f32.vlgmr.msra.gmra.mrb[64].mxu1 %vm5071_vm2, %v5651_v40 }
 0x218   :  { %v11805_v39 = vpop.eup %11804  ;;  %11361 = vmatmul.mubr.msk.f32.vlgmr.msra.gmra.mrb[66].mxu0 %vm5071_vm2, %v5653_v13  ;;  %11364 = vmatpush3.msra.mxu1 %v5779_v10  ;;  %v5783_v13 = vld [vmem:[%s13998_s2 + $0x38] sm:$0xff] }
 0x219   :  { %v11807_v19 = vpop.eup %11806  ;;  %v5655_v58 = vmul.f32 %v11805_v39, %v12937_v4  ;;  %v5485_v34 = vpop.xlane.xlu1 %5484  ;;  %11365 = vmatprep.mubr.msk.f32.mxu1 %vm11927_vm1, %v14041_v49  ;;  %11369 = vmatpush3.msra.mxu0 %v5780_v5  ;;  %v5782_v4 = vld [vmem:[%s13998_s2 + $0x30] sm:$0xff] }
 0x21a   :  { %v5657_v9 = vmul.f32 %v11807_v19, %v12939_v51  ;;  %11816 = vrcp.f32 %v5485_v34  ;;  %v5488_v60 = vpop.xlane.xlu0 %5487  ;;  %11370 = vmatprep.mubr.msk.f32.mxu0 %vm11927_vm1, %v14041_v49  ;;  %11373 = vmatprep.subr.mxu1 %v14041_v49  ;;  %v5785_v34 = vld [vmem:[%s13998_s2 + $0x48] sm:$0xff] }
 0x21b   :  { %11818 = vrcp.f32 %v5488_v60  ;;  %11366 = vmatmul.mubr.msk.f32.vlgmr.msra.gmra.mrb[66].mxu1 %vm5071_vm2, %v5655_v58  ;;  %11378 = vmatprep.subr.mxu0 %v14041_v49 }
 0x21c   :  { %v11809_v40 = vpop.eup %11808  ;;  %11371 = vmatmul.mubr.msk.f32.vlgmr.msra.gmra.mrb[68].mxu0 %vm5071_vm2, %v5657_v9  ;;  %11374 = vmatpush3.msra.mxu1 %v5781_v0 }
 0x21d   :  { %v11811_v51 = vpop.eup %11810  ;;  %v5659_v56 = vmul.f32 %v11809_v40, %v12947_v11  ;;  %v5491_v10 = vpop.xlane.xlu1 %5490  ;;  %11375 = vmatprep.mubr.msk.f32.mxu1 %vm11927_vm1, %v14041_v49  ;;  %11379 = vmatpush3.msra.mxu0 %v5782_v4  ;;  %v5784_v11 = vld [vmem:[%s13998_s2 + $0x40] sm:$0xff] }
 0x21e   :  { %v5661_v24 = vmul.f32 %v11811_v51, %v12949_v2  ;;  %11820 = vrcp.f32 %v5491_v10  ;;  %v5494_v5 = vpop.xlane.xlu0 %5493  ;;  %11380 = vmatprep.mubr.msk.f32.mxu0 %vm11927_vm1, %v14041_v49  ;;  %11383 = vmatprep.subr.mxu1 %v14041_v49  ;;  %v5787_v51 = vld [vmem:[%s13998_s2 + $0x58] sm:$0xff] }
 0x21f   :  { %11822 = vrcp.f32 %v5494_v5  ;;  %11376 = vmatmul.mubr.msk.f32.vlgmr.msra.gmra.mrb[68].mxu1 %vm5071_vm2, %v5659_v56  ;;  %11388 = vmatprep.subr.mxu0 %v14041_v49 }
 0x220   :  { %v11813_v39 = vpop.eup %11812  ;;  %11381 = vmatmul.mubr.msk.f32.vlgmr.msra.gmra.mrb[70].mxu0 %vm5071_vm2, %v5661_v24  ;;  %11384 = vmatpush3.msra.mxu1 %v5783_v13 }
 0x221   :  { %v11815_v2 = vpop.eup %11814  ;;  %v5663_v19 = vmul.f32 %v11813_v39, %v12957_v42  ;;  %v5497_v58 = vpop.xlane.xlu1 %5496  ;;  %11385 = vmatprep.mubr.msk.f32.mxu1 %vm11927_vm1, %v14041_v49  ;;  %11389 = vmatpush3.msra.mxu0 %v5784_v11  ;;  %v5786_v42 = vld [vmem:[%s13998_s2 + $0x50] sm:$0xff]  ;;  %v5789_v11 = vld [vmem:[%s13998_s2 + $0x68] sm:$0xff] }
 0x222   :  { %v5665_v0 = vmul.f32 %v11815_v2, %v12959_v28  ;;  %11824 = vrcp.f32 %v5497_v58  ;;  %v5500_v9 = vpop.xlane.xlu0 %5499  ;;  %11390 = vmatprep.mubr.msk.f32.mxu0 %vm11927_vm1, %v14041_v49  ;;  %11393 = vmatprep.subr.mxu1 %v14041_v49 }
 0x223   :  { %11826 = vrcp.f32 %v5500_v9  ;;  %11386 = vmatmul.mubr.msk.f32.vlgmr.msra.gmra.mrb[70].mxu1 %vm5071_vm2, %v5663_v19  ;;  %11398 = vmatprep.subr.mxu0 %v14041_v49 }
 0x224   :  { %v11817_v60 = vpop.eup %11816  ;;  %11391 = vmatmul.mubr.msk.f32.vlgmr.msra.gmra.mrb[72].mxu0 %vm5071_vm2, %v5665_v0  ;;  %11394 = vmatpush3.msra.mxu1 %v5785_v34  ;;  %v5791_v0 = vld [vmem:[%s13998_s2 + $0x78] sm:$0xff] }
 0x225   :  { %v11819_v28 = vpop.eup %11818  ;;  %v5667_v4 = vmul.f32 %v11817_v60, %v12967_v30  ;;  %v5503_v40 = vpop.xlane.xlu1 %5502  ;;  %11395 = vmatprep.mubr.msk.f32.mxu1 %vm11927_vm1, %v14041_v49  ;;  %11399 = vmatpush3.msra.mxu0 %v5786_v42  ;;  %v5788_v30 = vld [vmem:[%s13998_s2 + $0x60] sm:$0xff] }
 0x226   :  { %v5669_v56 = vmul.f32 %v11819_v28, %v12969_v48  ;;  %11828 = vrcp.f32 %v5503_v40  ;;  %v5506_v10 = vpop.xlane.xlu0 %5505  ;;  %11400 = vmatprep.mubr.msk.f32.mxu0 %vm11927_vm1, %v14041_v49  ;;  %11403 = vmatprep.subr.mxu1 %v14041_v49  ;;  %v5793_v40 = vld [vmem:[%s13998_s2 + $0x88] sm:$0xff] }
 0x227   :  { %11830 = vrcp.f32 %v5506_v10  ;;  %11396 = vmatmul.mubr.msk.f32.vlgmr.msra.gmra.mrb[72].mxu1 %vm5071_vm2, %v5667_v4  ;;  %11408 = vmatprep.subr.mxu0 %v14041_v49 }
 0x228   :  { %v11821_v13 = vpop.eup %11820  ;;  %11401 = vmatmul.mubr.msk.f32.vlgmr.msra.gmra.mrb[74].mxu0 %vm5071_vm2, %v5669_v56  ;;  %11404 = vmatpush3.msra.mxu1 %v5787_v51 }
 0x229   :  { %v11823_v48 = vpop.eup %11822  ;;  %v5671_v24 = vmul.f32 %v11821_v13, %v12977_v57  ;;  %v5509_v5 = vpop.xlane.xlu1 %5508  ;;  %11405 = vmatprep.mubr.msk.f32.mxu1 %vm11927_vm1, %v14041_v49  ;;  %11409 = vmatpush3.msra.mxu0 %v5788_v30  ;;  %v5790_v57 = vld [vmem:[%s13998_s2 + $0x70] sm:$0xff] }
 0x22a   :  { %v5673_v39 = vmul.f32 %v11823_v48, %v12979_v38  ;;  %11832 = vrcp.f32 %v5509_v5  ;;  %v5512_v2 = vpop.xlane.xlu0 %5511  ;;  %11410 = vmatprep.mubr.msk.f32.mxu0 %vm11927_vm1, %v14041_v49  ;;  %11413 = vmatprep.subr.mxu1 %v14041_v49  ;;  %v5795_v48 = vld [vmem:[%s13998_s2 + $0x98] sm:$0xff] }
 0x22b   :  { %11834 = vrcp.f32 %v5512_v2  ;;  %11406 = vmatmul.mubr.msk.f32.vlgmr.msra.gmra.mrb[74].mxu1 %vm5071_vm2, %v5671_v24  ;;  %11418 = vmatprep.subr.mxu0 %v14041_v49 }
 0x22c   :  { %v11825_v19 = vpop.eup %11824  ;;  %11411 = vmatmul.mubr.msk.f32.vlgmr.msra.gmra.mrb[76].mxu0 %vm5071_vm2, %v5673_v39  ;;  %11414 = vmatpush3.msra.mxu1 %v5789_v11 }
 0x22d   :  { %v11827_v38 = vpop.eup %11826  ;;  %v5675_v58 = vmul.f32 %v11825_v19, %v12987_v7  ;;  %v5515_v34 = vpop.xlane.xlu1 %5514  ;;  %11415 = vmatprep.mubr.msk.f32.mxu1 %vm11927_vm1, %v14041_v49  ;;  %11419 = vmatpush3.msra.mxu0 %v5790_v57  ;;  %v5792_v7 = vld [vmem:[%s13998_s2 + $0x80] sm:$0xff]  ;;  %v5797_v57 = vld [vmem:[%s13998_s2 + $0xa8] sm:$0xff] }
 0x22e   :  { %v5677_v9 = vmul.f32 %v11827_v38, %v12992_v31  ;;  %11836 = vrcp.f32 %v5515_v34  ;;  %v5518_v42 = vpop.xlane.xlu0 %5517  ;;  %11420 = vmatprep.mubr.msk.f32.mxu0 %vm11927_vm1, %v14041_v49  ;;  %11423 = vmatprep.subr.mxu1 %v14041_v49 }
 0x22f   :  { %11838 = vrcp.f32 %v5518_v42  ;;  %11416 = vmatmul.mubr.msk.f32.vlgmr.msra.gmra.mrb[76].mxu1 %vm5071_vm2, %v5675_v58  ;;  %11428 = vmatprep.subr.mxu0 %v14041_v49 }
 0x230   :  { %v11829_v60 = vpop.eup %11828  ;;  %11421 = vmatmul.mubr.msk.f32.vlgmr.msra.gmra.mrb[78].mxu0 %vm5071_vm2, %v5677_v9  ;;  %11424 = vmatpush3.msra.mxu1 %v5791_v0  ;;  %v5799_v9 = vld [vmem:[%s13998_s2 + $0xb8] sm:$0xff] }
 0x231   :  { %v11831_v31 = vpop.eup %11830  ;;  %v5679_v28 = vmul.f32 %v11829_v60, %v13001_v52  ;;  %v5521_v4 = vpop.xlane.xlu1 %5520  ;;  %11425 = vmatprep.mubr.msk.f32.mxu1 %vm11927_vm1, %v14041_v49  ;;  %11429 = vmatpush3.msra.mxu0 %v5792_v7  ;;  %v5794_v52 = vld [vmem:[%s13998_s2 + $0x90] sm:$0xff] }
 0x232   :  { %v5681_v51 = vmul.f32 %v11831_v31, %v13006_v29  ;;  %11840 = vrcp.f32 %v5521_v4  ;;  %v5524_v56 = vpop.xlane.xlu0 %5523  ;;  %11430 = vmatprep.mubr.msk.f32.mxu0 %vm11927_vm1, %v14041_v49  ;;  %11433 = vmatprep.subr.mxu1 %v14041_v49  ;;  %v5801_v4 = vld [vmem:[%s13998_s2 + $0xc8] sm:$0xff] }
 0x233   :  { %11842 = vrcp.f32 %v5524_v56  ;;  %11426 = vmatmul.mubr.msk.f32.vlgmr.msra.gmra.mrb[78].mxu1 %vm5071_vm2, %v5679_v28  ;;  %11438 = vmatprep.subr.mxu0 %v14041_v49 }
 0x234   :  { %v11833_v10 = vpop.eup %11832  ;;  %11431 = vmatmul.mubr.msk.f32.vlgmr.msra.gmra.mrb[80].mxu0 %vm5071_vm2, %v5681_v51  ;;  %11434 = vmatpush3.msra.mxu1 %v5793_v40 }
 0x235   :  { %v11835_v29 = vpop.eup %11834  ;;  %v5683_v30 = vmul.f32 %v11833_v10, %v13015_v8  ;;  %v5527_v13 = vpop.xlane.xlu1 %5526  ;;  %11435 = vmatprep.mubr.msk.f32.mxu1 %vm11927_vm1, %v14041_v49  ;;  %11439 = vmatpush3.msra.mxu0 %v5794_v52  ;;  %v5796_v8 = vld [vmem:[%s13998_s2 + $0xa0] sm:$0xff] }
 0x236   :  { %v5685_v24 = vmul.f32 %v11835_v29, %v13017_v17  ;;  %11844 = vrcp.f32 %v5527_v13  ;;  %v5530_v5 = vpop.xlane.xlu0 %5529  ;;  %11440 = vmatprep.mubr.msk.f32.mxu0 %vm11927_vm1, %v14041_v49  ;;  %11443 = vmatprep.subr.mxu1 %v14041_v49  ;;  %v5803_v29 = vld [vmem:[%s13998_s2 + $0xd8] sm:$0xff] }
 0x237   :  { %11846 = vrcp.f32 %v5530_v5  ;;  %11436 = vmatmul.mubr.msk.f32.vlgmr.msra.gmra.mrb[80].mxu1 %vm5071_vm2, %v5683_v30  ;;  %11448 = vmatprep.subr.mxu0 %v14041_v49 }
 0x238   :  { %v11837_v11 = vpop.eup %11836  ;;  %11441 = vmatmul.mubr.msk.f32.vlgmr.msra.gmra.mrb[82].mxu0 %vm5071_vm2, %v5685_v24  ;;  %11444 = vmatpush3.msra.mxu1 %v5795_v48 }
 0x239   :  { %v11839_v17 = vpop.eup %11838  ;;  %v5687_v39 = vmul.f32 %v11837_v11, %v13025_v16  ;;  %v5533_v2 = vpop.xlane.xlu1 %5532  ;;  %11445 = vmatprep.mubr.msk.f32.mxu1 %vm11927_vm1, %v14041_v49  ;;  %11449 = vmatpush3.msra.mxu0 %v5796_v8  ;;  %v5798_v16 = vld [vmem:[%s13998_s2 + $0xb0] sm:$0xff]  ;;  %v5805_v8 = vld [vmem:[%s13998_s2 + $0xe8] sm:$0xff] }
 0x23a   :  { %v5689_v19 = vmul.f32 %v11839_v17, %v13027_v37  ;;  %11848 = vrcp.f32 %v5533_v2  ;;  %v5536_v38 = vpop.xlane.xlu0 %5535  ;;  %11450 = vmatprep.mubr.msk.f32.mxu0 %vm11927_vm1, %v14041_v49  ;;  %11453 = vmatprep.subr.mxu1 %v14041_v49 }
 0x23b   :  { %11850 = vrcp.f32 %v5536_v38  ;;  %11446 = vmatmul.mubr.msk.f32.vlgmr.msra.gmra.mrb[82].mxu1 %vm5071_vm2, %v5687_v39  ;;  %11458 = vmatprep.subr.mxu0 %v14041_v49 }
 0x23c   :  { %v11841_v58 = vpop.eup %11840  ;;  %11451 = vmatmul.mubr.msk.f32.vlgmr.msra.gmra.mrb[84].mxu0 %vm5071_vm2, %v5689_v19  ;;  %11454 = vmatpush3.msra.mxu1 %v5797_v57  ;;  %v5807_v19 = vld [vmem:[%s13998_s2 + $0xf8] sm:$0xff] }
 0x23d   :  { %v11843_v37 = vpop.eup %11842  ;;  %v5691_v34 = vmul.f32 %v11841_v58, %v13035_v62  ;;  %v5539_v0 = vpop.xlane.xlu1 %5538  ;;  %11455 = vmatprep.mubr.msk.f32.mxu1 %vm11927_vm1, %v14041_v49  ;;  %11459 = vmatpush3.msra.mxu0 %v5798_v16  ;;  %v5800_v62 = vld [vmem:[%s13998_s2 + $0xc0] sm:$0xff] }
 0x23e   :  { %v5693_v42 = vmul.f32 %v11843_v37, %v13037_v43  ;;  %11852 = vrcp.f32 %v5539_v0  ;;  %v5542_v7 = vpop.xlane.xlu0 %5541  ;;  %11460 = vmatprep.mubr.msk.f32.mxu0 %vm11927_vm1, %v14041_v49  ;;  %11463 = vmatprep.subr.mxu1 %v14041_v49  ;;  %v5809_v0 = vld [vmem:[%s13998_s2 + $0x108] sm:$0xff] }
 0x23f   :  { %11854 = vrcp.f32 %v5542_v7  ;;  %11456 = vmatmul.mubr.msk.f32.vlgmr.msra.gmra.mrb[84].mxu1 %vm5071_vm2, %v5691_v34  ;;  %11468 = vmatprep.subr.mxu0 %v14041_v49 }
 0x240   :  { %v11845_v60 = vpop.eup %11844  ;;  %11461 = vmatmul.mubr.msk.f32.vlgmr.msra.gmra.mrb[86].mxu0 %vm5071_vm2, %v5693_v42  ;;  %11464 = vmatpush3.msra.mxu1 %v5799_v9 }
 0x241   :  { %v11847_v43 = vpop.eup %11846  ;;  %v5695_v31 = vmul.f32 %v11845_v60, %v13045_v18  ;;  %v5545_v28 = vpop.xlane.xlu1 %5544  ;;  %11465 = vmatprep.mubr.msk.f32.mxu1 %vm11927_vm1, %v14041_v49  ;;  %11469 = vmatpush3.msra.mxu0 %v5800_v62  ;;  %v5802_v18 = vld [vmem:[%s13998_s2 + $0xd0] sm:$0xff] }
 0x242   :  { %v5697_v40 = vmul.f32 %v11847_v43, %v13047_v22  ;;  %11856 = vrcp.f32 %v5545_v28  ;;  %v5548_v51 = vpop.xlane.xlu0 %5547  ;;  %11470 = vmatprep.mubr.msk.f32.mxu0 %vm11927_vm1, %v14041_v49  ;;  %11473 = vmatprep.subr.mxu1 %v14041_v49  ;;  %v5811_v43 = vld [vmem:[%s13998_s2 + $0x118] sm:$0xff] }
 0x243   :  { %11858 = vrcp.f32 %v5548_v51  ;;  %11466 = vmatmul.mubr.msk.f32.vlgmr.msra.gmra.mrb[86].mxu1 %vm5071_vm2, %v5695_v31  ;;  %11478 = vmatprep.subr.mxu0 %v14041_v49 }
 0x244   :  { %v11849_v56 = vpop.eup %11848  ;;  %11471 = vmatmul.mubr.msk.f32.vlgmr.msra.gmra.mrb[88].mxu0 %vm5071_vm2, %v5697_v40  ;;  %11474 = vmatpush3.msra.mxu1 %v5801_v4 }
 0x245   :  { %v11851_v22 = vpop.eup %11850  ;;  %v5699_v52 = vmul.f32 %v11849_v56, %v13055_v23  ;;  %v5551_v10 = vpop.xlane.xlu1 %5550  ;;  %11475 = vmatprep.mubr.msk.f32.mxu1 %vm11927_vm1, %v14041_v49  ;;  %11479 = vmatpush3.msra.mxu0 %v5802_v18  ;;  %v5804_v23 = vld [vmem:[%s13998_s2 + $0xe0] sm:$0xff]  ;;  %v5813_v18 = vld [vmem:[%s13998_s2 + $0x128] sm:$0xff] }
 0x246   :  { %v5701_v30 = vmul.f32 %v11851_v22, %v13057_v55  ;;  %11860 = vrcp.f32 %v5551_v10  ;;  %v5554_v13 = vpop.xlane.xlu0 %5553  ;;  %11480 = vmatprep.mubr.msk.f32.mxu0 %vm11927_vm1, %v14041_v49  ;;  %11483 = vmatprep.subr.mxu1 %v14041_v49 }
 0x247   :  { %11862 = vrcp.f32 %v5554_v13  ;;  %11476 = vmatmul.mubr.msk.f32.vlgmr.msra.gmra.mrb[88].mxu1 %vm5071_vm2, %v5699_v52  ;;  %11488 = vmatprep.subr.mxu0 %v14041_v49 }
 0x248   :  { %v11853_v48 = vpop.eup %11852  ;;  %11481 = vmatmul.mubr.msk.f32.vlgmr.msra.gmra.mrb[90].mxu0 %vm5071_vm2, %v5701_v30  ;;  %11484 = vmatpush3.msra.mxu1 %v5803_v29  ;;  %v5815_v30 = vld [vmem:[%s13998_s2 + $0x138] sm:$0xff] }
 0x249   :  { %v11855_v55 = vpop.eup %11854  ;;  %v5703_v24 = vmul.f32 %v11853_v48, %v13065_v32  ;;  %v5557_v5 = vpop.xlane.xlu1 %5556  ;;  %11485 = vmatprep.mubr.msk.f32.mxu1 %vm11927_vm1, %v14041_v49  ;;  %11489 = vmatpush3.msra.mxu0 %v5804_v23  ;;  %v5806_v32 = vld [vmem:[%s13998_s2 + $0xf0] sm:$0xff] }
 0x24a   :  { %v5705_v11 = vmul.f32 %v11855_v55, %v13067_v1  ;;  %11864 = vrcp.f32 %v5557_v5  ;;  %v5560_v17 = vpop.xlane.xlu0 %5559  ;;  %11490 = vmatprep.mubr.msk.f32.mxu0 %vm11927_vm1, %v14041_v49  ;;  %11493 = vmatprep.subr.mxu1 %v14041_v49  ;;  %v5817_v5 = vld [vmem:[%s13998_s2 + $0x148] sm:$0xff] }
 0x24b   :  { %11866 = vrcp.f32 %v5560_v17  ;;  %11486 = vmatmul.mubr.msk.f32.vlgmr.msra.gmra.mrb[90].mxu1 %vm5071_vm2, %v5703_v24  ;;  %11498 = vmatprep.subr.mxu0 %v14041_v49 }
 0x24c   :  { %v11857_v39 = vpop.eup %11856  ;;  %11491 = vmatmul.mubr.msk.f32.vlgmr.msra.gmra.mrb[92].mxu0 %vm5071_vm2, %v5705_v11  ;;  %11494 = vmatpush3.msra.mxu1 %v5805_v8 }
 0x24d   :  { %v11859_v1 = vpop.eup %11858  ;;  %v5707_v2 = vmul.f32 %v11857_v39, %v13075_v41  ;;  %v5563_v57 = vpop.xlane.xlu1 %5562  ;;  %11495 = vmatprep.mubr.msk.f32.mxu1 %vm11927_vm1, %v14041_v49  ;;  %11499 = vmatpush3.msra.mxu0 %v5806_v32  ;;  %v5808_v41 = vld [vmem:[%s13998_s2 + $0x100] sm:$0xff] }
 0x24e   :  { %v5709_v38 = vmul.f32 %v11859_v1, %v13077_v27  ;;  %11868 = vrcp.f32 %v5563_v57  ;;  %v5566_v16 = vpop.xlane.xlu0 %5565  ;;  %11500 = vmatprep.mubr.msk.f32.mxu0 %vm11927_vm1, %v14041_v49  ;;  %11503 = vmatprep.subr.mxu1 %v14041_v49  ;;  %v5819_v1 = vld [vmem:[%s13998_s2 + $0x158] sm:$0xff] }
 0x24f   :  { %11870 = vrcp.f32 %v5566_v16  ;;  %11496 = vmatmul.mubr.msk.f32.vlgmr.msra.gmra.mrb[92].mxu1 %vm5071_vm2, %v5707_v2  ;;  %11508 = vmatprep.subr.mxu0 %v14041_v49 }
 0x250   :  { %v11861_v58 = vpop.eup %11860  ;;  %11501 = vmatmul.mubr.msk.f32.vlgmr.msra.gmra.mrb[94].mxu0 %vm5071_vm2, %v5709_v38  ;;  %11504 = vmatpush3.msra.mxu1 %v5807_v19 }
 0x251   :  { %v11863_v27 = vpop.eup %11862  ;;  %v5711_v37 = vmul.f32 %v11861_v58, %v13085_v50  ;;  %v5569_v34 = vpop.xlane.xlu1 %5568  ;;  %11505 = vmatprep.mubr.msk.f32.mxu1 %vm11927_vm1, %v14041_v49  ;;  %11509 = vmatpush3.msra.mxu0 %v5808_v41  ;;  %v5810_v50 = vld [vmem:[%s13998_s2 + $0x110] sm:$0xff]  ;;  %v5821_v41 = vld [vmem:[%s13998_s2 + $0x168] sm:$0xff] }
 0x252   :  { %v5713_v9 = vmul.f32 %v11863_v27, %v13087_v36  ;;  %11872 = vrcp.f32 %v5569_v34  ;;  %v5572_v42 = vpop.xlane.xlu0 %5571  ;;  %11510 = vmatprep.mubr.msk.f32.mxu0 %vm11927_vm1, %v14041_v49  ;;  %11513 = vmatprep.subr.mxu1 %v14041_v49  ;;  %v14067_v34 = vld [vmem:[#allocation2_spill] sm:$0xff] }
 0x253   :  { %11874 = vrcp.f32 %v5572_v42  ;;  %11506 = vmatmul.mubr.msk.f32.vlgmr.msra.gmra.mrb[94].mxu1 %vm5071_vm2, %v5711_v37  ;;  %11518 = vmatprep.subr.mxu0 %v14041_v49  ;;  %v5823_v42 = vld [vmem:[%s13998_s2 + $0x178] sm:$0xff] }
 0x254   :  { %v11865_v7 = vpop.eup %11864  ;;  %11511 = vmatmul.mubr.msk.f32.vlgmr.msra.gmra.mrb[96].mxu0 %vm5071_vm2, %v5713_v9  ;;  %11514 = vmatpush3.msra.mxu1 %v5809_v0 }
 0x255   :  { %v11867_v36 = vpop.eup %11866  ;;  %v5715_v62 = vmul.f32 %v11865_v7, %v13095_v59  ;;  %v5575_v60 = vpop.xlane.xlu1 %5574  ;;  %11515 = vmatprep.mubr.msk.f32.mxu1 %vm11927_vm1, %v14041_v49  ;;  %11519 = vmatpush3.msra.mxu0 %v5810_v50  ;;  %v5812_v59 = vld [vmem:[%s13998_s2 + $0x120] sm:$0xff]  ;;  %v14068_v50 = vld [vmem:[#allocation3_spill] sm:$0xff] }
 0x256   :  { %v5717_v31 = vmul.f32 %v11867_v36, %v13097_v45  ;;  %11876 = vrcp.f32 %v5575_v60  ;;  %v5578_v28 = vpop.xlane.xlu0 %5577  ;;  %11520 = vmatprep.mubr.msk.f32.mxu0 %vm11927_vm1, %v14041_v49  ;;  %11523 = vmatprep.subr.mxu1 %v14041_v49 }
 0x257   :  { %11878 = vrcp.f32 %v5578_v28  ;;  %11516 = vmatmul.mubr.msk.f32.vlgmr.msra.gmra.mrb[96].mxu1 %vm5071_vm2, %v5715_v62  ;;  %11528 = vmatprep.subr.mxu0 %v14041_v49  ;;  %v5824_v62 = vld [vmem:[%s13998_s2 + $0x180] sm:$0xff] }
 0x258   :  { %v11869_v4 = vpop.eup %11868  ;;  %11521 = vmatmul.mubr.msk.f32.vlgmr.msra.gmra.mrb[98].mxu0 %vm5071_vm2, %v5717_v31  ;;  %11524 = vmatpush3.msra.mxu1 %v5811_v43  ;;  %v14069_v31 = vld [vmem:[#allocation4_spill] sm:$0xff] }
 0x259   :  { %v11871_v45 = vpop.eup %11870  ;;  %v5719_v40 = vmul.f32 %v11869_v4, %v13105_v6  ;;  %v5581_v51 = vpop.xlane.xlu1 %5580  ;;  %11525 = vmatprep.mubr.msk.f32.mxu1 %vm11927_vm1, %v14041_v49  ;;  %11529 = vmatpush3.msra.mxu0 %v5812_v59  ;;  %v5814_v6 = vld [vmem:[%s13998_s2 + $0x130] sm:$0xff]  ;;  %v5825_v4 = vld [vmem:[%s13998_s2 + $0x188] sm:$0xff] }
 0x25a   :  { %v5721_v56 = vmul.f32 %v11871_v45, %v13107_v54  ;;  %11880 = vrcp.f32 %v5581_v51  ;;  %v5584_v22 = vpop.xlane.xlu0 %5583  ;;  %11530 = vmatprep.mubr.msk.f32.mxu0 %vm11927_vm1, %v14041_v49  ;;  %11533 = vmatprep.subr.mxu1 %v14041_v49  ;;  %v14070_v45 = vld [vmem:[#allocation5_spill] sm:$0xff] }
 0x25b   :  { %11882 = vrcp.f32 %v5584_v22  ;;  %11526 = vmatmul.mubr.msk.f32.vlgmr.msra.gmra.mrb[98].mxu1 %vm5071_vm2, %v5719_v40  ;;  %11538 = vmatprep.subr.mxu0 %v14041_v49 }
 0x25c   :  { %v11873_v52 = vpop.eup %11872  ;;  %11531 = vmatmul.mubr.msk.f32.vlgmr.msra.gmra.mrb[100].mxu0 %vm5071_vm2, %v5721_v56  ;;  %11534 = vmatpush3.msra.mxu1 %v5813_v18  ;;  %v5826_v18 = vld [vmem:[%s13998_s2 + $0x190] sm:$0xff] }
 0x25d   :  { %v11875_v54 = vpop.eup %11874  ;;  %v5723_v10 = vmul.f32 %v11873_v52, %v13115_v20  ;;  %v5587_v29 = vpop.xlane.xlu1 %5586  ;;  %11535 = vmatprep.mubr.msk.f32.mxu1 %vm11927_vm1, %v14041_v49  ;;  %11539 = vmatpush3.msra.mxu0 %v5814_v6  ;;  %v5816_v20 = vld [vmem:[%s13998_s2 + $0x140] sm:$0xff] }
 0x25e   :  { %v5725_v13 = vmul.f32 %v11875_v54, %v13117_v63  ;;  %11884 = vrcp.f32 %v5587_v29  ;;  %v5590_v23 = vpop.xlane.xlu0 %5589  ;;  %11540 = vmatprep.mubr.msk.f32.mxu0 %vm11927_vm1, %v14041_v49  ;;  %11543 = vmatprep.subr.mxu1 %v14041_v49  ;;  %v14071_v6 = vld [vmem:[#allocation6_spill] sm:$0xff]  ;;  %v14072_v29 = vld [vmem:[#allocation7_spill] sm:$0xff] }
 0x25f   :  { %11886 = vrcp.f32 %v5590_v23  ;;  %11536 = vmatmul.mubr.msk.f32.vlgmr.msra.gmra.mrb[100].mxu1 %vm5071_vm2, %v5723_v10  ;;  %11548 = vmatprep.subr.mxu0 %v14041_v49  ;;  %v5827_v10 = vld [vmem:[%s13998_s2 + $0x198] sm:$0xff]  ;;  %v5828_v23 = vld [vmem:[%s13998_s2 + $0x1a0] sm:$0xff] }
 0x260   :  { %v11877_v48 = vpop.eup %11876  ;;  %11541 = vmatmul.mubr.msk.f32.vlgmr.msra.gmra.mrb[102].mxu0 %vm5071_vm2, %v5725_v13  ;;  %11544 = vmatpush3.msra.mxu1 %v5815_v30 }
 0x261   :  { %v11879_v63 = vpop.eup %11878  ;;  %v5727_v55 = vmul.f32 %v11877_v48, %v13125_v33  ;;  %v5593_v24 = vpop.xlane.xlu1 %5592  ;;  %11545 = vmatprep.mubr.msk.f32.mxu1 %vm11927_vm1, %v14041_v49  ;;  %11549 = vmatpush3.msra.mxu0 %v5816_v20  ;;  %v5818_v33 = vld [vmem:[%s13998_s2 + $0x150] sm:$0xff] }
 0x262   :  { %v5729_v8 = vmul.f32 %v11879_v63, %v13127_v12  ;;  %11888 = vrcp.f32 %v5593_v24  ;;  %v5596_v11 = vpop.xlane.xlu0 %5595  ;;  %11550 = vmatprep.mubr.msk.f32.mxu0 %vm11927_vm1, %v14041_v49  ;;  %11553 = vmatprep.subr.mxu1 %v14041_v49  ;;  %v5829_v24 = vld [vmem:[%s13998_s2 + $0x1a8] sm:$0xff] }
 0x263   :  { %11890 = vrcp.f32 %v5596_v11  ;;  %11546 = vmatmul.mubr.msk.f32.vlgmr.msra.gmra.mrb[102].mxu1 %vm5071_vm2, %v5727_v55  ;;  %11558 = vmatprep.subr.mxu0 %v14041_v49 }
 0x264   :  { %v11881_v17 = vpop.eup %11880  ;;  %11551 = vmatmul.mubr.msk.f32.vlgmr.msra.gmra.mrb[104].mxu0 %vm5071_vm2, %v5729_v8  ;;  %11554 = vmatpush3.msra.mxu1 %v5817_v5  ;;  %v14073_v5 = vld [vmem:[#allocation8_spill] sm:$0xff] }
 0x265   :  { %v11883_v12 = vpop.eup %11882  ;;  %v5731_v32 = vmul.f32 %v11881_v17, %v13135_v47  ;;  %v5599_v39 = vpop.xlane.xlu1 %5598  ;;  %11555 = vmatprep.mubr.msk.f32.mxu1 %vm11927_vm1, %v14041_v49  ;;  %11559 = vmatpush3.msra.mxu0 %v5818_v33  ;;  %v5820_v47 = vld [vmem:[%s13998_s2 + $0x160] sm:$0xff] }
 0x266   :  { %v5733_v2 = vmul.f32 %v11883_v12, %v13137_v26  ;;  %11892 = vrcp.f32 %v5599_v39  ;;  %v5602_v57 = vpop.xlane.xlu0 %5601  ;;  %11560 = vmatprep.mubr.msk.f32.mxu0 %vm11927_vm1, %v14041_v49  ;;  %11563 = vmatprep.subr.mxu1 %v14041_v49  ;;  %v5831_v39 = vld [vmem:[%s13998_s2 + $0x1b8] sm:$0xff] }
 0x267   :  { %11894 = vrcp.f32 %v5602_v57  ;;  %11556 = vmatmul.mubr.msk.f32.vlgmr.msra.gmra.mrb[104].mxu1 %vm5071_vm2, %v5731_v32  ;;  %11568 = vmatprep.subr.mxu0 %v14041_v49 }
 0x268   :  { %v11885_v19 = vpop.eup %11884  ;;  %11561 = vmatmul.mubr.msk.f32.vlgmr.msra.gmra.mrb[106].mxu0 %vm5071_vm2, %v5733_v2  ;;  %11564 = vmatpush3.msra.mxu1 %v5819_v1 }
 0x269   :  { %v11887_v26 = vpop.eup %11886  ;;  %v5735_v38 = vmul.f32 %v11885_v19, %v13145_v3  ;;  %v5605_v16 = vpop.xlane.xlu1 %5604  ;;  %11565 = vmatprep.mubr.msk.f32.mxu1 %vm11927_vm1, %v14041_v49  ;;  %11569 = vmatpush3.msra.mxu0 %v5820_v47  ;;  %v5822_v3 = vld [vmem:[%s13998_s2 + $0x170] sm:$0xff] }
 0x26a   :  { %v5737_v58 = vmul.f32 %v11887_v26, %v13147_v46  ;;  %11896 = vrcp.f32 %v5605_v16  ;;  %v5608_v27 = vpop.xlane.xlu0 %5607  ;;  %11570 = vmatprep.mubr.msk.f32.mxu0 %vm11927_vm1, %v14041_v49  ;;  %11573 = vmatprep.subr.mxu1 %v14041_v49  ;;  %v5833_v26 = vld [vmem:[%s13998_s2 + $0x1c8] sm:$0xff] }
 0x26b   :  { %11898 = vrcp.f32 %v5608_v27  ;;  %11566 = vmatmul.mubr.msk.f32.vlgmr.msra.gmra.mrb[106].mxu1 %vm5071_vm2, %v5735_v38  ;;  %11578 = vmatprep.subr.mxu0 %v14041_v49 }
 0x26c   :  { %v11889_v37 = vpop.eup %11888  ;;  %11571 = vmatmul.mubr.msk.f32.vlgmr.msra.gmra.mrb[108].mxu0 %vm5071_vm2, %v5737_v58  ;;  %11574 = vmatpush3.msra.mxu1 %v5821_v41 }
 0x26d   :  { %v11891_v46 = vpop.eup %11890  ;;  %v5739_v0 = vmul.f32 %v11889_v37, %v14067_v34  ;;  %v5611_v9 = vpop.xlane.xlu1 %5610  ;;  %11575 = vmatprep.mubr.msk.f32.mxu1 %vm11927_vm1, %v14041_v49  ;;  %11579 = vmatpush3.msra.mxu0 %v5822_v3  ;;  %v5835_v3 = vld [vmem:[%s13998_s2 + $0x1d8] sm:$0xff] }
 0x26e   :  { %v5741_v7 = vmul.f32 %v11891_v46, %v14068_v50  ;;  %11900 = vrcp.f32 %v5611_v9  ;;  %v5614_v36 = vpop.xlane.xlu0 %5613  ;;  %11580 = vmatprep.mubr.msk.f32.mxu0 %vm11927_vm1, %v14041_v49  ;;  %11583 = vmatprep.subr.mxu1 %v14041_v49  ;;  %v5837_v9 = vld [vmem:[%s13998_s2 + $0x1e8] sm:$0xff] }
 0x26f   :  { %11902 = vrcp.f32 %v5614_v36  ;;  %11576 = vmatmul.mubr.msk.f32.vlgmr.msra.gmra.mrb[108].mxu1 %vm5071_vm2, %v5739_v0  ;;  %11588 = vmatprep.subr.mxu0 %v14041_v49 }
 0x270   :  { %v11893_v60 = vpop.eup %11892  ;;  %11581 = vmatmul.mubr.msk.f32.vlgmr.msra.gmra.mrb[110].mxu0 %vm5071_vm2, %v5741_v7  ;;  %11584 = vmatpush3.msra.mxu1 %v5823_v42  ;;  %v14075_v42 = vld [vmem:[#allocation10_spill] sm:$0xff]  ;;  %v5838_v7 = vld [vmem:[%s13998_s2 + $0x1f0] sm:$0xff] }
 0x271   :  { %v11895_v43 = vpop.eup %11894  ;;  %v5743_v28 = vmul.f32 %v11893_v60, %v14069_v31  ;;  %v5617_v59 = vpop.xlane.xlu1 %5616  ;;  %11585 = vmatprep.mubr.msk.f32.mxu1 %vm11927_vm1, %v14041_v49  ;;  %11589 = vmatpush3.msra.mxu0 %v5824_v62  ;;  %v14076_v60 = vld [vmem:[#allocation11_spill] sm:$0xff]  ;;  %v5839_v31 = vld [vmem:[%s13998_s2 + $0x1f8] sm:$0xff] }
 0x272   :  { %v5745_v40 = vmul.f32 %v11895_v43, %v14070_v45  ;;  %11904 = vrcp.f32 %v5617_v59  ;;  %v5620_v51 = vpop.xlane.xlu0 %5619  ;;  %11590 = vmatprep.mubr.msk.f32.mxu0 %vm11927_vm1, %v14041_v49  ;;  %11593 = vmatprep.subr.mxu1 %v14041_v49 }
 0x273   :  { %11906 = vrcp.f32 %v5620_v51  ;;  %11586 = vmatmul.mubr.msk.f32.vlgmr.msra.gmra.mrb[110].mxu1 %vm5071_vm2, %v5743_v28  ;;  %11598 = vmatprep.subr.mxu0 %v14041_v49  ;;  %v14077_v28 = vld [vmem:[#allocation12_spill] sm:$0xff] }
 0x274   :  { %v11897_v56 = vpop.eup %11896  ;;  %11591 = vmatmul.mubr.msk.f32.vlgmr.msra.gmra.mrb[112].mxu0 %vm5071_vm2, %v5745_v40  ;;  %11594 = vmatpush3.msra.mxu1 %v5825_v4 }
 0x275   :  { %v11899_v22 = vpop.eup %11898  ;;  %v5747_v52 = vmul.f32 %v11897_v56, %v14071_v6  ;;  %v5623_v54 = vpop.xlane.xlu1 %5622  ;;  %11595 = vmatprep.mubr.msk.f32.mxu1 %vm11927_vm1, %v14041_v49  ;;  %11599 = vmatpush3.msra.mxu0 %v5826_v18 }
 0x276   :  { %v5749_v30 = vmul.f32 %v11899_v22, %v14072_v29  ;;  %11908 = vrcp.f32 %v5623_v54  ;;  %v5626_v13 = vpop.xlane.xlu0 %5625  ;;  %11600 = vmatprep.mubr.msk.f32.mxu0 %vm11927_vm1, %v14041_v49  ;;  %11603 = vmatprep.subr.mxu1 %v14041_v49 }
 0x277   :  { %11910 = vrcp.f32 %v5626_v13  ;;  %11596 = vmatmul.mubr.msk.f32.vlgmr.msra.gmra.mrb[112].mxu1 %vm5071_vm2, %v5747_v52  ;;  %11608 = vmatprep.subr.mxu0 %v14041_v49 }
 0x278   :  { %v11901_v20 = vpop.eup %11900  ;;  %11601 = vmatmul.mubr.msk.f32.vlgmr.msra.gmra.mrb[114].mxu0 %vm5071_vm2, %v5749_v30  ;;  %11604 = vmatpush3.msra.mxu1 %v5827_v10 }
 0x279   :  { %v11903_v48 = vpop.eup %11902  ;;  %v5751_v63 = vmul.f32 %v11901_v20, %v13185_v44  ;;  %v5629_v55 = vpop.xlane.xlu1 %5628  ;;  %11605 = vmatprep.mubr.msk.f32.mxu1 %vm11927_vm1, %v14041_v49  ;;  %11609 = vmatpush3.msra.mxu0 %v5828_v23  ;;  %v5830_v44 = vld [vmem:[%s13998_s2 + $0x1b0] sm:$0xff] }
 0x27a   :  { %v5753_v8 = vmul.f32 %v11903_v48, %v14073_v5  ;;  %11912 = vrcp.f32 %v5629_v55  ;;  %v5632_v11 = vpop.xlane.xlu0 %5631  ;;  %11610 = vmatprep.mubr.msk.f32.mxu0 %vm11927_vm1, %v14041_v49  ;;  %11613 = vmatprep.subr.mxu1 %v14041_v49 }
 0x27b   :  { %11914 = vrcp.f32 %v5632_v11  ;;  %11606 = vmatmul.mubr.msk.f32.vlgmr.msra.gmra.mrb[114].mxu1 %vm5071_vm2, %v5751_v63  ;;  %11618 = vmatprep.subr.mxu0 %v14041_v49 }
 0x27c   :  { %v11905_v33 = vpop.eup %11904  ;;  %11611 = vmatmul.mubr.msk.f32.vlgmr.msra.gmra.mrb[116].mxu0 %vm5071_vm2, %v5753_v8  ;;  %11614 = vmatpush3.msra.mxu1 %v5829_v24 }
 0x27d   :  { %v11907_v17 = vpop.eup %11906  ;;  %v5755_v12 = vmul.f32 %v11905_v33, %v13195_v53  ;;  %v5635_v32 = vpop.xlane.xlu1 %5634  ;;  %11615 = vmatprep.mubr.msk.f32.mxu1 %vm11927_vm1, %v14041_v49  ;;  %11619 = vmatpush3.msra.mxu0 %v5830_v44  ;;  %v5832_v53 = vld [vmem:[%s13998_s2 + $0x1c0] sm:$0xff] }
 0x27e   :  { %v5757_v1 = vmul.f32 %v11907_v17, %v13197_v15  ;;  %11916 = vrcp.f32 %v5635_v32  ;;  %v5638_v2 = vpop.xlane.xlu0 %5637  ;;  %11620 = vmatprep.mubr.msk.f32.mxu0 %vm11927_vm1, %v14041_v49  ;;  %11623 = vmatprep.subr.mxu1 %v14041_v49 }
 0x27f   :  { %11918 = vrcp.f32 %v5638_v2  ;;  %11616 = vmatmul.mubr.msk.f32.vlgmr.msra.gmra.mrb[116].mxu1 %vm5071_vm2, %v5755_v12  ;;  %11628 = vmatprep.subr.mxu0 %v14041_v49 }
 0x280   :  { %v11909_v57 = vpop.eup %11908  ;;  %11621 = vmatmul.mubr.msk.f32.vlgmr.msra.gmra.mrb[118].mxu0 %vm5071_vm2, %v5757_v1  ;;  %11624 = vmatpush3.msra.mxu1 %v5831_v39 }
 0x281   :  { %v11911_v15 = vpop.eup %11910  ;;  %v5759_v47 = vmul.f32 %v11909_v57, %v13205_v21  ;;  %v5641_v19 = vpop.xlane.xlu1 %5640  ;;  %11625 = vmatprep.mubr.msk.f32.mxu1 %vm11927_vm1, %v14041_v49  ;;  %11629 = vmatpush3.msra.mxu0 %v5832_v53  ;;  %v5834_v21 = vld [vmem:[%s13998_s2 + $0x1d0] sm:$0xff] }
 0x282   :  { %v5761_v38 = vmul.f32 %v11911_v15, %v13207_v61  ;;  %11920 = vrcp.f32 %v5641_v19  ;;  %v5644_v16 = vpop.xlane.xlu0 %5643  ;;  %11630 = vmatprep.mubr.msk.f32.mxu0 %vm11927_vm1, %v14041_v49  ;;  %11633 = vmatprep.subr.mxu1 %v14041_v49 }
 0x283   :  { %11922 = vrcp.f32 %v5644_v16  ;;  %11626 = vmatmul.mubr.msk.f32.vlgmr.msra.gmra.mrb[118].mxu1 %vm5071_vm2, %v5759_v47  ;;  %11638 = vmatprep.subr.mxu0 %v14041_v49 }
 0x284   :  { %v11913_v41 = vpop.eup %11912  ;;  %11631 = vmatmul.mubr.msk.f32.vlgmr.msra.gmra.mrb[120].mxu0 %vm5071_vm2, %v5761_v38  ;;  %11634 = vmatpush3.msra.mxu1 %v5833_v26 }
 0x285   :  { %v11915_v61 = vpop.eup %11914  ;;  %v5763_v58 = vmul.f32 %v11913_v41, %v13214_v35  ;;  %v5647_v27 = vpop.xlane.xlu1 %5646  ;;  %11635 = vmatprep.mubr.msk.f32.mxu1 %vm11927_vm1, %v14041_v49  ;;  %11639 = vmatpush3.msra.mxu0 %v5834_v21  ;;  %v5836_v35 = vld [vmem:[%s13998_s2 + $0x1e0] sm:$0xff] }
 0x286   :  { %v5765_v37 = vmul.f32 %v11915_v61, %v13216_v14  ;;  %11924 = vrcp.f32 %v5647_v27  ;;  %11640 = vmatprep.mubr.msk.f32.mxu0 %vm11927_vm1, %v14041_v49  ;;  %11643 = vmatprep.subr.mxu1 %v14041_v49  ;;  %v14074_v14 = vld [vmem:[#allocation9_spill] sm:$0xff] }
 0x287   :  { %11636 = vmatmul.mubr.msk.f32.vlgmr.msra.gmra.mrb[120].mxu1 %vm5071_vm2, %v5763_v58  ;;  %11648 = vmatprep.subr.mxu0 %v14041_v49 }
 0x288   :  { %v11917_v46 = vpop.eup %11916  ;;  %11641 = vmatmul.mubr.msk.f32.vlgmr.msra.gmra.mrb[122].mxu0 %vm5071_vm2, %v5765_v37  ;;  %11644 = vmatpush3.msra.mxu1 %v5835_v3 }
 0x289   :  { %v11919_v34 = vpop.eup %11918  ;;  %v5767_v0 = vmul.f32 %v11917_v46, %v14074_v14  ;;  %11645 = vmatprep.mubr.msk.f32.mxu1 %vm11927_vm1, %v14041_v49  ;;  %11649 = vmatpush3.msra.mxu0 %v5836_v35 }
 0x28a   :  { %v5769_v50 = vmul.f32 %v11919_v34, %v14075_v42  ;;  %11650 = vmatprep.mubr.msk.f32.mxu0 %vm11927_vm1, %v14041_v49  ;;  %11653 = vmatprep.subr.mxu1 %v14041_v49 }
 0x28b   :  { %11646 = vmatmul.mubr.msk.f32.vlgmr.msra.gmra.mrb[122].mxu1 %vm5071_vm2, %v5767_v0  ;;  %11658 = vmatprep.subr.mxu0 %v14041_v49 }
 0x28c   :  { %v11921_v36 = vpop.eup %11920  ;;  %11651 = vmatmul.mubr.msk.f32.vlgmr.msra.gmra.mrb[124].mxu0 %vm5071_vm2, %v5769_v50  ;;  %11654 = vmatpush3.msra.mxu1 %v5837_v9 }
 0x28d   :  { %v11923_v62 = vpop.eup %11922  ;;  %v5771_v43 = vmul.f32 %v11921_v36, %v14076_v60  ;;  %11655 = vmatprep.mubr.msk.f32.mxu1 %vm11927_vm1, %v14041_v49  ;;  %11659 = vmatpush3.msra.mxu0 %v5838_v7 }
 0x28e   :  { %v5773_v59 = vmul.f32 %v11923_v62, %v14077_v28  ;;  %11660 = vmatprep.mubr.msk.f32.mxu0 %vm11927_vm1, %v14041_v49  ;;  %11663 = vmatprep.subr.mxu1 %v14041_v49 }
 0x28f   :  { %11656 = vmatmul.mubr.msk.f32.vlgmr.msra.gmra.mrb[124].mxu1 %vm5071_vm2, %v5771_v43 }
 0x290   :  { %v11925_v4 = vpop.eup %11924  ;;  %11661 = vmatmul.mubr.msk.f32.vlgmr.msra.gmra.mrb[126].mxu0 %vm5071_vm2, %v5773_v59  ;;  %11664 = vmatpush3.msra.mxu1 %v5839_v31 }
 0x291   :  { %v5775_v45 = vmul.f32 %v11925_v4, %v13238_v25  ;;  %11665 = vmatprep.mubr.msk.f32.mxu1 %vm11927_vm1, %v14041_v49 }
 0x293   :  { %11666 = vmatmul.mubr.msk.f32.vlgmr.msra.gmra.mrb[126].mxu1 %vm5071_vm2, %v5775_v45 }
 0x2e6   :  { %v5909_v40 = vpop.f32.mrb[64].mxu0 }
 0x2e7   :  { %10512 = vst.msk [vmem:[%s13999_s3] sm:$0xff] %vm206_vm0, %v5909_v40  ;;  %v11352_v51 = vpop.f32.mrb[65].mxu0 }
 0x2ea   :  { %v5982_v18 = vpop.f32.mrb[64].mxu1 }
 0x2eb   :  { %10513 = vst.msk [vmem:[%s13999_s3 + $0x8] sm:$0xff] %vm206_vm0, %v5982_v18  ;;  %v6055_v56 = vpop.f32.mrb[66].mxu0  ;;  %v11357_v25 = vpop.f32.mrb[65].mxu1 }
 0x2ec   :  { %10514 = vst.msk [vmem:[%s13999_s3 + $0x10] sm:$0xff] %vm206_vm0, %v6055_v56  ;;  %v11362_v49 = vpop.f32.mrb[67].mxu0 }
 0x2ee   :  { %v6128_v22 = vpop.f32.mrb[66].mxu1 }
 0x2ef   :  { %10515 = vst.msk [vmem:[%s13999_s3 + $0x18] sm:$0xff] %vm206_vm0, %v6128_v22  ;;  %v6201_v6 = vpop.f32.mrb[68].mxu0  ;;  %v11367_v52 = vpop.f32.mrb[67].mxu1 }
 0x2f0   :  { %10516 = vst.msk [vmem:[%s13999_s3 + $0x20] sm:$0xff] %vm206_vm0, %v6201_v6  ;;  %v11372_v54 = vpop.f32.mrb[69].mxu0 }
 0x2f2   :  { %v6274_v10 = vpop.f32.mrb[68].mxu1 }
 0x2f3   :  { %10517 = vst.msk [vmem:[%s13999_s3 + $0x28] sm:$0xff] %vm206_vm0, %v6274_v10  ;;  %v6347_v29 = vpop.f32.mrb[70].mxu0  ;;  %v11377_v30 = vpop.f32.mrb[69].mxu1 }
 0x2f4   :  { %10518 = vst.msk [vmem:[%s13999_s3 + $0x30] sm:$0xff] %vm206_vm0, %v6347_v29  ;;  %v11382_v13 = vpop.f32.mrb[71].mxu0 }
 0x2f6   :  { %v6420_v23 = vpop.f32.mrb[70].mxu1 }
 0x2f7   :  { %10519 = vst.msk [vmem:[%s13999_s3 + $0x38] sm:$0xff] %vm206_vm0, %v6420_v23  ;;  %v6493_v20 = vpop.f32.mrb[72].mxu0  ;;  %v11387_v48 = vpop.f32.mrb[71].mxu1 }
 0x2f8   :  { %10520 = vst.msk [vmem:[%s13999_s3 + $0x40] sm:$0xff] %vm206_vm0, %v6493_v20  ;;  %v11392_v63 = vpop.f32.mrb[73].mxu0 }
 0x2fa   :  { %v6566_v55 = vpop.f32.mrb[72].mxu1 }
 0x2fb   :  { %10521 = vst.msk [vmem:[%s13999_s3 + $0x48] sm:$0xff] %vm206_vm0, %v6566_v55  ;;  %v6639_v24 = vpop.f32.mrb[74].mxu0  ;;  %v11397_v5 = vpop.f32.mrb[73].mxu1 }
 0x2fc   :  { %10522 = vst.msk [vmem:[%s13999_s3 + $0x50] sm:$0xff] %vm206_vm0, %v6639_v24  ;;  %v11402_v8 = vpop.f32.mrb[75].mxu0 }
 0x2fe   :  { %v6712_v11 = vpop.f32.mrb[74].mxu1 }
 0x2ff   :  { %10523 = vst.msk [vmem:[%s13999_s3 + $0x58] sm:$0xff] %vm206_vm0, %v6712_v11  ;;  %v6785_v44 = vpop.f32.mrb[76].mxu0  ;;  %v11407_v33 = vpop.f32.mrb[75].mxu1 }
 0x300   :  { %10524 = vst.msk [vmem:[%s13999_s3 + $0x60] sm:$0xff] %vm206_vm0, %v6785_v44  ;;  %v11412_v17 = vpop.f32.mrb[77].mxu0 }
 0x302   :  { %v6858_v12 = vpop.f32.mrb[76].mxu1 }
 0x303   :  { %10525 = vst.msk [vmem:[%s13999_s3 + $0x68] sm:$0xff] %vm206_vm0, %v6858_v12  ;;  %v6931_v32 = vpop.f32.mrb[78].mxu0  ;;  %v11417_v39 = vpop.f32.mrb[77].mxu1 }
 0x304   :  { %10526 = vst.msk [vmem:[%s13999_s3 + $0x70] sm:$0xff] %vm206_vm0, %v6931_v32  ;;  %v11422_v1 = vpop.f32.mrb[79].mxu0 }
 0x306   :  { %v7004_v2 = vpop.f32.mrb[78].mxu1 }
 0x307   :  { %10527 = vst.msk [vmem:[%s13999_s3 + $0x78] sm:$0xff] %vm206_vm0, %v7004_v2  ;;  %v7077_v53 = vpop.f32.mrb[80].mxu0  ;;  %v11427_v57 = vpop.f32.mrb[79].mxu1 }
 0x308   :  { %10528 = vst.msk [vmem:[%s13999_s3 + $0x80] sm:$0xff] %vm206_vm0, %v7077_v53  ;;  %v11432_v15 = vpop.f32.mrb[81].mxu0 }
 0x30a   :  { %v7150_v47 = vpop.f32.mrb[80].mxu1 }
 0x30b   :  { %10529 = vst.msk [vmem:[%s13999_s3 + $0x88] sm:$0xff] %vm206_vm0, %v7150_v47  ;;  %v7223_v19 = vpop.f32.mrb[82].mxu0  ;;  %v11437_v26 = vpop.f32.mrb[81].mxu1 }
 0x30c   :  { %10530 = vst.msk [vmem:[%s13999_s3 + $0x90] sm:$0xff] %vm206_vm0, %v7223_v19  ;;  %v11442_v38 = vpop.f32.mrb[83].mxu0 }
 0x30e   :  { %v7296_v16 = vpop.f32.mrb[82].mxu1 }
 0x30f   :  { %10531 = vst.msk [vmem:[%s13999_s3 + $0x98] sm:$0xff] %vm206_vm0, %v7296_v16  ;;  %v7369_v21 = vpop.f32.mrb[84].mxu0  ;;  %v11447_v41 = vpop.f32.mrb[83].mxu1 }
 0x310   :  { %10532 = vst.msk [vmem:[%s13999_s3 + $0xa0] sm:$0xff] %vm206_vm0, %v7369_v21  ;;  %v11452_v61 = vpop.f32.mrb[85].mxu0 }
 0x312   :  { %v7442_v58 = vpop.f32.mrb[84].mxu1 }
 0x313   :  { %10533 = vst.msk [vmem:[%s13999_s3 + $0xa8] sm:$0xff] %vm206_vm0, %v7442_v58  ;;  %v7515_v27 = vpop.f32.mrb[86].mxu0  ;;  %v11457_v3 = vpop.f32.mrb[85].mxu1 }
 0x314   :  { %10534 = vst.msk [vmem:[%s13999_s3 + $0xb0] sm:$0xff] %vm206_vm0, %v7515_v27  ;;  %v11462_v37 = vpop.f32.mrb[87].mxu0 }
 0x316   :  { %v7588_v35 = vpop.f32.mrb[86].mxu1 }
 0x317   :  { %10535 = vst.msk [vmem:[%s13999_s3 + $0xb8] sm:$0xff] %vm206_vm0, %v7588_v35  ;;  %v7661_v46 = vpop.f32.mrb[88].mxu0  ;;  %v11467_v34 = vpop.f32.mrb[87].mxu1 }
 0x318   :  { %10536 = vst.msk [vmem:[%s13999_s3 + $0xc0] sm:$0xff] %vm206_vm0, %v7661_v46  ;;  %v11472_v14 = vpop.f32.mrb[89].mxu0 }
 0x31a   :  { %v7734_v0 = vpop.f32.mrb[88].mxu1 }
 0x31b   :  { %10537 = vst.msk [vmem:[%s13999_s3 + $0xc8] sm:$0xff] %vm206_vm0, %v7734_v0  ;;  %v7807_v9 = vpop.f32.mrb[90].mxu0  ;;  %v11477_v42 = vpop.f32.mrb[89].mxu1 }
 0x31c   :  { %10538 = vst.msk [vmem:[%s13999_s3 + $0xd0] sm:$0xff] %vm206_vm0, %v7807_v9  ;;  %v11482_v50 = vpop.f32.mrb[91].mxu0 }
 0x31e   :  { %v7880_v7 = vpop.f32.mrb[90].mxu1 }
 0x31f   :  { %10539 = vst.msk [vmem:[%s13999_s3 + $0xd8] sm:$0xff] %vm206_vm0, %v7880_v7  ;;  %v7953_v36 = vpop.f32.mrb[92].mxu0  ;;  %v11487_v62 = vpop.f32.mrb[91].mxu1 }
 0x320   :  { %10540 = vst.msk [vmem:[%s13999_s3 + $0xe0] sm:$0xff] %vm206_vm0, %v7953_v36  ;;  %v11492_v60 = vpop.f32.mrb[93].mxu0 }
 0x322   :  { %v8026_v43 = vpop.f32.mrb[92].mxu1 }
 0x323   :  { %10541 = vst.msk [vmem:[%s13999_s3 + $0xe8] sm:$0xff] %vm206_vm0, %v8026_v43  ;;  %v8099_v31 = vpop.f32.mrb[94].mxu0  ;;  %v11497_v28 = vpop.f32.mrb[93].mxu1 }
 0x324   :  { %10542 = vst.msk [vmem:[%s13999_s3 + $0xf0] sm:$0xff] %vm206_vm0, %v8099_v31  ;;  %v11502_v59 = vpop.f32.mrb[95].mxu0 }
 0x326   :  { %v8172_v4 = vpop.f32.mrb[94].mxu1 }
 0x327   :  { %10543 = vst.msk [vmem:[%s13999_s3 + $0xf8] sm:$0xff] %vm206_vm0, %v8172_v4  ;;  %v8245_v45 = vpop.f32.mrb[96].mxu0  ;;  %v11507_v40 = vpop.f32.mrb[95].mxu1 }
 0x328   :  { %10544 = vst.msk [vmem:[%s13999_s3 + $0x100] sm:$0xff] %vm206_vm0, %v8245_v45  ;;  %v11512_v51 = vpop.f32.mrb[97].mxu0 }
 0x32a   :  { %v8318_v18 = vpop.f32.mrb[96].mxu1 }
 0x32b   :  { %10545 = vst.msk [vmem:[%s13999_s3 + $0x108] sm:$0xff] %vm206_vm0, %v8318_v18  ;;  %v8391_v56 = vpop.f32.mrb[98].mxu0  ;;  %v11517_v25 = vpop.f32.mrb[97].mxu1 }
 0x32c   :  { %10546 = vst.msk [vmem:[%s13999_s3 + $0x110] sm:$0xff] %vm206_vm0, %v8391_v56  ;;  %v11522_v49 = vpop.f32.mrb[99].mxu0 }
 0x32e   :  { %v8464_v22 = vpop.f32.mrb[98].mxu1 }
 0x32f   :  { %10547 = vst.msk [vmem:[%s13999_s3 + $0x118] sm:$0xff] %vm206_vm0, %v8464_v22  ;;  %v8537_v6 = vpop.f32.mrb[100].mxu0  ;;  %v11527_v52 = vpop.f32.mrb[99].mxu1 }
 0x330   :  { %10548 = vst.msk [vmem:[%s13999_s3 + $0x120] sm:$0xff] %vm206_vm0, %v8537_v6  ;;  %v11532_v54 = vpop.f32.mrb[101].mxu0 }
 0x332   :  { %v8610_v10 = vpop.f32.mrb[100].mxu1 }
 0x333   :  { %10549 = vst.msk [vmem:[%s13999_s3 + $0x128] sm:$0xff] %vm206_vm0, %v8610_v10  ;;  %v8683_v29 = vpop.f32.mrb[102].mxu0  ;;  %v11537_v30 = vpop.f32.mrb[101].mxu1 }
 0x334   :  { %10550 = vst.msk [vmem:[%s13999_s3 + $0x130] sm:$0xff] %vm206_vm0, %v8683_v29  ;;  %v11542_v13 = vpop.f32.mrb[103].mxu0 }
 0x336   :  { %v8756_v23 = vpop.f32.mrb[102].mxu1 }
 0x337   :  { %10551 = vst.msk [vmem:[%s13999_s3 + $0x138] sm:$0xff] %vm206_vm0, %v8756_v23  ;;  %v8829_v20 = vpop.f32.mrb[104].mxu0  ;;  %v11547_v48 = vpop.f32.mrb[103].mxu1 }
 0x338   :  { %10552 = vst.msk [vmem:[%s13999_s3 + $0x140] sm:$0xff] %vm206_vm0, %v8829_v20  ;;  %v11552_v63 = vpop.f32.mrb[105].mxu0 }
 0x33a   :  { %v8902_v55 = vpop.f32.mrb[104].mxu1 }
 0x33b   :  { %10553 = vst.msk [vmem:[%s13999_s3 + $0x148] sm:$0xff] %vm206_vm0, %v8902_v55  ;;  %v8975_v24 = vpop.f32.mrb[106].mxu0  ;;  %v11557_v5 = vpop.f32.mrb[105].mxu1 }
 0x33c   :  { %10554 = vst.msk [vmem:[%s13999_s3 + $0x150] sm:$0xff] %vm206_vm0, %v8975_v24  ;;  %v11562_v8 = vpop.f32.mrb[107].mxu0 }
 0x33e   :  { %v9048_v11 = vpop.f32.mrb[106].mxu1 }
 0x33f   :  { %10555 = vst.msk [vmem:[%s13999_s3 + $0x158] sm:$0xff] %vm206_vm0, %v9048_v11  ;;  %v9121_v44 = vpop.f32.mrb[108].mxu0  ;;  %v11567_v33 = vpop.f32.mrb[107].mxu1 }
 0x340   :  { %10556 = vst.msk [vmem:[%s13999_s3 + $0x160] sm:$0xff] %vm206_vm0, %v9121_v44  ;;  %v11572_v17 = vpop.f32.mrb[109].mxu0 }
 0x342   :  { %v9194_v12 = vpop.f32.mrb[108].mxu1 }
 0x343   :  { %10557 = vst.msk [vmem:[%s13999_s3 + $0x168] sm:$0xff] %vm206_vm0, %v9194_v12  ;;  %v9267_v32 = vpop.f32.mrb[110].mxu0  ;;  %v11577_v39 = vpop.f32.mrb[109].mxu1 }
 0x344   :  { %10558 = vst.msk [vmem:[%s13999_s3 + $0x170] sm:$0xff] %vm206_vm0, %v9267_v32  ;;  %v11582_v1 = vpop.f32.mrb[111].mxu0 }
 0x346   :  { %v9340_v2 = vpop.f32.mrb[110].mxu1 }
 0x347   :  { %10559 = vst.msk [vmem:[%s13999_s3 + $0x178] sm:$0xff] %vm206_vm0, %v9340_v2  ;;  %v9413_v53 = vpop.f32.mrb[112].mxu0  ;;  %v11587_v57 = vpop.f32.mrb[111].mxu1 }
 0x348   :  { %10560 = vst.msk [vmem:[%s13999_s3 + $0x180] sm:$0xff] %vm206_vm0, %v9413_v53  ;;  %v11592_v15 = vpop.f32.mrb[113].mxu0 }
 0x34a   :  { %v9486_v47 = vpop.f32.mrb[112].mxu1 }
 0x34b   :  { %10561 = vst.msk [vmem:[%s13999_s3 + $0x188] sm:$0xff] %vm206_vm0, %v9486_v47  ;;  %v9559_v19 = vpop.f32.mrb[114].mxu0  ;;  %v11597_v26 = vpop.f32.mrb[113].mxu1 }
 0x34c   :  { %10562 = vst.msk [vmem:[%s13999_s3 + $0x190] sm:$0xff] %vm206_vm0, %v9559_v19  ;;  %v11602_v38 = vpop.f32.mrb[115].mxu0 }
 0x34e   :  { %v9632_v16 = vpop.f32.mrb[114].mxu1 }
 0x34f   :  { %10563 = vst.msk [vmem:[%s13999_s3 + $0x198] sm:$0xff] %vm206_vm0, %v9632_v16  ;;  %v9705_v21 = vpop.f32.mrb[116].mxu0  ;;  %v11607_v41 = vpop.f32.mrb[115].mxu1 }
 0x350   :  { %10564 = vst.msk [vmem:[%s13999_s3 + $0x1a0] sm:$0xff] %vm206_vm0, %v9705_v21  ;;  %v11612_v61 = vpop.f32.mrb[117].mxu0 }
 0x352   :  { %v9778_v58 = vpop.f32.mrb[116].mxu1 }
 0x353   :  { %10565 = vst.msk [vmem:[%s13999_s3 + $0x1a8] sm:$0xff] %vm206_vm0, %v9778_v58  ;;  %v9851_v27 = vpop.f32.mrb[118].mxu0  ;;  %v11617_v3 = vpop.f32.mrb[117].mxu1 }
 0x354   :  { %10566 = vst.msk [vmem:[%s13999_s3 + $0x1b0] sm:$0xff] %vm206_vm0, %v9851_v27  ;;  %v11622_v37 = vpop.f32.mrb[119].mxu0 }
 0x356   :  { %v9924_v35 = vpop.f32.mrb[118].mxu1 }
 0x357   :  { %10567 = vst.msk [vmem:[%s13999_s3 + $0x1b8] sm:$0xff] %vm206_vm0, %v9924_v35  ;;  %v9997_v46 = vpop.f32.mrb[120].mxu0  ;;  %v11627_v34 = vpop.f32.mrb[119].mxu1 }
 0x358   :  { %10568 = vst.msk [vmem:[%s13999_s3 + $0x1c0] sm:$0xff] %vm206_vm0, %v9997_v46  ;;  %v11632_v14 = vpop.f32.mrb[121].mxu0 }
 0x35a   :  { %v10070_v0 = vpop.f32.mrb[120].mxu1 }
 0x35b   :  { %10569 = vst.msk [vmem:[%s13999_s3 + $0x1c8] sm:$0xff] %vm206_vm0, %v10070_v0  ;;  %v10143_v9 = vpop.f32.mrb[122].mxu0  ;;  %v11637_v42 = vpop.f32.mrb[121].mxu1 }
 0x35c   :  { %10570 = vst.msk [vmem:[%s13999_s3 + $0x1d0] sm:$0xff] %vm206_vm0, %v10143_v9  ;;  %v11642_v50 = vpop.f32.mrb[123].mxu0 }
 0x35e   :  { %v10216_v7 = vpop.f32.mrb[122].mxu1 }
 0x35f   :  { %10571 = vst.msk [vmem:[%s13999_s3 + $0x1d8] sm:$0xff] %vm206_vm0, %v10216_v7  ;;  %v10289_v36 = vpop.f32.mrb[124].mxu0  ;;  %v11647_v62 = vpop.f32.mrb[123].mxu1 }
 0x360   :  { %10572 = vst.msk [vmem:[%s13999_s3 + $0x1e0] sm:$0xff] %vm206_vm0, %v10289_v36  ;;  %v11652_v60 = vpop.f32.mrb[125].mxu0 }
 0x362   :  { %v10362_v43 = vpop.f32.mrb[124].mxu1 }
 0x363   :  { %10573 = vst.msk [vmem:[%s13999_s3 + $0x1e8] sm:$0xff] %vm206_vm0, %v10362_v43  ;;  %v10435_v31 = vpop.f32.mrb[126].mxu0  ;;  %v11657_v28 = vpop.f32.mrb[125].mxu1 }
 0x364   :  { %10574 = vst.msk [vmem:[%s13999_s3 + $0x1f0] sm:$0xff] %vm206_vm0, %v10435_v31  ;;  %v11662_v59 = vpop.f32.mrb[127].mxu0 }
 0x366   :  { %v10508_v4 = vpop.f32.mrb[126].mxu1 }
 0x367   :  { %10575 = vst.msk [vmem:[%s13999_s3 + $0x1f8] sm:$0xff] %vm206_vm0, %v10508_v4  ;;  %v11667_v45 = vpop.f32.mrb[127].mxu1 }

</bundles_post_ra>
